<compile_context>
chip_gen: v6e
topology: v6e:2x2x1
jax: 0.10.0
libtpu: 0.0.40
codegen_flags: <defaults>
</compile_context>

<pallas_src>
import jax
import jax.numpy as jnp
import numpy as np
from jax import lax
from jax.experimental import pallas as pl
from jax.experimental.pallas import tpu as pltpu


# ----------------------------------------------------------------------------
# Fused kernel: encoder -> (decoder ++ layer-0 input projection) -> 2-layer
# LSTM recurrence (head inputs staged) -> wide head + mean over time.
# ----------------------------------------------------------------------------
def _fused_forward_kernel(x_ref, we_ref, be_ref, wcat_ref, bcat_ref,
                          whh0_ref, wcat1_ref, b1_ref,
                          w2_ref, b2_ref, w3_ref, b3_ref,
                          out_ref, dec_ref,
                          xg0_ref, h1s_ref):
    TB, F = x_ref.shape
    H = we_ref.shape[1]
    B = out_ref.shape[0]
    O = w3_ref.shape[1]
    T = TB // B
    f32 = jnp.float32

    # --- encoder: one wide (T*B, F) x (F, H) matmul ---------------------------
    enc = jnp.maximum(
        jnp.dot(x_ref[...].astype(f32), we_ref[...], preferred_element_type=f32)
        + be_ref[...], 0.0)

    # --- decoder + hoisted layer-0 input projection, fused along N ------------
    # one (T*B, H) x (H, F + 4H) dot; dec / xg0 are 128-lane-aligned col slices.
    proj = jnp.dot(enc, wcat_ref[...], preferred_element_type=f32) + bcat_ref[...]
    dec_ref[...] = jnp.maximum(proj[:, :F], 0.0).astype(dec_ref.dtype)
    xg0_ref[...] = proj[:, F:]          # (T*B, 4H), staged in VMEM scratch

    # Hoisted bias broadcast (JAX does not CSE broadcast_in_dim; do it once).
    b1 = jnp.broadcast_to(b1_ref[...], (B, 4 * H))

    def cell(gates, c):
        # grouped nonlinearities: one sigmoid for (i,f), one for o, one tanh for g
        sif = jax.nn.sigmoid(gates[:, 0:2 * H])
        g = jnp.tanh(gates[:, 2 * H:3 * H])
        o = jax.nn.sigmoid(gates[:, 3 * H:4 * H])
        c_new = sif[:, H:2 * H] * c + sif[:, 0:H] * g
        h_new = o * jnp.tanh(c_new)
        return h_new, c_new

    h0 = jnp.zeros((B, H), f32)
    c0 = jnp.zeros((B, H), f32)
    h1 = jnp.zeros((B, H), f32)
    c1 = jnp.zeros((B, H), f32)

    # T is small & static: fully unrolled time loop -> zero per-step grid
    # overhead and cross-step instruction overlap.  Only the two recurrent
    # dots + gate nonlinearities remain on the serial chain; weight refs are
    # indexed at the point of use (no large live values across the unroll).
    for t in range(T):
        # layer 0: only the recurrent dot is in the loop (input proj hoisted)
        g0 = xg0_ref[t * B:(t + 1) * B, :] + jnp.dot(
            h0, whh0_ref[...], preferred_element_type=f32)
        h0, c0 = cell(g0, c0)
        # layer 1: single fused K=2H dot over concat([x_t(=h0), h1])
        xh = jnp.concatenate([h0, h1], axis=-1)
        g1 = jnp.dot(xh, wcat1_ref[...], preferred_element_type=f32) + b1
        h1, c1 = cell(g1, c1)
        # stage h1 for the hoisted head (never leaves VMEM)
        h1s_ref[t * B:(t + 1) * B, :] = h1

    # --- head (Linear -> ReLU -> Linear) as wide M = T*B matmuls --------------
    h1_all = h1s_ref[...]
    hid = jnp.maximum(
        jnp.dot(h1_all, w2_ref[...], preferred_element_type=f32) + b2_ref[...],
        0.0)
    out_all = jnp.dot(hid, w3_ref[...], preferred_element_type=f32)
    # mean over time; b3 added once after the mean (equivalent to per-step +b3)
    out_sum = jnp.sum(out_all.reshape(T, B, O), axis=0)
    out_ref[...] = (out_sum * (1.0 / T) + b3_ref[...]).astype(out_ref.dtype)


# ----------------------------------------------------------------------------
# Host wrapper: single pallas_call, whole arrays as VMEM blocks (no grid).
# Reshapes (free XLA metadata) happen here, not inside the kernel.
# ----------------------------------------------------------------------------
@jax.jit
def model_forward(x, p):
    T, B, F = x.shape
    H = p["We"].shape[1]
    O = p["W3"].shape[1]
    # Fuse decoder weight and layer-0 input-projection weight along N.
    wcat_dec = jnp.concatenate([p["Wd"], p["wih0"]], axis=1)     # (H, F+4H)
    bcat_dec = jnp.concatenate([p["bd"], p["b0"]], axis=0)       # (F+4H,)
    # Fuse layer-1's two weight matrices into one (2H, 4H) operand.
    wcat1 = jnp.concatenate([p["wih1"], p["whh1"]], axis=0)
    row = lambda b: b.reshape(1, -1)   # keep biases 2D for TPU layout

    out, dec2d = pl.pallas_call(
        _fused_forward_kernel,
        out_shape=(jax.ShapeDtypeStruct((B, O), x.dtype),
                   jax.ShapeDtypeStruct((T * B, F), x.dtype)),
        scratch_shapes=[pltpu.VMEM((T * B, 4 * H), jnp.float32),   # xg0
                        pltpu.VMEM((T * B, H), jnp.float32)],      # staged h1
    )(x.reshape(T * B, F),
      p["We"], row(p["be"]),
      wcat_dec, row(bcat_dec),
      p["whh0"],
      wcat1, row(p["b1"]),
      p["W2"], row(p["b2"]), p["W3"], row(p["b3"]))
    return out, dec2d.reshape(T, B, F)


# ----------------------------------------------------------------------------
# Pure-JAX reference (for correctness check)
# ----------------------------------------------------------------------------
def ref_forward(x, p):
    enc = jax.nn.relu(x @ p["We"] + p["be"])
    dec = jax.nn.relu(enc @ p["Wd"] + p["bd"])
    H = p["We"].shape[1]

    def run_layer(xs, wih, whh, b):
        B = xs.shape[1]
        h0 = jnp.zeros((B, H), jnp.float32)
        c0 = jnp.zeros((B, H), jnp.float32)

        def step(carry, x_t):
            h, c = carry
            gates = x_t @ wih + h @ whh + b
            i = jax.nn.sigmoid(gates[:, 0 * H:1 * H])
            f = jax.nn.sigmoid(gates[:, 1 * H:2 * H])
            g = jnp.tanh(gates[:, 2 * H:3 * H])
            o = jax.nn.sigmoid(gates[:, 3 * H:4 * H])
            c_new = f * c + i * g
            h_new = o * jnp.tanh(c_new)
            return (h_new, c_new), h_new

        _, hs = lax.scan(step, (h0, c0), xs)
        return hs

    h1 = run_layer(enc, p["wih0"], p["whh0"], p["b0"])
    h2 = run_layer(h1, p["wih1"], p["whh1"], p["b1"])
    out = jax.nn.relu(h2 @ p["W2"] + p["b2"]) @ p["W3"] + p["b3"]
    return jnp.mean(out, axis=0), dec


# ----------------------------------------------------------------------------
# Main
# ----------------------------------------------------------------------------
if __name__ == "__main__":
    # Small shapes consistent with the module: input_size = hidden_size =
    # output_size = 128, num_layer = 2, seq T = 8, batch B = 8.
    T, B = 8, 8
    F = H = O = 128

    key = jax.random.PRNGKey(0)
    ks = jax.random.split(key, 16)
    s = 1.0 / np.sqrt(H)
    u = lambda k, shape: jax.random.uniform(k, shape, jnp.float32, -s, s)

    params = {
        "We": u(ks[0], (F, H)),    "be": u(ks[1], (H,)),     # encoder Linear
        "Wd": u(ks[2], (H, F)),    "bd": u(ks[3], (F,)),     # decoder Linear
        "wih0": u(ks[4], (H, 4 * H)), "whh0": u(ks[5], (H, 4 * H)),
        "b0": u(ks[6], (4 * H,)),                             # = b_ih_l0 + b_hh_l0
        "wih1": u(ks[7], (H, 4 * H)), "whh1": u(ks[8], (H, 4 * H)),
        "b1": u(ks[9], (4 * H,)),                             # = b_ih_l1 + b_hh_l1
        "W2": u(ks[10], (H, H)),   "b2": u(ks[11], (H,)),     # layer2 Linear
        "W3": u(ks[12], (H, O)),   "b3": u(ks[13], (O,)),     # layer3 Linear
    }

    x = jax.random.normal(ks[14], (T, B, F), jnp.float32)

    out, decode_x = model_forward(x, params)
    out = jax.block_until_ready(out)
    decode_x = jax.block_until_ready(decode_x)

    out_ref, dec_ref = ref_forward(x, params)
    np.testing.assert_allclose(np.asarray(out), np.asarray(out_ref),
                               rtol=5e-5, atol=5e-5)
    np.testing.assert_allclose(np.asarray(decode_x), np.asarray(dec_ref),
                               rtol=5e-5, atol=5e-5)

    assert out.shape == (B, O) and decode_x.shape == (T, B, F)
    print("KERNEL_OK")
</pallas_src>

<mosaic_0001>
module attributes {stable_mosaic.version = 11 : i64} {
  func.func @_fused_forward_kernel(%arg0: memref<64x128xf32, #tpu.memory_space<vmem>>, %arg1: memref<128x128xf32, #tpu.memory_space<vmem>>, %arg2: memref<1x128xf32, #tpu.memory_space<vmem>>, %arg3: memref<128x640xf32, #tpu.memory_space<vmem>>, %arg4: memref<1x640xf32, #tpu.memory_space<vmem>>, %arg5: memref<128x512xf32, #tpu.memory_space<vmem>>, %arg6: memref<256x512xf32, #tpu.memory_space<vmem>>, %arg7: memref<1x512xf32, #tpu.memory_space<vmem>>, %arg8: memref<128x128xf32, #tpu.memory_space<vmem>>, %arg9: memref<1x128xf32, #tpu.memory_space<vmem>>, %arg10: memref<128x128xf32, #tpu.memory_space<vmem>>, %arg11: memref<1x128xf32, #tpu.memory_space<vmem>>, %arg12: memref<8x128xf32, #tpu.memory_space<vmem>>, %arg13: memref<64x128xf32, #tpu.memory_space<vmem>>, %arg14: memref<64x512xf32, #tpu.memory_space<vmem>>, %arg15: memref<64x128xf32, #tpu.memory_space<vmem>>) attributes {dimension_semantics = [], scalar_prefetch = 0 : i64, scratch_operands = 2 : i64, tpu.core_type = #tpu.core_type<tc>} {
    %c0 = arith.constant 0 : index
    %c0_0 = arith.constant 0 : index
    %0 = vector.load %arg0[%c0, %c0_0] : memref<64x128xf32, #tpu.memory_space<vmem>>, vector<64x128xf32>
    %c0_1 = arith.constant 0 : index
    %c0_2 = arith.constant 0 : index
    %1 = vector.load %arg1[%c0_1, %c0_2] : memref<128x128xf32, #tpu.memory_space<vmem>>, vector<128x128xf32>
    %cst = arith.constant dense<0.000000e+00> : vector<64x128xf32>
    %2 = tpu.matmul %0, %1, %cst {dimension_numbers = #tpu.dot_dimension_numbers<[1], [0], [0], [1], [0, 0, 1, 1], [], []>} : vector<64x128xf32>, vector<128x128xf32>, vector<64x128xf32> -> vector<64x128xf32>
    %c0_3 = arith.constant 0 : index
    %c0_4 = arith.constant 0 : index
    %3 = vector.load %arg2[%c0_3, %c0_4] : memref<1x128xf32, #tpu.memory_space<vmem>>, vector<1x128xf32>
    %4 = vector.broadcast %3 : vector<1x128xf32> to vector<64x128xf32>
    %5 = arith.addf %2, %4 : vector<64x128xf32>
    %cst_5 = arith.constant 0.000000e+00 : f32
    %6 = vector.broadcast %cst_5 : f32 to vector<64x128xf32>
    %7 = arith.maximumf %5, %6 : vector<64x128xf32>
    %c0_6 = arith.constant 0 : index
    %c0_7 = arith.constant 0 : index
    %8 = vector.load %arg3[%c0_6, %c0_7] : memref<128x640xf32, #tpu.memory_space<vmem>>, vector<128x640xf32>
    %cst_8 = arith.constant dense<0.000000e+00> : vector<64x640xf32>
    %9 = tpu.matmul %7, %8, %cst_8 {dimension_numbers = #tpu.dot_dimension_numbers<[1], [0], [0], [1], [0, 0, 1, 1], [], []>} : vector<64x128xf32>, vector<128x640xf32>, vector<64x640xf32> -> vector<64x640xf32>
    %c0_9 = arith.constant 0 : index
    %c0_10 = arith.constant 0 : index
    %10 = vector.load %arg4[%c0_9, %c0_10] : memref<1x640xf32, #tpu.memory_space<vmem>>, vector<1x640xf32>
    %11 = vector.broadcast %10 : vector<1x640xf32> to vector<64x640xf32>
    %12 = arith.addf %9, %11 : vector<64x640xf32>
    %13 = vector.extract_strided_slice %12 {offsets = [0, 0], sizes = [64, 128], strides = [1, 1]} : vector<64x640xf32> to vector<64x128xf32>
    %cst_11 = arith.constant 0.000000e+00 : f32
    %14 = vector.broadcast %cst_11 : f32 to vector<64x128xf32>
    %15 = arith.maximumf %13, %14 : vector<64x128xf32>
    %c0_12 = arith.constant 0 : index
    %c0_13 = arith.constant 0 : index
    %16 = vector.load %arg13[%c0_12, %c0_13] : memref<64x128xf32, #tpu.memory_space<vmem>>, vector<64x128xf32>
    tpu.vector_store %arg13[%c0_12, %c0_13], %15 {strides = array<i32>} : memref<64x128xf32, #tpu.memory_space<vmem>>, vector<64x128xf32>,
    %17 = vector.extract_strided_slice %12 {offsets = [0, 128], sizes = [64, 512], strides = [1, 1]} : vector<64x640xf32> to vector<64x512xf32>
    %c0_14 = arith.constant 0 : index
    %c0_15 = arith.constant 0 : index
    %18 = vector.load %arg14[%c0_14, %c0_15] : memref<64x512xf32, #tpu.memory_space<vmem>>, vector<64x512xf32>
    tpu.vector_store %arg14[%c0_14, %c0_15], %17 {strides = array<i32>} : memref<64x512xf32, #tpu.memory_space<vmem>>, vector<64x512xf32>,
    %c0_16 = arith.constant 0 : index
    %c0_17 = arith.constant 0 : index
    %19 = vector.load %arg7[%c0_16, %c0_17] : memref<1x512xf32, #tpu.memory_space<vmem>>, vector<1x512xf32>
    %20 = vector.shape_cast %19 : vector<1x512xf32> to vector<1x512xf32>
    %21 = vector.broadcast %20 : vector<1x512xf32> to vector<8x512xf32>
    %cst_18 = arith.constant 0.000000e+00 : f32
    %22 = vector.broadcast %cst_18 : f32 to vector<8x128xf32>
    %cst_19 = arith.constant 0.000000e+00 : f32
    %23 = vector.broadcast %cst_19 : f32 to vector<8x128xf32>
    %cst_20 = arith.constant 0.000000e+00 : f32
    %24 = vector.broadcast %cst_20 : f32 to vector<8x128xf32>
    %cst_21 = arith.constant 0.000000e+00 : f32
    %25 = vector.broadcast %cst_21 : f32 to vector<8x128xf32>
    %c0_22 = arith.constant 0 : index
    %c0_23 = arith.constant 0 : index
    %26 = vector.load %arg14[%c0_22, %c0_23] : memref<64x512xf32, #tpu.memory_space<vmem>>, vector<8x512xf32>
    %c0_24 = arith.constant 0 : index
    %c0_25 = arith.constant 0 : index
    %27 = vector.load %arg5[%c0_24, %c0_25] : memref<128x512xf32, #tpu.memory_space<vmem>>, vector<128x512xf32>
    %cst_26 = arith.constant dense<0.000000e+00> : vector<8x512xf32>
    %28 = tpu.matmul %22, %27, %cst_26 {dimension_numbers = #tpu.dot_dimension_numbers<[1], [0], [0], [1], [0, 0, 1, 1], [], []>} : vector<8x128xf32>, vector<128x512xf32>, vector<8x512xf32> -> vector<8x512xf32>
    %29 = arith.addf %26, %28 : vector<8x512xf32>
    %30 = vector.extract_strided_slice %29 {offsets = [0, 0], sizes = [8, 256], strides = [1, 1]} : vector<8x512xf32> to vector<8x256xf32>
    %31 = arith.negf %30 : vector<8x256xf32>
    %32 = math.exp %31 : vector<8x256xf32>
    %cst_27 = arith.constant 1.000000e+00 : f32
    %33 = vector.broadcast %cst_27 : f32 to vector<8x256xf32>
    %34 = arith.addf %33, %32 : vector<8x256xf32>
    %35 = arith.divf %33, %34 : vector<8x256xf32>
    %36 = vector.extract_strided_slice %29 {offsets = [0, 256], sizes = [8, 128], strides = [1, 1]} : vector<8x512xf32> to vector<8x128xf32>
    %37 = math.tanh %36 : vector<8x128xf32>
    %38 = vector.extract_strided_slice %29 {offsets = [0, 384], sizes = [8, 128], strides = [1, 1]} : vector<8x512xf32> to vector<8x128xf32>
    %39 = arith.negf %38 : vector<8x128xf32>
    %40 = math.exp %39 : vector<8x128xf32>
    %cst_28 = arith.constant 1.000000e+00 : f32
    %41 = vector.broadcast %cst_28 : f32 to vector<8x128xf32>
    %42 = arith.addf %41, %40 : vector<8x128xf32>
    %43 = arith.divf %41, %42 : vector<8x128xf32>
    %44 = vector.extract_strided_slice %35 {offsets = [0, 128], sizes = [8, 128], strides = [1, 1]} : vector<8x256xf32> to vector<8x128xf32>
    %45 = arith.mulf %44, %23 : vector<8x128xf32>
    %46 = vector.extract_strided_slice %35 {offsets = [0, 0], sizes = [8, 128], strides = [1, 1]} : vector<8x256xf32> to vector<8x128xf32>
    %47 = arith.mulf %46, %37 : vector<8x128xf32>
    %48 = arith.addf %45, %47 : vector<8x128xf32>
    %49 = math.tanh %48 : vector<8x128xf32>
    %50 = arith.mulf %43, %49 : vector<8x128xf32>
    %51 = tpu.concatenate %50, %24 in 1 : vector<8x128xf32>, vector<8x128xf32> -> vector<8x256xf32>
    %c0_29 = arith.constant 0 : index
    %c0_30 = arith.constant 0 : index
    %52 = vector.load %arg6[%c0_29, %c0_30] : memref<256x512xf32, #tpu.memory_space<vmem>>, vector<256x512xf32>
    %cst_31 = arith.constant dense<0.000000e+00> : vector<8x512xf32>
    %53 = tpu.matmul %51, %52, %cst_31 {dimension_numbers = #tpu.dot_dimension_numbers<[1], [0], [0], [1], [0, 0, 1, 1], [], []>} : vector<8x256xf32>, vector<256x512xf32>, vector<8x512xf32> -> vector<8x512xf32>
    %54 = arith.addf %53, %21 : vector<8x512xf32>
    %55 = vector.extract_strided_slice %54 {offsets = [0, 0], sizes = [8, 256], strides = [1, 1]} : vector<8x512xf32> to vector<8x256xf32>
    %56 = arith.negf %55 : vector<8x256xf32>
    %57 = math.exp %56 : vector<8x256xf32>
    %cst_32 = arith.constant 1.000000e+00 : f32
    %58 = vector.broadcast %cst_32 : f32 to vector<8x256xf32>
    %59 = arith.addf %58, %57 : vector<8x256xf32>
    %60 = arith.divf %58, %59 : vector<8x256xf32>
    %61 = vector.extract_strided_slice %54 {offsets = [0, 256], sizes = [8, 128], strides = [1, 1]} : vector<8x512xf32> to vector<8x128xf32>
    %62 = math.tanh %61 : vector<8x128xf32>
    %63 = vector.extract_strided_slice %54 {offsets = [0, 384], sizes = [8, 128], strides = [1, 1]} : vector<8x512xf32> to vector<8x128xf32>
    %64 = arith.negf %63 : vector<8x128xf32>
    %65 = math.exp %64 : vector<8x128xf32>
    %cst_33 = arith.constant 1.000000e+00 : f32
    %66 = vector.broadcast %cst_33 : f32 to vector<8x128xf32>
    %67 = arith.addf %66, %65 : vector<8x128xf32>
    %68 = arith.divf %66, %67 : vector<8x128xf32>
    %69 = vector.extract_strided_slice %60 {offsets = [0, 128], sizes = [8, 128], strides = [1, 1]} : vector<8x256xf32> to vector<8x128xf32>
    %70 = arith.mulf %69, %25 : vector<8x128xf32>
    %71 = vector.extract_strided_slice %60 {offsets = [0, 0], sizes = [8, 128], strides = [1, 1]} : vector<8x256xf32> to vector<8x128xf32>
    %72 = arith.mulf %71, %62 : vector<8x128xf32>
    %73 = arith.addf %70, %72 : vector<8x128xf32>
    %74 = math.tanh %73 : vector<8x128xf32>
    %75 = arith.mulf %68, %74 : vector<8x128xf32>
    %c0_34 = arith.constant 0 : index
    %c0_35 = arith.constant 0 : index
    %76 = vector.load %arg15[%c0_34, %c0_35] : memref<64x128xf32, #tpu.memory_space<vmem>>, vector<8x128xf32>
    tpu.vector_store %arg15[%c0_34, %c0_35], %75 {strides = array<i32>} : memref<64x128xf32, #tpu.memory_space<vmem>>, vector<8x128xf32>,
    %c8 = arith.constant 8 : index
    %c0_36 = arith.constant 0 : index
    %77 = vector.load %arg14[%c8, %c0_36] : memref<64x512xf32, #tpu.memory_space<vmem>>, vector<8x512xf32>
    %c0_37 = arith.constant 0 : index
    %c0_38 = arith.constant 0 : index
    %78 = vector.load %arg5[%c0_37, %c0_38] : memref<128x512xf32, #tpu.memory_space<vmem>>, vector<128x512xf32>
    %cst_39 = arith.constant dense<0.000000e+00> : vector<8x512xf32>
    %79 = tpu.matmul %50, %78, %cst_39 {dimension_numbers = #tpu.dot_dimension_numbers<[1], [0], [0], [1], [0, 0, 1, 1], [], []>} : vector<8x128xf32>, vector<128x512xf32>, vector<8x512xf32> -> vector<8x512xf32>
    %80 = arith.addf %77, %79 : vector<8x512xf32>
    %81 = vector.extract_strided_slice %80 {offsets = [0, 0], sizes = [8, 256], strides = [1, 1]} : vector<8x512xf32> to vector<8x256xf32>
    %82 = arith.negf %81 : vector<8x256xf32>
    %83 = math.exp %82 : vector<8x256xf32>
    %cst_40 = arith.constant 1.000000e+00 : f32
    %84 = vector.broadcast %cst_40 : f32 to vector<8x256xf32>
    %85 = arith.addf %84, %83 : vector<8x256xf32>
    %86 = arith.divf %84, %85 : vector<8x256xf32>
    %87 = vector.extract_strided_slice %80 {offsets = [0, 256], sizes = [8, 128], strides = [1, 1]} : vector<8x512xf32> to vector<8x128xf32>
    %88 = math.tanh %87 : vector<8x128xf32>
    %89 = vector.extract_strided_slice %80 {offsets = [0, 384], sizes = [8, 128], strides = [1, 1]} : vector<8x512xf32> to vector<8x128xf32>
    %90 = arith.negf %89 : vector<8x128xf32>
    %91 = math.exp %90 : vector<8x128xf32>
    %cst_41 = arith.constant 1.000000e+00 : f32
    %92 = vector.broadcast %cst_41 : f32 to vector<8x128xf32>
    %93 = arith.addf %92, %91 : vector<8x128xf32>
    %94 = arith.divf %92, %93 : vector<8x128xf32>
    %95 = vector.extract_strided_slice %86 {offsets = [0, 128], sizes = [8, 128], strides = [1, 1]} : vector<8x256xf32> to vector<8x128xf32>
    %96 = arith.mulf %95, %48 : vector<8x128xf32>
    %97 = vector.extract_strided_slice %86 {offsets = [0, 0], sizes = [8, 128], strides = [1, 1]} : vector<8x256xf32> to vector<8x128xf32>
    %98 = arith.mulf %97, %88 : vector<8x128xf32>
    %99 = arith.addf %96, %98 : vector<8x128xf32>
    %100 = math.tanh %99 : vector<8x128xf32>
    %101 = arith.mulf %94, %100 : vector<8x128xf32>
    %102 = tpu.concatenate %101, %75 in 1 : vector<8x128xf32>, vector<8x128xf32> -> vector<8x256xf32>
    %c0_42 = arith.constant 0 : index
    %c0_43 = arith.constant 0 : index
    %103 = vector.load %arg6[%c0_42, %c0_43] : memref<256x512xf32, #tpu.memory_space<vmem>>, vector<256x512xf32>
    %cst_44 = arith.constant dense<0.000000e+00> : vector<8x512xf32>
    %104 = tpu.matmul %102, %103, %cst_44 {dimension_numbers = #tpu.dot_dimension_numbers<[1], [0], [0], [1], [0, 0, 1, 1], [], []>} : vector<8x256xf32>, vector<256x512xf32>, vector<8x512xf32> -> vector<8x512xf32>
    %105 = arith.addf %104, %21 : vector<8x512xf32>
    %106 = vector.extract_strided_slice %105 {offsets = [0, 0], sizes = [8, 256], strides = [1, 1]} : vector<8x512xf32> to vector<8x256xf32>
    %107 = arith.negf %106 : vector<8x256xf32>
    %108 = math.exp %107 : vector<8x256xf32>
    %cst_45 = arith.constant 1.000000e+00 : f32
    %109 = vector.broadcast %cst_45 : f32 to vector<8x256xf32>
    %110 = arith.addf %109, %108 : vector<8x256xf32>
    %111 = arith.divf %109, %110 : vector<8x256xf32>
    %112 = vector.extract_strided_slice %105 {offsets = [0, 256], sizes = [8, 128], strides = [1, 1]} : vector<8x512xf32> to vector<8x128xf32>
    %113 = math.tanh %112 : vector<8x128xf32>
    %114 = vector.extract_strided_slice %105 {offsets = [0, 384], sizes = [8, 128], strides = [1, 1]} : vector<8x512xf32> to vector<8x128xf32>
    %115 = arith.negf %114 : vector<8x128xf32>
    %116 = math.exp %115 : vector<8x128xf32>
    %cst_46 = arith.constant 1.000000e+00 : f32
    %117 = vector.broadcast %cst_46 : f32 to vector<8x128xf32>
    %118 = arith.addf %117, %116 : vector<8x128xf32>
    %119 = arith.divf %117, %118 : vector<8x128xf32>
    %120 = vector.extract_strided_slice %111 {offsets = [0, 128], sizes = [8, 128], strides = [1, 1]} : vector<8x256xf32> to vector<8x128xf32>
    %121 = arith.mulf %120, %73 : vector<8x128xf32>
    %122 = vector.extract_strided_slice %111 {offsets = [0, 0], sizes = [8, 128], strides = [1, 1]} : vector<8x256xf32> to vector<8x128xf32>
    %123 = arith.mulf %122, %113 : vector<8x128xf32>
    %124 = arith.addf %121, %123 : vector<8x128xf32>
    %125 = math.tanh %124 : vector<8x128xf32>
    %126 = arith.mulf %119, %125 : vector<8x128xf32>
    %c8_47 = arith.constant 8 : index
    %c0_48 = arith.constant 0 : index
    %127 = vector.load %arg15[%c8_47, %c0_48] : memref<64x128xf32, #tpu.memory_space<vmem>>, vector<8x128xf32>
    tpu.vector_store %arg15[%c8_47, %c0_48], %126 {strides = array<i32>} : memref<64x128xf32, #tpu.memory_space<vmem>>, vector<8x128xf32>,
    %c16 = arith.constant 16 : index
    %c0_49 = arith.constant 0 : index
    %128 = vector.load %arg14[%c16, %c0_49] : memref<64x512xf32, #tpu.memory_space<vmem>>, vector<8x512xf32>
    %c0_50 = arith.constant 0 : index
    %c0_51 = arith.constant 0 : index
    %129 = vector.load %arg5[%c0_50, %c0_51] : memref<128x512xf32, #tpu.memory_space<vmem>>, vector<128x512xf32>
    %cst_52 = arith.constant dense<0.000000e+00> : vector<8x512xf32>
    %130 = tpu.matmul %101, %129, %cst_52 {dimension_numbers = #tpu.dot_dimension_numbers<[1], [0], [0], [1], [0, 0, 1, 1], [], []>} : vector<8x128xf32>, vector<128x512xf32>, vector<8x512xf32> -> vector<8x512xf32>
    %131 = arith.addf %128, %130 : vector<8x512xf32>
    %132 = vector.extract_strided_slice %131 {offsets = [0, 0], sizes = [8, 256], strides = [1, 1]} : vector<8x512xf32> to vector<8x256xf32>
    %133 = arith.negf %132 : vector<8x256xf32>
    %134 = math.exp %133 : vector<8x256xf32>
    %cst_53 = arith.constant 1.000000e+00 : f32
    %135 = vector.broadcast %cst_53 : f32 to vector<8x256xf32>
    %136 = arith.addf %135, %134 : vector<8x256xf32>
    %137 = arith.divf %135, %136 : vector<8x256xf32>
    %138 = vector.extract_strided_slice %131 {offsets = [0, 256], sizes = [8, 128], strides = [1, 1]} : vector<8x512xf32> to vector<8x128xf32>
    %139 = math.tanh %138 : vector<8x128xf32>
    %140 = vector.extract_strided_slice %131 {offsets = [0, 384], sizes = [8, 128], strides = [1, 1]} : vector<8x512xf32> to vector<8x128xf32>
    %141 = arith.negf %140 : vector<8x128xf32>
    %142 = math.exp %141 : vector<8x128xf32>
    %cst_54 = arith.constant 1.000000e+00 : f32
    %143 = vector.broadcast %cst_54 : f32 to vector<8x128xf32>
    %144 = arith.addf %143, %142 : vector<8x128xf32>
    %145 = arith.divf %143, %144 : vector<8x128xf32>
    %146 = vector.extract_strided_slice %137 {offsets = [0, 128], sizes = [8, 128], strides = [1, 1]} : vector<8x256xf32> to vector<8x128xf32>
    %147 = arith.mulf %146, %99 : vector<8x128xf32>
    %148 = vector.extract_strided_slice %137 {offsets = [0, 0], sizes = [8, 128], strides = [1, 1]} : vector<8x256xf32> to vector<8x128xf32>
    %149 = arith.mulf %148, %139 : vector<8x128xf32>
    %150 = arith.addf %147, %149 : vector<8x128xf32>
    %151 = math.tanh %150 : vector<8x128xf32>
    %152 = arith.mulf %145, %151 : vector<8x128xf32>
    %153 = tpu.concatenate %152, %126 in 1 : vector<8x128xf32>, vector<8x128xf32> -> vector<8x256xf32>
    %c0_55 = arith.constant 0 : index
    %c0_56 = arith.constant 0 : index
    %154 = vector.load %arg6[%c0_55, %c0_56] : memref<256x512xf32, #tpu.memory_space<vmem>>, vector<256x512xf32>
    %cst_57 = arith.constant dense<0.000000e+00> : vector<8x512xf32>
    %155 = tpu.matmul %153, %154, %cst_57 {dimension_numbers = #tpu.dot_dimension_numbers<[1], [0], [0], [1], [0, 0, 1, 1], [], []>} : vector<8x256xf32>, vector<256x512xf32>, vector<8x512xf32> -> vector<8x512xf32>
    %156 = arith.addf %155, %21 : vector<8x512xf32>
    %157 = vector.extract_strided_slice %156 {offsets = [0, 0], sizes = [8, 256], strides = [1, 1]} : vector<8x512xf32> to vector<8x256xf32>
    %158 = arith.negf %157 : vector<8x256xf32>
    %159 = math.exp %158 : vector<8x256xf32>
    %cst_58 = arith.constant 1.000000e+00 : f32
    %160 = vector.broadcast %cst_58 : f32 to vector<8x256xf32>
    %161 = arith.addf %160, %159 : vector<8x256xf32>
    %162 = arith.divf %160, %161 : vector<8x256xf32>
    %163 = vector.extract_strided_slice %156 {offsets = [0, 256], sizes = [8, 128], strides = [1, 1]} : vector<8x512xf32> to vector<8x128xf32>
    %164 = math.tanh %163 : vector<8x128xf32>
    %165 = vector.extract_strided_slice %156 {offsets = [0, 384], sizes = [8, 128], strides = [1, 1]} : vector<8x512xf32> to vector<8x128xf32>
    %166 = arith.negf %165 : vector<8x128xf32>
    %167 = math.exp %166 : vector<8x128xf32>
    %cst_59 = arith.constant 1.000000e+00 : f32
    %168 = vector.broadcast %cst_59 : f32 to vector<8x128xf32>
    %169 = arith.addf %168, %167 : vector<8x128xf32>
    %170 = arith.divf %168, %169 : vector<8x128xf32>
    %171 = vector.extract_strided_slice %162 {offsets = [0, 128], sizes = [8, 128], strides = [1, 1]} : vector<8x256xf32> to vector<8x128xf32>
    %172 = arith.mulf %171, %124 : vector<8x128xf32>
    %173 = vector.extract_strided_slice %162 {offsets = [0, 0], sizes = [8, 128], strides = [1, 1]} : vector<8x256xf32> to vector<8x128xf32>
    %174 = arith.mulf %173, %164 : vector<8x128xf32>
    %175 = arith.addf %172, %174 : vector<8x128xf32>
    %176 = math.tanh %175 : vector<8x128xf32>
    %177 = arith.mulf %170, %176 : vector<8x128xf32>
    %c16_60 = arith.constant 16 : index
    %c0_61 = arith.constant 0 : index
    %178 = vector.load %arg15[%c16_60, %c0_61] : memref<64x128xf32, #tpu.memory_space<vmem>>, vector<8x128xf32>
    tpu.vector_store %arg15[%c16_60, %c0_61], %177 {strides = array<i32>} : memref<64x128xf32, #tpu.memory_space<vmem>>, vector<8x128xf32>,
    %c24 = arith.constant 24 : index
    %c0_62 = arith.constant 0 : index
    %179 = vector.load %arg14[%c24, %c0_62] : memref<64x512xf32, #tpu.memory_space<vmem>>, vector<8x512xf32>
    %c0_63 = arith.constant 0 : index
    %c0_64 = arith.constant 0 : index
    %180 = vector.load %arg5[%c0_63, %c0_64] : memref<128x512xf32, #tpu.memory_space<vmem>>, vector<128x512xf32>
    %cst_65 = arith.constant dense<0.000000e+00> : vector<8x512xf32>
    %181 = tpu.matmul %152, %180, %cst_65 {dimension_numbers = #tpu.dot_dimension_numbers<[1], [0], [0], [1], [0, 0, 1, 1], [], []>} : vector<8x128xf32>, vector<128x512xf32>, vector<8x512xf32> -> vector<8x512xf32>
    %182 = arith.addf %179, %181 : vector<8x512xf32>
    %183 = vector.extract_strided_slice %182 {offsets = [0, 0], sizes = [8, 256], strides = [1, 1]} : vector<8x512xf32> to vector<8x256xf32>
    %184 = arith.negf %183 : vector<8x256xf32>
    %185 = math.exp %184 : vector<8x256xf32>
    %cst_66 = arith.constant 1.000000e+00 : f32
    %186 = vector.broadcast %cst_66 : f32 to vector<8x256xf32>
    %187 = arith.addf %186, %185 : vector<8x256xf32>
    %188 = arith.divf %186, %187 : vector<8x256xf32>
    %189 = vector.extract_strided_slice %182 {offsets = [0, 256], sizes = [8, 128], strides = [1, 1]} : vector<8x512xf32> to vector<8x128xf32>
    %190 = math.tanh %189 : vector<8x128xf32>
    %191 = vector.extract_strided_slice %182 {offsets = [0, 384], sizes = [8, 128], strides = [1, 1]} : vector<8x512xf32> to vector<8x128xf32>
    %192 = arith.negf %191 : vector<8x128xf32>
    %193 = math.exp %192 : vector<8x128xf32>
    %cst_67 = arith.constant 1.000000e+00 : f32
    %194 = vector.broadcast %cst_67 : f32 to vector<8x128xf32>
    %195 = arith.addf %194, %193 : vector<8x128xf32>
    %196 = arith.divf %194, %195 : vector<8x128xf32>
    %197 = vector.extract_strided_slice %188 {offsets = [0, 128], sizes = [8, 128], strides = [1, 1]} : vector<8x256xf32> to vector<8x128xf32>
    %198 = arith.mulf %197, %150 : vector<8x128xf32>
    %199 = vector.extract_strided_slice %188 {offsets = [0, 0], sizes = [8, 128], strides = [1, 1]} : vector<8x256xf32> to vector<8x128xf32>
    %200 = arith.mulf %199, %190 : vector<8x128xf32>
    %201 = arith.addf %198, %200 : vector<8x128xf32>
    %202 = math.tanh %201 : vector<8x128xf32>
    %203 = arith.mulf %196, %202 : vector<8x128xf32>
    %204 = tpu.concatenate %203, %177 in 1 : vector<8x128xf32>, vector<8x128xf32> -> vector<8x256xf32>
    %c0_68 = arith.constant 0 : index
    %c0_69 = arith.constant 0 : index
    %205 = vector.load %arg6[%c0_68, %c0_69] : memref<256x512xf32, #tpu.memory_space<vmem>>, vector<256x512xf32>
    %cst_70 = arith.constant dense<0.000000e+00> : vector<8x512xf32>
    %206 = tpu.matmul %204, %205, %cst_70 {dimension_numbers = #tpu.dot_dimension_numbers<[1], [0], [0], [1], [0, 0, 1, 1], [], []>} : vector<8x256xf32>, vector<256x512xf32>, vector<8x512xf32> -> vector<8x512xf32>
    %207 = arith.addf %206, %21 : vector<8x512xf32>
    %208 = vector.extract_strided_slice %207 {offsets = [0, 0], sizes = [8, 256], strides = [1, 1]} : vector<8x512xf32> to vector<8x256xf32>
    %209 = arith.negf %208 : vector<8x256xf32>
    %210 = math.exp %209 : vector<8x256xf32>
    %cst_71 = arith.constant 1.000000e+00 : f32
    %211 = vector.broadcast %cst_71 : f32 to vector<8x256xf32>
    %212 = arith.addf %211, %210 : vector<8x256xf32>
    %213 = arith.divf %211, %212 : vector<8x256xf32>
    %214 = vector.extract_strided_slice %207 {offsets = [0, 256], sizes = [8, 128], strides = [1, 1]} : vector<8x512xf32> to vector<8x128xf32>
    %215 = math.tanh %214 : vector<8x128xf32>
    %216 = vector.extract_strided_slice %207 {offsets = [0, 384], sizes = [8, 128], strides = [1, 1]} : vector<8x512xf32> to vector<8x128xf32>
    %217 = arith.negf %216 : vector<8x128xf32>
    %218 = math.exp %217 : vector<8x128xf32>
    %cst_72 = arith.constant 1.000000e+00 : f32
    %219 = vector.broadcast %cst_72 : f32 to vector<8x128xf32>
    %220 = arith.addf %219, %218 : vector<8x128xf32>
    %221 = arith.divf %219, %220 : vector<8x128xf32>
    %222 = vector.extract_strided_slice %213 {offsets = [0, 128], sizes = [8, 128], strides = [1, 1]} : vector<8x256xf32> to vector<8x128xf32>
    %223 = arith.mulf %222, %175 : vector<8x128xf32>
    %224 = vector.extract_strided_slice %213 {offsets = [0, 0], sizes = [8, 128], strides = [1, 1]} : vector<8x256xf32> to vector<8x128xf32>
    %225 = arith.mulf %224, %215 : vector<8x128xf32>
    %226 = arith.addf %223, %225 : vector<8x128xf32>
    %227 = math.tanh %226 : vector<8x128xf32>
    %228 = arith.mulf %221, %227 : vector<8x128xf32>
    %c24_73 = arith.constant 24 : index
    %c0_74 = arith.constant 0 : index
    %229 = vector.load %arg15[%c24_73, %c0_74] : memref<64x128xf32, #tpu.memory_space<vmem>>, vector<8x128xf32>
    tpu.vector_store %arg15[%c24_73, %c0_74], %228 {strides = array<i32>} : memref<64x128xf32, #tpu.memory_space<vmem>>, vector<8x128xf32>,
    %c32 = arith.constant 32 : index
    %c0_75 = arith.constant 0 : index
    %230 = vector.load %arg14[%c32, %c0_75] : memref<64x512xf32, #tpu.memory_space<vmem>>, vector<8x512xf32>
    %c0_76 = arith.constant 0 : index
    %c0_77 = arith.constant 0 : index
    %231 = vector.load %arg5[%c0_76, %c0_77] : memref<128x512xf32, #tpu.memory_space<vmem>>, vector<128x512xf32>
    %cst_78 = arith.constant dense<0.000000e+00> : vector<8x512xf32>
    %232 = tpu.matmul %203, %231, %cst_78 {dimension_numbers = #tpu.dot_dimension_numbers<[1], [0], [0], [1], [0, 0, 1, 1], [], []>} : vector<8x128xf32>, vector<128x512xf32>, vector<8x512xf32> -> vector<8x512xf32>
    %233 = arith.addf %230, %232 : vector<8x512xf32>
    %234 = vector.extract_strided_slice %233 {offsets = [0, 0], sizes = [8, 256], strides = [1, 1]} : vector<8x512xf32> to vector<8x256xf32>
    %235 = arith.negf %234 : vector<8x256xf32>
    %236 = math.exp %235 : vector<8x256xf32>
    %cst_79 = arith.constant 1.000000e+00 : f32
    %237 = vector.broadcast %cst_79 : f32 to vector<8x256xf32>
    %238 = arith.addf %237, %236 : vector<8x256xf32>
    %239 = arith.divf %237, %238 : vector<8x256xf32>
    %240 = vector.extract_strided_slice %233 {offsets = [0, 256], sizes = [8, 128], strides = [1, 1]} : vector<8x512xf32> to vector<8x128xf32>
    %241 = math.tanh %240 : vector<8x128xf32>
    %242 = vector.extract_strided_slice %233 {offsets = [0, 384], sizes = [8, 128], strides = [1, 1]} : vector<8x512xf32> to vector<8x128xf32>
    %243 = arith.negf %242 : vector<8x128xf32>
    %244 = math.exp %243 : vector<8x128xf32>
    %cst_80 = arith.constant 1.000000e+00 : f32
    %245 = vector.broadcast %cst_80 : f32 to vector<8x128xf32>
    %246 = arith.addf %245, %244 : vector<8x128xf32>
    %247 = arith.divf %245, %246 : vector<8x128xf32>
    %248 = vector.extract_strided_slice %239 {offsets = [0, 128], sizes = [8, 128], strides = [1, 1]} : vector<8x256xf32> to vector<8x128xf32>
    %249 = arith.mulf %248, %201 : vector<8x128xf32>
    %250 = vector.extract_strided_slice %239 {offsets = [0, 0], sizes = [8, 128], strides = [1, 1]} : vector<8x256xf32> to vector<8x128xf32>
    %251 = arith.mulf %250, %241 : vector<8x128xf32>
    %252 = arith.addf %249, %251 : vector<8x128xf32>
    %253 = math.tanh %252 : vector<8x128xf32>
    %254 = arith.mulf %247, %253 : vector<8x128xf32>
    %255 = tpu.concatenate %254, %228 in 1 : vector<8x128xf32>, vector<8x128xf32> -> vector<8x256xf32>
    %c0_81 = arith.constant 0 : index
    %c0_82 = arith.constant 0 : index
    %256 = vector.load %arg6[%c0_81, %c0_82] : memref<256x512xf32, #tpu.memory_space<vmem>>, vector<256x512xf32>
    %cst_83 = arith.constant dense<0.000000e+00> : vector<8x512xf32>
    %257 = tpu.matmul %255, %256, %cst_83 {dimension_numbers = #tpu.dot_dimension_numbers<[1], [0], [0], [1], [0, 0, 1, 1], [], []>} : vector<8x256xf32>, vector<256x512xf32>, vector<8x512xf32> -> vector<8x512xf32>
    %258 = arith.addf %257, %21 : vector<8x512xf32>
    %259 = vector.extract_strided_slice %258 {offsets = [0, 0], sizes = [8, 256], strides = [1, 1]} : vector<8x512xf32> to vector<8x256xf32>
    %260 = arith.negf %259 : vector<8x256xf32>
    %261 = math.exp %260 : vector<8x256xf32>
    %cst_84 = arith.constant 1.000000e+00 : f32
    %262 = vector.broadcast %cst_84 : f32 to vector<8x256xf32>
    %263 = arith.addf %262, %261 : vector<8x256xf32>
    %264 = arith.divf %262, %263 : vector<8x256xf32>
    %265 = vector.extract_strided_slice %258 {offsets = [0, 256], sizes = [8, 128], strides = [1, 1]} : vector<8x512xf32> to vector<8x128xf32>
    %266 = math.tanh %265 : vector<8x128xf32>
    %267 = vector.extract_strided_slice %258 {offsets = [0, 384], sizes = [8, 128], strides = [1, 1]} : vector<8x512xf32> to vector<8x128xf32>
    %268 = arith.negf %267 : vector<8x128xf32>
    %269 = math.exp %268 : vector<8x128xf32>
    %cst_85 = arith.constant 1.000000e+00 : f32
    %270 = vector.broadcast %cst_85 : f32 to vector<8x128xf32>
    %271 = arith.addf %270, %269 : vector<8x128xf32>
    %272 = arith.divf %270, %271 : vector<8x128xf32>
    %273 = vector.extract_strided_slice %264 {offsets = [0, 128], sizes = [8, 128], strides = [1, 1]} : vector<8x256xf32> to vector<8x128xf32>
    %274 = arith.mulf %273, %226 : vector<8x128xf32>
    %275 = vector.extract_strided_slice %264 {offsets = [0, 0], sizes = [8, 128], strides = [1, 1]} : vector<8x256xf32> to vector<8x128xf32>
    %276 = arith.mulf %275, %266 : vector<8x128xf32>
    %277 = arith.addf %274, %276 : vector<8x128xf32>
    %278 = math.tanh %277 : vector<8x128xf32>
    %279 = arith.mulf %272, %278 : vector<8x128xf32>
    %c32_86 = arith.constant 32 : index
    %c0_87 = arith.constant 0 : index
    %280 = vector.load %arg15[%c32_86, %c0_87] : memref<64x128xf32, #tpu.memory_space<vmem>>, vector<8x128xf32>
    tpu.vector_store %arg15[%c32_86, %c0_87], %279 {strides = array<i32>} : memref<64x128xf32, #tpu.memory_space<vmem>>, vector<8x128xf32>,
    %c40 = arith.constant 40 : index
    %c0_88 = arith.constant 0 : index
    %281 = vector.load %arg14[%c40, %c0_88] : memref<64x512xf32, #tpu.memory_space<vmem>>, vector<8x512xf32>
    %c0_89 = arith.constant 0 : index
    %c0_90 = arith.constant 0 : index
    %282 = vector.load %arg5[%c0_89, %c0_90] : memref<128x512xf32, #tpu.memory_space<vmem>>, vector<128x512xf32>
    %cst_91 = arith.constant dense<0.000000e+00> : vector<8x512xf32>
    %283 = tpu.matmul %254, %282, %cst_91 {dimension_numbers = #tpu.dot_dimension_numbers<[1], [0], [0], [1], [0, 0, 1, 1], [], []>} : vector<8x128xf32>, vector<128x512xf32>, vector<8x512xf32> -> vector<8x512xf32>
    %284 = arith.addf %281, %283 : vector<8x512xf32>
    %285 = vector.extract_strided_slice %284 {offsets = [0, 0], sizes = [8, 256], strides = [1, 1]} : vector<8x512xf32> to vector<8x256xf32>
    %286 = arith.negf %285 : vector<8x256xf32>
    %287 = math.exp %286 : vector<8x256xf32>
    %cst_92 = arith.constant 1.000000e+00 : f32
    %288 = vector.broadcast %cst_92 : f32 to vector<8x256xf32>
    %289 = arith.addf %288, %287 : vector<8x256xf32>
    %290 = arith.divf %288, %289 : vector<8x256xf32>
    %291 = vector.extract_strided_slice %284 {offsets = [0, 256], sizes = [8, 128], strides = [1, 1]} : vector<8x512xf32> to vector<8x128xf32>
    %292 = math.tanh %291 : vector<8x128xf32>
    %293 = vector.extract_strided_slice %284 {offsets = [0, 384], sizes = [8, 128], strides = [1, 1]} : vector<8x512xf32> to vector<8x128xf32>
    %294 = arith.negf %293 : vector<8x128xf32>
    %295 = math.exp %294 : vector<8x128xf32>
    %cst_93 = arith.constant 1.000000e+00 : f32
    %296 = vector.broadcast %cst_93 : f32 to vector<8x128xf32>
    %297 = arith.addf %296, %295 : vector<8x128xf32>
    %298 = arith.divf %296, %297 : vector<8x128xf32>
    %299 = vector.extract_strided_slice %290 {offsets = [0, 128], sizes = [8, 128], strides = [1, 1]} : vector<8x256xf32> to vector<8x128xf32>
    %300 = arith.mulf %299, %252 : vector<8x128xf32>
    %301 = vector.extract_strided_slice %290 {offsets = [0, 0], sizes = [8, 128], strides = [1, 1]} : vector<8x256xf32> to vector<8x128xf32>
    %302 = arith.mulf %301, %292 : vector<8x128xf32>
    %303 = arith.addf %300, %302 : vector<8x128xf32>
    %304 = math.tanh %303 : vector<8x128xf32>
    %305 = arith.mulf %298, %304 : vector<8x128xf32>
    %306 = tpu.concatenate %305, %279 in 1 : vector<8x128xf32>, vector<8x128xf32> -> vector<8x256xf32>
    %c0_94 = arith.constant 0 : index
    %c0_95 = arith.constant 0 : index
    %307 = vector.load %arg6[%c0_94, %c0_95] : memref<256x512xf32, #tpu.memory_space<vmem>>, vector<256x512xf32>
    %cst_96 = arith.constant dense<0.000000e+00> : vector<8x512xf32>
    %308 = tpu.matmul %306, %307, %cst_96 {dimension_numbers = #tpu.dot_dimension_numbers<[1], [0], [0], [1], [0, 0, 1, 1], [], []>} : vector<8x256xf32>, vector<256x512xf32>, vector<8x512xf32> -> vector<8x512xf32>
    %309 = arith.addf %308, %21 : vector<8x512xf32>
    %310 = vector.extract_strided_slice %309 {offsets = [0, 0], sizes = [8, 256], strides = [1, 1]} : vector<8x512xf32> to vector<8x256xf32>
    %311 = arith.negf %310 : vector<8x256xf32>
    %312 = math.exp %311 : vector<8x256xf32>
    %cst_97 = arith.constant 1.000000e+00 : f32
    %313 = vector.broadcast %cst_97 : f32 to vector<8x256xf32>
    %314 = arith.addf %313, %312 : vector<8x256xf32>
    %315 = arith.divf %313, %314 : vector<8x256xf32>
    %316 = vector.extract_strided_slice %309 {offsets = [0, 256], sizes = [8, 128], strides = [1, 1]} : vector<8x512xf32> to vector<8x128xf32>
    %317 = math.tanh %316 : vector<8x128xf32>
    %318 = vector.extract_strided_slice %309 {offsets = [0, 384], sizes = [8, 128], strides = [1, 1]} : vector<8x512xf32> to vector<8x128xf32>
    %319 = arith.negf %318 : vector<8x128xf32>
    %320 = math.exp %319 : vector<8x128xf32>
    %cst_98 = arith.constant 1.000000e+00 : f32
    %321 = vector.broadcast %cst_98 : f32 to vector<8x128xf32>
    %322 = arith.addf %321, %320 : vector<8x128xf32>
    %323 = arith.divf %321, %322 : vector<8x128xf32>
    %324 = vector.extract_strided_slice %315 {offsets = [0, 128], sizes = [8, 128], strides = [1, 1]} : vector<8x256xf32> to vector<8x128xf32>
    %325 = arith.mulf %324, %277 : vector<8x128xf32>
    %326 = vector.extract_strided_slice %315 {offsets = [0, 0], sizes = [8, 128], strides = [1, 1]} : vector<8x256xf32> to vector<8x128xf32>
    %327 = arith.mulf %326, %317 : vector<8x128xf32>
    %328 = arith.addf %325, %327 : vector<8x128xf32>
    %329 = math.tanh %328 : vector<8x128xf32>
    %330 = arith.mulf %323, %329 : vector<8x128xf32>
    %c40_99 = arith.constant 40 : index
    %c0_100 = arith.constant 0 : index
    %331 = vector.load %arg15[%c40_99, %c0_100] : memref<64x128xf32, #tpu.memory_space<vmem>>, vector<8x128xf32>
    tpu.vector_store %arg15[%c40_99, %c0_100], %330 {strides = array<i32>} : memref<64x128xf32, #tpu.memory_space<vmem>>, vector<8x128xf32>,
    %c48 = arith.constant 48 : index
    %c0_101 = arith.constant 0 : index
    %332 = vector.load %arg14[%c48, %c0_101] : memref<64x512xf32, #tpu.memory_space<vmem>>, vector<8x512xf32>
    %c0_102 = arith.constant 0 : index
    %c0_103 = arith.constant 0 : index
    %333 = vector.load %arg5[%c0_102, %c0_103] : memref<128x512xf32, #tpu.memory_space<vmem>>, vector<128x512xf32>
    %cst_104 = arith.constant dense<0.000000e+00> : vector<8x512xf32>
    %334 = tpu.matmul %305, %333, %cst_104 {dimension_numbers = #tpu.dot_dimension_numbers<[1], [0], [0], [1], [0, 0, 1, 1], [], []>} : vector<8x128xf32>, vector<128x512xf32>, vector<8x512xf32> -> vector<8x512xf32>
    %335 = arith.addf %332, %334 : vector<8x512xf32>
    %336 = vector.extract_strided_slice %335 {offsets = [0, 0], sizes = [8, 256], strides = [1, 1]} : vector<8x512xf32> to vector<8x256xf32>
    %337 = arith.negf %336 : vector<8x256xf32>
    %338 = math.exp %337 : vector<8x256xf32>
    %cst_105 = arith.constant 1.000000e+00 : f32
    %339 = vector.broadcast %cst_105 : f32 to vector<8x256xf32>
    %340 = arith.addf %339, %338 : vector<8x256xf32>
    %341 = arith.divf %339, %340 : vector<8x256xf32>
    %342 = vector.extract_strided_slice %335 {offsets = [0, 256], sizes = [8, 128], strides = [1, 1]} : vector<8x512xf32> to vector<8x128xf32>
    %343 = math.tanh %342 : vector<8x128xf32>
    %344 = vector.extract_strided_slice %335 {offsets = [0, 384], sizes = [8, 128], strides = [1, 1]} : vector<8x512xf32> to vector<8x128xf32>
    %345 = arith.negf %344 : vector<8x128xf32>
    %346 = math.exp %345 : vector<8x128xf32>
    %cst_106 = arith.constant 1.000000e+00 : f32
    %347 = vector.broadcast %cst_106 : f32 to vector<8x128xf32>
    %348 = arith.addf %347, %346 : vector<8x128xf32>
    %349 = arith.divf %347, %348 : vector<8x128xf32>
    %350 = vector.extract_strided_slice %341 {offsets = [0, 128], sizes = [8, 128], strides = [1, 1]} : vector<8x256xf32> to vector<8x128xf32>
    %351 = arith.mulf %350, %303 : vector<8x128xf32>
    %352 = vector.extract_strided_slice %341 {offsets = [0, 0], sizes = [8, 128], strides = [1, 1]} : vector<8x256xf32> to vector<8x128xf32>
    %353 = arith.mulf %352, %343 : vector<8x128xf32>
    %354 = arith.addf %351, %353 : vector<8x128xf32>
    %355 = math.tanh %354 : vector<8x128xf32>
    %356 = arith.mulf %349, %355 : vector<8x128xf32>
    %357 = tpu.concatenate %356, %330 in 1 : vector<8x128xf32>, vector<8x128xf32> -> vector<8x256xf32>
    %c0_107 = arith.constant 0 : index
    %c0_108 = arith.constant 0 : index
    %358 = vector.load %arg6[%c0_107, %c0_108] : memref<256x512xf32, #tpu.memory_space<vmem>>, vector<256x512xf32>
    %cst_109 = arith.constant dense<0.000000e+00> : vector<8x512xf32>
    %359 = tpu.matmul %357, %358, %cst_109 {dimension_numbers = #tpu.dot_dimension_numbers<[1], [0], [0], [1], [0, 0, 1, 1], [], []>} : vector<8x256xf32>, vector<256x512xf32>, vector<8x512xf32> -> vector<8x512xf32>
    %360 = arith.addf %359, %21 : vector<8x512xf32>
    %361 = vector.extract_strided_slice %360 {offsets = [0, 0], sizes = [8, 256], strides = [1, 1]} : vector<8x512xf32> to vector<8x256xf32>
    %362 = arith.negf %361 : vector<8x256xf32>
    %363 = math.exp %362 : vector<8x256xf32>
    %cst_110 = arith.constant 1.000000e+00 : f32
    %364 = vector.broadcast %cst_110 : f32 to vector<8x256xf32>
    %365 = arith.addf %364, %363 : vector<8x256xf32>
    %366 = arith.divf %364, %365 : vector<8x256xf32>
    %367 = vector.extract_strided_slice %360 {offsets = [0, 256], sizes = [8, 128], strides = [1, 1]} : vector<8x512xf32> to vector<8x128xf32>
    %368 = math.tanh %367 : vector<8x128xf32>
    %369 = vector.extract_strided_slice %360 {offsets = [0, 384], sizes = [8, 128], strides = [1, 1]} : vector<8x512xf32> to vector<8x128xf32>
    %370 = arith.negf %369 : vector<8x128xf32>
    %371 = math.exp %370 : vector<8x128xf32>
    %cst_111 = arith.constant 1.000000e+00 : f32
    %372 = vector.broadcast %cst_111 : f32 to vector<8x128xf32>
    %373 = arith.addf %372, %371 : vector<8x128xf32>
    %374 = arith.divf %372, %373 : vector<8x128xf32>
    %375 = vector.extract_strided_slice %366 {offsets = [0, 128], sizes = [8, 128], strides = [1, 1]} : vector<8x256xf32> to vector<8x128xf32>
    %376 = arith.mulf %375, %328 : vector<8x128xf32>
    %377 = vector.extract_strided_slice %366 {offsets = [0, 0], sizes = [8, 128], strides = [1, 1]} : vector<8x256xf32> to vector<8x128xf32>
    %378 = arith.mulf %377, %368 : vector<8x128xf32>
    %379 = arith.addf %376, %378 : vector<8x128xf32>
    %380 = math.tanh %379 : vector<8x128xf32>
    %381 = arith.mulf %374, %380 : vector<8x128xf32>
    %c48_112 = arith.constant 48 : index
    %c0_113 = arith.constant 0 : index
    %382 = vector.load %arg15[%c48_112, %c0_113] : memref<64x128xf32, #tpu.memory_space<vmem>>, vector<8x128xf32>
    tpu.vector_store %arg15[%c48_112, %c0_113], %381 {strides = array<i32>} : memref<64x128xf32, #tpu.memory_space<vmem>>, vector<8x128xf32>,
    %c56 = arith.constant 56 : index
    %c0_114 = arith.constant 0 : index
    %383 = vector.load %arg14[%c56, %c0_114] : memref<64x512xf32, #tpu.memory_space<vmem>>, vector<8x512xf32>
    %c0_115 = arith.constant 0 : index
    %c0_116 = arith.constant 0 : index
    %384 = vector.load %arg5[%c0_115, %c0_116] : memref<128x512xf32, #tpu.memory_space<vmem>>, vector<128x512xf32>
    %cst_117 = arith.constant dense<0.000000e+00> : vector<8x512xf32>
    %385 = tpu.matmul %356, %384, %cst_117 {dimension_numbers = #tpu.dot_dimension_numbers<[1], [0], [0], [1], [0, 0, 1, 1], [], []>} : vector<8x128xf32>, vector<128x512xf32>, vector<8x512xf32> -> vector<8x512xf32>
    %386 = arith.addf %383, %385 : vector<8x512xf32>
    %387 = vector.extract_strided_slice %386 {offsets = [0, 0], sizes = [8, 256], strides = [1, 1]} : vector<8x512xf32> to vector<8x256xf32>
    %388 = arith.negf %387 : vector<8x256xf32>
    %389 = math.exp %388 : vector<8x256xf32>
    %cst_118 = arith.constant 1.000000e+00 : f32
    %390 = vector.broadcast %cst_118 : f32 to vector<8x256xf32>
    %391 = arith.addf %390, %389 : vector<8x256xf32>
    %392 = arith.divf %390, %391 : vector<8x256xf32>
    %393 = vector.extract_strided_slice %386 {offsets = [0, 256], sizes = [8, 128], strides = [1, 1]} : vector<8x512xf32> to vector<8x128xf32>
    %394 = math.tanh %393 : vector<8x128xf32>
    %395 = vector.extract_strided_slice %386 {offsets = [0, 384], sizes = [8, 128], strides = [1, 1]} : vector<8x512xf32> to vector<8x128xf32>
    %396 = arith.negf %395 : vector<8x128xf32>
    %397 = math.exp %396 : vector<8x128xf32>
    %cst_119 = arith.constant 1.000000e+00 : f32
    %398 = vector.broadcast %cst_119 : f32 to vector<8x128xf32>
    %399 = arith.addf %398, %397 : vector<8x128xf32>
    %400 = arith.divf %398, %399 : vector<8x128xf32>
    %401 = vector.extract_strided_slice %392 {offsets = [0, 128], sizes = [8, 128], strides = [1, 1]} : vector<8x256xf32> to vector<8x128xf32>
    %402 = arith.mulf %401, %354 : vector<8x128xf32>
    %403 = vector.extract_strided_slice %392 {offsets = [0, 0], sizes = [8, 128], strides = [1, 1]} : vector<8x256xf32> to vector<8x128xf32>
    %404 = arith.mulf %403, %394 : vector<8x128xf32>
    %405 = arith.addf %402, %404 : vector<8x128xf32>
    %406 = math.tanh %405 : vector<8x128xf32>
    %407 = arith.mulf %400, %406 : vector<8x128xf32>
    %408 = tpu.concatenate %407, %381 in 1 : vector<8x128xf32>, vector<8x128xf32> -> vector<8x256xf32>
    %c0_120 = arith.constant 0 : index
    %c0_121 = arith.constant 0 : index
    %409 = vector.load %arg6[%c0_120, %c0_121] : memref<256x512xf32, #tpu.memory_space<vmem>>, vector<256x512xf32>
    %cst_122 = arith.constant dense<0.000000e+00> : vector<8x512xf32>
    %410 = tpu.matmul %408, %409, %cst_122 {dimension_numbers = #tpu.dot_dimension_numbers<[1], [0], [0], [1], [0, 0, 1, 1], [], []>} : vector<8x256xf32>, vector<256x512xf32>, vector<8x512xf32> -> vector<8x512xf32>
    %411 = arith.addf %410, %21 : vector<8x512xf32>
    %412 = vector.extract_strided_slice %411 {offsets = [0, 0], sizes = [8, 256], strides = [1, 1]} : vector<8x512xf32> to vector<8x256xf32>
    %413 = arith.negf %412 : vector<8x256xf32>
    %414 = math.exp %413 : vector<8x256xf32>
    %cst_123 = arith.constant 1.000000e+00 : f32
    %415 = vector.broadcast %cst_123 : f32 to vector<8x256xf32>
    %416 = arith.addf %415, %414 : vector<8x256xf32>
    %417 = arith.divf %415, %416 : vector<8x256xf32>
    %418 = vector.extract_strided_slice %411 {offsets = [0, 256], sizes = [8, 128], strides = [1, 1]} : vector<8x512xf32> to vector<8x128xf32>
    %419 = math.tanh %418 : vector<8x128xf32>
    %420 = vector.extract_strided_slice %411 {offsets = [0, 384], sizes = [8, 128], strides = [1, 1]} : vector<8x512xf32> to vector<8x128xf32>
    %421 = arith.negf %420 : vector<8x128xf32>
    %422 = math.exp %421 : vector<8x128xf32>
    %cst_124 = arith.constant 1.000000e+00 : f32
    %423 = vector.broadcast %cst_124 : f32 to vector<8x128xf32>
    %424 = arith.addf %423, %422 : vector<8x128xf32>
    %425 = arith.divf %423, %424 : vector<8x128xf32>
    %426 = vector.extract_strided_slice %417 {offsets = [0, 128], sizes = [8, 128], strides = [1, 1]} : vector<8x256xf32> to vector<8x128xf32>
    %427 = arith.mulf %426, %379 : vector<8x128xf32>
    %428 = vector.extract_strided_slice %417 {offsets = [0, 0], sizes = [8, 128], strides = [1, 1]} : vector<8x256xf32> to vector<8x128xf32>
    %429 = arith.mulf %428, %419 : vector<8x128xf32>
    %430 = arith.addf %427, %429 : vector<8x128xf32>
    %431 = math.tanh %430 : vector<8x128xf32>
    %432 = arith.mulf %425, %431 : vector<8x128xf32>
    %c56_125 = arith.constant 56 : index
    %c0_126 = arith.constant 0 : index
    %433 = vector.load %arg15[%c56_125, %c0_126] : memref<64x128xf32, #tpu.memory_space<vmem>>, vector<8x128xf32>
    tpu.vector_store %arg15[%c56_125, %c0_126], %432 {strides = array<i32>} : memref<64x128xf32, #tpu.memory_space<vmem>>, vector<8x128xf32>,
    %c0_127 = arith.constant 0 : index
    %c0_128 = arith.constant 0 : index
    %434 = vector.load %arg15[%c0_127, %c0_128] : memref<64x128xf32, #tpu.memory_space<vmem>>, vector<64x128xf32>
    %c0_129 = arith.constant 0 : index
    %c0_130 = arith.constant 0 : index
    %435 = vector.load %arg8[%c0_129, %c0_130] : memref<128x128xf32, #tpu.memory_space<vmem>>, vector<128x128xf32>
    %cst_131 = arith.constant dense<0.000000e+00> : vector<64x128xf32>
    %436 = tpu.matmul %434, %435, %cst_131 {dimension_numbers = #tpu.dot_dimension_numbers<[1], [0], [0], [1], [0, 0, 1, 1], [], []>} : vector<64x128xf32>, vector<128x128xf32>, vector<64x128xf32> -> vector<64x128xf32>
    %c0_132 = arith.constant 0 : index
    %c0_133 = arith.constant 0 : index
    %437 = vector.load %arg9[%c0_132, %c0_133] : memref<1x128xf32, #tpu.memory_space<vmem>>, vector<1x128xf32>
    %438 = vector.broadcast %437 : vector<1x128xf32> to vector<64x128xf32>
    %439 = arith.addf %436, %438 : vector<64x128xf32>
    %cst_134 = arith.constant 0.000000e+00 : f32
    %440 = vector.broadcast %cst_134 : f32 to vector<64x128xf32>
    %441 = arith.maximumf %439, %440 : vector<64x128xf32>
    %c0_135 = arith.constant 0 : index
    %c0_136 = arith.constant 0 : index
    %442 = vector.load %arg10[%c0_135, %c0_136] : memref<128x128xf32, #tpu.memory_space<vmem>>, vector<128x128xf32>
    %cst_137 = arith.constant dense<0.000000e+00> : vector<64x128xf32>
    %443 = tpu.matmul %441, %442, %cst_137 {dimension_numbers = #tpu.dot_dimension_numbers<[1], [0], [0], [1], [0, 0, 1, 1], [], []>} : vector<64x128xf32>, vector<128x128xf32>, vector<64x128xf32> -> vector<64x128xf32>
    %444 = vector.shape_cast %443 : vector<64x128xf32> to vector<8x8x128xf32>
    %cst_138 = arith.constant dense<0.000000e+00> : vector<8x128xf32>
    %445 = vector.multi_reduction <add>, %444, %cst_138 [0] : vector<8x8x128xf32> to vector<8x128xf32>
    %cst_139 = arith.constant 1.250000e-01 : f32
    %446 = vector.broadcast %cst_139 : f32 to vector<8x128xf32>
    %447 = arith.mulf %445, %446 : vector<8x128xf32>
    %c0_140 = arith.constant 0 : index
    %c0_141 = arith.constant 0 : index
    %448 = vector.load %arg11[%c0_140, %c0_141] : memref<1x128xf32, #tpu.memory_space<vmem>>, vector<1x128xf32>
    %449 = vector.broadcast %448 : vector<1x128xf32> to vector<8x128xf32>
    %450 = arith.addf %447, %449 : vector<8x128xf32>
    %c0_142 = arith.constant 0 : index
    %c0_143 = arith.constant 0 : index
    %451 = vector.load %arg12[%c0_142, %c0_143] : memref<8x128xf32, #tpu.memory_space<vmem>>, vector<8x128xf32>
    tpu.vector_store %arg12[%c0_142, %c0_143], %450 {strides = array<i32>} : memref<8x128xf32, #tpu.memory_space<vmem>>, vector<8x128xf32>,
    return
  }
}

</mosaic_0001>

<bundles_post_ra>
// kernel: model_forward.1
= control target key start
LH: loop header
LB: loop body
LE: loop exit
PB: predicated region body
PF: predicated region fallthrough
CT: control target
= control target key end

     0   :  { %19 = vsyncpa [#allocation5], 0  ;;  %s12163_s0 = inlined_call_operand.vmem [shape: f32[64,128], index: 0, kind: input, shape index: {}]   ;;  %s12164_s1 = inlined_call_operand.vmem [shape: f32[128,128], index: 1, kind: input, shape index: {}]   ;;  %s12165_s2 = inlined_call_operand.vmem [shape: f32[1,128], index: 2, kind: input, shape index: {}]   ;;  %s12166_s3 = inlined_call_operand.vmem [shape: f32[128,640], index: 3, kind: input, shape index: {}]   ;;  %s12167_s4 = inlined_call_operand.vmem [shape: f32[1,640], index: 4, kind: input, shape index: {}]   ;;  %s12168_s5 = inlined_call_operand.vmem [shape: f32[128,512], index: 5, kind: input, shape index: {}]   ;;  %s12169_s6 = inlined_call_operand.vmem [shape: f32[256,512], index: 6, kind: input, shape index: {}]   ;;  %s12170_s7 = inlined_call_operand.vmem [shape: f32[1,512], index: 7, kind: input, shape index: {}]   ;;  %s12171_s8 = inlined_call_operand.vmem [shape: f32[128,128], index: 8, kind: input, shape index: {}]   ;;  %s12172_s9 = inlined_call_operand.vmem [shape: f32[1,128], index: 9, kind: input, shape index: {}]   ;;  %s12173_s10 = inlined_call_operand.vmem [shape: f32[128,128], index: 10, kind: input, shape index: {}]   ;;  %s12174_s11 = inlined_call_operand.vmem [shape: f32[1,128], index: 11, kind: input, shape index: {}]   ;;  %s12175_s12 = inlined_call_operand.hbm [shape: f32[8,128], index: 12, kind: output, shape index: {0}]   ;;  %s12176_s13 = inlined_call_operand.hbm [shape: f32[64,128], index: 13, kind: output, shape index: {1}]  }
   0x1   :  { %v68_v0 = vld [vmem:[%s12164_s1 + $0x78] sm:$0xff]  ;;  %v67_v1 = vld [vmem:[%s12164_s1 + $0x70] sm:$0xff]  ;;  %v66_v2 = vld [vmem:[%s12164_s1 + $0x68] sm:$0xff] }
   0x2   :  { %5420 = vmatprep.subr.mxu0 %v68_v0  ;;  %v65_v3 = vld [vmem:[%s12164_s1 + $0x60] sm:$0xff]  ;;  %v64_v5 = vld [vmem:[%s12164_s1 + $0x58] sm:$0xff]  ;;  %v63_v6 = vld [vmem:[%s12164_s1 + $0x50] sm:$0xff] }
   0x3   :  { %5421 = vmatpush3.msra.mxu0 %v68_v0  ;;  %v45_v4 = vld [vmem:[%s12163_s0] sm:$0xff]  ;;  %v264_v8 = vld [vmem:[%s12166_s3 + $0x258] sm:$0xff]  ;;  %v259_v10 = vld [vmem:[%s12166_s3 + $0x230] sm:$0xff] }
   0x4   :  { %5422 = vmatprep.subr.mxu0 %v67_v1  ;;  %5452 = vmatprep.mubr.f32.mxu0 %v45_v4  ;;  %v265_v7 = vld [vmem:[%s12166_s3 + $0x260] sm:$0xff]  ;;  %v260_v9 = vld [vmem:[%s12166_s3 + $0x238] sm:$0xff]  ;;  %v62_v11 = vld [vmem:[%s12164_s1 + $0x48] sm:$0xff] }
   0x5   :  { %5423 = vmatpush3.msra.mxu0 %v67_v1  ;;  %296 = vmatprep.subr.mxu1 %v265_v7  ;;  %v255_v12 = vld [vmem:[%s12166_s3 + $0x210] sm:$0xff]  ;;  %v254_v13 = vld [vmem:[%s12166_s3 + $0x208] sm:$0xff]  ;;  %v61_v14 = vld [vmem:[%s12164_s1 + $0x40] sm:$0xff] }
   0x6   :  { %5424 = vmatprep.subr.mxu0 %v66_v2  ;;  %297 = vmatpush1.msra.mxu1 %v264_v8  ;;  %v250_v15 = vld [vmem:[%s12166_s3 + $0x1e8] sm:$0xff]  ;;  %v249_v16 = vld [vmem:[%s12166_s3 + $0x1e0] sm:$0xff]  ;;  %v60_v17 = vld [vmem:[%s12164_s1 + $0x38] sm:$0xff] }
   0x7   :  { %5425 = vmatpush3.msra.mxu0 %v66_v2  ;;  %298 = vmatprep.subr.mxu1 %v260_v9  ;;  %v245_v18 = vld [vmem:[%s12166_s3 + $0x1c0] sm:$0xff]  ;;  %v244_v19 = vld [vmem:[%s12166_s3 + $0x1b8] sm:$0xff]  ;;  %v59_v20 = vld [vmem:[%s12164_s1 + $0x30] sm:$0xff] }
   0x8   :  { %5426 = vmatprep.subr.mxu0 %v65_v3  ;;  %299 = vmatpush1.msra.mxu1 %v259_v10  ;;  %v240_v21 = vld [vmem:[%s12166_s3 + $0x198] sm:$0xff]  ;;  %v239_v22 = vld [vmem:[%s12166_s3 + $0x190] sm:$0xff]  ;;  %v58_v23 = vld [vmem:[%s12164_s1 + $0x28] sm:$0xff] }
   0x9   :  { %5427 = vmatpush3.msra.mxu0 %v65_v3  ;;  %300 = vmatprep.subr.mxu1 %v255_v12  ;;  %v235_v24 = vld [vmem:[%s12166_s3 + $0x170] sm:$0xff]  ;;  %v234_v25 = vld [vmem:[%s12166_s3 + $0x168] sm:$0xff]  ;;  %v57_v26 = vld [vmem:[%s12164_s1 + $0x20] sm:$0xff] }
   0xa   :  { %5428 = vmatprep.subr.mxu0 %v64_v5  ;;  %301 = vmatpush1.msra.mxu1 %v254_v13  ;;  %v230_v27 = vld [vmem:[%s12166_s3 + $0x148] sm:$0xff]  ;;  %v229_v28 = vld [vmem:[%s12166_s3 + $0x140] sm:$0xff]  ;;  %v56_v29 = vld [vmem:[%s12164_s1 + $0x18] sm:$0xff] }
   0xb   :  { %5429 = vmatpush3.msra.mxu0 %v64_v5  ;;  %302 = vmatprep.subr.mxu1 %v250_v15  ;;  %v225_v30 = vld [vmem:[%s12166_s3 + $0x120] sm:$0xff]  ;;  %v224_v31 = vld [vmem:[%s12166_s3 + $0x118] sm:$0xff]  ;;  %v55_v32 = vld [vmem:[%s12164_s1 + $0x10] sm:$0xff] }
   0xc   :  { %5430 = vmatprep.subr.mxu0 %v63_v6  ;;  %303 = vmatpush1.msra.mxu1 %v249_v16  ;;  %v220_v33 = vld [vmem:[%s12166_s3 + $0xf8] sm:$0xff]  ;;  %v219_v34 = vld [vmem:[%s12166_s3 + $0xf0] sm:$0xff] }
   0xd   :  { %5431 = vmatpush3.msra.mxu0 %v63_v6  ;;  %304 = vmatprep.subr.mxu1 %v245_v18 }
   0xe   :  { %5432 = vmatprep.subr.mxu0 %v62_v11  ;;  %305 = vmatpush1.msra.mxu1 %v244_v19 }
   0xf   :  { %5433 = vmatpush3.msra.mxu0 %v62_v11  ;;  %306 = vmatprep.subr.mxu1 %v240_v21 }
  0x10   :  { %5434 = vmatprep.subr.mxu0 %v61_v14  ;;  %307 = vmatpush1.msra.mxu1 %v239_v22 }
  0x11   :  { %5435 = vmatpush3.msra.mxu0 %v61_v14  ;;  %308 = vmatprep.subr.mxu1 %v235_v24 }
  0x12   :  { %5436 = vmatprep.subr.mxu0 %v60_v17  ;;  %309 = vmatpush1.msra.mxu1 %v234_v25 }
  0x13   :  { %5437 = vmatpush3.msra.mxu0 %v60_v17  ;;  %310 = vmatprep.subr.mxu1 %v230_v27 }
  0x14   :  { %5438 = vmatprep.subr.mxu0 %v59_v20  ;;  %311 = vmatpush1.msra.mxu1 %v229_v28 }
  0x15   :  { %5439 = vmatpush3.msra.mxu0 %v59_v20  ;;  %312 = vmatprep.subr.mxu1 %v225_v30 }
  0x16   :  { %5440 = vmatprep.subr.mxu0 %v58_v23 }
  0x17   :  { %5441 = vmatpush3.msra.mxu0 %v58_v23 }
  0x18   :  { %5442 = vmatprep.subr.mxu0 %v57_v26 }
  0x19   :  { %5443 = vmatpush3.msra.mxu0 %v57_v26 }
  0x1a   :  { %5444 = vmatprep.subr.mxu0 %v56_v29 }
  0x1b   :  { %20 = vsyncpa [#allocation7], 0  ;;  %5445 = vmatpush3.msra.mxu0 %v56_v29  ;;  %v54_v35 = vld [vmem:[%s12164_s1 + $0x8] sm:$0xff]  ;;  %313 = vmatpush1.msra.mxu1 %v224_v31  ;;  %v215_v36 = vld [vmem:[%s12166_s3 + $0xd0] sm:$0xff]  ;;  %v12177_v25 = vmov 0.0  }
  0x1c   :  { %5446 = vmatprep.subr.mxu0 %v55_v32  ;;  %314 = vmatprep.subr.mxu1 %v220_v33  ;;  %v214_v37 = vld [vmem:[%s12166_s3 + $0xc8] sm:$0xff]  ;;  %v53_v38 = vld [vmem:[%s12164_s1] sm:$0xff]  ;;  %v267_v42 = vld [vmem:[%s12166_s3 + $0x270] sm:$0xff] }
  0x1d   :  { %5447 = vmatpush3.msra.mxu0 %v55_v32  ;;  %315 = vmatpush1.msra.mxu1 %v219_v34  ;;  %v210_v39 = vld [vmem:[%s12166_s3 + $0xa8] sm:$0xff]  ;;  %v209_v40 = vld [vmem:[%s12166_s3 + $0xa0] sm:$0xff]  ;;  %v47_v43 = vld [vmem:[%s12163_s0 + $0x10] sm:$0xff] }
  0x1e   :  { %5448 = vmatprep.subr.mxu0 %v54_v35  ;;  %316 = vmatprep.subr.mxu1 %v215_v36  ;;  %v46_v41 = vld [vmem:[%s12163_s0 + $0x8] sm:$0xff]  ;;  %v205_v46 = vld [vmem:[%s12166_s3 + $0x80] sm:$0xff]  ;;  %v204_v48 = vld [vmem:[%s12166_s3 + $0x78] sm:$0xff] }
  0x1f   :  { %5449 = vmatpush3.msra.mxu0 %v54_v35  ;;  %317 = vmatpush1.msra.mxu1 %v214_v37  ;;  %v266_v44 = vld [vmem:[%s12166_s3 + $0x268] sm:$0xff]  ;;  %v261_v47 = vld [vmem:[%s12166_s3 + $0x240] sm:$0xff]  ;;  %v48_v49 = vld [vmem:[%s12163_s0 + $0x18] sm:$0xff] }
  0x20   :  { %5450 = vmatprep.subr.mxu0 %v53_v38  ;;  %318 = vmatprep.subr.mxu1 %v210_v39  ;;  %v262_v45 = vld [vmem:[%s12166_s3 + $0x248] sm:$0xff]  ;;  %v257_v50 = vld [vmem:[%s12166_s3 + $0x220] sm:$0xff]  ;;  %v256_v52 = vld [vmem:[%s12166_s3 + $0x218] sm:$0xff] }
  0x21   :  { %5451 = vmatpush3.msra.mxu0 %v53_v38  ;;  %319 = vmatpush1.msra.mxu1 %v209_v40  ;;  %v49_v51 = vld [vmem:[%s12163_s0 + $0x20] sm:$0xff]  ;;  %v252_v53 = vld [vmem:[%s12166_s3 + $0x1f8] sm:$0xff]  ;;  %v251_v54 = vld [vmem:[%s12166_s3 + $0x1f0] sm:$0xff] }
  0x22   :  { %5453 = vmatmul.mubr.f32.vlgmr.msra.gmra.mxu0 %v46_v41  ;;  %409 = vmatprep.subr.mxu0 %v267_v42  ;;  %v50_v55 = vld [vmem:[%s12163_s0 + $0x28] sm:$0xff]  ;;  %v247_v56 = vld [vmem:[%s12166_s3 + $0x1d0] sm:$0xff]  ;;  %v241_v60 = vld [vmem:[%s12166_s3 + $0x1a0] sm:$0xff] }
  0x23   :  { %5455 = vmatprep.mubr.f32.mxu0 %v47_v43  ;;  %410 = vmatpush1.msra.mxu0 %v266_v44  ;;  %v51_v57 = vld [vmem:[%s12163_s0 + $0x30] sm:$0xff]  ;;  %v246_v58 = vld [vmem:[%s12166_s3 + $0x1c8] sm:$0xff]  ;;  %v52_v61 = vld [vmem:[%s12163_s0 + $0x38] sm:$0xff] }
  0x24   :  { %411 = vmatprep.subr.mxu0 %v262_v45  ;;  %320 = vmatprep.subr.mxu1 %v205_v46  ;;  %v242_v59 = vld [vmem:[%s12166_s3 + $0x1a8] sm:$0xff]  ;;  %v237_v62 = vld [vmem:[%s12166_s3 + $0x180] sm:$0xff]  ;;  %v236_v63 = vld [vmem:[%s12166_s3 + $0x178] sm:$0xff] }
  0x25   :  { %412 = vmatpush1.msra.mxu0 %v261_v47  ;;  %321 = vmatpush1.msra.mxu1 %v204_v48  ;;  %v232_v0 = vld [vmem:[%s12166_s3 + $0x158] sm:$0xff]  ;;  %v231_v1 = vld [vmem:[%s12166_s3 + $0x150] sm:$0xff]  ;;  %v226_v3 = vld [vmem:[%s12166_s3 + $0x128] sm:$0xff] }
  0x26   :  { %5456 = vmatmul.mubr.f32.gmra.mxu0 %v48_v49  ;;  %413 = vmatprep.subr.mxu0 %v257_v50  ;;  %v227_v2 = vld [vmem:[%s12166_s3 + $0x130] sm:$0xff]  ;;  %v222_v4 = vld [vmem:[%s12166_s3 + $0x108] sm:$0xff]  ;;  %v221_v5 = vld [vmem:[%s12166_s3 + $0x100] sm:$0xff] }
  0x27   :  { %5458 = vmatprep.mubr.f32.mxu0 %v49_v51  ;;  %414 = vmatpush1.msra.mxu0 %v256_v52  ;;  %v217_v6 = vld [vmem:[%s12166_s3 + $0xe0] sm:$0xff]  ;;  %v216_v7 = vld [vmem:[%s12166_s3 + $0xd8] sm:$0xff]  ;;  %v211_v9 = vld [vmem:[%s12166_s3 + $0xb0] sm:$0xff] }
  0x28   :  { %415 = vmatprep.subr.mxu0 %v252_v53  ;;  %v212_v8 = vld [vmem:[%s12166_s3 + $0xb8] sm:$0xff]  ;;  %v207_v10 = vld [vmem:[%s12166_s3 + $0x90] sm:$0xff]  ;;  %v206_v12 = vld [vmem:[%s12166_s3 + $0x88] sm:$0xff]  ;;  %360 = vmatprep.mubr.f32.mxu1 %v12177_v25 }
  0x29   :  { %416 = vmatpush1.msra.mxu0 %v251_v54  ;;  %v200_v11 = vld [vmem:[%s12166_s3 + $0x58] sm:$0xff]  ;;  %v199_v13 = vld [vmem:[%s12166_s3 + $0x50] sm:$0xff]  ;;  %v202_v14 = vld [vmem:[%s12166_s3 + $0x68] sm:$0xff] }
  0x2a   :  { %5459 = vmatmul.mubr.f32.gmra.mxu0 %v50_v55  ;;  %417 = vmatprep.subr.mxu0 %v247_v56  ;;  %v195_v15 = vld [vmem:[%s12166_s3 + $0x30] sm:$0xff]  ;;  %v201_v16 = vld [vmem:[%s12166_s3 + $0x60] sm:$0xff]  ;;  %v194_v17 = vld [vmem:[%s12166_s3 + $0x28] sm:$0xff] }
  0x2b   :  { %5461 = vmatprep.mubr.f32.mxu0 %v51_v57  ;;  %418 = vmatpush1.msra.mxu0 %v246_v58  ;;  %v197_v18 = vld [vmem:[%s12166_s3 + $0x40] sm:$0xff]  ;;  %v190_v19 = vld [vmem:[%s12166_s3 + $0x8] sm:$0xff]  ;;  %v196_v20 = vld [vmem:[%s12166_s3 + $0x38] sm:$0xff] }
  0x2c   :  { %419 = vmatprep.subr.mxu0 %v242_v59  ;;  %322 = vmatprep.subr.mxu1 %v200_v11  ;;  %v189_v21 = vld [vmem:[%s12166_s3] sm:$0xff]  ;;  %v192_v22 = vld [vmem:[%s12166_s3 + $0x18] sm:$0xff]  ;;  %v191_v23 = vld [vmem:[%s12166_s3 + $0x10] sm:$0xff] }
  0x2d   :  { %420 = vmatpush1.msra.mxu0 %v241_v60  ;;  %323 = vmatpush1.msra.mxu1 %v199_v13  ;;  %v268_v24 = vld [vmem:[%s12166_s3 + $0x278] sm:$0xff]  ;;  %v762_v26 = vld [vmem:[%s12168_s5 + $0x1e8] sm:$0xff]  ;;  %v6251_v28 = vld [vmem:[%s12165_s2] ss:$0 sm:$0xff] }
  0x2e   :  { %5462 = vmatmul.mubr.f32.gmra.mxu0 %v52_v61  ;;  %421 = vmatprep.subr.mxu0 %v237_v62  ;;  %v761_v33 = vld [vmem:[%s12168_s5 + $0x1e0] sm:$0xff]  ;;  %v263_v35 = vld [vmem:[%s12166_s3 + $0x250] sm:$0xff]  ;;  %v758_v36 = vld [vmem:[%s12168_s5 + $0x1c8] sm:$0xff] }
  0x2f   :  { %422 = vmatpush1.msra.mxu0 %v236_v63  ;;  %324 = vmatprep.subr.mxu1 %v195_v15  ;;  %v258_v37 = vld [vmem:[%s12166_s3 + $0x228] sm:$0xff]  ;;  %v757_v39 = vld [vmem:[%s12168_s5 + $0x1c0] sm:$0xff]  ;;  %v248_v46 = vld [vmem:[%s12166_s3 + $0x1d8] sm:$0xff] }
  0x30   :  { %423 = vmatprep.subr.mxu0 %v232_v0  ;;  %325 = vmatpush1.msra.mxu1 %v194_v17  ;;  %v754_v41 = vld [vmem:[%s12168_s5 + $0x1a8] sm:$0xff]  ;;  %v253_v42 = vld [vmem:[%s12166_s3 + $0x200] sm:$0xff]  ;;  %v243_v51 = vld [vmem:[%s12166_s3 + $0x1b0] sm:$0xff] }
  0x31   :  { %424 = vmatpush1.msra.mxu0 %v231_v1  ;;  %326 = vmatprep.subr.mxu1 %v190_v19  ;;  %v753_v44 = vld [vmem:[%s12168_s5 + $0x1a0] sm:$0xff]  ;;  %v750_v45 = vld [vmem:[%s12168_s5 + $0x188] sm:$0xff]  ;;  %v228_v0 = vld [vmem:[%s12166_s3 + $0x138] sm:$0xff] }
  0x32   :  { %425 = vmatprep.subr.mxu0 %v227_v2  ;;  %327 = vmatpush1.msra.mxu1 %v189_v21  ;;  %v749_v47 = vld [vmem:[%s12168_s5 + $0x180] sm:$0xff]  ;;  %v746_v50 = vld [vmem:[%s12168_s5 + $0x168] sm:$0xff] }
  0x33   :  { %426 = vmatpush1.msra.mxu0 %v226_v3  ;;  %473 = vmatprep.mubr.f32.mxu0 %v12177_v25  ;;  %v745_v53 = vld [vmem:[%s12168_s5 + $0x160] sm:$0xff]  ;;  %v742_v54 = vld [vmem:[%s12168_s5 + $0x148] sm:$0xff] }
  0x34   :  { %427 = vmatprep.subr.mxu0 %v222_v4  ;;  %5464 = vmatprep.subr.mxu1 %v268_v24  ;;  %v238_v55 = vld [vmem:[%s12166_s3 + $0x188] sm:$0xff]  ;;  %v741_v57 = vld [vmem:[%s12168_s5 + $0x140] sm:$0xff] }
  0x35   :  { %428 = vmatpush1.msra.mxu0 %v221_v5  ;;  %v738_v59 = vld [vmem:[%s12168_s5 + $0x128] sm:$0xff]  ;;  %v233_v60 = vld [vmem:[%s12166_s3 + $0x160] sm:$0xff]  ;;  %v223_v5 = vld [vmem:[%s12166_s3 + $0x110] sm:$0xff] }
  0x36   :  { %429 = vmatprep.subr.mxu0 %v217_v6  ;;  %v737_v62 = vld [vmem:[%s12168_s5 + $0x120] sm:$0xff]  ;;  %v734_v63 = vld [vmem:[%s12168_s5 + $0x108] sm:$0xff] }
  0x37   :  { %430 = vmatpush1.msra.mxu0 %v216_v7  ;;  %v733_v1 = vld [vmem:[%s12168_s5 + $0x100] sm:$0xff]  ;;  %v730_v4 = vld [vmem:[%s12168_s5 + $0xe8] sm:$0xff] }
  0x38   :  { %431 = vmatprep.subr.mxu0 %v212_v8  ;;  %v729_v7 = vld [vmem:[%s12168_s5 + $0xe0] sm:$0xff]  ;;  %v726_v8 = vld [vmem:[%s12168_s5 + $0xc8] sm:$0xff] }
  0x39   :  { %432 = vmatpush1.msra.mxu0 %v211_v9  ;;  %v218_v9 = vld [vmem:[%s12166_s3 + $0xe8] sm:$0xff]  ;;  %v725_v11 = vld [vmem:[%s12168_s5 + $0xc0] sm:$0xff] }
  0x3a   :  { %433 = vmatprep.subr.mxu0 %v207_v10  ;;  %v722_v13 = vld [vmem:[%s12168_s5 + $0xa8] sm:$0xff]  ;;  %v717_v19 = vld [vmem:[%s12168_s5 + $0x80] sm:$0xff] }
  0x3b   :  { %434 = vmatpush1.msra.mxu0 %v206_v12  ;;  %v718_v17 = vld [vmem:[%s12168_s5 + $0x88] sm:$0xff] }
  0x3c   :  { %435 = vmatprep.subr.mxu0 %v202_v14  ;;  %v213_v14 = vld [vmem:[%s12166_s3 + $0xc0] sm:$0xff]  ;;  %v714_v21 = vld [vmem:[%s12168_s5 + $0x68] sm:$0xff] }
  0x3d   :  { %436 = vmatpush1.msra.mxu0 %v201_v16  ;;  %v721_v16 = vld [vmem:[%s12168_s5 + $0xa0] sm:$0xff] }
  0x3e   :  { %437 = vmatprep.subr.mxu0 %v197_v18  ;;  %v208_v18 = vld [vmem:[%s12166_s3 + $0x98] sm:$0xff] }
  0x3f   :  { %438 = vmatpush1.msra.mxu0 %v196_v20 }
  0x40   :  { %439 = vmatprep.subr.mxu0 %v192_v22  ;;  %v203_v22 = vld [vmem:[%s12166_s3 + $0x70] sm:$0xff] }
  0x41   :  { %440 = vmatpush1.msra.mxu0 %v191_v23 }
  0x42   :  { %765 = vmatprep.subr.mxu0 %v762_v26  ;;  %v710_v26 = vld [vmem:[%s12168_s5 + $0x48] sm:$0xff] }
  0xe2   :  { %v5454_v27 = vpop.f32.mrf.mxu0 }
  0xe3   :  { %v148_v34 = vadd.f32 %v5454_v27, %v6251_v28  ;;  %v198_v27 = vld [vmem:[%s12166_s3 + $0x48] sm:$0xff] }
  0xe4   :  { %v142_v29 = vpop.f32.mrf.mxu0 }
  0xe5   :  { %v143_v30 = vadd.f32 %v6251_v28, %v142_v29  ;;  %v6274_v40 = vmax.f32 %v148_v34, 0.0  ;;  %v702_v34 = vld [vmem:[%s12168_s5 + $0x8] sm:$0xff] }
  0xe6   :  { %v5457_v32 = vpop.f32.mrf.mxu0 }
  0xe7   :  { %v6254_v31 = vmax.f32 %v143_v30, 0.0  ;;  %v158_v52 = vadd.f32 %v5457_v32, %v6251_v28  ;;  %v706_v30 = vld [vmem:[%s12168_s5 + $0x28] sm:$0xff]  ;;  %v193_v32 = vld [vmem:[%s12166_s3 + $0x20] sm:$0xff] }
  0xe8   :  { %v152_v38 = vpop.f32.mrf.mxu0 }
  0xe9   :  { %361 = vmatmul.mubr.f32.vlgmr.msra.gmra.mxu1 %v6254_v31  ;;  %474 = vmatmul.mubr.f32.vlgmr.msra.gmra.mxu0 %v6254_v31  ;;  %v153_v43 = vadd.f32 %v6251_v28, %v152_v38  ;;  %v6324_v58 = vmax.f32 %v158_v52, 0.0  ;;  %v6463_v38 = vld [vmem:[%s12168_s5 + $0x1d0] sm:$0xff] }
  0xea   :  { %5465 = vmatpush3.msra.mxu1 %v268_v24  ;;  %766 = vmatpush1.msra.mxu0 %v761_v33  ;;  %v5460_v49 = vpop.f32.mrf.mxu0  ;;  %v713_v24 = vld [vmem:[%s12168_s5 + $0x60] sm:$0xff]  ;;  %v6555_v52 = vld [vmem:[%s12168_s5 + $0xf0] sm:$0xff] }
  0xeb   :  { %5466 = vmatprep.subr.mxu1 %v263_v35  ;;  %767 = vmatprep.subr.mxu0 %v758_v36  ;;  %v6299_v48 = vmax.f32 %v153_v43, 0.0  ;;  %v168_v6 = vadd.f32 %v5460_v49, %v6251_v28  ;;  %v705_v33 = vld [vmem:[%s12168_s5 + $0x20] sm:$0xff]  ;;  %v6445_v36 = vld [vmem:[%s12168_s5 + $0x1f8] sm:$0xff] }
  0xec   :  { %5467 = vmatpush3.msra.mxu1 %v263_v35  ;;  %366 = vmatprep.mubr.f32.mxu1 %v12177_v25  ;;  %v162_v56 = vpop.f32.mrf.mxu0  ;;  %v701_v35 = vld [vmem:[%s12168_s5] sm:$0xff]  ;;  %v6498_v43 = vld [vmem:[%s12168_s5 + $0x178] sm:$0xff] }
  0xed   :  { %479 = vmatprep.mubr.f32.mxu0 %v12177_v25  ;;  %5468 = vmatprep.subr.mxu1 %v258_v37  ;;  %v163_v61 = vadd.f32 %v6251_v28, %v162_v56  ;;  %v6374_v12 = vmax.f32 %v168_v6, 0.0  ;;  %v6536_v49 = vld [vmem:[%s12168_s5 + $0x118] sm:$0xff]  ;;  %v6579_v56 = vld [vmem:[%s12168_s5 + $0xb0] sm:$0xff] }
  0xee   :  { %768 = vmatpush1.msra.mxu0 %v757_v39  ;;  %367 = vmatmul.mubr.f32.gmra.mxu1 %v6274_v40  ;;  %v5463_v3 = vpop.f32.mrf.mxu0  ;;  %v6470_v39 = vld [vmem:[%s12168_s5 + $0x1b8] sm:$0xff]  ;;  %v6645_v6 = vld [vmem:[%s12169_s6 + $0x1f0] sm:$0xff] }
  0xef   :  { %480 = vmatmul.mubr.f32.gmra.mxu0 %v6274_v40  ;;  %5469 = vmatpush3.msra.mxu1 %v258_v37  ;;  %v6349_v2 = vmax.f32 %v163_v61, 0.0  ;;  %v178_v23 = vadd.f32 %v5463_v3, %v6251_v28  ;;  %v6450_v37 = vld [vmem:[%s12168_s5 + $0x1f0] sm:$0xff]  ;;  %v712_v61 = vld [vmem:[%s12168_s5 + $0x58] sm:$0xff]  ;;  %v6628_v3 = vld [vmem:[%s12169_s6 + $0x1e8] sm:$0xff] }
  0xf0   :  { %769 = vmatprep.subr.mxu0 %v754_v41  ;;  %5470 = vmatprep.subr.mxu1 %v253_v42  ;;  %v172_v10 = vpop.f32.mrf.mxu0  ;;  %v6483_v41 = vld [vmem:[%s12168_s5 + $0x198] sm:$0xff] }
  0xf1   :  { %770 = vmatpush1.msra.mxu0 %v753_v44  ;;  %5471 = vmatpush3.msra.mxu1 %v253_v42  ;;  %v173_v15 = vadd.f32 %v6251_v28, %v172_v10  ;;  %v709_v28 = vld [vmem:[%s12168_s5 + $0x40] sm:$0xff]  ;;  %v188_v29 = vmax.f32 %v178_v23, 0.0  ;;  %v6491_v42 = vld [vmem:[%s12168_s5 + $0x190] sm:$0xff]  ;;  %v6748_v23 = vld [vmem:[%s12169_s6 + $0x148] sm:$0xff] }
  0xf2   :  { %771 = vmatprep.subr.mxu0 %v750_v45  ;;  %372 = vmatprep.mubr.f32.mxu1 %v12177_v25  ;;  %v6504_v44 = vld [vmem:[%s12168_s5 + $0x170] sm:$0xff]  ;;  %v6510_v45 = vld [vmem:[%s12168_s5 + $0x158] sm:$0xff]  ;;  %12654 = vst [vmem:[#allocation14_spill] sm:$0xff] %v6748_v23 }
  0xf3   :  { %485 = vmatprep.mubr.f32.mxu0 %v12177_v25  ;;  %5472 = vmatprep.subr.mxu1 %v248_v46  ;;  %v6399_v20 = vmax.f32 %v173_v15, 0.0  ;;  %v6669_v10 = vld [vmem:[%s12169_s6 + $0x1d0] sm:$0xff]  ;;  %v6700_v15 = vld [vmem:[%s12169_s6 + $0x188] sm:$0xff] }
  0xf4   :  { %772 = vmatpush1.msra.mxu0 %v749_v47  ;;  %373 = vmatmul.mubr.f32.gmra.mxu1 %v6299_v48  ;;  %v6524_v47 = vld [vmem:[%s12168_s5 + $0x138] sm:$0xff] }
  0xf5   :  { %486 = vmatmul.mubr.f32.gmra.mxu0 %v6299_v48  ;;  %5473 = vmatpush3.msra.mxu1 %v248_v46  ;;  %v6517_v46 = vld [vmem:[%s12168_s5 + $0x150] sm:$0xff] }
  0xf6   :  { %773 = vmatprep.subr.mxu0 %v746_v50  ;;  %5474 = vmatprep.subr.mxu1 %v243_v51  ;;  %v6542_v50 = vld [vmem:[%s12168_s5 + $0x110] sm:$0xff] }
  0xf7   :  { %774 = vmatpush1.msra.mxu0 %v745_v53  ;;  %5475 = vmatpush3.msra.mxu1 %v243_v51  ;;  %v6548_v51 = vld [vmem:[%s12168_s5 + $0xf8] sm:$0xff] }
  0xf8   :  { %775 = vmatprep.subr.mxu0 %v742_v54  ;;  %378 = vmatprep.mubr.f32.mxu1 %v12177_v25  ;;  %v6561_v53 = vld [vmem:[%s12168_s5 + $0xd8] sm:$0xff]  ;;  %v6567_v54 = vld [vmem:[%s12168_s5 + $0xd0] sm:$0xff] }
  0xf9   :  { %491 = vmatprep.mubr.f32.mxu0 %v12177_v25  ;;  %5476 = vmatprep.subr.mxu1 %v238_v55 }
  0xfa   :  { %776 = vmatpush1.msra.mxu0 %v741_v57  ;;  %379 = vmatmul.mubr.f32.gmra.mxu1 %v6324_v58  ;;  %v6585_v57 = vld [vmem:[%s12168_s5 + $0x98] sm:$0xff] }
  0xfb   :  { %492 = vmatmul.mubr.f32.gmra.mxu0 %v6324_v58  ;;  %5477 = vmatpush3.msra.mxu1 %v238_v55  ;;  %v6573_v55 = vld [vmem:[%s12168_s5 + $0xb8] sm:$0xff] }
  0xfc   :  { %777 = vmatprep.subr.mxu0 %v738_v59  ;;  %5478 = vmatprep.subr.mxu1 %v233_v60  ;;  %v6597_v59 = vld [vmem:[%s12168_s5 + $0x78] sm:$0xff] }
  0xfd   :  { %778 = vmatpush1.msra.mxu0 %v737_v62  ;;  %5479 = vmatpush3.msra.mxu1 %v233_v60  ;;  %v715_v60 = vld [vmem:[%s12168_s5 + $0x70] sm:$0xff] }
  0xfe   :  { %779 = vmatprep.subr.mxu0 %v734_v63  ;;  %384 = vmatprep.mubr.f32.mxu1 %v12177_v25  ;;  %v711_v62 = vld [vmem:[%s12168_s5 + $0x50] sm:$0xff]  ;;  %v708_v63 = vld [vmem:[%s12168_s5 + $0x38] sm:$0xff] }
  0xff   :  { %497 = vmatprep.mubr.f32.mxu0 %v12177_v25  ;;  %5480 = vmatprep.subr.mxu1 %v228_v0 }
 0x100   :  { %780 = vmatpush1.msra.mxu0 %v733_v1  ;;  %385 = vmatmul.mubr.f32.gmra.mxu1 %v6349_v2  ;;  %v704_v1 = vld [vmem:[%s12168_s5 + $0x18] sm:$0xff] }
 0x101   :  { %498 = vmatmul.mubr.f32.gmra.mxu0 %v6349_v2  ;;  %5481 = vmatpush3.msra.mxu1 %v228_v0  ;;  %v707_v0 = vld [vmem:[%s12168_s5 + $0x30] sm:$0xff] }
 0x102   :  { %781 = vmatprep.subr.mxu0 %v730_v4  ;;  %5482 = vmatprep.subr.mxu1 %v223_v5  ;;  %v6633_v4 = vld [vmem:[%s12169_s6 + $0x1f8] sm:$0xff] }
 0x103   :  { %782 = vmatpush1.msra.mxu0 %v729_v7  ;;  %5483 = vmatpush3.msra.mxu1 %v223_v5  ;;  %v6640_v5 = vld [vmem:[%s12169_s6 + $0x1e0] sm:$0xff]  ;;  %v6652_v7 = vld [vmem:[%s12169_s6 + $0x1c8] sm:$0xff] }
 0x104   :  { %783 = vmatprep.subr.mxu0 %v726_v8  ;;  %390 = vmatprep.mubr.f32.mxu1 %v12177_v25  ;;  %v6657_v8 = vld [vmem:[%s12169_s6 + $0x1d8] sm:$0xff] }
 0x105   :  { %503 = vmatprep.mubr.f32.mxu0 %v12177_v25  ;;  %5484 = vmatprep.subr.mxu1 %v218_v9 }
 0x106   :  { %784 = vmatpush1.msra.mxu0 %v725_v11  ;;  %391 = vmatmul.mubr.f32.gmra.mxu1 %v6374_v12  ;;  %v6676_v11 = vld [vmem:[%s12169_s6 + $0x1a8] sm:$0xff] }
 0x107   :  { %504 = vmatmul.mubr.f32.gmra.mxu0 %v6374_v12  ;;  %5485 = vmatpush3.msra.mxu1 %v218_v9  ;;  %v6664_v9 = vld [vmem:[%s12169_s6 + $0x1c0] sm:$0xff] }
 0x108   :  { %785 = vmatprep.subr.mxu0 %v722_v13  ;;  %5486 = vmatprep.subr.mxu1 %v213_v14  ;;  %v6688_v13 = vld [vmem:[%s12169_s6 + $0x1a0] sm:$0xff] }
 0x109   :  { %786 = vmatpush1.msra.mxu0 %v721_v16  ;;  %5487 = vmatpush3.msra.mxu1 %v213_v14  ;;  %v6693_v14 = vld [vmem:[%s12169_s6 + $0x1b0] sm:$0xff]  ;;  %v6705_v16 = vld [vmem:[%s12169_s6 + $0x198] sm:$0xff] }
 0x10a   :  { %787 = vmatprep.subr.mxu0 %v718_v17  ;;  %396 = vmatprep.mubr.f32.mxu1 %v12177_v25  ;;  %v6712_v17 = vld [vmem:[%s12169_s6 + $0x180] sm:$0xff] }
 0x10b   :  { %509 = vmatprep.mubr.f32.mxu0 %v12177_v25  ;;  %5488 = vmatprep.subr.mxu1 %v208_v18 }
 0x10c   :  { %788 = vmatpush1.msra.mxu0 %v717_v19  ;;  %397 = vmatmul.mubr.f32.gmra.mxu1 %v6399_v20  ;;  %v6724_v19 = vld [vmem:[%s12169_s6 + $0x168] sm:$0xff] }
 0x10d   :  { %510 = vmatmul.mubr.f32.gmra.mxu0 %v6399_v20  ;;  %5489 = vmatpush3.msra.mxu1 %v208_v18  ;;  %v6717_v18 = vld [vmem:[%s12169_s6 + $0x190] sm:$0xff]  ;;  %12650 = vst [vmem:[#allocation10_spill] sm:$0xff] %v6724_v19 }
 0x10e   :  { %789 = vmatprep.subr.mxu0 %v714_v21  ;;  %5490 = vmatprep.subr.mxu1 %v203_v22  ;;  %v6736_v21 = vld [vmem:[%s12169_s6 + $0x160] sm:$0xff] }
 0x10f   :  { %790 = vmatpush1.msra.mxu0 %v713_v24  ;;  %5491 = vmatpush3.msra.mxu1 %v203_v22  ;;  %12652 = vst [vmem:[#allocation12_spill] sm:$0xff] %v6736_v21  ;;  %v6741_v22 = vld [vmem:[%s12169_s6 + $0x170] sm:$0xff]  ;;  %v6753_v24 = vld [vmem:[%s12169_s6 + $0x158] sm:$0xff] }
 0x110   :  { %791 = vmatprep.subr.mxu0 %v710_v26  ;;  %402 = vmatprep.mubr.f32.mxu1 %v12177_v25  ;;  %12653 = vst [vmem:[#allocation13_spill] sm:$0xff] %v6741_v22  ;;  %12655 = vst [vmem:[#allocation15_spill] sm:$0xff] %v6753_v24  ;;  %v6760_v26 = vld [vmem:[%s12169_s6 + $0x140] sm:$0xff] }
 0x111   :  { %515 = vmatprep.mubr.f32.mxu0 %v12177_v25  ;;  %5492 = vmatprep.subr.mxu1 %v198_v27  ;;  %12656 = vst [vmem:[#allocation16_spill] sm:$0xff] %v6760_v26 }
 0x112   :  { %792 = vmatpush1.msra.mxu0 %v709_v28  ;;  %403 = vmatmul.mubr.f32.gmra.mxu1 %v188_v29  ;;  %v6772_v28 = vld [vmem:[%s12169_s6 + $0x128] sm:$0xff] }
 0x113   :  { %516 = vmatmul.mubr.f32.gmra.mxu0 %v188_v29  ;;  %5493 = vmatpush3.msra.mxu1 %v198_v27  ;;  %v6765_v27 = vld [vmem:[%s12169_s6 + $0x150] sm:$0xff]  ;;  %12658 = vst [vmem:[#allocation18_spill] sm:$0xff] %v6772_v28 }
 0x114   :  { %793 = vmatprep.subr.mxu0 %v706_v30  ;;  %5494 = vmatprep.subr.mxu1 %v193_v32  ;;  %12657 = vst [vmem:[#allocation17_spill] sm:$0xff] %v6765_v27  ;;  %v6784_v30 = vld [vmem:[%s12169_s6 + $0x120] sm:$0xff] }
 0x115   :  { %5496 = vmatprep.mubr.f32.mxu1 %v6254_v31  ;;  %794 = vmatpush1.msra.mxu0 %v705_v33  ;;  %v6456_v31 = vld [vmem:[%s12168_s5 + $0x1d8] sm:$0xff]  ;;  %12660 = vst [vmem:[#allocation20_spill] sm:$0xff] %v6784_v30  ;;  %v6796_v33 = vld [vmem:[%s12169_s6 + $0x108] sm:$0xff] }
 0x116   :  { %5495 = vmatpush3.msra.mxu1 %v193_v32  ;;  %795 = vmatprep.subr.mxu0 %v702_v34  ;;  %v6789_v32 = vld [vmem:[%s12169_s6 + $0x130] sm:$0xff]  ;;  %12662 = vst [vmem:[#allocation22_spill] sm:$0xff] %v6796_v33  ;;  %v6801_v34 = vld [vmem:[%s12169_s6 + $0x118] sm:$0xff] }
 0x117   :  { %796 = vmatpush1.msra.mxu0 %v701_v35  ;;  %829 = vmatprep.mubr.f32.mxu0 %v12177_v25  ;;  %12661 = vst [vmem:[#allocation21_spill] sm:$0xff] %v6789_v32  ;;  %12663 = vst [vmem:[#allocation23_spill] sm:$0xff] %v6801_v34  ;;  %v6808_v35 = vld [vmem:[%s12169_s6 + $0x100] sm:$0xff] }
 0x118   :  { %836 = vmatprep.subr.mxu1 %v6445_v36  ;;  %5497 = vmatmul.mubr.f32.vlgmr.msra.gmra.mxu1 %v6274_v40  ;;  %v6477_v40 = vld [vmem:[%s12168_s5 + $0x1b0] sm:$0xff]  ;;  %12664 = vst [vmem:[#allocation24_spill] sm:$0xff] %v6808_v35 }
 0x119   :  { %830 = vmatmul.mubr.f32.vlgmr.msra.gmra.mxu0 %v12177_v25  ;;  %837 = vmatpush1.msra.mxu1 %v6450_v37 }
 0x11a   :  { %5499 = vmatprep.mubr.f32.mxu1 %v6299_v48  ;;  %838 = vmatprep.subr.mxu1 %v6456_v31  ;;  %v6530_v48 = vld [vmem:[%s12168_s5 + $0x130] sm:$0xff] }
 0x11b   :  { %839 = vmatpush1.msra.mxu1 %v6463_v38  ;;  %1127 = vmatprep.mubr.f32.mxu0 %v12177_v25 }
 0x11c   :  { %840 = vmatprep.subr.mxu1 %v6470_v39  ;;  %5500 = vmatmul.mubr.f32.gmra.mxu1 %v6324_v58  ;;  %v6591_v58 = vld [vmem:[%s12168_s5 + $0x90] sm:$0xff] }
 0x11d   :  { %841 = vmatpush1.msra.mxu1 %v6477_v40  ;;  %5502 = vmatprep.mubr.f32.mxu1 %v6349_v2  ;;  %v703_v2 = vld [vmem:[%s12168_s5 + $0x10] sm:$0xff] }
 0x11e   :  { %842 = vmatprep.subr.mxu1 %v6483_v41  ;;  %1063 = vmatprep.subr.mxu0 %v6628_v3 }
 0x11f   :  { %843 = vmatpush1.msra.mxu1 %v6491_v42  ;;  %1064 = vmatpush1.msra.mxu0 %v6640_v5 }
 0x120   :  { %844 = vmatprep.subr.mxu1 %v6498_v43  ;;  %5503 = vmatmul.mubr.f32.gmra.mxu1 %v6374_v12  ;;  %v6681_v12 = vld [vmem:[%s12169_s6 + $0x1b8] sm:$0xff] }
 0x121   :  { %845 = vmatpush1.msra.mxu1 %v6504_v44  ;;  %5505 = vmatprep.mubr.f32.mxu1 %v6399_v20  ;;  %v6729_v20 = vld [vmem:[%s12169_s6 + $0x178] sm:$0xff] }
 0x122   :  { %846 = vmatprep.subr.mxu1 %v6510_v45  ;;  %1065 = vmatprep.subr.mxu0 %v6652_v7  ;;  %12651 = vst [vmem:[#allocation11_spill] sm:$0xff] %v6729_v20 }
 0x123   :  { %847 = vmatpush1.msra.mxu1 %v6517_v46  ;;  %1066 = vmatpush1.msra.mxu0 %v6664_v9 }
 0x124   :  { %848 = vmatprep.subr.mxu1 %v6524_v47  ;;  %5506 = vmatmul.mubr.f32.gmra.mxu1 %v188_v29  ;;  %v6777_v29 = vld [vmem:[%s12169_s6 + $0x138] sm:$0xff] }
 0x125   :  { %849 = vmatpush1.msra.mxu1 %v6530_v48  ;;  %900 = vmatprep.mubr.f32.mxu1 %v12177_v25  ;;  %12659 = vst [vmem:[#allocation19_spill] sm:$0xff] %v6777_v29 }
 0x126   :  { %850 = vmatprep.subr.mxu1 %v6536_v49  ;;  %1067 = vmatprep.subr.mxu0 %v6676_v11 }
 0x127   :  { %851 = vmatpush1.msra.mxu1 %v6542_v50  ;;  %1068 = vmatpush1.msra.mxu0 %v6688_v13 }
 0x128   :  { %852 = vmatprep.subr.mxu1 %v6548_v51  ;;  %1069 = vmatprep.subr.mxu0 %v6700_v15 }
 0x129   :  { %853 = vmatpush1.msra.mxu1 %v6555_v52  ;;  %1070 = vmatpush1.msra.mxu0 %v6712_v17 }
 0x12a   :  { %854 = vmatprep.subr.mxu1 %v6561_v53  ;;  %1071 = vmatprep.subr.mxu0 %v6724_v19 }
 0x12b   :  { %855 = vmatpush1.msra.mxu1 %v6567_v54  ;;  %1072 = vmatpush1.msra.mxu0 %v6736_v21 }
 0x12c   :  { %856 = vmatprep.subr.mxu1 %v6573_v55  ;;  %1073 = vmatprep.subr.mxu0 %v6748_v23 }
 0x12d   :  { %857 = vmatpush1.msra.mxu1 %v6579_v56  ;;  %1074 = vmatpush1.msra.mxu0 %v6760_v26 }
 0x12e   :  { %858 = vmatprep.subr.mxu1 %v6585_v57  ;;  %1075 = vmatprep.subr.mxu0 %v6772_v28 }
 0x12f   :  { %859 = vmatpush1.msra.mxu1 %v6591_v58  ;;  %1076 = vmatpush1.msra.mxu0 %v6784_v30 }
 0x130   :  { %860 = vmatprep.subr.mxu1 %v6597_v59  ;;  %1077 = vmatprep.subr.mxu0 %v6796_v33 }
 0x131   :  { %861 = vmatpush1.msra.mxu1 %v715_v60  ;;  %v6813_v60 = vld [vmem:[%s12169_s6 + $0x110] sm:$0xff]  ;;  %1078 = vmatpush1.msra.mxu0 %v6808_v35  ;;  %v271_v35 = vlaneseq }
 0x132   :  { %862 = vmatprep.subr.mxu1 %v712_v61  ;;  %12665 = vst [vmem:[#allocation25_spill] sm:$0xff] %v6813_v60  ;;  %v6820_v61 = vld [vmem:[%s12169_s6 + $0xe8] sm:$0xff] }
 0x133   :  { %863 = vmatpush1.msra.mxu1 %v711_v62  ;;  %12666 = vst [vmem:[#allocation26_spill] sm:$0xff] %v6820_v61  ;;  %v6825_v62 = vld [vmem:[%s12169_s6 + $0xf8] sm:$0xff]  ;;  %1079 = vmatprep.subr.mxu0 %v6820_v61  ;;  %v7272_v61 = vld [vmem:[%s12169_s6 + $0x288] sm:$0xff] }
 0x134   :  { %864 = vmatprep.subr.mxu1 %v708_v63  ;;  %12667 = vst [vmem:[#allocation27_spill] sm:$0xff] %v6825_v62  ;;  %v6832_v63 = vld [vmem:[%s12169_s6 + $0xe0] sm:$0xff]  ;;  %12742 = vst [vmem:[#allocation102_spill] sm:$0xff] %v7272_v61 }
 0x135   :  { %865 = vmatpush1.msra.mxu1 %v707_v0  ;;  %12668 = vst [vmem:[#allocation28_spill] sm:$0xff] %v6832_v63  ;;  %v6837_v0 = vld [vmem:[%s12169_s6 + $0xf0] sm:$0xff]  ;;  %1080 = vmatpush1.msra.mxu0 %v6832_v63  ;;  %v7238_v63 = vld [vmem:[%s12169_s6 + $0x2c0] sm:$0xff] }
 0x136   :  { %866 = vmatprep.subr.mxu1 %v704_v1  ;;  %12669 = vst [vmem:[#allocation29_spill] sm:$0xff] %v6837_v0  ;;  %v6844_v1 = vld [vmem:[%s12169_s6 + $0xc8] sm:$0xff]  ;;  %12736 = vst [vmem:[#allocation96_spill] sm:$0xff] %v7238_v63 }
 0x137   :  { %867 = vmatpush1.msra.mxu1 %v703_v2  ;;  %12670 = vst [vmem:[#allocation30_spill] sm:$0xff] %v6844_v1  ;;  %v6849_v2 = vld [vmem:[%s12169_s6 + $0xd8] sm:$0xff]  ;;  %1081 = vmatprep.subr.mxu0 %v6844_v1  ;;  %v6868_v1 = vld [vmem:[%s12169_s6 + $0xa8] sm:$0xff] }
 0x138   :  { %901 = vmatmul.mubr.f32.vlgmr.msra.gmra.mxu1 %v12177_v25  ;;  %1134 = vmatprep.subr.mxu1 %v6633_v4  ;;  %12671 = vst [vmem:[#allocation31_spill] sm:$0xff] %v6849_v2  ;;  %12674 = vst [vmem:[#allocation34_spill] sm:$0xff] %v6868_v1 }
 0x139   :  { %1198 = vmatprep.mubr.f32.mxu1 %v12177_v25  ;;  %1135 = vmatpush1.msra.mxu1 %v6645_v6  ;;  %v6856_v25 = vld [vmem:[%s12169_s6 + $0xc0] sm:$0xff] }
 0x13a   :  { %1136 = vmatprep.subr.mxu1 %v6657_v8  ;;  %12672 = vst [vmem:[#allocation32_spill] sm:$0xff] %v6856_v25  ;;  %1082 = vmatpush1.msra.mxu0 %v6856_v25  ;;  %v6880_v25 = vld [vmem:[%s12169_s6 + $0xa0] sm:$0xff] }
 0x13b   :  { %1137 = vmatpush1.msra.mxu1 %v6669_v10  ;;  %1083 = vmatprep.subr.mxu0 %v6868_v1  ;;  %12676 = vst [vmem:[#allocation36_spill] sm:$0xff] %v6880_v25  ;;  %v6892_v1 = vld [vmem:[%s12169_s6 + $0x88] sm:$0xff] }
 0x13c   :  { %1138 = vmatprep.subr.mxu1 %v6681_v12  ;;  %1084 = vmatpush1.msra.mxu0 %v6880_v25  ;;  %12678 = vst [vmem:[#allocation38_spill] sm:$0xff] %v6892_v1  ;;  %v6904_v25 = vld [vmem:[%s12169_s6 + $0x80] sm:$0xff] }
 0x13d   :  { %1139 = vmatpush1.msra.mxu1 %v6693_v14  ;;  %1085 = vmatprep.subr.mxu0 %v6892_v1  ;;  %12680 = vst [vmem:[#allocation40_spill] sm:$0xff] %v6904_v25  ;;  %v6916_v1 = vld [vmem:[%s12169_s6 + $0x68] sm:$0xff] }
 0x13e   :  { %1140 = vmatprep.subr.mxu1 %v6705_v16  ;;  %1086 = vmatpush1.msra.mxu0 %v6904_v25  ;;  %12682 = vst [vmem:[#allocation42_spill] sm:$0xff] %v6916_v1  ;;  %v6928_v25 = vld [vmem:[%s12169_s6 + $0x60] sm:$0xff] }
 0x13f   :  { %1141 = vmatpush1.msra.mxu1 %v6717_v18  ;;  %1087 = vmatprep.subr.mxu0 %v6916_v1  ;;  %12684 = vst [vmem:[#allocation44_spill] sm:$0xff] %v6928_v25  ;;  %v6940_v1 = vld [vmem:[%s12169_s6 + $0x48] sm:$0xff] }
 0x140   :  { %1142 = vmatprep.subr.mxu1 %v6729_v20  ;;  %1088 = vmatpush1.msra.mxu0 %v6928_v25  ;;  %12686 = vst [vmem:[#allocation46_spill] sm:$0xff] %v6940_v1  ;;  %v6952_v25 = vld [vmem:[%s12169_s6 + $0x40] sm:$0xff] }
 0x141   :  { %1143 = vmatpush1.msra.mxu1 %v6741_v22  ;;  %1089 = vmatprep.subr.mxu0 %v6940_v1  ;;  %12688 = vst [vmem:[#allocation48_spill] sm:$0xff] %v6952_v25  ;;  %v6964_v1 = vld [vmem:[%s12169_s6 + $0x28] sm:$0xff] }
 0x142   :  { %1144 = vmatprep.subr.mxu1 %v6753_v24  ;;  %1090 = vmatpush1.msra.mxu0 %v6952_v25  ;;  %12690 = vst [vmem:[#allocation50_spill] sm:$0xff] %v6964_v1  ;;  %v6976_v25 = vld [vmem:[%s12169_s6 + $0x20] sm:$0xff] }
 0x143   :  { %1145 = vmatpush1.msra.mxu1 %v6765_v27  ;;  %1091 = vmatprep.subr.mxu0 %v6964_v1  ;;  %12692 = vst [vmem:[#allocation52_spill] sm:$0xff] %v6976_v25  ;;  %v6988_v1 = vld [vmem:[%s12169_s6 + $0x8] sm:$0xff] }
 0x144   :  { %1146 = vmatprep.subr.mxu1 %v6777_v29  ;;  %1092 = vmatpush1.msra.mxu0 %v6976_v25  ;;  %12694 = vst [vmem:[#allocation54_spill] sm:$0xff] %v6988_v1  ;;  %v7000_v25 = vld [vmem:[%s12169_s6] sm:$0xff] }
 0x145   :  { %1147 = vmatpush1.msra.mxu1 %v6789_v32  ;;  %1093 = vmatprep.subr.mxu0 %v6988_v1  ;;  %12696 = vst [vmem:[#allocation56_spill] sm:$0xff] %v7000_v25  ;;  %v7012_v1 = vld [vmem:[%s12169_s6 + $0x3e8] sm:$0xff] }
 0x146   :  { %1148 = vmatprep.subr.mxu1 %v6801_v34  ;;  %1094 = vmatpush1.msra.mxu0 %v7000_v25  ;;  %12698 = vst [vmem:[#allocation58_spill] sm:$0xff] %v7012_v1  ;;  %v7024_v25 = vld [vmem:[%s12169_s6 + $0x3e0] sm:$0xff] }
 0x147   :  { %1149 = vmatpush1.msra.mxu1 %v6813_v60  ;;  %1095 = vmatprep.subr.mxu0 %v7012_v1  ;;  %12700 = vst [vmem:[#allocation60_spill] sm:$0xff] %v7024_v25  ;;  %v7036_v1 = vld [vmem:[%s12169_s6 + $0x3c8] sm:$0xff]  ;;  %v7289_v60 = vld [vmem:[%s12169_s6 + $0x290] sm:$0xff] }
 0x148   :  { %1150 = vmatprep.subr.mxu1 %v6825_v62  ;;  %1096 = vmatpush2.msra.mxu0 %v7024_v25  ;;  %12702 = vst [vmem:[#allocation62_spill] sm:$0xff] %v7036_v1  ;;  %v7048_v25 = vld [vmem:[%s12169_s6 + $0x3c0] sm:$0xff]  ;;  %v7255_v62 = vld [vmem:[%s12169_s6 + $0x2b8] sm:$0xff]  ;;  %12745 = vst [vmem:[#allocation105_spill] sm:$0xff] %v7289_v60 }
 0x149   :  { %1151 = vmatpush1.msra.mxu1 %v6837_v0  ;;  %v6861_v0 = vld [vmem:[%s12169_s6 + $0xd0] sm:$0xff]  ;;  %1097 = vmatprep.subr.mxu0 %v7036_v1  ;;  %12704 = vst [vmem:[#allocation64_spill] sm:$0xff] %v7048_v25  ;;  %v7060_v1 = vld [vmem:[%s12169_s6 + $0x3a8] sm:$0xff]  ;;  %12739 = vst [vmem:[#allocation99_spill] sm:$0xff] %v7255_v62 }
 0x14a   :  { %1152 = vmatprep.subr.mxu1 %v6849_v2  ;;  %12673 = vst [vmem:[#allocation33_spill] sm:$0xff] %v6861_v0  ;;  %v6873_v2 = vld [vmem:[%s12169_s6 + $0xb8] sm:$0xff]  ;;  %1098 = vmatpush2.msra.mxu0 %v7048_v25  ;;  %12706 = vst [vmem:[#allocation66_spill] sm:$0xff] %v7060_v1  ;;  %v7072_v25 = vld [vmem:[%s12169_s6 + $0x3a0] sm:$0xff] }
 0x14b   :  { %1153 = vmatpush1.msra.mxu1 %v6861_v0  ;;  %12675 = vst [vmem:[#allocation35_spill] sm:$0xff] %v6873_v2  ;;  %v6885_v0 = vld [vmem:[%s12169_s6 + $0xb0] sm:$0xff]  ;;  %1099 = vmatprep.subr.mxu0 %v7060_v1  ;;  %12708 = vst [vmem:[#allocation68_spill] sm:$0xff] %v7072_v25  ;;  %v7084_v1 = vld [vmem:[%s12169_s6 + $0x388] sm:$0xff] }
 0x14c   :  { %1154 = vmatprep.subr.mxu1 %v6873_v2  ;;  %12677 = vst [vmem:[#allocation37_spill] sm:$0xff] %v6885_v0  ;;  %v6897_v2 = vld [vmem:[%s12169_s6 + $0x98] sm:$0xff]  ;;  %1100 = vmatpush2.msra.mxu0 %v7072_v25  ;;  %12710 = vst [vmem:[#allocation70_spill] sm:$0xff] %v7084_v1  ;;  %v7096_v25 = vld [vmem:[%s12169_s6 + $0x380] sm:$0xff] }
 0x14d   :  { %1155 = vmatpush1.msra.mxu1 %v6885_v0  ;;  %12679 = vst [vmem:[#allocation39_spill] sm:$0xff] %v6897_v2  ;;  %v6909_v0 = vld [vmem:[%s12169_s6 + $0x90] sm:$0xff]  ;;  %1101 = vmatprep.subr.mxu0 %v7084_v1  ;;  %12712 = vst [vmem:[#allocation72_spill] sm:$0xff] %v7096_v25  ;;  %v7108_v1 = vld [vmem:[%s12169_s6 + $0x368] sm:$0xff] }
 0x14e   :  { %1156 = vmatprep.subr.mxu1 %v6897_v2  ;;  %12681 = vst [vmem:[#allocation41_spill] sm:$0xff] %v6909_v0  ;;  %v6921_v2 = vld [vmem:[%s12169_s6 + $0x78] sm:$0xff]  ;;  %1102 = vmatpush2.msra.mxu0 %v7096_v25  ;;  %12714 = vst [vmem:[#allocation74_spill] sm:$0xff] %v7108_v1  ;;  %v7120_v25 = vld [vmem:[%s12169_s6 + $0x360] sm:$0xff] }
 0x14f   :  { %1157 = vmatpush1.msra.mxu1 %v6909_v0  ;;  %12683 = vst [vmem:[#allocation43_spill] sm:$0xff] %v6921_v2  ;;  %v6933_v0 = vld [vmem:[%s12169_s6 + $0x70] sm:$0xff]  ;;  %1103 = vmatprep.subr.mxu0 %v7108_v1  ;;  %12716 = vst [vmem:[#allocation76_spill] sm:$0xff] %v7120_v25  ;;  %v7132_v1 = vld [vmem:[%s12169_s6 + $0x348] sm:$0xff] }
 0x150   :  { %1158 = vmatprep.subr.mxu1 %v6921_v2  ;;  %12685 = vst [vmem:[#allocation45_spill] sm:$0xff] %v6933_v0  ;;  %v6945_v2 = vld [vmem:[%s12169_s6 + $0x58] sm:$0xff]  ;;  %1104 = vmatpush2.msra.mxu0 %v7120_v25  ;;  %12718 = vst [vmem:[#allocation78_spill] sm:$0xff] %v7132_v1  ;;  %v7144_v25 = vld [vmem:[%s12169_s6 + $0x340] sm:$0xff] }
 0x151   :  { %1159 = vmatpush1.msra.mxu1 %v6933_v0  ;;  %12687 = vst [vmem:[#allocation47_spill] sm:$0xff] %v6945_v2  ;;  %v6957_v0 = vld [vmem:[%s12169_s6 + $0x50] sm:$0xff]  ;;  %1105 = vmatprep.subr.mxu0 %v7132_v1  ;;  %12720 = vst [vmem:[#allocation80_spill] sm:$0xff] %v7144_v25  ;;  %v7156_v1 = vld [vmem:[%s12169_s6 + $0x328] sm:$0xff] }
 0x152   :  { %1160 = vmatprep.subr.mxu1 %v6945_v2  ;;  %12689 = vst [vmem:[#allocation49_spill] sm:$0xff] %v6957_v0  ;;  %v6969_v2 = vld [vmem:[%s12169_s6 + $0x38] sm:$0xff]  ;;  %1106 = vmatpush2.msra.mxu0 %v7144_v25  ;;  %12722 = vst [vmem:[#allocation82_spill] sm:$0xff] %v7156_v1  ;;  %v7168_v25 = vld [vmem:[%s12169_s6 + $0x320] sm:$0xff] }
 0x153   :  { %1161 = vmatpush1.msra.mxu1 %v6957_v0  ;;  %12691 = vst [vmem:[#allocation51_spill] sm:$0xff] %v6969_v2  ;;  %v6981_v0 = vld [vmem:[%s12169_s6 + $0x30] sm:$0xff]  ;;  %1107 = vmatprep.subr.mxu0 %v7156_v1  ;;  %12724 = vst [vmem:[#allocation84_spill] sm:$0xff] %v7168_v25  ;;  %v7180_v1 = vld [vmem:[%s12169_s6 + $0x308] sm:$0xff] }
 0x154   :  { %1162 = vmatprep.subr.mxu1 %v6969_v2  ;;  %12693 = vst [vmem:[#allocation53_spill] sm:$0xff] %v6981_v0  ;;  %v6993_v2 = vld [vmem:[%s12169_s6 + $0x18] sm:$0xff]  ;;  %1108 = vmatpush2.msra.mxu0 %v7168_v25  ;;  %12726 = vst [vmem:[#allocation86_spill] sm:$0xff] %v7180_v1  ;;  %v7192_v25 = vld [vmem:[%s12169_s6 + $0x300] sm:$0xff] }
 0x155   :  { %1163 = vmatpush1.msra.mxu1 %v6981_v0  ;;  %12695 = vst [vmem:[#allocation55_spill] sm:$0xff] %v6993_v2  ;;  %v7005_v0 = vld [vmem:[%s12169_s6 + $0x10] sm:$0xff]  ;;  %1109 = vmatprep.subr.mxu0 %v7180_v1  ;;  %12728 = vst [vmem:[#allocation88_spill] sm:$0xff] %v7192_v25  ;;  %v7204_v1 = vld [vmem:[%s12169_s6 + $0x2e8] sm:$0xff] }
 0x156   :  { %1164 = vmatprep.subr.mxu1 %v6993_v2  ;;  %12697 = vst [vmem:[#allocation57_spill] sm:$0xff] %v7005_v0  ;;  %v7017_v2 = vld [vmem:[%s12169_s6 + $0x3f8] sm:$0xff]  ;;  %1110 = vmatpush2.msra.mxu0 %v7192_v25  ;;  %12730 = vst [vmem:[#allocation90_spill] sm:$0xff] %v7204_v1  ;;  %v7216_v25 = vld [vmem:[%s12169_s6 + $0x2e0] sm:$0xff] }
 0x157   :  { %1165 = vmatpush1.msra.mxu1 %v7005_v0  ;;  %12699 = vst [vmem:[#allocation59_spill] sm:$0xff] %v7017_v2  ;;  %v7029_v0 = vld [vmem:[%s12169_s6 + $0x3f0] sm:$0xff]  ;;  %1111 = vmatprep.subr.mxu0 %v7204_v1  ;;  %12732 = vst [vmem:[#allocation92_spill] sm:$0xff] %v7216_v25  ;;  %v7228_v1 = vld [vmem:[%s12169_s6 + $0x2c8] sm:$0xff] }
 0x158   :  { %1166 = vmatprep.subr.mxu1 %v7017_v2  ;;  %12701 = vst [vmem:[#allocation61_spill] sm:$0xff] %v7029_v0  ;;  %v7041_v2 = vld [vmem:[%s12169_s6 + $0x3d8] sm:$0xff]  ;;  %1112 = vmatpush2.msra.mxu0 %v7216_v25  ;;  %12734 = vst [vmem:[#allocation94_spill] sm:$0xff] %v7228_v1  ;;  %v7250_v25 = vld [vmem:[%s12169_s6 + $0x2a8] sm:$0xff] }
 0x159   :  { %1167 = vmatpush2.msra.mxu1 %v7029_v0  ;;  %12703 = vst [vmem:[#allocation63_spill] sm:$0xff] %v7041_v2  ;;  %v7053_v0 = vld [vmem:[%s12169_s6 + $0x3d0] sm:$0xff]  ;;  %1113 = vmatprep.subr.mxu0 %v7228_v1  ;;  %12738 = vst [vmem:[#allocation98_spill] sm:$0xff] %v7250_v25 }
 0x15a   :  { %1168 = vmatprep.subr.mxu1 %v7041_v2  ;;  %12705 = vst [vmem:[#allocation65_spill] sm:$0xff] %v7053_v0  ;;  %v7065_v2 = vld [vmem:[%s12169_s6 + $0x3b8] sm:$0xff]  ;;  %1114 = vmatpush2.msra.mxu0 %v7238_v63  ;;  %v7267_v1 = vld [vmem:[%s12169_s6 + $0x2b0] sm:$0xff]  ;;  %v7284_v63 = vld [vmem:[%s12169_s6 + $0x280] sm:$0xff] }
 0x15b   :  { %1169 = vmatpush2.msra.mxu1 %v7053_v0  ;;  %12707 = vst [vmem:[#allocation67_spill] sm:$0xff] %v7065_v2  ;;  %v7077_v0 = vld [vmem:[%s12169_s6 + $0x3b0] sm:$0xff]  ;;  %12741 = vst [vmem:[#allocation101_spill] sm:$0xff] %v7267_v1  ;;  %1115 = vmatprep.subr.mxu0 %v7250_v25  ;;  %v7301_v25 = vld [vmem:[%s12169_s6 + $0x278] sm:$0xff] }
 0x15c   :  { %1170 = vmatprep.subr.mxu1 %v7065_v2  ;;  %12709 = vst [vmem:[#allocation69_spill] sm:$0xff] %v7077_v0  ;;  %v7089_v2 = vld [vmem:[%s12169_s6 + $0x398] sm:$0xff]  ;;  %12744 = vst [vmem:[#allocation104_spill] sm:$0xff] %v7284_v63 }
 0x15d   :  { %1171 = vmatpush2.msra.mxu1 %v7077_v0  ;;  %12711 = vst [vmem:[#allocation71_spill] sm:$0xff] %v7089_v2  ;;  %v7101_v0 = vld [vmem:[%s12169_s6 + $0x390] sm:$0xff]  ;;  %12747 = vst [vmem:[#allocation107_spill] sm:$0xff] %v7301_v25 }
 0x15e   :  { %1172 = vmatprep.subr.mxu1 %v7089_v2  ;;  %12713 = vst [vmem:[#allocation73_spill] sm:$0xff] %v7101_v0  ;;  %v7113_v2 = vld [vmem:[%s12169_s6 + $0x378] sm:$0xff] }
 0x15f   :  { %1173 = vmatpush2.msra.mxu1 %v7101_v0  ;;  %12715 = vst [vmem:[#allocation75_spill] sm:$0xff] %v7113_v2  ;;  %v7125_v0 = vld [vmem:[%s12169_s6 + $0x370] sm:$0xff] }
 0x160   :  { %1174 = vmatprep.subr.mxu1 %v7113_v2  ;;  %12717 = vst [vmem:[#allocation77_spill] sm:$0xff] %v7125_v0  ;;  %v7137_v2 = vld [vmem:[%s12169_s6 + $0x358] sm:$0xff] }
 0x161   :  { %1175 = vmatpush2.msra.mxu1 %v7125_v0  ;;  %12719 = vst [vmem:[#allocation79_spill] sm:$0xff] %v7137_v2  ;;  %v7149_v0 = vld [vmem:[%s12169_s6 + $0x350] sm:$0xff] }
 0x162   :  { %1176 = vmatprep.subr.mxu1 %v7137_v2  ;;  %12721 = vst [vmem:[#allocation81_spill] sm:$0xff] %v7149_v0  ;;  %v7161_v2 = vld [vmem:[%s12169_s6 + $0x338] sm:$0xff] }
 0x163   :  { %1177 = vmatpush2.msra.mxu1 %v7149_v0  ;;  %12723 = vst [vmem:[#allocation83_spill] sm:$0xff] %v7161_v2  ;;  %v7173_v0 = vld [vmem:[%s12169_s6 + $0x330] sm:$0xff] }
 0x164   :  { %1178 = vmatprep.subr.mxu1 %v7161_v2  ;;  %12725 = vst [vmem:[#allocation85_spill] sm:$0xff] %v7173_v0  ;;  %v7185_v2 = vld [vmem:[%s12169_s6 + $0x318] sm:$0xff] }
 0x165   :  { %1179 = vmatpush2.msra.mxu1 %v7173_v0  ;;  %12727 = vst [vmem:[#allocation87_spill] sm:$0xff] %v7185_v2  ;;  %v7197_v0 = vld [vmem:[%s12169_s6 + $0x310] sm:$0xff] }
 0x166   :  { %1180 = vmatprep.subr.mxu1 %v7185_v2  ;;  %12729 = vst [vmem:[#allocation89_spill] sm:$0xff] %v7197_v0  ;;  %v7209_v2 = vld [vmem:[%s12169_s6 + $0x2f8] sm:$0xff] }
 0x167   :  { %1181 = vmatpush2.msra.mxu1 %v7197_v0  ;;  %12731 = vst [vmem:[#allocation91_spill] sm:$0xff] %v7209_v2  ;;  %v7221_v0 = vld [vmem:[%s12169_s6 + $0x2f0] sm:$0xff] }
 0x168   :  { %1182 = vmatprep.subr.mxu1 %v7209_v2  ;;  %12733 = vst [vmem:[#allocation93_spill] sm:$0xff] %v7221_v0  ;;  %v7233_v2 = vld [vmem:[%s12169_s6 + $0x2d8] sm:$0xff] }
 0x169   :  { %1183 = vmatpush2.msra.mxu1 %v7221_v0  ;;  %12735 = vst [vmem:[#allocation95_spill] sm:$0xff] %v7233_v2  ;;  %v7245_v0 = vld [vmem:[%s12169_s6 + $0x2d0] sm:$0xff] }
 0x16a   :  { %1184 = vmatprep.subr.mxu1 %v7233_v2  ;;  %12737 = vst [vmem:[#allocation97_spill] sm:$0xff] %v7245_v0  ;;  %v7262_v2 = vld [vmem:[%s12169_s6 + $0x2a0] sm:$0xff] }
 0x16b   :  { %1185 = vmatpush2.msra.mxu1 %v7245_v0  ;;  %12740 = vst [vmem:[#allocation100_spill] sm:$0xff] %v7262_v2  ;;  %v7279_v0 = vld [vmem:[%s12169_s6 + $0x298] sm:$0xff]  ;;  %1116 = vmatpush2.msra.mxu0 %v7262_v2  ;;  %v7308_v2 = vld [vmem:[%s12169_s6 + $0x260] sm:$0xff] }
 0x16c   :  { %1186 = vmatprep.subr.mxu1 %v7255_v62  ;;  %12743 = vst [vmem:[#allocation103_spill] sm:$0xff] %v7279_v0  ;;  %v7296_v62 = vld [vmem:[%s12169_s6 + $0x268] sm:$0xff]  ;;  %1117 = vmatprep.subr.mxu0 %v7272_v61  ;;  %12748 = vst [vmem:[#allocation108_spill] sm:$0xff] %v7308_v2 }
 0x16d   :  { %1187 = vmatpush2.msra.mxu1 %v7267_v1  ;;  %12746 = vst [vmem:[#allocation106_spill] sm:$0xff] %v7296_v62  ;;  %v7313_v1 = vld [vmem:[%s12169_s6 + $0x270] sm:$0xff]  ;;  %1118 = vmatpush2.msra.mxu0 %v7284_v63  ;;  %v7320_v61 = vld [vmem:[%s12169_s6 + $0x248] sm:$0xff]  ;;  %v7332_v63 = vld [vmem:[%s12169_s6 + $0x240] sm:$0xff] }
 0x16e   :  { %1188 = vmatprep.subr.mxu1 %v7279_v0  ;;  %12749 = vst [vmem:[#allocation109_spill] sm:$0xff] %v7313_v1  ;;  %12750 = vst [vmem:[#allocation110_spill] sm:$0xff] %v7320_v61  ;;  %v7325_v0 = vld [vmem:[%s12169_s6 + $0x258] sm:$0xff]  ;;  %1119 = vmatprep.subr.mxu0 %v7296_v62  ;;  %v7344_v62 = vld [vmem:[%s12169_s6 + $0x228] sm:$0xff] }
 0x16f   :  { %1189 = vmatpush2.msra.mxu1 %v7289_v60  ;;  %12751 = vst [vmem:[#allocation111_spill] sm:$0xff] %v7325_v0  ;;  %12752 = vst [vmem:[#allocation112_spill] sm:$0xff] %v7332_v63  ;;  %v7337_v60 = vld [vmem:[%s12169_s6 + $0x250] sm:$0xff]  ;;  %1120 = vmatpush2.msra.mxu0 %v7308_v2  ;;  %v7356_v2 = vld [vmem:[%s12169_s6 + $0x220] sm:$0xff] }
 0x170   :  { %1190 = vmatprep.subr.mxu1 %v7301_v25  ;;  %12753 = vst [vmem:[#allocation113_spill] sm:$0xff] %v7337_v60  ;;  %12754 = vst [vmem:[#allocation114_spill] sm:$0xff] %v7344_v62  ;;  %v7349_v25 = vld [vmem:[%s12169_s6 + $0x238] sm:$0xff]  ;;  %1121 = vmatprep.subr.mxu0 %v7320_v61  ;;  %v7368_v61 = vld [vmem:[%s12169_s6 + $0x208] sm:$0xff] }
 0x171   :  { %1191 = vmatpush2.msra.mxu1 %v7313_v1  ;;  %12755 = vst [vmem:[#allocation115_spill] sm:$0xff] %v7349_v25  ;;  %12756 = vst [vmem:[#allocation116_spill] sm:$0xff] %v7356_v2  ;;  %v7361_v1 = vld [vmem:[%s12169_s6 + $0x230] sm:$0xff]  ;;  %1122 = vmatpush2.msra.mxu0 %v7332_v63  ;;  %v7380_v63 = vld [vmem:[%s12169_s6 + $0x200] sm:$0xff] }
 0x172   :  { %1192 = vmatprep.subr.mxu1 %v7325_v0  ;;  %12757 = vst [vmem:[#allocation117_spill] sm:$0xff] %v7361_v1  ;;  %12758 = vst [vmem:[#allocation118_spill] sm:$0xff] %v7368_v61  ;;  %v7373_v0 = vld [vmem:[%s12169_s6 + $0x218] sm:$0xff]  ;;  %1123 = vmatprep.subr.mxu0 %v7344_v62  ;;  %v7392_v62 = vld [vmem:[%s12168_s5 + $0x1e8] sm:$0xff] }
 0x173   :  { %1193 = vmatpush2.msra.mxu1 %v7337_v60  ;;  %12759 = vst [vmem:[#allocation119_spill] sm:$0xff] %v7373_v0  ;;  %12760 = vst [vmem:[#allocation120_spill] sm:$0xff] %v7380_v63  ;;  %v7385_v60 = vld [vmem:[%s12169_s6 + $0x210] sm:$0xff]  ;;  %1124 = vmatpush2.msra.mxu0 %v7356_v2  ;;  %v7406_v2 = vld [vmem:[%s12167_s4] sm:$0x1f] }
 0x174   :  { %1194 = vmatprep.subr.mxu1 %v7349_v25  ;;  %12761 = vst [vmem:[#allocation121_spill] sm:$0xff] %v7385_v60  ;;  %12762 = vst [vmem:[#allocation122_spill] sm:$0xff] %v7392_v62  ;;  %1125 = vmatprep.subr.mxu0 %v7368_v61  ;;  %v7398_v25 = vshrl.u32 %v271_v35, 7 }
 0x175   :  { %1195 = vmatpush2.msra.mxu1 %v7361_v1  ;;  %1126 = vmatpush2.msra.mxu0 %v7380_v63 }
 0x176   :  { %1196 = vmatprep.subr.mxu1 %v7373_v0  ;;  %12763 = vst [vmem:[#allocation123_spill] sm:$0xff] %v7398_v25  ;;  %1298 = vmatprep.subr.mxu0 %v7392_v62  ;;  %v12281_v1 = vsub.s32 0, %v7398_v25  ;;  %v12286_v62 = vsub.s32 2, %v7398_v25  ;;  %v12292_v32 = vsub.s32 3, %v7398_v25 }
 0x177   :  { %1197 = vmatpush2.msra.mxu1 %v7385_v60 }
 0x178   :  { %1369 = vmatprep.subr.mxu1 %v6445_v36  ;;  %v7411_v0 = vrot.slane %v7406_v2, %v12281_v1  ;;  %v12289_v36 = vsub.s32 1, %v7398_v25  ;;  %v7426_v1 = vrot.slane %v7406_v2, %v12286_v62 }
 0x1a9   :  { %v362_v63 = vpop.f32.mrf.mxu1  ;;  %v7413_v60 = vpop.f32.mrf.mxu0 }
 0x1aa   :  { %v363_v35 = vadd.f32 %v362_v63, %v7411_v0  ;;  %v7431_v63 = vrot.slane %v7406_v2, %v12289_v36 }
 0x1ab   :  { %v7418_v61 = vpop.f32.mrf.mxu1  ;;  %v7420_v34 = vpop.f32.mrf.mxu0 }
 0x1ac   :  { %v627_v33 = vmax.f32 %v363_v35, 0.0  ;;  %v7437_v35 = vrot.slane %v7406_v2, %v12292_v32 }
 0x1ae   :  { %635 = vst [vmem:[#allocation6] sm:$0xff] %v627_v33  ;;  %v368_v30 = vpop.f32.mrf.mxu1 }
 0x1af   :  { %v369_v29 = vadd.f32 %v368_v30, %v7411_v0  ;;  %v481_v28 = vpop.f32.mrf.mxu0 }
 0x1b0   :  { %v7440_v33 = vadd.f32 %v481_v28, %v7426_v1  ;;  %v370_v27 = vpop.f32.mrf.mxu1 }
 0x1b1   :  { %v628_v62 = vmax.f32 %v369_v29, 0.0  ;;  %v7443_v26 = vadd.f32 %v370_v27, %v7431_v63  ;;  %v483_v24 = vpop.f32.mrf.mxu0 }
 0x1b2   :  { %12764 = vst [vmem:[#allocation124_spill] sm:$0xff] %v7440_v33  ;;  %v7446_v36 = vadd.f32 %v483_v24, %v7437_v35 }
 0x1b3   :  { %12765 = vst [vmem:[#allocation125_spill] sm:$0xff] %v7443_v26  ;;  %636 = vst [vmem:[#allocation6 + $0x8] sm:$0xff] %v628_v62 }
 0x1b4   :  { %12766 = vst [vmem:[#allocation126_spill] sm:$0xff] %v7446_v36  ;;  %v374_v30 = vpop.f32.mrf.mxu1 }
 0x1b5   :  { %v375_v23 = vadd.f32 %v374_v30, %v7411_v0  ;;  %v487_v22 = vpop.f32.mrf.mxu0 }
 0x1b6   :  { %v7450_v32 = vadd.f32 %v487_v22, %v7426_v1  ;;  %v376_v21 = vpop.f32.mrf.mxu1 }
 0x1b7   :  { %v629_v28 = vmax.f32 %v375_v23, 0.0  ;;  %v7453_v33 = vadd.f32 %v376_v21, %v7431_v63  ;;  %v489_v29 = vpop.f32.mrf.mxu0 }
 0x1b8   :  { %12767 = vst [vmem:[#allocation127_spill] sm:$0xff] %v7450_v32  ;;  %v7456_v27 = vadd.f32 %v489_v29, %v7437_v35 }
 0x1b9   :  { %12768 = vst [vmem:[#allocation128_spill] sm:$0xff] %v7453_v33  ;;  %637 = vst [vmem:[#allocation6 + $0x10] sm:$0xff] %v629_v28 }
 0x1ba   :  { %12769 = vst [vmem:[#allocation129_spill] sm:$0xff] %v7456_v27  ;;  %v380_v24 = vpop.f32.mrf.mxu1 }
 0x1bb   :  { %v381_v62 = vadd.f32 %v380_v24, %v7411_v0  ;;  %v493_v36 = vpop.f32.mrf.mxu0 }
 0x1bc   :  { %v7460_v30 = vadd.f32 %v493_v36, %v7426_v1  ;;  %v382_v26 = vpop.f32.mrf.mxu1 }
 0x1bd   :  { %v630_v22 = vmax.f32 %v381_v62, 0.0  ;;  %v7463_v32 = vadd.f32 %v382_v26, %v7431_v63  ;;  %v495_v23 = vpop.f32.mrf.mxu0 }
 0x1be   :  { %12770 = vst [vmem:[#allocation130_spill] sm:$0xff] %v7460_v30  ;;  %v7466_v21 = vadd.f32 %v495_v23, %v7437_v35 }
 0x1bf   :  { %12771 = vst [vmem:[#allocation131_spill] sm:$0xff] %v7463_v32  ;;  %638 = vst [vmem:[#allocation6 + $0x18] sm:$0xff] %v630_v22 }
 0x1c0   :  { %12772 = vst [vmem:[#allocation132_spill] sm:$0xff] %v7466_v21  ;;  %v386_v29 = vpop.f32.mrf.mxu1 }
 0x1c1   :  { %v387_v28 = vadd.f32 %v386_v29, %v7411_v0  ;;  %v499_v27 = vpop.f32.mrf.mxu0 }
 0x1c2   :  { %v7470_v24 = vadd.f32 %v499_v27, %v7426_v1  ;;  %v388_v33 = vpop.f32.mrf.mxu1 }
 0x1c3   :  { %v631_v36 = vmax.f32 %v387_v28, 0.0  ;;  %v7473_v30 = vadd.f32 %v388_v33, %v7431_v63  ;;  %v501_v62 = vpop.f32.mrf.mxu0 }
 0x1c4   :  { %12773 = vst [vmem:[#allocation133_spill] sm:$0xff] %v7470_v24  ;;  %v7476_v26 = vadd.f32 %v501_v62, %v7437_v35 }
 0x1c5   :  { %12774 = vst [vmem:[#allocation134_spill] sm:$0xff] %v7473_v30  ;;  %639 = vst [vmem:[#allocation6 + $0x20] sm:$0xff] %v631_v36 }
 0x1c6   :  { %12775 = vst [vmem:[#allocation135_spill] sm:$0xff] %v7476_v26  ;;  %v392_v23 = vpop.f32.mrf.mxu1 }
 0x1c7   :  { %v393_v22 = vadd.f32 %v392_v23, %v7411_v0  ;;  %v505_v21 = vpop.f32.mrf.mxu0 }
 0x1c8   :  { %v7480_v29 = vadd.f32 %v505_v21, %v7426_v1  ;;  %v394_v32 = vpop.f32.mrf.mxu1 }
 0x1c9   :  { %v632_v27 = vmax.f32 %v393_v22, 0.0  ;;  %v7483_v24 = vadd.f32 %v394_v32, %v7431_v63  ;;  %v507_v28 = vpop.f32.mrf.mxu0 }
 0x1ca   :  { %12776 = vst [vmem:[#allocation136_spill] sm:$0xff] %v7480_v29  ;;  %v7486_v33 = vadd.f32 %v507_v28, %v7437_v35  ;;  %v289_v28 = vsub.s32 4, %v7398_v25 }
 0x1cb   :  { %12777 = vst [vmem:[#allocation137_spill] sm:$0xff] %v7483_v24  ;;  %640 = vst [vmem:[#allocation6 + $0x28] sm:$0xff] %v632_v27 }
 0x1cc   :  { %12778 = vst [vmem:[#allocation138_spill] sm:$0xff] %v7486_v33  ;;  %v398_v62 = vpop.f32.mrf.mxu1 }
 0x1cd   :  { %v399_v36 = vadd.f32 %v398_v62, %v7411_v0  ;;  %v511_v26 = vpop.f32.mrf.mxu0 }
 0x1ce   :  { %v7490_v23 = vadd.f32 %v511_v26, %v7426_v1  ;;  %v400_v30 = vpop.f32.mrf.mxu1 }
 0x1cf   :  { %v633_v21 = vmax.f32 %v399_v36, 0.0  ;;  %v7493_v29 = vadd.f32 %v400_v30, %v7431_v63  ;;  %v513_v22 = vpop.f32.mrf.mxu0 }
 0x1d0   :  { %12779 = vst [vmem:[#allocation139_spill] sm:$0xff] %v7490_v23  ;;  %v7496_v32 = vadd.f32 %v513_v22, %v7437_v35 }
 0x1d1   :  { %12780 = vst [vmem:[#allocation140_spill] sm:$0xff] %v7493_v29  ;;  %641 = vst [vmem:[#allocation6 + $0x30] sm:$0xff] %v633_v21  ;;  %v290_v29 = vrot.slane %v7406_v2, %v289_v28 }
 0x1d2   :  { %12781 = vst [vmem:[#allocation141_spill] sm:$0xff] %v7496_v32  ;;  %v404_v27 = vpop.f32.mrf.mxu1 }
 0x1d3   :  { %v405_v33 = vadd.f32 %v404_v27, %v7411_v0  ;;  %v517_v62 = vpop.f32.mrf.mxu0 }
 0x1d4   :  { %v7501_v24 = vadd.f32 %v517_v62, %v7426_v1  ;;  %v406_v26 = vpop.f32.mrf.mxu1  ;;  %v476_v62 = vadd.f32 %v7413_v60, %v7426_v1 }
 0x1d5   :  { %v634_v23 = vmax.f32 %v405_v33, 0.0  ;;  %v7504_v36 = vadd.f32 %v406_v26, %v7431_v63  ;;  %v519_v30 = vpop.f32.mrf.mxu0  ;;  %v365_v33 = vadd.f32 %v7418_v61, %v7431_v63 }
 0x1d6   :  { %12782 = vst [vmem:[#allocation142_spill] sm:$0xff] %v7501_v24  ;;  %v7508_v22 = vadd.f32 %v519_v30, %v7437_v35 }
 0x1d7   :  { %12783 = vst [vmem:[#allocation143_spill] sm:$0xff] %v7504_v36  ;;  %642 = vst [vmem:[#allocation6 + $0x38] sm:$0xff] %v634_v23 }
 0x1d8   :  { %12784 = vst [vmem:[#allocation144_spill] sm:$0xff] %v7508_v22  ;;  %v5498_v21 = vpop.f32.mrf.mxu1 }
 0x1d9   :  { %v7510_v32 = vadd.f32 %v5498_v21, %v290_v29  ;;  %v831_v0 = vpop.f32.mrf.mxu0 }
 0x1da   :  { %v588_v27 = vpop.f32.mrf.mxu1  ;;  %v907_v2 = vadd.f32 %v831_v0, %v365_v33 }
 0x1db   :  { %12785 = vst [vmem:[#allocation145_spill] sm:$0xff] %v7510_v32  ;;  %v833_v24 = vpop.f32.mrf.mxu0 }
 0x1dc   :  { %v5501_v26 = vpop.f32.mrf.mxu1  ;;  %v908_v36 = vadd.f32 %v833_v24, %v476_v62  ;;  %v5274_v32 = vmul.f32 -1.442695, %v907_v2  ;;  %v589_v2 = vadd.f32 %v588_v27, %v290_v29  ;;  %v7538_v27 = vld [vmem:[%s12168_s5 + $0x1e0] sm:$0xff] }
 0x1dd   :  { %v7516_v25 = vadd.f32 %v5501_v26, %v290_v29 }
 0x1de   :  { %v598_v28 = vpop.f32.mrf.mxu1  ;;  %v5275_v21 = vmul.f32 -1.442695, %v908_v36  ;;  %v478_v36 = vadd.f32 %v7420_v34, %v7437_v35 }
 0x1df   :  { %12786 = vst [vmem:[#allocation146_spill] sm:$0xff] %v7516_v25  ;;  %v7518_v30 = vadd.f32 %v598_v28, %v290_v29  ;;  %v12916_v25 = vld [vmem:[#allocation124_spill] sm:$0xff] }
 0x1e0   :  { %v5504_v23 = vpop.f32.mrf.mxu1  ;;  %5601 = vpow2.f32 %v5275_v21 }
 0x1e1   :  { %12787 = vst [vmem:[#allocation147_spill] sm:$0xff] %v7518_v30  ;;  %v7520_v22 = vadd.f32 %v5504_v23, %v290_v29  ;;  %5603 = vpow2.f32 %v5274_v32 }
 0x1e2   :  { %v608_v20 = vpop.f32.mrf.mxu1 }
 0x1e3   :  { %12788 = vst [vmem:[#allocation148_spill] sm:$0xff] %v7520_v22  ;;  %v7522_v19 = vadd.f32 %v608_v20, %v290_v29 }
 0x1e4   :  { %v5507_v60 = vpop.f32.mrf.mxu1 }
 0x1e5   :  { %12789 = vst [vmem:[#allocation149_spill] sm:$0xff] %v7522_v19  ;;  %v7524_v1 = vadd.f32 %v5507_v60, %v290_v29 }
 0x1e6   :  { %v618_v61 = vpop.f32.mrf.mxu1 }
 0x1e7   :  { %12790 = vst [vmem:[#allocation150_spill] sm:$0xff] %v7524_v1  ;;  %v7526_v63 = vadd.f32 %v618_v61, %v290_v29 }
 0x1e9   :  { %12791 = vst [vmem:[#allocation151_spill] sm:$0xff] %v7526_v63 }
 0x1ed   :  { %v5602_v24 = vpop.eup %5601 }
 0x1ee   :  { %v5604_v0 = vpop.eup %5603  ;;  %v918_v62 = vadd.f32 1.0, %v5602_v24 }
 0x1ef   :  { %v917_v33 = vadd.f32 1.0, %v5604_v0 }
 0x1f0   :  { %5605 = vrcp.f32 %v918_v62  ;;  %v7543_v62 = vld [vmem:[%s12168_s5 + $0x1c8] sm:$0xff] }
 0x1f1   :  { %5607 = vrcp.f32 %v917_v33  ;;  %v7709_v33 = vld [vmem:[%s12168_s5 + $0x70] sm:$0xff] }
 0x1f8   :  { %v902_v26 = vpop.f32.mrf.mxu1 }
 0x1f9   :  { %v909_v20 = vadd.f32 %v902_v26, %v478_v36  ;;  %v7728_v36 = vld [vmem:[%s12168_s5 + $0x40] sm:$0xff]  ;;  %v7740_v26 = vld [vmem:[%s12168_s5 + $0x28] sm:$0xff] }
 0x1fa   :  { %v904_v28 = vpop.f32.mrf.mxu1 }
 0x1fb   :  { %5609 = vtanh.f32 %v909_v20  ;;  %v910_v23 = vadd.f32 %v904_v28, %v589_v2  ;;  %v7752_v2 = vld [vmem:[%s12168_s5 + $0x20] sm:$0xff]  ;;  %v7757_v20 = vld [vmem:[%s12168_s5 + $0x30] sm:$0xff]  ;;  %v7764_v28 = vld [vmem:[%s12168_s5 + $0x8] sm:$0xff] }
 0x1fd   :  { %v5276_v21 = vmul.f32 -1.442695, %v910_v23  ;;  %v5606_v32 = vpop.eup %5605  ;;  %v7769_v23 = vld [vmem:[%s12168_s5 + $0x18] sm:$0xff] }
 0x1fe   :  { %v5608_v60 = vpop.eup %5607  ;;  %v930_v1 = vmul.f32 0.0, %v5606_v32  ;;  %v7783_v32 = vld [vmem:[%s12168_s5 + $0x10] sm:$0xff] }
 0x1ff   :  { %5611 = vpow2.f32 %v5276_v21  ;;  %v7776_v21 = vld [vmem:[%s12168_s5] sm:$0xff] }
 0x208   :  { %v5610_v61 = vpop.eup %5609 }
 0x209   :  { %v931_v63 = vmul.f32 %v5610_v61, %v5608_v60  ;;  %v12792_v60 = vmov 0.0   ;;  %v12809_v61 = vld [vmem:[#allocation26_spill] sm:$0xff] }
 0x20b   :  { %v7530_v24 = vadd.f32 %v931_v63, %v930_v1  ;;  %v7557_v1 = vld [vmem:[%s12168_s5 + $0x1a8] sm:$0xff]  ;;  %v7564_v63 = vld [vmem:[%s12168_s5 + $0x1a0] sm:$0xff] }
 0x20c   :  { %v5612_v0 = vpop.eup %5611 }
 0x20d   :  { %v927_v22 = vadd.f32 1.0, %v5612_v0  ;;  %5613 = vtanh.f32 %v7530_v24  ;;  %v12810_v0 = vld [vmem:[#allocation27_spill] sm:$0xff] }
 0x20f   :  { %5615 = vrcp.f32 %v927_v22  ;;  %v7550_v22 = vld [vmem:[%s12168_s5 + $0x1c0] sm:$0xff] }
 0x21a   :  { %v5614_v34 = vpop.eup %5613 }
 0x21c   :  { %v5616_v35 = vpop.eup %5615 }
 0x21d   :  { %v7533_v29 = vmul.f32 %v5616_v35, %v5614_v34  ;;  %v12811_v34 = vld [vmem:[#allocation28_spill] sm:$0xff]  ;;  %v12812_v35 = vld [vmem:[#allocation29_spill] sm:$0xff] }
 0x21f   :  { %1128 = vmatmul.mubr.f32.vlgmr.msra.gmra.mxu0 %v7533_v29  ;;  %1199 = vmatmul.mubr.f32.vlgmr.msra.gmra.mxu1 %v7533_v29 }
 0x220   :  { %1299 = vmatpush1.msra.mxu0 %v7538_v27  ;;  %1370 = vmatpush1.msra.mxu1 %v6450_v37  ;;  %v7571_v37 = vld [vmem:[%s12168_s5 + $0x188] sm:$0xff] }
 0x221   :  { %1300 = vmatprep.subr.mxu0 %v7543_v62  ;;  %1371 = vmatprep.subr.mxu1 %v6456_v31  ;;  %v7578_v31 = vld [vmem:[%s12168_s5 + $0x180] sm:$0xff] }
 0x222   :  { %1301 = vmatpush1.msra.mxu0 %v7550_v22  ;;  %1372 = vmatpush1.msra.mxu1 %v6463_v38  ;;  %v7585_v38 = vld [vmem:[%s12168_s5 + $0x168] sm:$0xff] }
 0x223   :  { %1302 = vmatprep.subr.mxu0 %v7557_v1  ;;  %1373 = vmatprep.subr.mxu1 %v6470_v39  ;;  %v7592_v39 = vld [vmem:[%s12168_s5 + $0x160] sm:$0xff] }
 0x224   :  { %1303 = vmatpush1.msra.mxu0 %v7564_v63  ;;  %1374 = vmatpush1.msra.mxu1 %v6477_v40  ;;  %v7599_v40 = vld [vmem:[%s12168_s5 + $0x148] sm:$0xff] }
 0x225   :  { %1304 = vmatprep.subr.mxu0 %v7571_v37  ;;  %1375 = vmatprep.subr.mxu1 %v6483_v41  ;;  %v7606_v41 = vld [vmem:[%s12168_s5 + $0x140] sm:$0xff] }
 0x226   :  { %1305 = vmatpush1.msra.mxu0 %v7578_v31  ;;  %1376 = vmatpush1.msra.mxu1 %v6491_v42  ;;  %v7613_v42 = vld [vmem:[%s12168_s5 + $0x128] sm:$0xff] }
 0x227   :  { %1306 = vmatprep.subr.mxu0 %v7585_v38  ;;  %1377 = vmatprep.subr.mxu1 %v6498_v43  ;;  %v7620_v43 = vld [vmem:[%s12168_s5 + $0x120] sm:$0xff] }
 0x228   :  { %1307 = vmatpush1.msra.mxu0 %v7592_v39  ;;  %1378 = vmatpush1.msra.mxu1 %v6504_v44  ;;  %v7627_v44 = vld [vmem:[%s12168_s5 + $0x108] sm:$0xff] }
 0x229   :  { %1308 = vmatprep.subr.mxu0 %v7599_v40  ;;  %1379 = vmatprep.subr.mxu1 %v6510_v45  ;;  %v7634_v45 = vld [vmem:[%s12168_s5 + $0x100] sm:$0xff] }
 0x22a   :  { %1309 = vmatpush1.msra.mxu0 %v7606_v41  ;;  %1380 = vmatpush1.msra.mxu1 %v6517_v46  ;;  %v7641_v46 = vld [vmem:[%s12168_s5 + $0xe8] sm:$0xff] }
 0x22b   :  { %1310 = vmatprep.subr.mxu0 %v7613_v42  ;;  %1381 = vmatprep.subr.mxu1 %v6524_v47  ;;  %v7648_v47 = vld [vmem:[%s12168_s5 + $0xe0] sm:$0xff] }
 0x22c   :  { %1311 = vmatpush1.msra.mxu0 %v7620_v43  ;;  %1382 = vmatpush1.msra.mxu1 %v6530_v48  ;;  %v7655_v48 = vld [vmem:[%s12168_s5 + $0xc8] sm:$0xff] }
 0x22d   :  { %1312 = vmatprep.subr.mxu0 %v7627_v44  ;;  %1383 = vmatprep.subr.mxu1 %v6536_v49  ;;  %v7662_v49 = vld [vmem:[%s12168_s5 + $0xc0] sm:$0xff] }
 0x22e   :  { %1313 = vmatpush1.msra.mxu0 %v7634_v45  ;;  %1384 = vmatpush1.msra.mxu1 %v6542_v50  ;;  %v7669_v50 = vld [vmem:[%s12168_s5 + $0xa8] sm:$0xff] }
 0x22f   :  { %1314 = vmatprep.subr.mxu0 %v7641_v46  ;;  %1385 = vmatprep.subr.mxu1 %v6548_v51  ;;  %v7676_v51 = vld [vmem:[%s12168_s5 + $0xa0] sm:$0xff] }
 0x230   :  { %1315 = vmatpush1.msra.mxu0 %v7648_v47  ;;  %1386 = vmatpush1.msra.mxu1 %v6555_v52  ;;  %v7683_v52 = vld [vmem:[%s12168_s5 + $0x88] sm:$0xff] }
 0x231   :  { %1316 = vmatprep.subr.mxu0 %v7655_v48  ;;  %1387 = vmatprep.subr.mxu1 %v6561_v53  ;;  %v7690_v53 = vld [vmem:[%s12168_s5 + $0x80] sm:$0xff] }
 0x232   :  { %1317 = vmatpush1.msra.mxu0 %v7662_v49  ;;  %1388 = vmatpush1.msra.mxu1 %v6567_v54  ;;  %v7697_v54 = vld [vmem:[%s12168_s5 + $0x68] sm:$0xff] }
 0x233   :  { %1318 = vmatprep.subr.mxu0 %v7669_v50  ;;  %1389 = vmatprep.subr.mxu1 %v6573_v55  ;;  %v7704_v55 = vld [vmem:[%s12168_s5 + $0x60] sm:$0xff] }
 0x234   :  { %1319 = vmatpush1.msra.mxu0 %v7676_v51  ;;  %1390 = vmatpush1.msra.mxu1 %v6579_v56  ;;  %v7716_v56 = vld [vmem:[%s12168_s5 + $0x48] sm:$0xff] }
 0x235   :  { %1320 = vmatprep.subr.mxu0 %v7683_v52  ;;  %1391 = vmatprep.subr.mxu1 %v6585_v57  ;;  %v7721_v57 = vld [vmem:[%s12168_s5 + $0x58] sm:$0xff] }
 0x236   :  { %1321 = vmatpush1.msra.mxu0 %v7690_v53  ;;  %1392 = vmatpush1.msra.mxu1 %v6591_v58  ;;  %v7733_v58 = vld [vmem:[%s12168_s5 + $0x50] sm:$0xff] }
 0x237   :  { %1322 = vmatprep.subr.mxu0 %v7697_v54  ;;  %1393 = vmatprep.subr.mxu1 %v6597_v59  ;;  %v7745_v59 = vld [vmem:[%s12168_s5 + $0x38] sm:$0xff] }
 0x238   :  { %1323 = vmatpush1.msra.mxu0 %v7704_v55  ;;  %1394 = vmatpush1.msra.mxu1 %v7709_v33 }
 0x239   :  { %1324 = vmatprep.subr.mxu0 %v7716_v56  ;;  %1395 = vmatprep.subr.mxu1 %v7721_v57 }
 0x23a   :  { %1325 = vmatpush1.msra.mxu0 %v7728_v36  ;;  %1396 = vmatpush1.msra.mxu1 %v7733_v58 }
 0x23b   :  { %1326 = vmatprep.subr.mxu0 %v7740_v26  ;;  %1397 = vmatprep.subr.mxu1 %v7745_v59 }
 0x23c   :  { %1327 = vmatpush1.msra.mxu0 %v7752_v2  ;;  %1398 = vmatpush1.msra.mxu1 %v7757_v20 }
 0x23d   :  { %1328 = vmatprep.subr.mxu0 %v7764_v28  ;;  %1399 = vmatprep.subr.mxu1 %v7769_v23 }
 0x23e   :  { %1329 = vmatpush1.msra.mxu0 %v7776_v21  ;;  %1362 = vmatprep.mubr.f32.mxu0 %v12792_v60 }
 0x23f   :  { %1400 = vmatpush1.msra.mxu1 %v7783_v32  ;;  %1433 = vmatprep.mubr.f32.mxu1 %v12792_v60 }
 0x240   :  { %1363 = vmatmul.mubr.f32.vlgmr.msra.gmra.mxu0 %v7533_v29  ;;  %1434 = vmatmul.mubr.f32.vlgmr.msra.gmra.mxu1 %v7533_v29  ;;  %v12813_v29 = vld [vmem:[#allocation30_spill] sm:$0xff] }
 0x241   :  { %1596 = vmatprep.subr.mxu0 %v6628_v3  ;;  %1667 = vmatprep.subr.mxu1 %v6633_v4  ;;  %v12793_v3 = vld [vmem:[#allocation10_spill] sm:$0xff]  ;;  %v12794_v4 = vld [vmem:[#allocation11_spill] sm:$0xff] }
 0x242   :  { %1597 = vmatpush1.msra.mxu0 %v6640_v5  ;;  %1668 = vmatpush1.msra.mxu1 %v6645_v6  ;;  %v12795_v5 = vld [vmem:[#allocation12_spill] sm:$0xff]  ;;  %v12796_v6 = vld [vmem:[#allocation13_spill] sm:$0xff] }
 0x243   :  { %1598 = vmatprep.subr.mxu0 %v6652_v7  ;;  %1669 = vmatprep.subr.mxu1 %v6657_v8  ;;  %v12797_v7 = vld [vmem:[#allocation14_spill] sm:$0xff]  ;;  %v12798_v8 = vld [vmem:[#allocation15_spill] sm:$0xff] }
 0x244   :  { %1599 = vmatpush1.msra.mxu0 %v6664_v9  ;;  %1670 = vmatpush1.msra.mxu1 %v6669_v10  ;;  %v12799_v9 = vld [vmem:[#allocation16_spill] sm:$0xff]  ;;  %v12800_v10 = vld [vmem:[#allocation17_spill] sm:$0xff] }
 0x245   :  { %1600 = vmatprep.subr.mxu0 %v6676_v11  ;;  %1671 = vmatprep.subr.mxu1 %v6681_v12  ;;  %v12801_v11 = vld [vmem:[#allocation18_spill] sm:$0xff]  ;;  %v12802_v12 = vld [vmem:[#allocation19_spill] sm:$0xff] }
 0x246   :  { %1601 = vmatpush1.msra.mxu0 %v6688_v13  ;;  %1672 = vmatpush1.msra.mxu1 %v6693_v14  ;;  %v12803_v13 = vld [vmem:[#allocation20_spill] sm:$0xff]  ;;  %v12804_v14 = vld [vmem:[#allocation21_spill] sm:$0xff] }
 0x247   :  { %1602 = vmatprep.subr.mxu0 %v6700_v15  ;;  %1673 = vmatprep.subr.mxu1 %v6705_v16  ;;  %v12805_v15 = vld [vmem:[#allocation22_spill] sm:$0xff]  ;;  %v12806_v16 = vld [vmem:[#allocation23_spill] sm:$0xff] }
 0x248   :  { %1603 = vmatpush1.msra.mxu0 %v6712_v17  ;;  %1674 = vmatpush1.msra.mxu1 %v6717_v18  ;;  %v12807_v17 = vld [vmem:[#allocation24_spill] sm:$0xff]  ;;  %v12808_v18 = vld [vmem:[#allocation25_spill] sm:$0xff] }
 0x249   :  { %1604 = vmatprep.subr.mxu0 %v12793_v3  ;;  %1675 = vmatprep.subr.mxu1 %v12794_v4  ;;  %v12814_v3 = vld [vmem:[#allocation31_spill] sm:$0xff]  ;;  %v12815_v4 = vld [vmem:[#allocation32_spill] sm:$0xff] }
 0x24a   :  { %1605 = vmatpush1.msra.mxu0 %v12795_v5  ;;  %1676 = vmatpush1.msra.mxu1 %v12796_v6  ;;  %v12816_v5 = vld [vmem:[#allocation33_spill] sm:$0xff]  ;;  %v12817_v6 = vld [vmem:[#allocation34_spill] sm:$0xff] }
 0x24b   :  { %1606 = vmatprep.subr.mxu0 %v12797_v7  ;;  %1677 = vmatprep.subr.mxu1 %v12798_v8  ;;  %v12818_v7 = vld [vmem:[#allocation35_spill] sm:$0xff]  ;;  %v12819_v8 = vld [vmem:[#allocation36_spill] sm:$0xff] }
 0x24c   :  { %1607 = vmatpush1.msra.mxu0 %v12799_v9  ;;  %1678 = vmatpush1.msra.mxu1 %v12800_v10  ;;  %v12820_v9 = vld [vmem:[#allocation37_spill] sm:$0xff]  ;;  %v12821_v10 = vld [vmem:[#allocation38_spill] sm:$0xff] }
 0x24d   :  { %1608 = vmatprep.subr.mxu0 %v12801_v11  ;;  %1679 = vmatprep.subr.mxu1 %v12802_v12  ;;  %v12822_v11 = vld [vmem:[#allocation39_spill] sm:$0xff]  ;;  %v12823_v12 = vld [vmem:[#allocation40_spill] sm:$0xff] }
 0x24e   :  { %1609 = vmatpush1.msra.mxu0 %v12803_v13  ;;  %1680 = vmatpush1.msra.mxu1 %v12804_v14  ;;  %v12824_v13 = vld [vmem:[#allocation41_spill] sm:$0xff]  ;;  %v12825_v14 = vld [vmem:[#allocation42_spill] sm:$0xff] }
 0x24f   :  { %1610 = vmatprep.subr.mxu0 %v12805_v15  ;;  %1681 = vmatprep.subr.mxu1 %v12806_v16  ;;  %v12826_v15 = vld [vmem:[#allocation43_spill] sm:$0xff]  ;;  %v12827_v16 = vld [vmem:[#allocation44_spill] sm:$0xff] }
 0x250   :  { %1611 = vmatpush1.msra.mxu0 %v12807_v17  ;;  %1682 = vmatpush1.msra.mxu1 %v12808_v18  ;;  %v12828_v17 = vld [vmem:[#allocation45_spill] sm:$0xff]  ;;  %v12829_v18 = vld [vmem:[#allocation46_spill] sm:$0xff] }
 0x251   :  { %1612 = vmatprep.subr.mxu0 %v12809_v61  ;;  %1683 = vmatprep.subr.mxu1 %v12810_v0  ;;  %v12830_v61 = vld [vmem:[#allocation47_spill] sm:$0xff]  ;;  %v12831_v0 = vld [vmem:[#allocation48_spill] sm:$0xff] }
 0x252   :  { %1613 = vmatpush1.msra.mxu0 %v12811_v34  ;;  %1684 = vmatpush1.msra.mxu1 %v12812_v35  ;;  %v12832_v34 = vld [vmem:[#allocation49_spill] sm:$0xff]  ;;  %v12833_v35 = vld [vmem:[#allocation50_spill] sm:$0xff] }
 0x253   :  { %1614 = vmatprep.subr.mxu0 %v12813_v29  ;;  %1685 = vmatprep.subr.mxu1 %v12814_v3  ;;  %v12834_v29 = vld [vmem:[#allocation51_spill] sm:$0xff]  ;;  %v12835_v3 = vld [vmem:[#allocation52_spill] sm:$0xff] }
 0x254   :  { %1615 = vmatpush1.msra.mxu0 %v12815_v4  ;;  %1686 = vmatpush1.msra.mxu1 %v12816_v5  ;;  %v12836_v4 = vld [vmem:[#allocation53_spill] sm:$0xff]  ;;  %v12837_v5 = vld [vmem:[#allocation54_spill] sm:$0xff] }
 0x255   :  { %1616 = vmatprep.subr.mxu0 %v12817_v6  ;;  %1687 = vmatprep.subr.mxu1 %v12818_v7  ;;  %v12838_v6 = vld [vmem:[#allocation55_spill] sm:$0xff]  ;;  %v12839_v7 = vld [vmem:[#allocation56_spill] sm:$0xff] }
 0x256   :  { %1617 = vmatpush1.msra.mxu0 %v12819_v8  ;;  %1688 = vmatpush1.msra.mxu1 %v12820_v9  ;;  %v12840_v8 = vld [vmem:[#allocation57_spill] sm:$0xff]  ;;  %v12841_v9 = vld [vmem:[#allocation58_spill] sm:$0xff] }
 0x257   :  { %1618 = vmatprep.subr.mxu0 %v12821_v10  ;;  %1689 = vmatprep.subr.mxu1 %v12822_v11  ;;  %v12842_v10 = vld [vmem:[#allocation59_spill] sm:$0xff]  ;;  %v12843_v11 = vld [vmem:[#allocation60_spill] sm:$0xff] }
 0x258   :  { %1619 = vmatpush1.msra.mxu0 %v12823_v12  ;;  %1690 = vmatpush1.msra.mxu1 %v12824_v13  ;;  %v12844_v12 = vld [vmem:[#allocation61_spill] sm:$0xff]  ;;  %v12845_v13 = vld [vmem:[#allocation62_spill] sm:$0xff] }
 0x259   :  { %1620 = vmatprep.subr.mxu0 %v12825_v14  ;;  %1691 = vmatprep.subr.mxu1 %v12826_v15  ;;  %v12846_v14 = vld [vmem:[#allocation63_spill] sm:$0xff]  ;;  %v12847_v15 = vld [vmem:[#allocation64_spill] sm:$0xff] }
 0x25a   :  { %1621 = vmatpush1.msra.mxu0 %v12827_v16  ;;  %1692 = vmatpush1.msra.mxu1 %v12828_v17  ;;  %v12848_v16 = vld [vmem:[#allocation65_spill] sm:$0xff]  ;;  %v12849_v17 = vld [vmem:[#allocation66_spill] sm:$0xff] }
 0x25b   :  { %1622 = vmatprep.subr.mxu0 %v12829_v18  ;;  %1693 = vmatprep.subr.mxu1 %v12830_v61  ;;  %v12850_v18 = vld [vmem:[#allocation67_spill] sm:$0xff]  ;;  %v12851_v61 = vld [vmem:[#allocation68_spill] sm:$0xff] }
 0x25c   :  { %1623 = vmatpush1.msra.mxu0 %v12831_v0  ;;  %1694 = vmatpush1.msra.mxu1 %v12832_v34  ;;  %v12852_v0 = vld [vmem:[#allocation69_spill] sm:$0xff]  ;;  %v12853_v34 = vld [vmem:[#allocation70_spill] sm:$0xff] }
 0x25d   :  { %1624 = vmatprep.subr.mxu0 %v12833_v35  ;;  %1695 = vmatprep.subr.mxu1 %v12834_v29  ;;  %v12854_v35 = vld [vmem:[#allocation71_spill] sm:$0xff]  ;;  %v12855_v29 = vld [vmem:[#allocation72_spill] sm:$0xff] }
 0x25e   :  { %1625 = vmatpush1.msra.mxu0 %v12835_v3  ;;  %1696 = vmatpush1.msra.mxu1 %v12836_v4  ;;  %v12856_v3 = vld [vmem:[#allocation73_spill] sm:$0xff]  ;;  %v12857_v4 = vld [vmem:[#allocation74_spill] sm:$0xff] }
 0x25f   :  { %1626 = vmatprep.subr.mxu0 %v12837_v5  ;;  %1697 = vmatprep.subr.mxu1 %v12838_v6  ;;  %v12858_v5 = vld [vmem:[#allocation75_spill] sm:$0xff]  ;;  %v12859_v6 = vld [vmem:[#allocation76_spill] sm:$0xff] }
 0x260   :  { %1627 = vmatpush1.msra.mxu0 %v12839_v7  ;;  %1698 = vmatpush1.msra.mxu1 %v12840_v8  ;;  %v12860_v7 = vld [vmem:[#allocation77_spill] sm:$0xff]  ;;  %v12861_v8 = vld [vmem:[#allocation78_spill] sm:$0xff] }
 0x261   :  { %1628 = vmatprep.subr.mxu0 %v12841_v9  ;;  %1699 = vmatprep.subr.mxu1 %v12842_v10  ;;  %v12862_v9 = vld [vmem:[#allocation79_spill] sm:$0xff]  ;;  %v12863_v10 = vld [vmem:[#allocation80_spill] sm:$0xff] }
 0x262   :  { %1629 = vmatpush2.msra.mxu0 %v12843_v11  ;;  %1700 = vmatpush2.msra.mxu1 %v12844_v12  ;;  %v12864_v11 = vld [vmem:[#allocation81_spill] sm:$0xff]  ;;  %v12865_v12 = vld [vmem:[#allocation82_spill] sm:$0xff] }
 0x263   :  { %1630 = vmatprep.subr.mxu0 %v12845_v13  ;;  %1701 = vmatprep.subr.mxu1 %v12846_v14  ;;  %v12866_v13 = vld [vmem:[#allocation83_spill] sm:$0xff]  ;;  %v12867_v14 = vld [vmem:[#allocation84_spill] sm:$0xff] }
 0x264   :  { %1631 = vmatpush2.msra.mxu0 %v12847_v15  ;;  %1702 = vmatpush2.msra.mxu1 %v12848_v16  ;;  %v12868_v15 = vld [vmem:[#allocation85_spill] sm:$0xff]  ;;  %v12869_v16 = vld [vmem:[#allocation86_spill] sm:$0xff] }
 0x265   :  { %1632 = vmatprep.subr.mxu0 %v12849_v17  ;;  %1703 = vmatprep.subr.mxu1 %v12850_v18  ;;  %v12870_v17 = vld [vmem:[#allocation87_spill] sm:$0xff]  ;;  %v12871_v18 = vld [vmem:[#allocation88_spill] sm:$0xff] }
 0x266   :  { %1633 = vmatpush2.msra.mxu0 %v12851_v61  ;;  %1704 = vmatpush2.msra.mxu1 %v12852_v0  ;;  %v12872_v61 = vld [vmem:[#allocation89_spill] sm:$0xff]  ;;  %v12873_v0 = vld [vmem:[#allocation90_spill] sm:$0xff] }
 0x267   :  { %1634 = vmatprep.subr.mxu0 %v12853_v34  ;;  %1705 = vmatprep.subr.mxu1 %v12854_v35  ;;  %v12874_v34 = vld [vmem:[#allocation91_spill] sm:$0xff]  ;;  %v12875_v35 = vld [vmem:[#allocation92_spill] sm:$0xff] }
 0x268   :  { %1635 = vmatpush2.msra.mxu0 %v12855_v29  ;;  %1706 = vmatpush2.msra.mxu1 %v12856_v3  ;;  %v12876_v29 = vld [vmem:[#allocation93_spill] sm:$0xff]  ;;  %v12877_v3 = vld [vmem:[#allocation94_spill] sm:$0xff] }
 0x269   :  { %1636 = vmatprep.subr.mxu0 %v12857_v4  ;;  %1707 = vmatprep.subr.mxu1 %v12858_v5  ;;  %v12878_v4 = vld [vmem:[#allocation95_spill] sm:$0xff]  ;;  %v12879_v5 = vld [vmem:[#allocation96_spill] sm:$0xff] }
 0x26a   :  { %1637 = vmatpush2.msra.mxu0 %v12859_v6  ;;  %1708 = vmatpush2.msra.mxu1 %v12860_v7  ;;  %v12880_v6 = vld [vmem:[#allocation97_spill] sm:$0xff]  ;;  %v12881_v7 = vld [vmem:[#allocation98_spill] sm:$0xff] }
 0x26b   :  { %1638 = vmatprep.subr.mxu0 %v12861_v8  ;;  %1709 = vmatprep.subr.mxu1 %v12862_v9  ;;  %v12882_v8 = vld [vmem:[#allocation99_spill] sm:$0xff]  ;;  %v12883_v9 = vld [vmem:[#allocation100_spill] sm:$0xff] }
 0x26c   :  { %1639 = vmatpush2.msra.mxu0 %v12863_v10  ;;  %1710 = vmatpush2.msra.mxu1 %v12864_v11  ;;  %v12884_v10 = vld [vmem:[#allocation101_spill] sm:$0xff]  ;;  %v12885_v11 = vld [vmem:[#allocation102_spill] sm:$0xff] }
 0x26d   :  { %1640 = vmatprep.subr.mxu0 %v12865_v12  ;;  %1711 = vmatprep.subr.mxu1 %v12866_v13  ;;  %v12886_v12 = vld [vmem:[#allocation103_spill] sm:$0xff]  ;;  %v12887_v13 = vld [vmem:[#allocation104_spill] sm:$0xff] }
 0x26e   :  { %1641 = vmatpush2.msra.mxu0 %v12867_v14  ;;  %1712 = vmatpush2.msra.mxu1 %v12868_v15  ;;  %v12888_v14 = vld [vmem:[#allocation105_spill] sm:$0xff]  ;;  %v12889_v15 = vld [vmem:[#allocation106_spill] sm:$0xff] }
 0x26f   :  { %1642 = vmatprep.subr.mxu0 %v12869_v16  ;;  %1713 = vmatprep.subr.mxu1 %v12870_v17  ;;  %v12890_v16 = vld [vmem:[#allocation107_spill] sm:$0xff]  ;;  %v12891_v17 = vld [vmem:[#allocation108_spill] sm:$0xff] }
 0x270   :  { %1643 = vmatpush2.msra.mxu0 %v12871_v18  ;;  %1714 = vmatpush2.msra.mxu1 %v12872_v61  ;;  %v12892_v18 = vld [vmem:[#allocation109_spill] sm:$0xff]  ;;  %v12893_v61 = vld [vmem:[#allocation110_spill] sm:$0xff] }
 0x271   :  { %1644 = vmatprep.subr.mxu0 %v12873_v0  ;;  %1715 = vmatprep.subr.mxu1 %v12874_v34  ;;  %v12894_v0 = vld [vmem:[#allocation111_spill] sm:$0xff]  ;;  %v12895_v34 = vld [vmem:[#allocation112_spill] sm:$0xff] }
 0x272   :  { %1645 = vmatpush2.msra.mxu0 %v12875_v35  ;;  %1716 = vmatpush2.msra.mxu1 %v12876_v29  ;;  %v12896_v35 = vld [vmem:[#allocation113_spill] sm:$0xff]  ;;  %v12897_v29 = vld [vmem:[#allocation114_spill] sm:$0xff] }
 0x273   :  { %1646 = vmatprep.subr.mxu0 %v12877_v3  ;;  %1717 = vmatprep.subr.mxu1 %v12878_v4  ;;  %v12898_v3 = vld [vmem:[#allocation115_spill] sm:$0xff]  ;;  %v12899_v4 = vld [vmem:[#allocation116_spill] sm:$0xff] }
 0x274   :  { %1647 = vmatpush2.msra.mxu0 %v12879_v5  ;;  %1718 = vmatpush2.msra.mxu1 %v12880_v6  ;;  %v12900_v5 = vld [vmem:[#allocation117_spill] sm:$0xff]  ;;  %v12901_v6 = vld [vmem:[#allocation118_spill] sm:$0xff] }
 0x275   :  { %1648 = vmatprep.subr.mxu0 %v12881_v7  ;;  %1719 = vmatprep.subr.mxu1 %v12882_v8  ;;  %v12902_v7 = vld [vmem:[#allocation119_spill] sm:$0xff]  ;;  %v12903_v8 = vld [vmem:[#allocation120_spill] sm:$0xff] }
 0x276   :  { %1649 = vmatpush2.msra.mxu0 %v12883_v9  ;;  %1720 = vmatpush2.msra.mxu1 %v12884_v10  ;;  %v12904_v9 = vld [vmem:[#allocation121_spill] sm:$0xff]  ;;  %v12905_v10 = vld [vmem:[#allocation122_spill] sm:$0xff] }
 0x277   :  { %1650 = vmatprep.subr.mxu0 %v12885_v11  ;;  %1721 = vmatprep.subr.mxu1 %v12886_v12  ;;  %v7925_v11 = vld [vmem:[%s12168_s5 + $0x1f8] sm:$0xff]  ;;  %v675_v12 = vld [vmem:[%s12170_s7] sm:$0xf] }
 0x278   :  { %1651 = vmatpush2.msra.mxu0 %v12887_v13  ;;  %1722 = vmatpush2.msra.mxu1 %v12888_v14  ;;  %v12906_v13 = vld [vmem:[#allocation123_spill] sm:$0xff] }
 0x279   :  { %1652 = vmatprep.subr.mxu0 %v12889_v15  ;;  %1723 = vmatprep.subr.mxu1 %v12890_v16  ;;  %v12907_v14 = vsub.s32 0, %v12906_v13  ;;  %v12909_v16 = vsub.s32 1, %v12906_v13 }
 0x27a   :  { %1653 = vmatpush2.msra.mxu0 %v12891_v17  ;;  %1724 = vmatpush2.msra.mxu1 %v12892_v18 }
 0x27b   :  { %1654 = vmatprep.subr.mxu0 %v12893_v61  ;;  %1725 = vmatprep.subr.mxu1 %v12894_v0  ;;  %v7933_v15 = vrot.slane %v675_v12, %v12907_v14  ;;  %v7937_v17 = vrot.slane %v675_v12, %v12909_v16 }
 0x27c   :  { %1655 = vmatpush2.msra.mxu0 %v12895_v34  ;;  %1726 = vmatpush2.msra.mxu1 %v12896_v35 }
 0x27d   :  { %1656 = vmatprep.subr.mxu0 %v12897_v29  ;;  %1727 = vmatprep.subr.mxu1 %v12898_v3  ;;  %12908 = vst [vmem:[#allocation10_spill] sm:$0xff] %v7933_v15  ;;  %12910 = vst [vmem:[#allocation11_spill] sm:$0xff] %v7937_v17 }
 0x27e   :  { %1657 = vmatpush2.msra.mxu0 %v12899_v4  ;;  %1728 = vmatpush2.msra.mxu1 %v12900_v5  ;;  %v12911_v4 = vsub.s32 3, %v12906_v13 }
 0x27f   :  { %1658 = vmatprep.subr.mxu0 %v12901_v6  ;;  %1729 = vmatprep.subr.mxu1 %v12902_v7 }
 0x280   :  { %1659 = vmatpush2.msra.mxu0 %v12903_v8  ;;  %1730 = vmatpush2.msra.mxu1 %v12904_v9  ;;  %v7943_v5 = vrot.slane %v675_v12, %v12911_v4  ;;  %v12913_v8 = vsub.s32 2, %v12906_v13  ;;  %v12915_v4 = vld [vmem:[#allocation125_spill] sm:$0xff] }
 0x281   :  { %1831 = vmatprep.subr.mxu0 %v12905_v10  ;;  %1902 = vmatprep.subr.mxu1 %v7925_v11 }
 0x282   :  { %12912 = vst [vmem:[#allocation12_spill] sm:$0xff] %v7943_v5  ;;  %v7948_v9 = vrot.slane %v675_v12, %v12913_v8 }
 0x284   :  { %12914 = vst [vmem:[#allocation13_spill] sm:$0xff] %v7948_v9 }
 0x2df   :  { %v1129_v18 = vpop.f32.mrf.mxu0  ;;  %v1200_v29 = vpop.f32.mrf.mxu1 }
 0x2e0   :  { %v1130_v61 = vadd.f32 %v1129_v18, %v7933_v15  ;;  %v1201_v16 = vadd.f32 %v1200_v29, %v7948_v9 }
 0x2e1   :  { %v1131_v0 = vpop.f32.mrf.mxu0  ;;  %v1202_v6 = vpop.f32.mrf.mxu1 }
 0x2e2   :  { %v5277_v34 = vmul.f32 -1.442695, %v1130_v61  ;;  %v1132_v35 = vadd.f32 %v1131_v0, %v7937_v17  ;;  %v1203_v7 = vadd.f32 %v1202_v6, %v7943_v5 }
 0x2e4   :  { %5617 = vpow2.f32 %v5277_v34  ;;  %v5278_v3 = vmul.f32 -1.442695, %v1132_v35  ;;  %v5279_v10 = vmul.f32 -1.442695, %v1203_v7 }
 0x2e6   :  { %5619 = vpow2.f32 %v5278_v3 }
 0x2e7   :  { %5621 = vpow2.f32 %v5279_v10 }
 0x2f1   :  { %v5618_v14 = vpop.eup %5617 }
 0x2f2   :  { %v1211_v18 = vadd.f32 1.0, %v5618_v14 }
 0x2f3   :  { %v5620_v61 = vpop.eup %5619 }
 0x2f4   :  { %5623 = vrcp.f32 %v1211_v18  ;;  %v1212_v0 = vadd.f32 1.0, %v5620_v61  ;;  %v5622_v34 = vpop.eup %5621 }
 0x2f5   :  { %5625 = vtanh.f32 %v1201_v16  ;;  %v1221_v13 = vadd.f32 1.0, %v5622_v34  ;;  %v12918_v34 = vld [vmem:[#allocation126_spill] sm:$0xff] }
 0x2f6   :  { %5627 = vrcp.f32 %v1212_v0  ;;  %v12917_v0 = vld [vmem:[#allocation145_spill] sm:$0xff] }
 0x300   :  { %v1364_v35 = vpop.f32.mrf.mxu0  ;;  %v1435_v10 = vpop.f32.mrf.mxu1 }
 0x301   :  { %v5624_v3 = vpop.eup %5623  ;;  %v1440_v6 = vadd.f32 %v1364_v35, %v12915_v4  ;;  %v1442_v4 = vadd.f32 %v1435_v10, %v12918_v34  ;;  %v7976_v34 = vld [vmem:[%s12168_s5 + $0x1d8] sm:$0xff] }
 0x302   :  { %v5626_v19 = vpop.eup %5625  ;;  %v1366_v12 = vpop.f32.mrf.mxu0 }
 0x303   :  { %v5628_v8 = vpop.eup %5627  ;;  %v5280_v7 = vmul.f32 -1.442695, %v1440_v6  ;;  %v1441_v30 = vadd.f32 %v1366_v12, %v12916_v25  ;;  %v1225_v14 = vmul.f32 %v5626_v19, %v5624_v3  ;;  %v1437_v16 = vpop.f32.mrf.mxu1 }
 0x304   :  { %v1224_v29 = vmul.f32 0.0, %v5628_v8  ;;  %v1443_v35 = vadd.f32 %v1437_v16, %v12917_v0 }
 0x305   :  { %5629 = vpow2.f32 %v5280_v7  ;;  %v5281_v18 = vmul.f32 -1.442695, %v1441_v30 }
 0x306   :  { %v7953_v61 = vadd.f32 %v1225_v14, %v1224_v29  ;;  %5631 = vrcp.f32 %v1221_v13  ;;  %v5282_v9 = vmul.f32 -1.442695, %v1443_v35  ;;  %v7971_v35 = vld [vmem:[%s12168_s5 + $0x1f0] sm:$0xff] }
 0x307   :  { %5633 = vpow2.f32 %v5281_v18 }
 0x308   :  { %5635 = vtanh.f32 %v7953_v61 }
 0x309   :  { %5637 = vtanh.f32 %v1442_v4  ;;  %v7990_v4 = vld [vmem:[%s12168_s5 + $0x1b8] sm:$0xff] }
 0x30a   :  { %5639 = vpow2.f32 %v5282_v9 }
 0x312   :  { %v5630_v6 = vpop.eup %5629 }
 0x313   :  { %v5632_v5 = vpop.eup %5631  ;;  %v1450_v25 = vadd.f32 1.0, %v5630_v6  ;;  %v7997_v6 = vld [vmem:[%s12168_s5 + $0x1b0] sm:$0xff] }
 0x314   :  { %v5634_v19 = vpop.eup %5633 }
 0x315   :  { %v5636_v3 = vpop.eup %5635  ;;  %5641 = vrcp.f32 %v1450_v25  ;;  %v1451_v30 = vadd.f32 1.0, %v5634_v19  ;;  %v8272_v25 = vld [vmem:[%s12169_s6 + $0x170] sm:$0xff]  ;;  %v8279_v19 = vld [vmem:[%s12169_s6 + $0x148] sm:$0xff] }
 0x316   :  { %v7958_v12 = vmul.f32 %v5636_v3, %v5632_v5  ;;  %v5638_v13 = vpop.eup %5637  ;;  %12922 = vst [vmem:[#allocation17_spill] sm:$0xff] %v8272_v25  ;;  %12923 = vst [vmem:[#allocation18_spill] sm:$0xff] %v8279_v19  ;;  %v8284_v3 = vld [vmem:[%s12169_s6 + $0x158] sm:$0xff] }
 0x317   :  { %5643 = vrcp.f32 %v1451_v30  ;;  %v5640_v8 = vpop.eup %5639  ;;  %12924 = vst [vmem:[#allocation19_spill] sm:$0xff] %v8284_v3  ;;  %v8291_v30 = vld [vmem:[%s12169_s6 + $0x140] sm:$0xff] }
 0x318   :  { %12919 = vst [vmem:[#allocation14_spill] sm:$0xff] %v7958_v12  ;;  %1660 = vmatprep.mubr.f32.mxu0 %v7958_v12  ;;  %1731 = vmatprep.mubr.f32.mxu1 %v7958_v12  ;;  %v1460_v10 = vadd.f32 1.0, %v5640_v8  ;;  %12925 = vst [vmem:[#allocation20_spill] sm:$0xff] %v8291_v30  ;;  %v8303_v8 = vld [vmem:[%s12169_s6 + $0x128] sm:$0xff]  ;;  %v8356_v12 = vld [vmem:[%s12169_s6 + $0xf8] sm:$0xff] }
 0x319   :  { %12927 = vst [vmem:[#allocation22_spill] sm:$0xff] %v8303_v8  ;;  %12936 = vst [vmem:[#allocation31_spill] sm:$0xff] %v8356_v12 }
 0x31a   :  { %5645 = vrcp.f32 %v1460_v10  ;;  %v8327_v10 = vld [vmem:[%s12169_s6 + $0x108] sm:$0xff] }
 0x31b   :  { %12931 = vst [vmem:[#allocation26_spill] sm:$0xff] %v8327_v10 }
 0x322   :  { %v5642_v7 = vpop.eup %5641 }
 0x323   :  { %v1464_v29 = vmul.f32 %v5642_v7, %v5638_v13  ;;  %v8296_v13 = vld [vmem:[%s12169_s6 + $0x150] sm:$0xff]  ;;  %v8308_v7 = vld [vmem:[%s12169_s6 + $0x138] sm:$0xff] }
 0x324   :  { %v5644_v14 = vpop.eup %5643  ;;  %12926 = vst [vmem:[#allocation21_spill] sm:$0xff] %v8296_v13  ;;  %12928 = vst [vmem:[#allocation23_spill] sm:$0xff] %v8308_v7 }
 0x325   :  { %v1463_v18 = vmul.f32 %v5644_v14, %v7530_v24  ;;  %v7983_v24 = vld [vmem:[%s12168_s5 + $0x1d0] sm:$0xff] }
 0x326   :  { %v8320_v14 = vld [vmem:[%s12169_s6 + $0x130] sm:$0xff] }
 0x327   :  { %v7963_v16 = vadd.f32 %v1464_v29, %v1463_v18  ;;  %v5646_v5 = vpop.eup %5645  ;;  %v8315_v29 = vld [vmem:[%s12169_s6 + $0x120] sm:$0xff]  ;;  %12930 = vst [vmem:[#allocation25_spill] sm:$0xff] %v8320_v14  ;;  %v8332_v18 = vld [vmem:[%s12169_s6 + $0x118] sm:$0xff] }
 0x328   :  { %12929 = vst [vmem:[#allocation24_spill] sm:$0xff] %v8315_v29  ;;  %12932 = vst [vmem:[#allocation27_spill] sm:$0xff] %v8332_v18 }
 0x329   :  { %5647 = vtanh.f32 %v7963_v16 }
 0x336   :  { %v5648_v9 = vpop.eup %5647 }
 0x337   :  { %v7966_v0 = vmul.f32 %v5648_v9, %v5646_v5  ;;  %v8339_v5 = vld [vmem:[%s12169_s6 + $0x100] sm:$0xff]  ;;  %v8344_v9 = vld [vmem:[%s12169_s6 + $0x110] sm:$0xff] }
 0x338   :  { %12933 = vst [vmem:[#allocation28_spill] sm:$0xff] %v8339_v5  ;;  %12934 = vst [vmem:[#allocation29_spill] sm:$0xff] %v8344_v9 }
 0x339   :  { %1661 = vmatmul.mubr.f32.vlgmr.msra.gmra.mxu0 %v7966_v0  ;;  %1732 = vmatmul.mubr.f32.vlgmr.msra.gmra.mxu1 %v7966_v0 }
 0x33a   :  { %1832 = vmatpush1.msra.mxu0 %v7538_v27  ;;  %1903 = vmatpush1.msra.mxu1 %v7971_v35  ;;  %v8004_v27 = vld [vmem:[%s12168_s5 + $0x198] sm:$0xff] }
 0x33b   :  { %1833 = vmatprep.subr.mxu0 %v7543_v62  ;;  %1904 = vmatprep.subr.mxu1 %v7976_v34  ;;  %v8011_v62 = vld [vmem:[%s12168_s5 + $0x190] sm:$0xff] }
 0x33c   :  { %1834 = vmatpush1.msra.mxu0 %v7550_v22  ;;  %1905 = vmatpush1.msra.mxu1 %v7983_v24  ;;  %v8018_v22 = vld [vmem:[%s12168_s5 + $0x178] sm:$0xff] }
 0x33d   :  { %1835 = vmatprep.subr.mxu0 %v7557_v1  ;;  %1906 = vmatprep.subr.mxu1 %v7990_v4  ;;  %v8025_v1 = vld [vmem:[%s12168_s5 + $0x170] sm:$0xff] }
 0x33e   :  { %1836 = vmatpush1.msra.mxu0 %v7564_v63  ;;  %1907 = vmatpush1.msra.mxu1 %v7997_v6  ;;  %v8032_v63 = vld [vmem:[%s12168_s5 + $0x158] sm:$0xff] }
 0x33f   :  { %1837 = vmatprep.subr.mxu0 %v7571_v37  ;;  %1908 = vmatprep.subr.mxu1 %v8004_v27  ;;  %v8039_v37 = vld [vmem:[%s12168_s5 + $0x150] sm:$0xff] }
 0x340   :  { %1838 = vmatpush1.msra.mxu0 %v7578_v31  ;;  %1909 = vmatpush1.msra.mxu1 %v8011_v62  ;;  %v8046_v31 = vld [vmem:[%s12168_s5 + $0x138] sm:$0xff] }
 0x341   :  { %1839 = vmatprep.subr.mxu0 %v7585_v38  ;;  %1910 = vmatprep.subr.mxu1 %v8018_v22  ;;  %v8053_v38 = vld [vmem:[%s12168_s5 + $0x130] sm:$0xff] }
 0x342   :  { %1840 = vmatpush1.msra.mxu0 %v7592_v39  ;;  %1911 = vmatpush1.msra.mxu1 %v8025_v1  ;;  %v8060_v39 = vld [vmem:[%s12168_s5 + $0x118] sm:$0xff] }
 0x343   :  { %1841 = vmatprep.subr.mxu0 %v7599_v40  ;;  %1912 = vmatprep.subr.mxu1 %v8032_v63  ;;  %v8067_v40 = vld [vmem:[%s12168_s5 + $0x110] sm:$0xff] }
 0x344   :  { %1842 = vmatpush1.msra.mxu0 %v7606_v41  ;;  %1913 = vmatpush1.msra.mxu1 %v8039_v37  ;;  %v8074_v41 = vld [vmem:[%s12168_s5 + $0xf8] sm:$0xff] }
 0x345   :  { %1843 = vmatprep.subr.mxu0 %v7613_v42  ;;  %1914 = vmatprep.subr.mxu1 %v8046_v31  ;;  %v8081_v42 = vld [vmem:[%s12168_s5 + $0xf0] sm:$0xff] }
 0x346   :  { %1844 = vmatpush1.msra.mxu0 %v7620_v43  ;;  %1915 = vmatpush1.msra.mxu1 %v8053_v38  ;;  %v8088_v43 = vld [vmem:[%s12168_s5 + $0xd8] sm:$0xff] }
 0x347   :  { %1845 = vmatprep.subr.mxu0 %v7627_v44  ;;  %1916 = vmatprep.subr.mxu1 %v8060_v39  ;;  %v8095_v44 = vld [vmem:[%s12168_s5 + $0xd0] sm:$0xff] }
 0x348   :  { %1846 = vmatpush1.msra.mxu0 %v7634_v45  ;;  %1917 = vmatpush1.msra.mxu1 %v8067_v40  ;;  %v8102_v45 = vld [vmem:[%s12168_s5 + $0xb8] sm:$0xff] }
 0x349   :  { %1847 = vmatprep.subr.mxu0 %v7641_v46  ;;  %1918 = vmatprep.subr.mxu1 %v8074_v41  ;;  %v8109_v46 = vld [vmem:[%s12168_s5 + $0xb0] sm:$0xff] }
 0x34a   :  { %1848 = vmatpush1.msra.mxu0 %v7648_v47  ;;  %1919 = vmatpush1.msra.mxu1 %v8081_v42  ;;  %v8116_v47 = vld [vmem:[%s12168_s5 + $0x98] sm:$0xff] }
 0x34b   :  { %1849 = vmatprep.subr.mxu0 %v7655_v48  ;;  %1920 = vmatprep.subr.mxu1 %v8088_v43  ;;  %v8123_v48 = vld [vmem:[%s12168_s5 + $0x90] sm:$0xff] }
 0x34c   :  { %1850 = vmatpush1.msra.mxu0 %v7662_v49  ;;  %1921 = vmatpush1.msra.mxu1 %v8095_v44  ;;  %v8130_v49 = vld [vmem:[%s12168_s5 + $0x78] sm:$0xff] }
 0x34d   :  { %1851 = vmatprep.subr.mxu0 %v7669_v50  ;;  %1922 = vmatprep.subr.mxu1 %v8102_v45  ;;  %v8159_v50 = vld [vmem:[%s12169_s6 + $0x1e8] sm:$0xff] }
 0x34e   :  { %1852 = vmatpush1.msra.mxu0 %v7676_v51  ;;  %1923 = vmatpush1.msra.mxu1 %v8109_v46  ;;  %v8164_v51 = vld [vmem:[%s12169_s6 + $0x1f8] sm:$0xff] }
 0x34f   :  { %1853 = vmatprep.subr.mxu0 %v7683_v52  ;;  %1924 = vmatprep.subr.mxu1 %v8116_v47  ;;  %v8171_v52 = vld [vmem:[%s12169_s6 + $0x1e0] sm:$0xff] }
 0x350   :  { %1854 = vmatpush1.msra.mxu0 %v7690_v53  ;;  %1925 = vmatpush1.msra.mxu1 %v8123_v48  ;;  %v8176_v53 = vld [vmem:[%s12169_s6 + $0x1f0] sm:$0xff] }
 0x351   :  { %1855 = vmatprep.subr.mxu0 %v7697_v54  ;;  %1926 = vmatprep.subr.mxu1 %v8130_v49  ;;  %v8183_v54 = vld [vmem:[%s12169_s6 + $0x1c8] sm:$0xff] }
 0x352   :  { %1856 = vmatpush1.msra.mxu0 %v7704_v55  ;;  %1927 = vmatpush1.msra.mxu1 %v7709_v33  ;;  %v8188_v55 = vld [vmem:[%s12169_s6 + $0x1d8] sm:$0xff]  ;;  %v8195_v33 = vld [vmem:[%s12169_s6 + $0x1c0] sm:$0xff] }
 0x353   :  { %1857 = vmatprep.subr.mxu0 %v7716_v56  ;;  %1928 = vmatprep.subr.mxu1 %v7721_v57  ;;  %v8200_v56 = vld [vmem:[%s12169_s6 + $0x1d0] sm:$0xff]  ;;  %v8207_v57 = vld [vmem:[%s12169_s6 + $0x1a8] sm:$0xff] }
 0x354   :  { %1858 = vmatpush1.msra.mxu0 %v7728_v36  ;;  %1929 = vmatpush1.msra.mxu1 %v7733_v58  ;;  %v8212_v36 = vld [vmem:[%s12169_s6 + $0x1b8] sm:$0xff]  ;;  %v8219_v58 = vld [vmem:[%s12169_s6 + $0x1a0] sm:$0xff] }
 0x355   :  { %1859 = vmatprep.subr.mxu0 %v7740_v26  ;;  %1930 = vmatprep.subr.mxu1 %v7745_v59  ;;  %v8224_v26 = vld [vmem:[%s12169_s6 + $0x1b0] sm:$0xff]  ;;  %v8231_v59 = vld [vmem:[%s12169_s6 + $0x188] sm:$0xff] }
 0x356   :  { %1860 = vmatpush1.msra.mxu0 %v7752_v2  ;;  %1931 = vmatpush1.msra.mxu1 %v7757_v20  ;;  %v8236_v2 = vld [vmem:[%s12169_s6 + $0x198] sm:$0xff]  ;;  %v8243_v20 = vld [vmem:[%s12169_s6 + $0x180] sm:$0xff] }
 0x357   :  { %1861 = vmatprep.subr.mxu0 %v7764_v28  ;;  %1932 = vmatprep.subr.mxu1 %v7769_v23  ;;  %v8248_v28 = vld [vmem:[%s12169_s6 + $0x190] sm:$0xff]  ;;  %v8255_v23 = vld [vmem:[%s12169_s6 + $0x168] sm:$0xff] }
 0x358   :  { %1862 = vmatpush1.msra.mxu0 %v7776_v21  ;;  %1895 = vmatprep.mubr.f32.mxu0 %v12792_v60  ;;  %v8260_v21 = vld [vmem:[%s12169_s6 + $0x178] sm:$0xff] }
 0x359   :  { %1933 = vmatpush1.msra.mxu1 %v7783_v32  ;;  %1966 = vmatprep.mubr.f32.mxu1 %v12792_v60  ;;  %12920 = vst [vmem:[#allocation15_spill] sm:$0xff] %v8260_v21  ;;  %v8267_v32 = vld [vmem:[%s12169_s6 + $0x160] sm:$0xff] }
 0x35a   :  { %1896 = vmatmul.mubr.f32.vlgmr.msra.gmra.mxu0 %v7966_v0  ;;  %1967 = vmatmul.mubr.f32.vlgmr.msra.gmra.mxu1 %v7966_v0  ;;  %12921 = vst [vmem:[#allocation16_spill] sm:$0xff] %v8267_v32  ;;  %v8351_v0 = vld [vmem:[%s12169_s6 + $0xe8] sm:$0xff] }
 0x35b   :  { %2129 = vmatprep.subr.mxu0 %v8159_v50  ;;  %2200 = vmatprep.subr.mxu1 %v8164_v51  ;;  %12935 = vst [vmem:[#allocation30_spill] sm:$0xff] %v8351_v0 }
 0x35c   :  { %2130 = vmatpush1.msra.mxu0 %v8171_v52  ;;  %2201 = vmatpush1.msra.mxu1 %v8176_v53 }
 0x35d   :  { %2131 = vmatprep.subr.mxu0 %v8183_v54  ;;  %2202 = vmatprep.subr.mxu1 %v8188_v55 }
 0x35e   :  { %2132 = vmatpush1.msra.mxu0 %v8195_v33  ;;  %2203 = vmatpush1.msra.mxu1 %v8200_v56 }
 0x35f   :  { %2133 = vmatprep.subr.mxu0 %v8207_v57  ;;  %2204 = vmatprep.subr.mxu1 %v8212_v36 }
 0x360   :  { %2134 = vmatpush1.msra.mxu0 %v8219_v58  ;;  %2205 = vmatpush1.msra.mxu1 %v8224_v26 }
 0x361   :  { %2135 = vmatprep.subr.mxu0 %v8231_v59  ;;  %2206 = vmatprep.subr.mxu1 %v8236_v2 }
 0x362   :  { %2136 = vmatpush1.msra.mxu0 %v8243_v20  ;;  %2207 = vmatpush1.msra.mxu1 %v8248_v28 }
 0x363   :  { %2137 = vmatprep.subr.mxu0 %v8255_v23  ;;  %2208 = vmatprep.subr.mxu1 %v8260_v21 }
 0x364   :  { %2138 = vmatpush1.msra.mxu0 %v8267_v32  ;;  %2209 = vmatpush1.msra.mxu1 %v8272_v25 }
 0x365   :  { %2139 = vmatprep.subr.mxu0 %v8279_v19  ;;  %2210 = vmatprep.subr.mxu1 %v8284_v3  ;;  %v13033_v19 = vld [vmem:[#allocation13_spill] sm:$0xff] }
 0x366   :  { %2140 = vmatpush1.msra.mxu0 %v8291_v30  ;;  %2211 = vmatpush1.msra.mxu1 %v8296_v13  ;;  %v13032_v30 = vld [vmem:[#allocation12_spill] sm:$0xff] }
 0x367   :  { %2141 = vmatprep.subr.mxu0 %v8303_v8  ;;  %2212 = vmatprep.subr.mxu1 %v8308_v7 }
 0x368   :  { %2142 = vmatpush1.msra.mxu0 %v8315_v29  ;;  %2213 = vmatpush1.msra.mxu1 %v8320_v14  ;;  %v8767_v14 = vld [vmem:[%s12169_s6 + $0x2c0] sm:$0xff]  ;;  %v8784_v29 = vld [vmem:[%s12169_s6 + $0x2b8] sm:$0xff] }
 0x369   :  { %2143 = vmatprep.subr.mxu0 %v8327_v10  ;;  %2214 = vmatprep.subr.mxu1 %v8332_v18  ;;  %v8733_v18 = vld [vmem:[%s12169_s6 + $0x2e8] sm:$0xff]  ;;  %v8750_v10 = vld [vmem:[%s12169_s6 + $0x2f0] sm:$0xff]  ;;  %13005 = vst [vmem:[#allocation100_spill] sm:$0xff] %v8767_v14  ;;  %13008 = vst [vmem:[#allocation103_spill] sm:$0xff] %v8784_v29 }
 0x36a   :  { %2144 = vmatpush1.msra.mxu0 %v8339_v5  ;;  %2215 = vmatpush1.msra.mxu1 %v8344_v9  ;;  %v8363_v5 = vld [vmem:[%s12169_s6 + $0xe0] sm:$0xff]  ;;  %v8368_v9 = vld [vmem:[%s12169_s6 + $0xf0] sm:$0xff]  ;;  %12999 = vst [vmem:[#allocation94_spill] sm:$0xff] %v8733_v18  ;;  %13002 = vst [vmem:[#allocation97_spill] sm:$0xff] %v8750_v10 }
 0x36b   :  { %2145 = vmatprep.subr.mxu0 %v8351_v0  ;;  %2216 = vmatprep.subr.mxu1 %v8356_v12  ;;  %12937 = vst [vmem:[#allocation32_spill] sm:$0xff] %v8363_v5  ;;  %12938 = vst [vmem:[#allocation33_spill] sm:$0xff] %v8368_v9  ;;  %v8375_v0 = vld [vmem:[%s12169_s6 + $0xc8] sm:$0xff]  ;;  %v8380_v12 = vld [vmem:[%s12169_s6 + $0xd8] sm:$0xff] }
 0x36c   :  { %2146 = vmatpush1.msra.mxu0 %v8363_v5  ;;  %2217 = vmatpush1.msra.mxu1 %v8368_v9  ;;  %12939 = vst [vmem:[#allocation34_spill] sm:$0xff] %v8375_v0  ;;  %12940 = vst [vmem:[#allocation35_spill] sm:$0xff] %v8380_v12  ;;  %v8387_v5 = vld [vmem:[%s12169_s6 + $0xc0] sm:$0xff]  ;;  %v8392_v9 = vld [vmem:[%s12169_s6 + $0xd0] sm:$0xff] }
 0x36d   :  { %2147 = vmatprep.subr.mxu0 %v8375_v0  ;;  %2218 = vmatprep.subr.mxu1 %v8380_v12  ;;  %12941 = vst [vmem:[#allocation36_spill] sm:$0xff] %v8387_v5  ;;  %12942 = vst [vmem:[#allocation37_spill] sm:$0xff] %v8392_v9  ;;  %v8399_v0 = vld [vmem:[%s12169_s6 + $0xa8] sm:$0xff]  ;;  %v8404_v12 = vld [vmem:[%s12169_s6 + $0xb8] sm:$0xff] }
 0x36e   :  { %2148 = vmatpush1.msra.mxu0 %v8387_v5  ;;  %2219 = vmatpush1.msra.mxu1 %v8392_v9  ;;  %12943 = vst [vmem:[#allocation38_spill] sm:$0xff] %v8399_v0  ;;  %12944 = vst [vmem:[#allocation39_spill] sm:$0xff] %v8404_v12  ;;  %v8411_v5 = vld [vmem:[%s12169_s6 + $0xa0] sm:$0xff]  ;;  %v8416_v9 = vld [vmem:[%s12169_s6 + $0xb0] sm:$0xff] }
 0x36f   :  { %2149 = vmatprep.subr.mxu0 %v8399_v0  ;;  %2220 = vmatprep.subr.mxu1 %v8404_v12  ;;  %12945 = vst [vmem:[#allocation40_spill] sm:$0xff] %v8411_v5  ;;  %12946 = vst [vmem:[#allocation41_spill] sm:$0xff] %v8416_v9  ;;  %v8423_v0 = vld [vmem:[%s12169_s6 + $0x88] sm:$0xff]  ;;  %v8428_v12 = vld [vmem:[%s12169_s6 + $0x98] sm:$0xff] }
 0x370   :  { %2150 = vmatpush1.msra.mxu0 %v8411_v5  ;;  %2221 = vmatpush1.msra.mxu1 %v8416_v9  ;;  %12947 = vst [vmem:[#allocation42_spill] sm:$0xff] %v8423_v0  ;;  %12948 = vst [vmem:[#allocation43_spill] sm:$0xff] %v8428_v12  ;;  %v8435_v5 = vld [vmem:[%s12169_s6 + $0x80] sm:$0xff]  ;;  %v8440_v9 = vld [vmem:[%s12169_s6 + $0x90] sm:$0xff] }
 0x371   :  { %2151 = vmatprep.subr.mxu0 %v8423_v0  ;;  %2222 = vmatprep.subr.mxu1 %v8428_v12  ;;  %12949 = vst [vmem:[#allocation44_spill] sm:$0xff] %v8435_v5  ;;  %12950 = vst [vmem:[#allocation45_spill] sm:$0xff] %v8440_v9  ;;  %v8447_v0 = vld [vmem:[%s12169_s6 + $0x68] sm:$0xff]  ;;  %v8452_v12 = vld [vmem:[%s12169_s6 + $0x78] sm:$0xff] }
 0x372   :  { %2152 = vmatpush1.msra.mxu0 %v8435_v5  ;;  %2223 = vmatpush1.msra.mxu1 %v8440_v9  ;;  %12951 = vst [vmem:[#allocation46_spill] sm:$0xff] %v8447_v0  ;;  %12952 = vst [vmem:[#allocation47_spill] sm:$0xff] %v8452_v12  ;;  %v8459_v5 = vld [vmem:[%s12169_s6 + $0x60] sm:$0xff]  ;;  %v8464_v9 = vld [vmem:[%s12169_s6 + $0x70] sm:$0xff] }
 0x373   :  { %2153 = vmatprep.subr.mxu0 %v8447_v0  ;;  %2224 = vmatprep.subr.mxu1 %v8452_v12  ;;  %12953 = vst [vmem:[#allocation48_spill] sm:$0xff] %v8459_v5  ;;  %12954 = vst [vmem:[#allocation49_spill] sm:$0xff] %v8464_v9  ;;  %v8471_v0 = vld [vmem:[%s12169_s6 + $0x48] sm:$0xff]  ;;  %v8476_v12 = vld [vmem:[%s12169_s6 + $0x58] sm:$0xff] }
 0x374   :  { %2154 = vmatpush1.msra.mxu0 %v8459_v5  ;;  %2225 = vmatpush1.msra.mxu1 %v8464_v9  ;;  %12955 = vst [vmem:[#allocation50_spill] sm:$0xff] %v8471_v0  ;;  %12956 = vst [vmem:[#allocation51_spill] sm:$0xff] %v8476_v12  ;;  %v8483_v5 = vld [vmem:[%s12169_s6 + $0x40] sm:$0xff]  ;;  %v8488_v9 = vld [vmem:[%s12169_s6 + $0x50] sm:$0xff] }
 0x375   :  { %2155 = vmatprep.subr.mxu0 %v8471_v0  ;;  %2226 = vmatprep.subr.mxu1 %v8476_v12  ;;  %12957 = vst [vmem:[#allocation52_spill] sm:$0xff] %v8483_v5  ;;  %12958 = vst [vmem:[#allocation53_spill] sm:$0xff] %v8488_v9  ;;  %v8495_v0 = vld [vmem:[%s12169_s6 + $0x28] sm:$0xff]  ;;  %v8500_v12 = vld [vmem:[%s12169_s6 + $0x38] sm:$0xff] }
 0x376   :  { %2156 = vmatpush1.msra.mxu0 %v8483_v5  ;;  %2227 = vmatpush1.msra.mxu1 %v8488_v9  ;;  %12959 = vst [vmem:[#allocation54_spill] sm:$0xff] %v8495_v0  ;;  %12960 = vst [vmem:[#allocation55_spill] sm:$0xff] %v8500_v12  ;;  %v8507_v5 = vld [vmem:[%s12169_s6 + $0x20] sm:$0xff]  ;;  %v8512_v9 = vld [vmem:[%s12169_s6 + $0x30] sm:$0xff] }
 0x377   :  { %2157 = vmatprep.subr.mxu0 %v8495_v0  ;;  %2228 = vmatprep.subr.mxu1 %v8500_v12  ;;  %12961 = vst [vmem:[#allocation56_spill] sm:$0xff] %v8507_v5  ;;  %12962 = vst [vmem:[#allocation57_spill] sm:$0xff] %v8512_v9  ;;  %v8519_v0 = vld [vmem:[%s12169_s6 + $0x8] sm:$0xff]  ;;  %v8524_v12 = vld [vmem:[%s12169_s6 + $0x18] sm:$0xff] }
 0x378   :  { %2158 = vmatpush1.msra.mxu0 %v8507_v5  ;;  %2229 = vmatpush1.msra.mxu1 %v8512_v9  ;;  %12963 = vst [vmem:[#allocation58_spill] sm:$0xff] %v8519_v0  ;;  %12964 = vst [vmem:[#allocation59_spill] sm:$0xff] %v8524_v12  ;;  %v8531_v5 = vld [vmem:[%s12169_s6] sm:$0xff]  ;;  %v8536_v9 = vld [vmem:[%s12169_s6 + $0x10] sm:$0xff] }
 0x379   :  { %2159 = vmatprep.subr.mxu0 %v8519_v0  ;;  %2230 = vmatprep.subr.mxu1 %v8524_v12  ;;  %12965 = vst [vmem:[#allocation60_spill] sm:$0xff] %v8531_v5  ;;  %12966 = vst [vmem:[#allocation61_spill] sm:$0xff] %v8536_v9  ;;  %v8543_v0 = vld [vmem:[%s12169_s6 + $0x3e8] sm:$0xff]  ;;  %v8548_v12 = vld [vmem:[%s12169_s6 + $0x3f8] sm:$0xff] }
 0x37a   :  { %2160 = vmatpush1.msra.mxu0 %v8531_v5  ;;  %2231 = vmatpush1.msra.mxu1 %v8536_v9  ;;  %12967 = vst [vmem:[#allocation62_spill] sm:$0xff] %v8543_v0  ;;  %12968 = vst [vmem:[#allocation63_spill] sm:$0xff] %v8548_v12  ;;  %v8555_v5 = vld [vmem:[%s12169_s6 + $0x3e0] sm:$0xff]  ;;  %v8560_v9 = vld [vmem:[%s12169_s6 + $0x3f0] sm:$0xff] }
 0x37b   :  { %2161 = vmatprep.subr.mxu0 %v8543_v0  ;;  %2232 = vmatprep.subr.mxu1 %v8548_v12  ;;  %12969 = vst [vmem:[#allocation64_spill] sm:$0xff] %v8555_v5  ;;  %12970 = vst [vmem:[#allocation65_spill] sm:$0xff] %v8560_v9  ;;  %v8567_v0 = vld [vmem:[%s12169_s6 + $0x3c8] sm:$0xff]  ;;  %v8572_v12 = vld [vmem:[%s12169_s6 + $0x3d8] sm:$0xff] }
 0x37c   :  { %2162 = vmatpush2.msra.mxu0 %v8555_v5  ;;  %2233 = vmatpush2.msra.mxu1 %v8560_v9  ;;  %12971 = vst [vmem:[#allocation66_spill] sm:$0xff] %v8567_v0  ;;  %12972 = vst [vmem:[#allocation67_spill] sm:$0xff] %v8572_v12  ;;  %v8579_v5 = vld [vmem:[%s12169_s6 + $0x3c0] sm:$0xff]  ;;  %v8584_v9 = vld [vmem:[%s12169_s6 + $0x3d0] sm:$0xff] }
 0x37d   :  { %2163 = vmatprep.subr.mxu0 %v8567_v0  ;;  %2234 = vmatprep.subr.mxu1 %v8572_v12  ;;  %12973 = vst [vmem:[#allocation68_spill] sm:$0xff] %v8579_v5  ;;  %12974 = vst [vmem:[#allocation69_spill] sm:$0xff] %v8584_v9  ;;  %v8591_v0 = vld [vmem:[%s12169_s6 + $0x3a8] sm:$0xff]  ;;  %v8596_v12 = vld [vmem:[%s12169_s6 + $0x3b8] sm:$0xff] }
 0x37e   :  { %2164 = vmatpush2.msra.mxu0 %v8579_v5  ;;  %2235 = vmatpush2.msra.mxu1 %v8584_v9  ;;  %12975 = vst [vmem:[#allocation70_spill] sm:$0xff] %v8591_v0  ;;  %12976 = vst [vmem:[#allocation71_spill] sm:$0xff] %v8596_v12  ;;  %v8603_v5 = vld [vmem:[%s12169_s6 + $0x3a0] sm:$0xff]  ;;  %v8608_v9 = vld [vmem:[%s12169_s6 + $0x3b0] sm:$0xff] }
 0x37f   :  { %2165 = vmatprep.subr.mxu0 %v8591_v0  ;;  %2236 = vmatprep.subr.mxu1 %v8596_v12  ;;  %12977 = vst [vmem:[#allocation72_spill] sm:$0xff] %v8603_v5  ;;  %12978 = vst [vmem:[#allocation73_spill] sm:$0xff] %v8608_v9  ;;  %v8615_v0 = vld [vmem:[%s12169_s6 + $0x388] sm:$0xff]  ;;  %v8620_v12 = vld [vmem:[%s12169_s6 + $0x398] sm:$0xff] }
 0x380   :  { %2166 = vmatpush2.msra.mxu0 %v8603_v5  ;;  %2237 = vmatpush2.msra.mxu1 %v8608_v9  ;;  %12979 = vst [vmem:[#allocation74_spill] sm:$0xff] %v8615_v0  ;;  %12980 = vst [vmem:[#allocation75_spill] sm:$0xff] %v8620_v12  ;;  %v8627_v5 = vld [vmem:[%s12169_s6 + $0x380] sm:$0xff]  ;;  %v8632_v9 = vld [vmem:[%s12169_s6 + $0x390] sm:$0xff] }
 0x381   :  { %2167 = vmatprep.subr.mxu0 %v8615_v0  ;;  %2238 = vmatprep.subr.mxu1 %v8620_v12  ;;  %12981 = vst [vmem:[#allocation76_spill] sm:$0xff] %v8627_v5  ;;  %12982 = vst [vmem:[#allocation77_spill] sm:$0xff] %v8632_v9  ;;  %v8639_v0 = vld [vmem:[%s12169_s6 + $0x368] sm:$0xff]  ;;  %v8644_v12 = vld [vmem:[%s12169_s6 + $0x378] sm:$0xff] }
 0x382   :  { %2168 = vmatpush2.msra.mxu0 %v8627_v5  ;;  %2239 = vmatpush2.msra.mxu1 %v8632_v9  ;;  %12983 = vst [vmem:[#allocation78_spill] sm:$0xff] %v8639_v0  ;;  %12984 = vst [vmem:[#allocation79_spill] sm:$0xff] %v8644_v12  ;;  %v8651_v5 = vld [vmem:[%s12169_s6 + $0x360] sm:$0xff]  ;;  %v8656_v9 = vld [vmem:[%s12169_s6 + $0x370] sm:$0xff] }
 0x383   :  { %2169 = vmatprep.subr.mxu0 %v8639_v0  ;;  %2240 = vmatprep.subr.mxu1 %v8644_v12  ;;  %12985 = vst [vmem:[#allocation80_spill] sm:$0xff] %v8651_v5  ;;  %12986 = vst [vmem:[#allocation81_spill] sm:$0xff] %v8656_v9  ;;  %v8663_v0 = vld [vmem:[%s12169_s6 + $0x348] sm:$0xff]  ;;  %v8668_v12 = vld [vmem:[%s12169_s6 + $0x358] sm:$0xff] }
 0x384   :  { %2170 = vmatpush2.msra.mxu0 %v8651_v5  ;;  %2241 = vmatpush2.msra.mxu1 %v8656_v9  ;;  %12987 = vst [vmem:[#allocation82_spill] sm:$0xff] %v8663_v0  ;;  %12988 = vst [vmem:[#allocation83_spill] sm:$0xff] %v8668_v12  ;;  %v8675_v5 = vld [vmem:[%s12169_s6 + $0x340] sm:$0xff]  ;;  %v8680_v9 = vld [vmem:[%s12169_s6 + $0x350] sm:$0xff] }
 0x385   :  { %2171 = vmatprep.subr.mxu0 %v8663_v0  ;;  %2242 = vmatprep.subr.mxu1 %v8668_v12  ;;  %12989 = vst [vmem:[#allocation84_spill] sm:$0xff] %v8675_v5  ;;  %12990 = vst [vmem:[#allocation85_spill] sm:$0xff] %v8680_v9  ;;  %v8687_v0 = vld [vmem:[%s12169_s6 + $0x328] sm:$0xff]  ;;  %v8692_v12 = vld [vmem:[%s12169_s6 + $0x338] sm:$0xff] }
 0x386   :  { %2172 = vmatpush2.msra.mxu0 %v8675_v5  ;;  %2243 = vmatpush2.msra.mxu1 %v8680_v9  ;;  %12991 = vst [vmem:[#allocation86_spill] sm:$0xff] %v8687_v0  ;;  %12992 = vst [vmem:[#allocation87_spill] sm:$0xff] %v8692_v12  ;;  %v8699_v5 = vld [vmem:[%s12169_s6 + $0x320] sm:$0xff]  ;;  %v8704_v9 = vld [vmem:[%s12169_s6 + $0x330] sm:$0xff] }
 0x387   :  { %2173 = vmatprep.subr.mxu0 %v8687_v0  ;;  %2244 = vmatprep.subr.mxu1 %v8692_v12  ;;  %12993 = vst [vmem:[#allocation88_spill] sm:$0xff] %v8699_v5  ;;  %12994 = vst [vmem:[#allocation89_spill] sm:$0xff] %v8704_v9  ;;  %v8711_v0 = vld [vmem:[%s12169_s6 + $0x308] sm:$0xff]  ;;  %v8716_v12 = vld [vmem:[%s12169_s6 + $0x318] sm:$0xff] }
 0x388   :  { %2174 = vmatpush2.msra.mxu0 %v8699_v5  ;;  %2245 = vmatpush2.msra.mxu1 %v8704_v9  ;;  %12995 = vst [vmem:[#allocation90_spill] sm:$0xff] %v8711_v0  ;;  %12996 = vst [vmem:[#allocation91_spill] sm:$0xff] %v8716_v12  ;;  %v8723_v5 = vld [vmem:[%s12169_s6 + $0x300] sm:$0xff]  ;;  %v8728_v9 = vld [vmem:[%s12169_s6 + $0x310] sm:$0xff] }
 0x389   :  { %2175 = vmatprep.subr.mxu0 %v8711_v0  ;;  %2246 = vmatprep.subr.mxu1 %v8716_v12  ;;  %12997 = vst [vmem:[#allocation92_spill] sm:$0xff] %v8723_v5  ;;  %12998 = vst [vmem:[#allocation93_spill] sm:$0xff] %v8728_v9  ;;  %v8740_v12 = vld [vmem:[%s12169_s6 + $0x2f8] sm:$0xff]  ;;  %v8745_v0 = vld [vmem:[%s12169_s6 + $0x2e0] sm:$0xff] }
 0x38a   :  { %2176 = vmatpush2.msra.mxu0 %v8723_v5  ;;  %2247 = vmatpush2.msra.mxu1 %v8728_v9  ;;  %13000 = vst [vmem:[#allocation95_spill] sm:$0xff] %v8740_v12  ;;  %13001 = vst [vmem:[#allocation96_spill] sm:$0xff] %v8745_v0  ;;  %v8757_v9 = vld [vmem:[%s12169_s6 + $0x2c8] sm:$0xff]  ;;  %v8762_v5 = vld [vmem:[%s12169_s6 + $0x2d8] sm:$0xff] }
 0x38b   :  { %2177 = vmatprep.subr.mxu0 %v8733_v18  ;;  %2248 = vmatprep.subr.mxu1 %v8740_v12  ;;  %13003 = vst [vmem:[#allocation98_spill] sm:$0xff] %v8757_v9  ;;  %13004 = vst [vmem:[#allocation99_spill] sm:$0xff] %v8762_v5  ;;  %v8774_v12 = vld [vmem:[%s12169_s6 + $0x2d0] sm:$0xff]  ;;  %v8779_v18 = vld [vmem:[%s12169_s6 + $0x2a8] sm:$0xff] }
 0x38c   :  { %2178 = vmatpush2.msra.mxu0 %v8745_v0  ;;  %2249 = vmatpush2.msra.mxu1 %v8750_v10  ;;  %13006 = vst [vmem:[#allocation101_spill] sm:$0xff] %v8774_v12  ;;  %13007 = vst [vmem:[#allocation102_spill] sm:$0xff] %v8779_v18  ;;  %v8791_v10 = vld [vmem:[%s12169_s6 + $0x2a0] sm:$0xff]  ;;  %v8796_v0 = vld [vmem:[%s12169_s6 + $0x2b0] sm:$0xff] }
 0x38d   :  { %2179 = vmatprep.subr.mxu0 %v8757_v9  ;;  %2250 = vmatprep.subr.mxu1 %v8762_v5  ;;  %13009 = vst [vmem:[#allocation104_spill] sm:$0xff] %v8791_v10  ;;  %13010 = vst [vmem:[#allocation105_spill] sm:$0xff] %v8796_v0  ;;  %v8803_v9 = vld [vmem:[%s12169_s6 + $0x288] sm:$0xff]  ;;  %v8808_v5 = vld [vmem:[%s12169_s6 + $0x298] sm:$0xff] }
 0x38e   :  { %2180 = vmatpush2.msra.mxu0 %v8767_v14  ;;  %2251 = vmatpush2.msra.mxu1 %v8774_v12  ;;  %13011 = vst [vmem:[#allocation106_spill] sm:$0xff] %v8803_v9  ;;  %13012 = vst [vmem:[#allocation107_spill] sm:$0xff] %v8808_v5  ;;  %v8815_v14 = vld [vmem:[%s12169_s6 + $0x280] sm:$0xff]  ;;  %v8820_v12 = vld [vmem:[%s12169_s6 + $0x290] sm:$0xff] }
 0x38f   :  { %2181 = vmatprep.subr.mxu0 %v8779_v18  ;;  %2252 = vmatprep.subr.mxu1 %v8784_v29  ;;  %13013 = vst [vmem:[#allocation108_spill] sm:$0xff] %v8815_v14  ;;  %13014 = vst [vmem:[#allocation109_spill] sm:$0xff] %v8820_v12  ;;  %v8827_v18 = vld [vmem:[%s12169_s6 + $0x268] sm:$0xff]  ;;  %v8832_v29 = vld [vmem:[%s12169_s6 + $0x278] sm:$0xff] }
 0x390   :  { %2182 = vmatpush2.msra.mxu0 %v8791_v10  ;;  %2253 = vmatpush2.msra.mxu1 %v8796_v0  ;;  %13015 = vst [vmem:[#allocation110_spill] sm:$0xff] %v8827_v18  ;;  %13016 = vst [vmem:[#allocation111_spill] sm:$0xff] %v8832_v29  ;;  %v8839_v10 = vld [vmem:[%s12169_s6 + $0x260] sm:$0xff]  ;;  %v8844_v0 = vld [vmem:[%s12169_s6 + $0x270] sm:$0xff] }
 0x391   :  { %2183 = vmatprep.subr.mxu0 %v8803_v9  ;;  %2254 = vmatprep.subr.mxu1 %v8808_v5  ;;  %13017 = vst [vmem:[#allocation112_spill] sm:$0xff] %v8839_v10  ;;  %13018 = vst [vmem:[#allocation113_spill] sm:$0xff] %v8844_v0  ;;  %v8851_v9 = vld [vmem:[%s12169_s6 + $0x248] sm:$0xff]  ;;  %v8856_v5 = vld [vmem:[%s12169_s6 + $0x258] sm:$0xff] }
 0x392   :  { %2184 = vmatpush2.msra.mxu0 %v8815_v14  ;;  %2255 = vmatpush2.msra.mxu1 %v8820_v12  ;;  %13019 = vst [vmem:[#allocation114_spill] sm:$0xff] %v8851_v9  ;;  %13020 = vst [vmem:[#allocation115_spill] sm:$0xff] %v8856_v5  ;;  %v8863_v14 = vld [vmem:[%s12169_s6 + $0x240] sm:$0xff]  ;;  %v8868_v12 = vld [vmem:[%s12169_s6 + $0x250] sm:$0xff] }
 0x393   :  { %2185 = vmatprep.subr.mxu0 %v8827_v18  ;;  %2256 = vmatprep.subr.mxu1 %v8832_v29  ;;  %13021 = vst [vmem:[#allocation116_spill] sm:$0xff] %v8863_v14  ;;  %13022 = vst [vmem:[#allocation117_spill] sm:$0xff] %v8868_v12  ;;  %v8875_v18 = vld [vmem:[%s12169_s6 + $0x228] sm:$0xff]  ;;  %v8880_v29 = vld [vmem:[%s12169_s6 + $0x238] sm:$0xff] }
 0x394   :  { %2186 = vmatpush2.msra.mxu0 %v8839_v10  ;;  %2257 = vmatpush2.msra.mxu1 %v8844_v0  ;;  %13023 = vst [vmem:[#allocation118_spill] sm:$0xff] %v8875_v18  ;;  %13024 = vst [vmem:[#allocation119_spill] sm:$0xff] %v8880_v29  ;;  %v8887_v10 = vld [vmem:[%s12169_s6 + $0x220] sm:$0xff]  ;;  %v8892_v0 = vld [vmem:[%s12169_s6 + $0x230] sm:$0xff] }
 0x395   :  { %2187 = vmatprep.subr.mxu0 %v8851_v9  ;;  %2258 = vmatprep.subr.mxu1 %v8856_v5  ;;  %13025 = vst [vmem:[#allocation120_spill] sm:$0xff] %v8887_v10  ;;  %13026 = vst [vmem:[#allocation121_spill] sm:$0xff] %v8892_v0  ;;  %v8899_v9 = vld [vmem:[%s12169_s6 + $0x208] sm:$0xff]  ;;  %v8904_v5 = vld [vmem:[%s12169_s6 + $0x218] sm:$0xff] }
 0x396   :  { %2188 = vmatpush2.msra.mxu0 %v8863_v14  ;;  %2259 = vmatpush2.msra.mxu1 %v8868_v12  ;;  %13027 = vst [vmem:[#allocation122_spill] sm:$0xff] %v8899_v9  ;;  %13028 = vst [vmem:[#allocation123_spill] sm:$0xff] %v8904_v5  ;;  %v8911_v14 = vld [vmem:[%s12169_s6 + $0x200] sm:$0xff]  ;;  %v8916_v12 = vld [vmem:[%s12169_s6 + $0x210] sm:$0xff] }
 0x397   :  { %2189 = vmatprep.subr.mxu0 %v8875_v18  ;;  %2260 = vmatprep.subr.mxu1 %v8880_v29  ;;  %13029 = vst [vmem:[#allocation125_spill] sm:$0xff] %v8911_v14  ;;  %13030 = vst [vmem:[#allocation124_spill] sm:$0xff] %v8916_v12  ;;  %v8923_v18 = vld [vmem:[%s12168_s5 + $0x1e8] sm:$0xff] }
 0x398   :  { %2190 = vmatpush2.msra.mxu0 %v8887_v10  ;;  %2261 = vmatpush2.msra.mxu1 %v8892_v0  ;;  %13031 = vst [vmem:[#allocation145_spill] sm:$0xff] %v8923_v18 }
 0x399   :  { %2191 = vmatprep.subr.mxu0 %v8899_v9  ;;  %2262 = vmatprep.subr.mxu1 %v8904_v5 }
 0x39a   :  { %2192 = vmatpush2.msra.mxu0 %v8911_v14  ;;  %2263 = vmatpush2.msra.mxu1 %v8916_v12 }
 0x39b   :  { %2364 = vmatprep.subr.mxu0 %v8923_v18  ;;  %2435 = vmatprep.subr.mxu1 %v7925_v11 }
 0x3f9   :  { %v1662_v10 = vpop.f32.mrf.mxu0  ;;  %v1733_v13 = vpop.f32.mrf.mxu1 }
 0x3fa   :  { %v1663_v0 = vadd.f32 %v1662_v10, %v7933_v15  ;;  %v1734_v18 = vadd.f32 %v1733_v13, %v13033_v19 }
 0x3fb   :  { %v1664_v29 = vpop.f32.mrf.mxu0  ;;  %v1735_v5 = vpop.f32.mrf.mxu1 }
 0x3fc   :  { %v5283_v7 = vmul.f32 -1.442695, %v1663_v0  ;;  %v1665_v8 = vadd.f32 %v1664_v29, %v7937_v17  ;;  %v1736_v14 = vadd.f32 %v1735_v5, %v13032_v30  ;;  %v13034_v17 = vld [vmem:[#allocation128_spill] sm:$0xff] }
 0x3fe   :  { %5649 = vpow2.f32 %v5283_v7  ;;  %v5284_v9 = vmul.f32 -1.442695, %v1665_v8  ;;  %v5285_v3 = vmul.f32 -1.442695, %v1736_v14  ;;  %v13035_v14 = vld [vmem:[#allocation127_spill] sm:$0xff] }
 0x400   :  { %5651 = vpow2.f32 %v5284_v9 }
 0x401   :  { %5653 = vpow2.f32 %v5285_v3 }
 0x40b   :  { %v5650_v12 = vpop.eup %5649 }
 0x40c   :  { %v1744_v25 = vadd.f32 1.0, %v5650_v12 }
 0x40d   :  { %v5652_v11 = vpop.eup %5651 }
 0x40e   :  { %5655 = vrcp.f32 %v1744_v25  ;;  %v1745_v10 = vadd.f32 1.0, %v5652_v11  ;;  %v5654_v0 = vpop.eup %5653 }
 0x40f   :  { %5657 = vtanh.f32 %v1734_v18  ;;  %v1754_v13 = vadd.f32 1.0, %v5654_v0 }
 0x410   :  { %5659 = vrcp.f32 %v1745_v10 }
 0x41a   :  { %v1897_v29 = vpop.f32.mrf.mxu0  ;;  %v1968_v25 = vpop.f32.mrf.mxu1 }
 0x41b   :  { %v5656_v7 = vpop.eup %5655  ;;  %v1973_v8 = vadd.f32 %v1897_v29, %v13034_v17  ;;  %v13036_v17 = vld [vmem:[#allocation147_spill] sm:$0xff]  ;;  %v13037_v29 = vld [vmem:[#allocation129_spill] sm:$0xff] }
 0x41c   :  { %v5658_v9 = vpop.eup %5657  ;;  %v1899_v15 = vpop.f32.mrf.mxu0 }
 0x41d   :  { %v5660_v32 = vpop.eup %5659  ;;  %v5286_v5 = vmul.f32 -1.442695, %v1973_v8  ;;  %v1974_v30 = vadd.f32 %v1899_v15, %v13035_v14  ;;  %v1758_v21 = vmul.f32 %v5658_v9, %v5656_v7  ;;  %v1970_v11 = vpop.f32.mrf.mxu1  ;;  %v1975_v8 = vadd.f32 %v1968_v25, %v13037_v29  ;;  %v8956_v29 = vld [vmem:[%s12168_s5 + $0x1e0] sm:$0xff] }
 0x41e   :  { %v1757_v12 = vmul.f32 %v5660_v32, %v7953_v61  ;;  %v1976_v10 = vadd.f32 %v1970_v11, %v13036_v17 }
 0x41f   :  { %5661 = vpow2.f32 %v5286_v5  ;;  %v5287_v3 = vmul.f32 -1.442695, %v1974_v30 }
 0x420   :  { %v8938_v18 = vadd.f32 %v1758_v21, %v1757_v12  ;;  %v5288_v19 = vmul.f32 -1.442695, %v1976_v10 }
 0x421   :  { %5663 = vpow2.f32 %v5287_v3 }
 0x422   :  { %5665 = vrcp.f32 %v1754_v13 }
 0x423   :  { %5667 = vtanh.f32 %v8938_v18 }
 0x424   :  { %5669 = vtanh.f32 %v1975_v8  ;;  %v8961_v8 = vld [vmem:[%s12168_s5 + $0x1c8] sm:$0xff] }
 0x425   :  { %5671 = vpow2.f32 %v5288_v19 }
 0x42c   :  { %v5662_v15 = vpop.eup %5661 }
 0x42d   :  { %v1983_v7 = vadd.f32 1.0, %v5662_v15  ;;  %v8975_v15 = vld [vmem:[%s12168_s5 + $0x1a8] sm:$0xff] }
 0x42e   :  { %v5664_v61 = vpop.eup %5663 }
 0x42f   :  { %v5666_v32 = vpop.eup %5665  ;;  %5673 = vrcp.f32 %v1983_v7  ;;  %v1984_v30 = vadd.f32 1.0, %v5664_v61  ;;  %v8982_v7 = vld [vmem:[%s12168_s5 + $0x1a0] sm:$0xff]  ;;  %v9127_v61 = vld [vmem:[%s12168_s5 + $0x70] sm:$0xff] }
 0x430   :  { %v5668_v21 = vpop.eup %5667 }
 0x431   :  { %5675 = vrcp.f32 %v1984_v30  ;;  %v8943_v0 = vmul.f32 %v5668_v21, %v5666_v32  ;;  %v5670_v9 = vpop.eup %5669  ;;  %v9146_v32 = vld [vmem:[%s12168_s5 + $0x40] sm:$0xff]  ;;  %v9158_v30 = vld [vmem:[%s12168_s5 + $0x28] sm:$0xff] }
 0x432   :  { %v5672_v5 = vpop.eup %5671  ;;  %v9170_v21 = vld [vmem:[%s12168_s5 + $0x20] sm:$0xff] }
 0x433   :  { %13038 = vst [vmem:[#allocation126_spill] sm:$0xff] %v8943_v0  ;;  %2193 = vmatprep.mubr.f32.mxu0 %v8943_v0  ;;  %2264 = vmatprep.mubr.f32.mxu1 %v8943_v0  ;;  %v1993_v25 = vadd.f32 1.0, %v5672_v5  ;;  %v9182_v5 = vld [vmem:[%s12168_s5 + $0x8] sm:$0xff] }
 0x435   :  { %5677 = vrcp.f32 %v1993_v25  ;;  %v13056_v25 = vld [vmem:[#allocation32_spill] sm:$0xff] }
 0x43c   :  { %v5674_v14 = vpop.eup %5673 }
 0x43d   :  { %v1997_v12 = vmul.f32 %v5674_v14, %v5670_v9  ;;  %v9175_v9 = vld [vmem:[%s12168_s5 + $0x30] sm:$0xff]  ;;  %v9187_v14 = vld [vmem:[%s12168_s5 + $0x18] sm:$0xff] }
 0x43e   :  { %v5676_v13 = vpop.eup %5675 }
 0x43f   :  { %v1996_v3 = vmul.f32 %v5676_v13, %v7963_v16  ;;  %v8968_v16 = vld [vmem:[%s12168_s5 + $0x1c0] sm:$0xff]  ;;  %v9201_v13 = vld [vmem:[%s12168_s5 + $0x10] sm:$0xff] }
 0x441   :  { %v8948_v19 = vadd.f32 %v1997_v12, %v1996_v3  ;;  %v9194_v12 = vld [vmem:[%s12168_s5] sm:$0xff] }
 0x442   :  { %v5678_v11 = vpop.eup %5677  ;;  %v13057_v3 = vld [vmem:[#allocation33_spill] sm:$0xff] }
 0x443   :  { %5679 = vtanh.f32 %v8948_v19 }
 0x450   :  { %v5680_v17 = vpop.eup %5679 }
 0x451   :  { %v8951_v10 = vmul.f32 %v5680_v17, %v5678_v11  ;;  %v13058_v11 = vld [vmem:[#allocation34_spill] sm:$0xff]  ;;  %v13059_v17 = vld [vmem:[#allocation35_spill] sm:$0xff] }
 0x453   :  { %2194 = vmatmul.mubr.f32.vlgmr.msra.gmra.mxu0 %v8951_v10  ;;  %2265 = vmatmul.mubr.f32.vlgmr.msra.gmra.mxu1 %v8951_v10 }
 0x454   :  { %2365 = vmatpush1.msra.mxu0 %v8956_v29  ;;  %2436 = vmatpush1.msra.mxu1 %v7971_v35  ;;  %v8989_v35 = vld [vmem:[%s12168_s5 + $0x188] sm:$0xff] }
 0x455   :  { %2366 = vmatprep.subr.mxu0 %v8961_v8  ;;  %2437 = vmatprep.subr.mxu1 %v7976_v34  ;;  %v8996_v34 = vld [vmem:[%s12168_s5 + $0x180] sm:$0xff] }
 0x456   :  { %2367 = vmatpush1.msra.mxu0 %v8968_v16  ;;  %2438 = vmatpush1.msra.mxu1 %v7983_v24  ;;  %v9003_v24 = vld [vmem:[%s12168_s5 + $0x168] sm:$0xff] }
 0x457   :  { %2368 = vmatprep.subr.mxu0 %v8975_v15  ;;  %2439 = vmatprep.subr.mxu1 %v7990_v4  ;;  %v9010_v4 = vld [vmem:[%s12168_s5 + $0x160] sm:$0xff] }
 0x458   :  { %2369 = vmatpush1.msra.mxu0 %v8982_v7  ;;  %2440 = vmatpush1.msra.mxu1 %v7997_v6  ;;  %v9017_v6 = vld [vmem:[%s12168_s5 + $0x148] sm:$0xff] }
 0x459   :  { %2370 = vmatprep.subr.mxu0 %v8989_v35  ;;  %2441 = vmatprep.subr.mxu1 %v8004_v27  ;;  %v9024_v27 = vld [vmem:[%s12168_s5 + $0x140] sm:$0xff] }
 0x45a   :  { %2371 = vmatpush1.msra.mxu0 %v8996_v34  ;;  %2442 = vmatpush1.msra.mxu1 %v8011_v62  ;;  %v9031_v62 = vld [vmem:[%s12168_s5 + $0x128] sm:$0xff] }
 0x45b   :  { %2372 = vmatprep.subr.mxu0 %v9003_v24  ;;  %2443 = vmatprep.subr.mxu1 %v8018_v22  ;;  %v9038_v22 = vld [vmem:[%s12168_s5 + $0x120] sm:$0xff] }
 0x45c   :  { %2373 = vmatpush1.msra.mxu0 %v9010_v4  ;;  %2444 = vmatpush1.msra.mxu1 %v8025_v1  ;;  %v9045_v1 = vld [vmem:[%s12168_s5 + $0x108] sm:$0xff] }
 0x45d   :  { %2374 = vmatprep.subr.mxu0 %v9017_v6  ;;  %2445 = vmatprep.subr.mxu1 %v8032_v63  ;;  %v9052_v63 = vld [vmem:[%s12168_s5 + $0x100] sm:$0xff] }
 0x45e   :  { %2375 = vmatpush1.msra.mxu0 %v9024_v27  ;;  %2446 = vmatpush1.msra.mxu1 %v8039_v37  ;;  %v9059_v37 = vld [vmem:[%s12168_s5 + $0xe8] sm:$0xff] }
 0x45f   :  { %2376 = vmatprep.subr.mxu0 %v9031_v62  ;;  %2447 = vmatprep.subr.mxu1 %v8046_v31  ;;  %v9066_v31 = vld [vmem:[%s12168_s5 + $0xe0] sm:$0xff] }
 0x460   :  { %2377 = vmatpush1.msra.mxu0 %v9038_v22  ;;  %2448 = vmatpush1.msra.mxu1 %v8053_v38  ;;  %v9073_v38 = vld [vmem:[%s12168_s5 + $0xc8] sm:$0xff] }
 0x461   :  { %2378 = vmatprep.subr.mxu0 %v9045_v1  ;;  %2449 = vmatprep.subr.mxu1 %v8060_v39  ;;  %v9080_v39 = vld [vmem:[%s12168_s5 + $0xc0] sm:$0xff] }
 0x462   :  { %2379 = vmatpush1.msra.mxu0 %v9052_v63  ;;  %2450 = vmatpush1.msra.mxu1 %v8067_v40  ;;  %v9087_v40 = vld [vmem:[%s12168_s5 + $0xa8] sm:$0xff] }
 0x463   :  { %2380 = vmatprep.subr.mxu0 %v9059_v37  ;;  %2451 = vmatprep.subr.mxu1 %v8074_v41  ;;  %v9094_v41 = vld [vmem:[%s12168_s5 + $0xa0] sm:$0xff] }
 0x464   :  { %2381 = vmatpush1.msra.mxu0 %v9066_v31  ;;  %2452 = vmatpush1.msra.mxu1 %v8081_v42  ;;  %v9101_v42 = vld [vmem:[%s12168_s5 + $0x88] sm:$0xff] }
 0x465   :  { %2382 = vmatprep.subr.mxu0 %v9073_v38  ;;  %2453 = vmatprep.subr.mxu1 %v8088_v43  ;;  %v9108_v43 = vld [vmem:[%s12168_s5 + $0x80] sm:$0xff] }
 0x466   :  { %2383 = vmatpush1.msra.mxu0 %v9080_v39  ;;  %2454 = vmatpush1.msra.mxu1 %v8095_v44  ;;  %v9115_v44 = vld [vmem:[%s12168_s5 + $0x68] sm:$0xff] }
 0x467   :  { %2384 = vmatprep.subr.mxu0 %v9087_v40  ;;  %2455 = vmatprep.subr.mxu1 %v8102_v45  ;;  %v9122_v45 = vld [vmem:[%s12168_s5 + $0x60] sm:$0xff] }
 0x468   :  { %2385 = vmatpush1.msra.mxu0 %v9094_v41  ;;  %2456 = vmatpush1.msra.mxu1 %v8109_v46  ;;  %v9134_v46 = vld [vmem:[%s12168_s5 + $0x48] sm:$0xff] }
 0x469   :  { %2386 = vmatprep.subr.mxu0 %v9101_v42  ;;  %2457 = vmatprep.subr.mxu1 %v8116_v47  ;;  %v9139_v47 = vld [vmem:[%s12168_s5 + $0x58] sm:$0xff] }
 0x46a   :  { %2387 = vmatpush1.msra.mxu0 %v9108_v43  ;;  %2458 = vmatpush1.msra.mxu1 %v8123_v48  ;;  %v9151_v48 = vld [vmem:[%s12168_s5 + $0x50] sm:$0xff] }
 0x46b   :  { %2388 = vmatprep.subr.mxu0 %v9115_v44  ;;  %2459 = vmatprep.subr.mxu1 %v8130_v49  ;;  %v9163_v49 = vld [vmem:[%s12168_s5 + $0x38] sm:$0xff] }
 0x46c   :  { %2389 = vmatpush1.msra.mxu0 %v9122_v45  ;;  %2460 = vmatpush1.msra.mxu1 %v9127_v61 }
 0x46d   :  { %2390 = vmatprep.subr.mxu0 %v9134_v46  ;;  %2461 = vmatprep.subr.mxu1 %v9139_v47 }
 0x46e   :  { %2391 = vmatpush1.msra.mxu0 %v9146_v32  ;;  %2462 = vmatpush1.msra.mxu1 %v9151_v48 }
 0x46f   :  { %2392 = vmatprep.subr.mxu0 %v9158_v30  ;;  %2463 = vmatprep.subr.mxu1 %v9163_v49 }
 0x470   :  { %2393 = vmatpush1.msra.mxu0 %v9170_v21  ;;  %2464 = vmatpush1.msra.mxu1 %v9175_v9 }
 0x471   :  { %2394 = vmatprep.subr.mxu0 %v9182_v5  ;;  %2465 = vmatprep.subr.mxu1 %v9187_v14 }
 0x472   :  { %2395 = vmatpush1.msra.mxu0 %v9194_v12  ;;  %2428 = vmatprep.mubr.f32.mxu0 %v12792_v60 }
 0x473   :  { %2466 = vmatpush1.msra.mxu1 %v9201_v13  ;;  %2499 = vmatprep.mubr.f32.mxu1 %v12792_v60 }
 0x474   :  { %2429 = vmatmul.mubr.f32.vlgmr.msra.gmra.mxu0 %v8951_v10  ;;  %2500 = vmatmul.mubr.f32.vlgmr.msra.gmra.mxu1 %v8951_v10  ;;  %v13060_v10 = vld [vmem:[#allocation36_spill] sm:$0xff] }
 0x475   :  { %2662 = vmatprep.subr.mxu0 %v8159_v50  ;;  %2733 = vmatprep.subr.mxu1 %v8164_v51  ;;  %v13039_v50 = vld [vmem:[#allocation15_spill] sm:$0xff]  ;;  %v13040_v51 = vld [vmem:[#allocation16_spill] sm:$0xff] }
 0x476   :  { %2663 = vmatpush1.msra.mxu0 %v8171_v52  ;;  %2734 = vmatpush1.msra.mxu1 %v8176_v53  ;;  %v13041_v52 = vld [vmem:[#allocation17_spill] sm:$0xff]  ;;  %v13042_v53 = vld [vmem:[#allocation18_spill] sm:$0xff] }
 0x477   :  { %2664 = vmatprep.subr.mxu0 %v8183_v54  ;;  %2735 = vmatprep.subr.mxu1 %v8188_v55  ;;  %v13043_v54 = vld [vmem:[#allocation19_spill] sm:$0xff]  ;;  %v13044_v55 = vld [vmem:[#allocation20_spill] sm:$0xff] }
 0x478   :  { %2665 = vmatpush1.msra.mxu0 %v8195_v33  ;;  %2736 = vmatpush1.msra.mxu1 %v8200_v56  ;;  %v13045_v33 = vld [vmem:[#allocation21_spill] sm:$0xff]  ;;  %v13046_v56 = vld [vmem:[#allocation22_spill] sm:$0xff] }
 0x479   :  { %2666 = vmatprep.subr.mxu0 %v8207_v57  ;;  %2737 = vmatprep.subr.mxu1 %v8212_v36  ;;  %v13047_v57 = vld [vmem:[#allocation23_spill] sm:$0xff]  ;;  %v13048_v36 = vld [vmem:[#allocation24_spill] sm:$0xff] }
 0x47a   :  { %2667 = vmatpush1.msra.mxu0 %v8219_v58  ;;  %2738 = vmatpush1.msra.mxu1 %v8224_v26  ;;  %v13049_v58 = vld [vmem:[#allocation25_spill] sm:$0xff]  ;;  %v13050_v26 = vld [vmem:[#allocation26_spill] sm:$0xff] }
 0x47b   :  { %2668 = vmatprep.subr.mxu0 %v8231_v59  ;;  %2739 = vmatprep.subr.mxu1 %v8236_v2  ;;  %v13051_v59 = vld [vmem:[#allocation27_spill] sm:$0xff]  ;;  %v13052_v2 = vld [vmem:[#allocation28_spill] sm:$0xff] }
 0x47c   :  { %2669 = vmatpush1.msra.mxu0 %v8243_v20  ;;  %2740 = vmatpush1.msra.mxu1 %v8248_v28  ;;  %v13053_v20 = vld [vmem:[#allocation29_spill] sm:$0xff]  ;;  %v13054_v28 = vld [vmem:[#allocation30_spill] sm:$0xff] }
 0x47d   :  { %2670 = vmatprep.subr.mxu0 %v8255_v23  ;;  %2741 = vmatprep.subr.mxu1 %v13039_v50  ;;  %v13055_v23 = vld [vmem:[#allocation31_spill] sm:$0xff]  ;;  %v13061_v50 = vld [vmem:[#allocation37_spill] sm:$0xff] }
 0x47e   :  { %2671 = vmatpush1.msra.mxu0 %v13040_v51  ;;  %2742 = vmatpush1.msra.mxu1 %v13041_v52  ;;  %v13062_v51 = vld [vmem:[#allocation38_spill] sm:$0xff]  ;;  %v13063_v52 = vld [vmem:[#allocation39_spill] sm:$0xff] }
 0x47f   :  { %2672 = vmatprep.subr.mxu0 %v13042_v53  ;;  %2743 = vmatprep.subr.mxu1 %v13043_v54  ;;  %v13064_v53 = vld [vmem:[#allocation40_spill] sm:$0xff]  ;;  %v13065_v54 = vld [vmem:[#allocation41_spill] sm:$0xff] }
 0x480   :  { %2673 = vmatpush1.msra.mxu0 %v13044_v55  ;;  %2744 = vmatpush1.msra.mxu1 %v13045_v33  ;;  %v13066_v55 = vld [vmem:[#allocation42_spill] sm:$0xff]  ;;  %v13067_v33 = vld [vmem:[#allocation43_spill] sm:$0xff] }
 0x481   :  { %2674 = vmatprep.subr.mxu0 %v13046_v56  ;;  %2745 = vmatprep.subr.mxu1 %v13047_v57  ;;  %v13068_v56 = vld [vmem:[#allocation44_spill] sm:$0xff]  ;;  %v13069_v57 = vld [vmem:[#allocation45_spill] sm:$0xff] }
 0x482   :  { %2675 = vmatpush1.msra.mxu0 %v13048_v36  ;;  %2746 = vmatpush1.msra.mxu1 %v13049_v58  ;;  %v13070_v36 = vld [vmem:[#allocation46_spill] sm:$0xff]  ;;  %v13071_v58 = vld [vmem:[#allocation47_spill] sm:$0xff] }
 0x483   :  { %2676 = vmatprep.subr.mxu0 %v13050_v26  ;;  %2747 = vmatprep.subr.mxu1 %v13051_v59  ;;  %v13072_v26 = vld [vmem:[#allocation48_spill] sm:$0xff]  ;;  %v13073_v59 = vld [vmem:[#allocation49_spill] sm:$0xff] }
 0x484   :  { %2677 = vmatpush1.msra.mxu0 %v13052_v2  ;;  %2748 = vmatpush1.msra.mxu1 %v13053_v20  ;;  %v13074_v2 = vld [vmem:[#allocation50_spill] sm:$0xff]  ;;  %v13075_v20 = vld [vmem:[#allocation51_spill] sm:$0xff] }
 0x485   :  { %2678 = vmatprep.subr.mxu0 %v13054_v28  ;;  %2749 = vmatprep.subr.mxu1 %v13055_v23  ;;  %v13076_v28 = vld [vmem:[#allocation52_spill] sm:$0xff]  ;;  %v13077_v23 = vld [vmem:[#allocation53_spill] sm:$0xff] }
 0x486   :  { %2679 = vmatpush1.msra.mxu0 %v13056_v25  ;;  %2750 = vmatpush1.msra.mxu1 %v13057_v3  ;;  %v13078_v25 = vld [vmem:[#allocation54_spill] sm:$0xff]  ;;  %v13079_v3 = vld [vmem:[#allocation55_spill] sm:$0xff] }
 0x487   :  { %2680 = vmatprep.subr.mxu0 %v13058_v11  ;;  %2751 = vmatprep.subr.mxu1 %v13059_v17  ;;  %v13080_v11 = vld [vmem:[#allocation56_spill] sm:$0xff]  ;;  %v13081_v17 = vld [vmem:[#allocation57_spill] sm:$0xff] }
 0x488   :  { %2681 = vmatpush1.msra.mxu0 %v13060_v10  ;;  %2752 = vmatpush1.msra.mxu1 %v13061_v50  ;;  %v13082_v10 = vld [vmem:[#allocation58_spill] sm:$0xff]  ;;  %v13083_v50 = vld [vmem:[#allocation59_spill] sm:$0xff] }
 0x489   :  { %2682 = vmatprep.subr.mxu0 %v13062_v51  ;;  %2753 = vmatprep.subr.mxu1 %v13063_v52  ;;  %v13084_v51 = vld [vmem:[#allocation60_spill] sm:$0xff]  ;;  %v13085_v52 = vld [vmem:[#allocation61_spill] sm:$0xff] }
 0x48a   :  { %2683 = vmatpush1.msra.mxu0 %v13064_v53  ;;  %2754 = vmatpush1.msra.mxu1 %v13065_v54  ;;  %v13086_v53 = vld [vmem:[#allocation62_spill] sm:$0xff]  ;;  %v13087_v54 = vld [vmem:[#allocation63_spill] sm:$0xff] }
 0x48b   :  { %2684 = vmatprep.subr.mxu0 %v13066_v55  ;;  %2755 = vmatprep.subr.mxu1 %v13067_v33  ;;  %v13088_v55 = vld [vmem:[#allocation64_spill] sm:$0xff]  ;;  %v13089_v33 = vld [vmem:[#allocation65_spill] sm:$0xff] }
 0x48c   :  { %2685 = vmatpush1.msra.mxu0 %v13068_v56  ;;  %2756 = vmatpush1.msra.mxu1 %v13069_v57  ;;  %v13090_v56 = vld [vmem:[#allocation66_spill] sm:$0xff]  ;;  %v13091_v57 = vld [vmem:[#allocation67_spill] sm:$0xff] }
 0x48d   :  { %2686 = vmatprep.subr.mxu0 %v13070_v36  ;;  %2757 = vmatprep.subr.mxu1 %v13071_v58  ;;  %v13092_v36 = vld [vmem:[#allocation68_spill] sm:$0xff]  ;;  %v13093_v58 = vld [vmem:[#allocation69_spill] sm:$0xff] }
 0x48e   :  { %2687 = vmatpush1.msra.mxu0 %v13072_v26  ;;  %2758 = vmatpush1.msra.mxu1 %v13073_v59  ;;  %v13094_v26 = vld [vmem:[#allocation70_spill] sm:$0xff]  ;;  %v13095_v59 = vld [vmem:[#allocation71_spill] sm:$0xff] }
 0x48f   :  { %2688 = vmatprep.subr.mxu0 %v13074_v2  ;;  %2759 = vmatprep.subr.mxu1 %v13075_v20  ;;  %v13096_v2 = vld [vmem:[#allocation72_spill] sm:$0xff]  ;;  %v13097_v20 = vld [vmem:[#allocation73_spill] sm:$0xff] }
 0x490   :  { %2689 = vmatpush1.msra.mxu0 %v13076_v28  ;;  %2760 = vmatpush1.msra.mxu1 %v13077_v23  ;;  %v13098_v28 = vld [vmem:[#allocation74_spill] sm:$0xff]  ;;  %v13099_v23 = vld [vmem:[#allocation75_spill] sm:$0xff] }
 0x491   :  { %2690 = vmatprep.subr.mxu0 %v13078_v25  ;;  %2761 = vmatprep.subr.mxu1 %v13079_v3  ;;  %v13100_v25 = vld [vmem:[#allocation76_spill] sm:$0xff]  ;;  %v13101_v3 = vld [vmem:[#allocation77_spill] sm:$0xff] }
 0x492   :  { %2691 = vmatpush1.msra.mxu0 %v13080_v11  ;;  %2762 = vmatpush1.msra.mxu1 %v13081_v17  ;;  %v13102_v11 = vld [vmem:[#allocation78_spill] sm:$0xff]  ;;  %v13103_v17 = vld [vmem:[#allocation79_spill] sm:$0xff] }
 0x493   :  { %2692 = vmatprep.subr.mxu0 %v13082_v10  ;;  %2763 = vmatprep.subr.mxu1 %v13083_v50  ;;  %v13104_v10 = vld [vmem:[#allocation80_spill] sm:$0xff]  ;;  %v13105_v50 = vld [vmem:[#allocation81_spill] sm:$0xff] }
 0x494   :  { %2693 = vmatpush1.msra.mxu0 %v13084_v51  ;;  %2764 = vmatpush1.msra.mxu1 %v13085_v52  ;;  %v13106_v51 = vld [vmem:[#allocation82_spill] sm:$0xff]  ;;  %v13107_v52 = vld [vmem:[#allocation83_spill] sm:$0xff] }
 0x495   :  { %2694 = vmatprep.subr.mxu0 %v13086_v53  ;;  %2765 = vmatprep.subr.mxu1 %v13087_v54  ;;  %v13108_v53 = vld [vmem:[#allocation84_spill] sm:$0xff]  ;;  %v13109_v54 = vld [vmem:[#allocation85_spill] sm:$0xff] }
 0x496   :  { %2695 = vmatpush2.msra.mxu0 %v13088_v55  ;;  %2766 = vmatpush2.msra.mxu1 %v13089_v33  ;;  %v13110_v55 = vld [vmem:[#allocation86_spill] sm:$0xff]  ;;  %v13111_v33 = vld [vmem:[#allocation87_spill] sm:$0xff] }
 0x497   :  { %2696 = vmatprep.subr.mxu0 %v13090_v56  ;;  %2767 = vmatprep.subr.mxu1 %v13091_v57  ;;  %v13112_v56 = vld [vmem:[#allocation88_spill] sm:$0xff]  ;;  %v13113_v57 = vld [vmem:[#allocation89_spill] sm:$0xff] }
 0x498   :  { %2697 = vmatpush2.msra.mxu0 %v13092_v36  ;;  %2768 = vmatpush2.msra.mxu1 %v13093_v58  ;;  %v13114_v36 = vld [vmem:[#allocation90_spill] sm:$0xff]  ;;  %v13115_v58 = vld [vmem:[#allocation91_spill] sm:$0xff] }
 0x499   :  { %2698 = vmatprep.subr.mxu0 %v13094_v26  ;;  %2769 = vmatprep.subr.mxu1 %v13095_v59  ;;  %v13116_v26 = vld [vmem:[#allocation92_spill] sm:$0xff]  ;;  %v13117_v59 = vld [vmem:[#allocation93_spill] sm:$0xff] }
 0x49a   :  { %2699 = vmatpush2.msra.mxu0 %v13096_v2  ;;  %2770 = vmatpush2.msra.mxu1 %v13097_v20  ;;  %v13118_v2 = vld [vmem:[#allocation94_spill] sm:$0xff]  ;;  %v13119_v20 = vld [vmem:[#allocation95_spill] sm:$0xff] }
 0x49b   :  { %2700 = vmatprep.subr.mxu0 %v13098_v28  ;;  %2771 = vmatprep.subr.mxu1 %v13099_v23  ;;  %v13120_v28 = vld [vmem:[#allocation96_spill] sm:$0xff]  ;;  %v13121_v23 = vld [vmem:[#allocation97_spill] sm:$0xff] }
 0x49c   :  { %2701 = vmatpush2.msra.mxu0 %v13100_v25  ;;  %2772 = vmatpush2.msra.mxu1 %v13101_v3  ;;  %v13122_v25 = vld [vmem:[#allocation98_spill] sm:$0xff]  ;;  %v13123_v3 = vld [vmem:[#allocation99_spill] sm:$0xff] }
 0x49d   :  { %2702 = vmatprep.subr.mxu0 %v13102_v11  ;;  %2773 = vmatprep.subr.mxu1 %v13103_v17  ;;  %v13124_v11 = vld [vmem:[#allocation100_spill] sm:$0xff]  ;;  %v13125_v17 = vld [vmem:[#allocation101_spill] sm:$0xff] }
 0x49e   :  { %2703 = vmatpush2.msra.mxu0 %v13104_v10  ;;  %2774 = vmatpush2.msra.mxu1 %v13105_v50  ;;  %v13126_v10 = vld [vmem:[#allocation102_spill] sm:$0xff]  ;;  %v13127_v50 = vld [vmem:[#allocation103_spill] sm:$0xff] }
 0x49f   :  { %2704 = vmatprep.subr.mxu0 %v13106_v51  ;;  %2775 = vmatprep.subr.mxu1 %v13107_v52  ;;  %v13128_v51 = vld [vmem:[#allocation104_spill] sm:$0xff]  ;;  %v13129_v52 = vld [vmem:[#allocation105_spill] sm:$0xff] }
 0x4a0   :  { %2705 = vmatpush2.msra.mxu0 %v13108_v53  ;;  %2776 = vmatpush2.msra.mxu1 %v13109_v54  ;;  %v13130_v53 = vld [vmem:[#allocation106_spill] sm:$0xff]  ;;  %v13131_v54 = vld [vmem:[#allocation107_spill] sm:$0xff] }
 0x4a1   :  { %2706 = vmatprep.subr.mxu0 %v13110_v55  ;;  %2777 = vmatprep.subr.mxu1 %v13111_v33  ;;  %v13132_v55 = vld [vmem:[#allocation108_spill] sm:$0xff]  ;;  %v13133_v33 = vld [vmem:[#allocation109_spill] sm:$0xff] }
 0x4a2   :  { %2707 = vmatpush2.msra.mxu0 %v13112_v56  ;;  %2778 = vmatpush2.msra.mxu1 %v13113_v57  ;;  %v13134_v56 = vld [vmem:[#allocation110_spill] sm:$0xff]  ;;  %v13135_v57 = vld [vmem:[#allocation111_spill] sm:$0xff] }
 0x4a3   :  { %2708 = vmatprep.subr.mxu0 %v13114_v36  ;;  %2779 = vmatprep.subr.mxu1 %v13115_v58  ;;  %v13136_v36 = vld [vmem:[#allocation112_spill] sm:$0xff]  ;;  %v13137_v58 = vld [vmem:[#allocation113_spill] sm:$0xff] }
 0x4a4   :  { %2709 = vmatpush2.msra.mxu0 %v13116_v26  ;;  %2780 = vmatpush2.msra.mxu1 %v13117_v59  ;;  %v13138_v26 = vld [vmem:[#allocation114_spill] sm:$0xff]  ;;  %v13139_v59 = vld [vmem:[#allocation115_spill] sm:$0xff] }
 0x4a5   :  { %2710 = vmatprep.subr.mxu0 %v13118_v2  ;;  %2781 = vmatprep.subr.mxu1 %v13119_v20  ;;  %v13140_v2 = vld [vmem:[#allocation116_spill] sm:$0xff]  ;;  %v13141_v20 = vld [vmem:[#allocation117_spill] sm:$0xff] }
 0x4a6   :  { %2711 = vmatpush2.msra.mxu0 %v13120_v28  ;;  %2782 = vmatpush2.msra.mxu1 %v13121_v23  ;;  %v13142_v28 = vld [vmem:[#allocation118_spill] sm:$0xff]  ;;  %v13143_v23 = vld [vmem:[#allocation119_spill] sm:$0xff] }
 0x4a7   :  { %2712 = vmatprep.subr.mxu0 %v13122_v25  ;;  %2783 = vmatprep.subr.mxu1 %v13123_v3  ;;  %v13144_v25 = vld [vmem:[#allocation120_spill] sm:$0xff]  ;;  %v13145_v3 = vld [vmem:[#allocation121_spill] sm:$0xff] }
 0x4a8   :  { %2713 = vmatpush2.msra.mxu0 %v13124_v11  ;;  %2784 = vmatpush2.msra.mxu1 %v13125_v17  ;;  %v13146_v11 = vld [vmem:[#allocation122_spill] sm:$0xff]  ;;  %v13147_v17 = vld [vmem:[#allocation123_spill] sm:$0xff] }
 0x4a9   :  { %2714 = vmatprep.subr.mxu0 %v13126_v10  ;;  %2785 = vmatprep.subr.mxu1 %v13127_v50  ;;  %v13148_v10 = vld [vmem:[#allocation125_spill] sm:$0xff]  ;;  %v13149_v50 = vld [vmem:[#allocation124_spill] sm:$0xff] }
 0x4aa   :  { %2715 = vmatpush2.msra.mxu0 %v13128_v51  ;;  %2786 = vmatpush2.msra.mxu1 %v13129_v52  ;;  %v13150_v51 = vld [vmem:[#allocation145_spill] sm:$0xff]  ;;  %v9343_v52 = vld [vmem:[%s12168_s5 + $0x1f8] sm:$0xff] }
 0x4ab   :  { %2716 = vmatprep.subr.mxu0 %v13130_v53  ;;  %2787 = vmatprep.subr.mxu1 %v13131_v54  ;;  %v13151_v54 = vld [vmem:[#allocation10_spill] sm:$0xff] }
 0x4ac   :  { %2717 = vmatpush2.msra.mxu0 %v13132_v55  ;;  %2788 = vmatpush2.msra.mxu1 %v13133_v33 }
 0x4ad   :  { %2718 = vmatprep.subr.mxu0 %v13134_v56  ;;  %2789 = vmatprep.subr.mxu1 %v13135_v57  ;;  %v13152_v57 = vld [vmem:[#allocation11_spill] sm:$0xff] }
 0x4ae   :  { %2719 = vmatpush2.msra.mxu0 %v13136_v36  ;;  %2790 = vmatpush2.msra.mxu1 %v13137_v58 }
 0x4af   :  { %2720 = vmatprep.subr.mxu0 %v13138_v26  ;;  %2791 = vmatprep.subr.mxu1 %v13139_v59 }
 0x4b0   :  { %2721 = vmatpush2.msra.mxu0 %v13140_v2  ;;  %2792 = vmatpush2.msra.mxu1 %v13141_v20  ;;  %v13153_v2 = vld [vmem:[#allocation12_spill] sm:$0xff] }
 0x4b1   :  { %2722 = vmatprep.subr.mxu0 %v13142_v28  ;;  %2793 = vmatprep.subr.mxu1 %v13143_v23 }
 0x4b2   :  { %2723 = vmatpush2.msra.mxu0 %v13144_v25  ;;  %2794 = vmatpush2.msra.mxu1 %v13145_v3  ;;  %v13154_v25 = vld [vmem:[#allocation13_spill] sm:$0xff] }
 0x4b3   :  { %2724 = vmatprep.subr.mxu0 %v13146_v11  ;;  %2795 = vmatprep.subr.mxu1 %v13147_v17 }
 0x4b4   :  { %2725 = vmatpush2.msra.mxu0 %v13148_v10  ;;  %2796 = vmatpush2.msra.mxu1 %v13149_v50 }
 0x4b5   :  { %2897 = vmatprep.subr.mxu0 %v13150_v51  ;;  %2968 = vmatprep.subr.mxu1 %v9343_v52 }
 0x513   :  { %v2195_v53 = vpop.f32.mrf.mxu0  ;;  %v2266_v58 = vpop.f32.mrf.mxu1 }
 0x514   :  { %v2196_v55 = vadd.f32 %v2195_v53, %v13151_v54  ;;  %v2267_v3 = vadd.f32 %v2266_v58, %v13154_v25 }
 0x515   :  { %v2197_v33 = vpop.f32.mrf.mxu0  ;;  %v2268_v59 = vpop.f32.mrf.mxu1 }
 0x516   :  { %v5289_v56 = vmul.f32 -1.442695, %v2196_v55  ;;  %v2198_v36 = vadd.f32 %v2197_v33, %v13152_v57  ;;  %v2269_v20 = vadd.f32 %v2268_v59, %v13153_v2  ;;  %v13155_v55 = vld [vmem:[#allocation131_spill] sm:$0xff] }
 0x518   :  { %5681 = vpow2.f32 %v5289_v56  ;;  %v5290_v26 = vmul.f32 -1.442695, %v2198_v36  ;;  %v5291_v28 = vmul.f32 -1.442695, %v2269_v20  ;;  %v13156_v20 = vld [vmem:[#allocation130_spill] sm:$0xff] }
 0x51a   :  { %5683 = vpow2.f32 %v5290_v26 }
 0x51b   :  { %5685 = vpow2.f32 %v5291_v28 }
 0x525   :  { %v5682_v23 = vpop.eup %5681 }
 0x526   :  { %v2277_v11 = vadd.f32 1.0, %v5682_v23 }
 0x527   :  { %v5684_v17 = vpop.eup %5683 }
 0x528   :  { %5687 = vrcp.f32 %v2277_v11  ;;  %v2278_v10 = vadd.f32 1.0, %v5684_v17  ;;  %v5686_v50 = vpop.eup %5685 }
 0x529   :  { %5689 = vtanh.f32 %v2267_v3  ;;  %v2287_v23 = vadd.f32 1.0, %v5686_v50 }
 0x52a   :  { %5691 = vrcp.f32 %v2278_v10  ;;  %v13157_v10 = vld [vmem:[#allocation146_spill] sm:$0xff] }
 0x534   :  { %v2430_v51 = vpop.f32.mrf.mxu0  ;;  %v2501_v28 = vpop.f32.mrf.mxu1 }
 0x535   :  { %v5688_v53 = vpop.eup %5687  ;;  %v2506_v33 = vadd.f32 %v2430_v51, %v13155_v55  ;;  %v13158_v55 = vld [vmem:[#allocation132_spill] sm:$0xff] }
 0x536   :  { %v5690_v56 = vpop.eup %5689  ;;  %v2432_v36 = vpop.f32.mrf.mxu0 }
 0x537   :  { %v5692_v26 = vpop.eup %5691  ;;  %v5292_v59 = vmul.f32 -1.442695, %v2506_v33  ;;  %v2507_v0 = vadd.f32 %v2432_v36, %v13156_v20  ;;  %v2291_v2 = vmul.f32 %v5690_v56, %v5688_v53  ;;  %v2503_v17 = vpop.f32.mrf.mxu1  ;;  %v2508_v33 = vadd.f32 %v2501_v28, %v13158_v55  ;;  %v9371_v55 = vld [vmem:[%s12168_s5 + $0x1f0] sm:$0xff] }
 0x538   :  { %v2290_v58 = vmul.f32 %v5692_v26, %v8938_v18  ;;  %v2509_v51 = vadd.f32 %v2503_v17, %v13157_v10 }
 0x539   :  { %5693 = vpow2.f32 %v5292_v59  ;;  %v5293_v11 = vmul.f32 -1.442695, %v2507_v0 }
 0x53a   :  { %v9353_v3 = vadd.f32 %v2291_v2, %v2290_v58  ;;  %v5294_v25 = vmul.f32 -1.442695, %v2509_v51 }
 0x53b   :  { %5695 = vpow2.f32 %v5293_v11 }
 0x53c   :  { %5697 = vrcp.f32 %v2287_v23 }
 0x53d   :  { %5699 = vtanh.f32 %v9353_v3 }
 0x53e   :  { %5701 = vtanh.f32 %v2508_v33  ;;  %v9376_v33 = vld [vmem:[%s12168_s5 + $0x1d8] sm:$0xff] }
 0x53f   :  { %5703 = vpow2.f32 %v5294_v25 }
 0x546   :  { %v5694_v36 = vpop.eup %5693 }
 0x547   :  { %v2516_v53 = vadd.f32 1.0, %v5694_v36  ;;  %v9390_v36 = vld [vmem:[%s12168_s5 + $0x1b8] sm:$0xff] }
 0x548   :  { %v5696_v18 = vpop.eup %5695 }
 0x549   :  { %v5698_v50 = vpop.eup %5697  ;;  %5705 = vrcp.f32 %v2516_v53  ;;  %v2517_v0 = vadd.f32 1.0, %v5696_v18  ;;  %v9397_v53 = vld [vmem:[%s12168_s5 + $0x1b0] sm:$0xff] }
 0x54a   :  { %v5700_v2 = vpop.eup %5699  ;;  %v9672_v18 = vld [vmem:[%s12169_s6 + $0x170] sm:$0xff] }
 0x54b   :  { %5707 = vrcp.f32 %v2517_v0  ;;  %v9358_v56 = vmul.f32 %v5700_v2, %v5698_v50  ;;  %v5702_v26 = vpop.eup %5701  ;;  %13162 = vst [vmem:[#allocation129_spill] sm:$0xff] %v9672_v18  ;;  %v9679_v50 = vld [vmem:[%s12169_s6 + $0x148] sm:$0xff]  ;;  %v9684_v0 = vld [vmem:[%s12169_s6 + $0x158] sm:$0xff]  ;;  %v9691_v2 = vld [vmem:[%s12169_s6 + $0x140] sm:$0xff] }
 0x54c   :  { %v5704_v59 = vpop.eup %5703  ;;  %13163 = vst [vmem:[#allocation15_spill] sm:$0xff] %v9679_v50  ;;  %13164 = vst [vmem:[#allocation16_spill] sm:$0xff] %v9684_v0 }
 0x54d   :  { %13159 = vst [vmem:[#allocation128_spill] sm:$0xff] %v9358_v56  ;;  %2726 = vmatprep.mubr.f32.mxu0 %v9358_v56  ;;  %2797 = vmatprep.mubr.f32.mxu1 %v9358_v56  ;;  %v2526_v28 = vadd.f32 1.0, %v5704_v59  ;;  %13165 = vst [vmem:[#allocation17_spill] sm:$0xff] %v9691_v2  ;;  %v9703_v59 = vld [vmem:[%s12169_s6 + $0x128] sm:$0xff]  ;;  %v9756_v56 = vld [vmem:[%s12169_s6 + $0xf8] sm:$0xff] }
 0x54e   :  { %13167 = vst [vmem:[#allocation19_spill] sm:$0xff] %v9703_v59  ;;  %13176 = vst [vmem:[#allocation28_spill] sm:$0xff] %v9756_v56 }
 0x54f   :  { %5709 = vrcp.f32 %v2526_v28  ;;  %v9727_v28 = vld [vmem:[%s12169_s6 + $0x108] sm:$0xff] }
 0x550   :  { %13171 = vst [vmem:[#allocation23_spill] sm:$0xff] %v9727_v28 }
 0x556   :  { %v5706_v20 = vpop.eup %5705 }
 0x557   :  { %v2530_v58 = vmul.f32 %v5706_v20, %v5702_v26  ;;  %v9696_v26 = vld [vmem:[%s12169_s6 + $0x150] sm:$0xff]  ;;  %v9708_v20 = vld [vmem:[%s12169_s6 + $0x138] sm:$0xff] }
 0x558   :  { %v5708_v23 = vpop.eup %5707  ;;  %13166 = vst [vmem:[#allocation18_spill] sm:$0xff] %v9696_v26  ;;  %13168 = vst [vmem:[#allocation20_spill] sm:$0xff] %v9708_v20 }
 0x559   :  { %v2529_v11 = vmul.f32 %v5708_v23, %v8948_v19  ;;  %v9383_v19 = vld [vmem:[%s12168_s5 + $0x1d0] sm:$0xff] }
 0x55a   :  { %v9720_v23 = vld [vmem:[%s12169_s6 + $0x130] sm:$0xff] }
 0x55b   :  { %v9363_v25 = vadd.f32 %v2530_v58, %v2529_v11  ;;  %v9715_v58 = vld [vmem:[%s12169_s6 + $0x120] sm:$0xff]  ;;  %13170 = vst [vmem:[#allocation22_spill] sm:$0xff] %v9720_v23  ;;  %v9732_v11 = vld [vmem:[%s12169_s6 + $0x118] sm:$0xff] }
 0x55c   :  { %v5710_v17 = vpop.eup %5709  ;;  %13169 = vst [vmem:[#allocation21_spill] sm:$0xff] %v9715_v58  ;;  %13172 = vst [vmem:[#allocation24_spill] sm:$0xff] %v9732_v11 }
 0x55d   :  { %5711 = vtanh.f32 %v9363_v25 }
 0x56a   :  { %v5712_v10 = vpop.eup %5711 }
 0x56b   :  { %v9366_v51 = vmul.f32 %v5712_v10, %v5710_v17  ;;  %v9739_v17 = vld [vmem:[%s12169_s6 + $0x100] sm:$0xff]  ;;  %v9744_v10 = vld [vmem:[%s12169_s6 + $0x110] sm:$0xff] }
 0x56c   :  { %13173 = vst [vmem:[#allocation25_spill] sm:$0xff] %v9739_v17  ;;  %13174 = vst [vmem:[#allocation26_spill] sm:$0xff] %v9744_v10 }
 0x56d   :  { %2727 = vmatmul.mubr.f32.vlgmr.msra.gmra.mxu0 %v9366_v51  ;;  %2798 = vmatmul.mubr.f32.vlgmr.msra.gmra.mxu1 %v9366_v51 }
 0x56e   :  { %2898 = vmatpush1.msra.mxu0 %v8956_v29  ;;  %2969 = vmatpush1.msra.mxu1 %v9371_v55  ;;  %v9404_v29 = vld [vmem:[%s12168_s5 + $0x198] sm:$0xff] }
 0x56f   :  { %2899 = vmatprep.subr.mxu0 %v8961_v8  ;;  %2970 = vmatprep.subr.mxu1 %v9376_v33  ;;  %v9411_v8 = vld [vmem:[%s12168_s5 + $0x190] sm:$0xff] }
 0x570   :  { %2900 = vmatpush1.msra.mxu0 %v8968_v16  ;;  %2971 = vmatpush1.msra.mxu1 %v9383_v19  ;;  %v9418_v16 = vld [vmem:[%s12168_s5 + $0x178] sm:$0xff] }
 0x571   :  { %2901 = vmatprep.subr.mxu0 %v8975_v15  ;;  %2972 = vmatprep.subr.mxu1 %v9390_v36  ;;  %v9425_v15 = vld [vmem:[%s12168_s5 + $0x170] sm:$0xff] }
 0x572   :  { %2902 = vmatpush1.msra.mxu0 %v8982_v7  ;;  %2973 = vmatpush1.msra.mxu1 %v9397_v53  ;;  %v9432_v7 = vld [vmem:[%s12168_s5 + $0x158] sm:$0xff] }
 0x573   :  { %2903 = vmatprep.subr.mxu0 %v8989_v35  ;;  %2974 = vmatprep.subr.mxu1 %v9404_v29  ;;  %v9439_v35 = vld [vmem:[%s12168_s5 + $0x150] sm:$0xff] }
 0x574   :  { %2904 = vmatpush1.msra.mxu0 %v8996_v34  ;;  %2975 = vmatpush1.msra.mxu1 %v9411_v8  ;;  %v9446_v34 = vld [vmem:[%s12168_s5 + $0x138] sm:$0xff] }
 0x575   :  { %2905 = vmatprep.subr.mxu0 %v9003_v24  ;;  %2976 = vmatprep.subr.mxu1 %v9418_v16  ;;  %v9453_v24 = vld [vmem:[%s12168_s5 + $0x130] sm:$0xff] }
 0x576   :  { %2906 = vmatpush1.msra.mxu0 %v9010_v4  ;;  %2977 = vmatpush1.msra.mxu1 %v9425_v15  ;;  %v9460_v4 = vld [vmem:[%s12168_s5 + $0x118] sm:$0xff] }
 0x577   :  { %2907 = vmatprep.subr.mxu0 %v9017_v6  ;;  %2978 = vmatprep.subr.mxu1 %v9432_v7  ;;  %v9467_v6 = vld [vmem:[%s12168_s5 + $0x110] sm:$0xff] }
 0x578   :  { %2908 = vmatpush1.msra.mxu0 %v9024_v27  ;;  %2979 = vmatpush1.msra.mxu1 %v9439_v35  ;;  %v9474_v27 = vld [vmem:[%s12168_s5 + $0xf8] sm:$0xff] }
 0x579   :  { %2909 = vmatprep.subr.mxu0 %v9031_v62  ;;  %2980 = vmatprep.subr.mxu1 %v9446_v34  ;;  %v9481_v62 = vld [vmem:[%s12168_s5 + $0xf0] sm:$0xff] }
 0x57a   :  { %2910 = vmatpush1.msra.mxu0 %v9038_v22  ;;  %2981 = vmatpush1.msra.mxu1 %v9453_v24  ;;  %v9488_v22 = vld [vmem:[%s12168_s5 + $0xd8] sm:$0xff] }
 0x57b   :  { %2911 = vmatprep.subr.mxu0 %v9045_v1  ;;  %2982 = vmatprep.subr.mxu1 %v9460_v4  ;;  %v9495_v1 = vld [vmem:[%s12168_s5 + $0xd0] sm:$0xff] }
 0x57c   :  { %2912 = vmatpush1.msra.mxu0 %v9052_v63  ;;  %2983 = vmatpush1.msra.mxu1 %v9467_v6  ;;  %v9502_v63 = vld [vmem:[%s12168_s5 + $0xb8] sm:$0xff] }
 0x57d   :  { %2913 = vmatprep.subr.mxu0 %v9059_v37  ;;  %2984 = vmatprep.subr.mxu1 %v9474_v27  ;;  %v9509_v37 = vld [vmem:[%s12168_s5 + $0xb0] sm:$0xff] }
 0x57e   :  { %2914 = vmatpush1.msra.mxu0 %v9066_v31  ;;  %2985 = vmatpush1.msra.mxu1 %v9481_v62  ;;  %v9516_v31 = vld [vmem:[%s12168_s5 + $0x98] sm:$0xff] }
 0x57f   :  { %2915 = vmatprep.subr.mxu0 %v9073_v38  ;;  %2986 = vmatprep.subr.mxu1 %v9488_v22  ;;  %v9523_v38 = vld [vmem:[%s12168_s5 + $0x90] sm:$0xff] }
 0x580   :  { %2916 = vmatpush1.msra.mxu0 %v9080_v39  ;;  %2987 = vmatpush1.msra.mxu1 %v9495_v1  ;;  %v9530_v39 = vld [vmem:[%s12168_s5 + $0x78] sm:$0xff] }
 0x581   :  { %2917 = vmatprep.subr.mxu0 %v9087_v40  ;;  %2988 = vmatprep.subr.mxu1 %v9502_v63  ;;  %v9559_v40 = vld [vmem:[%s12169_s6 + $0x1e8] sm:$0xff] }
 0x582   :  { %2918 = vmatpush1.msra.mxu0 %v9094_v41  ;;  %2989 = vmatpush1.msra.mxu1 %v9509_v37  ;;  %v9564_v41 = vld [vmem:[%s12169_s6 + $0x1f8] sm:$0xff] }
 0x583   :  { %2919 = vmatprep.subr.mxu0 %v9101_v42  ;;  %2990 = vmatprep.subr.mxu1 %v9516_v31  ;;  %v9571_v42 = vld [vmem:[%s12169_s6 + $0x1e0] sm:$0xff] }
 0x584   :  { %2920 = vmatpush1.msra.mxu0 %v9108_v43  ;;  %2991 = vmatpush1.msra.mxu1 %v9523_v38  ;;  %v9576_v43 = vld [vmem:[%s12169_s6 + $0x1f0] sm:$0xff] }
 0x585   :  { %2921 = vmatprep.subr.mxu0 %v9115_v44  ;;  %2992 = vmatprep.subr.mxu1 %v9530_v39  ;;  %v9583_v44 = vld [vmem:[%s12169_s6 + $0x1c8] sm:$0xff] }
 0x586   :  { %2922 = vmatpush1.msra.mxu0 %v9122_v45  ;;  %2993 = vmatpush1.msra.mxu1 %v9127_v61  ;;  %v9588_v45 = vld [vmem:[%s12169_s6 + $0x1d8] sm:$0xff]  ;;  %v9595_v61 = vld [vmem:[%s12169_s6 + $0x1c0] sm:$0xff] }
 0x587   :  { %2923 = vmatprep.subr.mxu0 %v9134_v46  ;;  %2994 = vmatprep.subr.mxu1 %v9139_v47  ;;  %v9600_v46 = vld [vmem:[%s12169_s6 + $0x1d0] sm:$0xff]  ;;  %v9607_v47 = vld [vmem:[%s12169_s6 + $0x1a8] sm:$0xff] }
 0x588   :  { %2924 = vmatpush1.msra.mxu0 %v9146_v32  ;;  %2995 = vmatpush1.msra.mxu1 %v9151_v48  ;;  %v9612_v32 = vld [vmem:[%s12169_s6 + $0x1b8] sm:$0xff]  ;;  %v9619_v48 = vld [vmem:[%s12169_s6 + $0x1a0] sm:$0xff] }
 0x589   :  { %2925 = vmatprep.subr.mxu0 %v9158_v30  ;;  %2996 = vmatprep.subr.mxu1 %v9163_v49  ;;  %v9624_v30 = vld [vmem:[%s12169_s6 + $0x1b0] sm:$0xff]  ;;  %v9631_v49 = vld [vmem:[%s12169_s6 + $0x188] sm:$0xff] }
 0x58a   :  { %2926 = vmatpush1.msra.mxu0 %v9170_v21  ;;  %2997 = vmatpush1.msra.mxu1 %v9175_v9  ;;  %v9636_v21 = vld [vmem:[%s12169_s6 + $0x198] sm:$0xff]  ;;  %v9643_v9 = vld [vmem:[%s12169_s6 + $0x180] sm:$0xff] }
 0x58b   :  { %2927 = vmatprep.subr.mxu0 %v9182_v5  ;;  %2998 = vmatprep.subr.mxu1 %v9187_v14  ;;  %v9648_v5 = vld [vmem:[%s12169_s6 + $0x190] sm:$0xff]  ;;  %v9655_v14 = vld [vmem:[%s12169_s6 + $0x168] sm:$0xff] }
 0x58c   :  { %2928 = vmatpush1.msra.mxu0 %v9194_v12  ;;  %2961 = vmatprep.mubr.f32.mxu0 %v12792_v60  ;;  %v9660_v12 = vld [vmem:[%s12169_s6 + $0x178] sm:$0xff] }
 0x58d   :  { %2999 = vmatpush1.msra.mxu1 %v9201_v13  ;;  %3032 = vmatprep.mubr.f32.mxu1 %v12792_v60  ;;  %13160 = vst [vmem:[#allocation127_spill] sm:$0xff] %v9660_v12  ;;  %v9667_v13 = vld [vmem:[%s12169_s6 + $0x160] sm:$0xff] }
 0x58e   :  { %2962 = vmatmul.mubr.f32.vlgmr.msra.gmra.mxu0 %v9366_v51  ;;  %3033 = vmatmul.mubr.f32.vlgmr.msra.gmra.mxu1 %v9366_v51  ;;  %13161 = vst [vmem:[#allocation147_spill] sm:$0xff] %v9667_v13  ;;  %v9751_v51 = vld [vmem:[%s12169_s6 + $0xe8] sm:$0xff] }
 0x58f   :  { %3195 = vmatprep.subr.mxu0 %v9559_v40  ;;  %3266 = vmatprep.subr.mxu1 %v9564_v41  ;;  %13175 = vst [vmem:[#allocation27_spill] sm:$0xff] %v9751_v51 }
 0x590   :  { %3196 = vmatpush1.msra.mxu0 %v9571_v42  ;;  %3267 = vmatpush1.msra.mxu1 %v9576_v43 }
 0x591   :  { %3197 = vmatprep.subr.mxu0 %v9583_v44  ;;  %3268 = vmatprep.subr.mxu1 %v9588_v45 }
 0x592   :  { %3198 = vmatpush1.msra.mxu0 %v9595_v61  ;;  %3269 = vmatpush1.msra.mxu1 %v9600_v46 }
 0x593   :  { %3199 = vmatprep.subr.mxu0 %v9607_v47  ;;  %3270 = vmatprep.subr.mxu1 %v9612_v32 }
 0x594   :  { %3200 = vmatpush1.msra.mxu0 %v9619_v48  ;;  %3271 = vmatpush1.msra.mxu1 %v9624_v30 }
 0x595   :  { %3201 = vmatprep.subr.mxu0 %v9631_v49  ;;  %3272 = vmatprep.subr.mxu1 %v9636_v21 }
 0x596   :  { %3202 = vmatpush1.msra.mxu0 %v9643_v9  ;;  %3273 = vmatpush1.msra.mxu1 %v9648_v5 }
 0x597   :  { %3203 = vmatprep.subr.mxu0 %v9655_v14  ;;  %3274 = vmatprep.subr.mxu1 %v9660_v12 }
 0x598   :  { %3204 = vmatpush1.msra.mxu0 %v9667_v13  ;;  %3275 = vmatpush1.msra.mxu1 %v9672_v18 }
 0x599   :  { %3205 = vmatprep.subr.mxu0 %v9679_v50  ;;  %3276 = vmatprep.subr.mxu1 %v9684_v0  ;;  %v13273_v50 = vld [vmem:[#allocation13_spill] sm:$0xff] }
 0x59a   :  { %3206 = vmatpush1.msra.mxu0 %v9691_v2  ;;  %3277 = vmatpush1.msra.mxu1 %v9696_v26  ;;  %v13272_v2 = vld [vmem:[#allocation12_spill] sm:$0xff] }
 0x59b   :  { %3207 = vmatprep.subr.mxu0 %v9703_v59  ;;  %3278 = vmatprep.subr.mxu1 %v9708_v20 }
 0x59c   :  { %3208 = vmatpush1.msra.mxu0 %v9715_v58  ;;  %3279 = vmatpush1.msra.mxu1 %v9720_v23  ;;  %v10167_v23 = vld [vmem:[%s12169_s6 + $0x2c0] sm:$0xff]  ;;  %v10184_v58 = vld [vmem:[%s12169_s6 + $0x2b8] sm:$0xff] }
 0x59d   :  { %3209 = vmatprep.subr.mxu0 %v9727_v28  ;;  %3280 = vmatprep.subr.mxu1 %v9732_v11  ;;  %v10133_v11 = vld [vmem:[%s12169_s6 + $0x2e8] sm:$0xff]  ;;  %v10150_v28 = vld [vmem:[%s12169_s6 + $0x2f0] sm:$0xff]  ;;  %13245 = vst [vmem:[#allocation97_spill] sm:$0xff] %v10167_v23  ;;  %13248 = vst [vmem:[#allocation100_spill] sm:$0xff] %v10184_v58 }
 0x59e   :  { %3210 = vmatpush1.msra.mxu0 %v9739_v17  ;;  %3281 = vmatpush1.msra.mxu1 %v9744_v10  ;;  %v9763_v17 = vld [vmem:[%s12169_s6 + $0xe0] sm:$0xff]  ;;  %v9768_v10 = vld [vmem:[%s12169_s6 + $0xf0] sm:$0xff]  ;;  %13239 = vst [vmem:[#allocation91_spill] sm:$0xff] %v10133_v11  ;;  %13242 = vst [vmem:[#allocation94_spill] sm:$0xff] %v10150_v28 }
 0x59f   :  { %3211 = vmatprep.subr.mxu0 %v9751_v51  ;;  %3282 = vmatprep.subr.mxu1 %v9756_v56  ;;  %13177 = vst [vmem:[#allocation29_spill] sm:$0xff] %v9763_v17  ;;  %13178 = vst [vmem:[#allocation30_spill] sm:$0xff] %v9768_v10  ;;  %v9775_v51 = vld [vmem:[%s12169_s6 + $0xc8] sm:$0xff]  ;;  %v9780_v56 = vld [vmem:[%s12169_s6 + $0xd8] sm:$0xff] }
 0x5a0   :  { %3212 = vmatpush1.msra.mxu0 %v9763_v17  ;;  %3283 = vmatpush1.msra.mxu1 %v9768_v10  ;;  %13179 = vst [vmem:[#allocation31_spill] sm:$0xff] %v9775_v51  ;;  %13180 = vst [vmem:[#allocation32_spill] sm:$0xff] %v9780_v56  ;;  %v9787_v17 = vld [vmem:[%s12169_s6 + $0xc0] sm:$0xff]  ;;  %v9792_v10 = vld [vmem:[%s12169_s6 + $0xd0] sm:$0xff] }
 0x5a1   :  { %3213 = vmatprep.subr.mxu0 %v9775_v51  ;;  %3284 = vmatprep.subr.mxu1 %v9780_v56  ;;  %13181 = vst [vmem:[#allocation33_spill] sm:$0xff] %v9787_v17  ;;  %13182 = vst [vmem:[#allocation34_spill] sm:$0xff] %v9792_v10  ;;  %v9799_v51 = vld [vmem:[%s12169_s6 + $0xa8] sm:$0xff]  ;;  %v9804_v56 = vld [vmem:[%s12169_s6 + $0xb8] sm:$0xff] }
 0x5a2   :  { %3214 = vmatpush1.msra.mxu0 %v9787_v17  ;;  %3285 = vmatpush1.msra.mxu1 %v9792_v10  ;;  %13183 = vst [vmem:[#allocation35_spill] sm:$0xff] %v9799_v51  ;;  %13184 = vst [vmem:[#allocation36_spill] sm:$0xff] %v9804_v56  ;;  %v9811_v17 = vld [vmem:[%s12169_s6 + $0xa0] sm:$0xff]  ;;  %v9816_v10 = vld [vmem:[%s12169_s6 + $0xb0] sm:$0xff] }
 0x5a3   :  { %3215 = vmatprep.subr.mxu0 %v9799_v51  ;;  %3286 = vmatprep.subr.mxu1 %v9804_v56  ;;  %13185 = vst [vmem:[#allocation37_spill] sm:$0xff] %v9811_v17  ;;  %13186 = vst [vmem:[#allocation38_spill] sm:$0xff] %v9816_v10  ;;  %v9823_v51 = vld [vmem:[%s12169_s6 + $0x88] sm:$0xff]  ;;  %v9828_v56 = vld [vmem:[%s12169_s6 + $0x98] sm:$0xff] }
 0x5a4   :  { %3216 = vmatpush1.msra.mxu0 %v9811_v17  ;;  %3287 = vmatpush1.msra.mxu1 %v9816_v10  ;;  %13187 = vst [vmem:[#allocation39_spill] sm:$0xff] %v9823_v51  ;;  %13188 = vst [vmem:[#allocation40_spill] sm:$0xff] %v9828_v56  ;;  %v9835_v17 = vld [vmem:[%s12169_s6 + $0x80] sm:$0xff]  ;;  %v9840_v10 = vld [vmem:[%s12169_s6 + $0x90] sm:$0xff] }
 0x5a5   :  { %3217 = vmatprep.subr.mxu0 %v9823_v51  ;;  %3288 = vmatprep.subr.mxu1 %v9828_v56  ;;  %13189 = vst [vmem:[#allocation41_spill] sm:$0xff] %v9835_v17  ;;  %13190 = vst [vmem:[#allocation42_spill] sm:$0xff] %v9840_v10  ;;  %v9847_v51 = vld [vmem:[%s12169_s6 + $0x68] sm:$0xff]  ;;  %v9852_v56 = vld [vmem:[%s12169_s6 + $0x78] sm:$0xff] }
 0x5a6   :  { %3218 = vmatpush1.msra.mxu0 %v9835_v17  ;;  %3289 = vmatpush1.msra.mxu1 %v9840_v10  ;;  %13191 = vst [vmem:[#allocation43_spill] sm:$0xff] %v9847_v51  ;;  %13192 = vst [vmem:[#allocation44_spill] sm:$0xff] %v9852_v56  ;;  %v9859_v17 = vld [vmem:[%s12169_s6 + $0x60] sm:$0xff]  ;;  %v9864_v10 = vld [vmem:[%s12169_s6 + $0x70] sm:$0xff] }
 0x5a7   :  { %3219 = vmatprep.subr.mxu0 %v9847_v51  ;;  %3290 = vmatprep.subr.mxu1 %v9852_v56  ;;  %13193 = vst [vmem:[#allocation45_spill] sm:$0xff] %v9859_v17  ;;  %13194 = vst [vmem:[#allocation46_spill] sm:$0xff] %v9864_v10  ;;  %v9871_v51 = vld [vmem:[%s12169_s6 + $0x48] sm:$0xff]  ;;  %v9876_v56 = vld [vmem:[%s12169_s6 + $0x58] sm:$0xff] }
 0x5a8   :  { %3220 = vmatpush1.msra.mxu0 %v9859_v17  ;;  %3291 = vmatpush1.msra.mxu1 %v9864_v10  ;;  %13195 = vst [vmem:[#allocation47_spill] sm:$0xff] %v9871_v51  ;;  %13196 = vst [vmem:[#allocation48_spill] sm:$0xff] %v9876_v56  ;;  %v9883_v17 = vld [vmem:[%s12169_s6 + $0x40] sm:$0xff]  ;;  %v9888_v10 = vld [vmem:[%s12169_s6 + $0x50] sm:$0xff] }
 0x5a9   :  { %3221 = vmatprep.subr.mxu0 %v9871_v51  ;;  %3292 = vmatprep.subr.mxu1 %v9876_v56  ;;  %13197 = vst [vmem:[#allocation49_spill] sm:$0xff] %v9883_v17  ;;  %13198 = vst [vmem:[#allocation50_spill] sm:$0xff] %v9888_v10  ;;  %v9895_v51 = vld [vmem:[%s12169_s6 + $0x28] sm:$0xff]  ;;  %v9900_v56 = vld [vmem:[%s12169_s6 + $0x38] sm:$0xff] }
 0x5aa   :  { %3222 = vmatpush1.msra.mxu0 %v9883_v17  ;;  %3293 = vmatpush1.msra.mxu1 %v9888_v10  ;;  %13199 = vst [vmem:[#allocation51_spill] sm:$0xff] %v9895_v51  ;;  %13200 = vst [vmem:[#allocation52_spill] sm:$0xff] %v9900_v56  ;;  %v9907_v17 = vld [vmem:[%s12169_s6 + $0x20] sm:$0xff]  ;;  %v9912_v10 = vld [vmem:[%s12169_s6 + $0x30] sm:$0xff] }
 0x5ab   :  { %3223 = vmatprep.subr.mxu0 %v9895_v51  ;;  %3294 = vmatprep.subr.mxu1 %v9900_v56  ;;  %13201 = vst [vmem:[#allocation53_spill] sm:$0xff] %v9907_v17  ;;  %13202 = vst [vmem:[#allocation54_spill] sm:$0xff] %v9912_v10  ;;  %v9919_v51 = vld [vmem:[%s12169_s6 + $0x8] sm:$0xff]  ;;  %v9924_v56 = vld [vmem:[%s12169_s6 + $0x18] sm:$0xff] }
 0x5ac   :  { %3224 = vmatpush1.msra.mxu0 %v9907_v17  ;;  %3295 = vmatpush1.msra.mxu1 %v9912_v10  ;;  %13203 = vst [vmem:[#allocation55_spill] sm:$0xff] %v9919_v51  ;;  %13204 = vst [vmem:[#allocation56_spill] sm:$0xff] %v9924_v56  ;;  %v9931_v17 = vld [vmem:[%s12169_s6] sm:$0xff]  ;;  %v9936_v10 = vld [vmem:[%s12169_s6 + $0x10] sm:$0xff] }
 0x5ad   :  { %3225 = vmatprep.subr.mxu0 %v9919_v51  ;;  %3296 = vmatprep.subr.mxu1 %v9924_v56  ;;  %13205 = vst [vmem:[#allocation57_spill] sm:$0xff] %v9931_v17  ;;  %13206 = vst [vmem:[#allocation58_spill] sm:$0xff] %v9936_v10  ;;  %v9943_v51 = vld [vmem:[%s12169_s6 + $0x3e8] sm:$0xff]  ;;  %v9948_v56 = vld [vmem:[%s12169_s6 + $0x3f8] sm:$0xff] }
 0x5ae   :  { %3226 = vmatpush1.msra.mxu0 %v9931_v17  ;;  %3297 = vmatpush1.msra.mxu1 %v9936_v10  ;;  %13207 = vst [vmem:[#allocation59_spill] sm:$0xff] %v9943_v51  ;;  %13208 = vst [vmem:[#allocation60_spill] sm:$0xff] %v9948_v56  ;;  %v9955_v17 = vld [vmem:[%s12169_s6 + $0x3e0] sm:$0xff]  ;;  %v9960_v10 = vld [vmem:[%s12169_s6 + $0x3f0] sm:$0xff] }
 0x5af   :  { %3227 = vmatprep.subr.mxu0 %v9943_v51  ;;  %3298 = vmatprep.subr.mxu1 %v9948_v56  ;;  %13209 = vst [vmem:[#allocation61_spill] sm:$0xff] %v9955_v17  ;;  %13210 = vst [vmem:[#allocation62_spill] sm:$0xff] %v9960_v10  ;;  %v9967_v51 = vld [vmem:[%s12169_s6 + $0x3c8] sm:$0xff]  ;;  %v9972_v56 = vld [vmem:[%s12169_s6 + $0x3d8] sm:$0xff] }
 0x5b0   :  { %3228 = vmatpush2.msra.mxu0 %v9955_v17  ;;  %3299 = vmatpush2.msra.mxu1 %v9960_v10  ;;  %13211 = vst [vmem:[#allocation63_spill] sm:$0xff] %v9967_v51  ;;  %13212 = vst [vmem:[#allocation64_spill] sm:$0xff] %v9972_v56  ;;  %v9979_v17 = vld [vmem:[%s12169_s6 + $0x3c0] sm:$0xff]  ;;  %v9984_v10 = vld [vmem:[%s12169_s6 + $0x3d0] sm:$0xff] }
 0x5b1   :  { %3229 = vmatprep.subr.mxu0 %v9967_v51  ;;  %3300 = vmatprep.subr.mxu1 %v9972_v56  ;;  %13213 = vst [vmem:[#allocation65_spill] sm:$0xff] %v9979_v17  ;;  %13214 = vst [vmem:[#allocation66_spill] sm:$0xff] %v9984_v10  ;;  %v9991_v51 = vld [vmem:[%s12169_s6 + $0x3a8] sm:$0xff]  ;;  %v9996_v56 = vld [vmem:[%s12169_s6 + $0x3b8] sm:$0xff] }
 0x5b2   :  { %3230 = vmatpush2.msra.mxu0 %v9979_v17  ;;  %3301 = vmatpush2.msra.mxu1 %v9984_v10  ;;  %13215 = vst [vmem:[#allocation67_spill] sm:$0xff] %v9991_v51  ;;  %13216 = vst [vmem:[#allocation68_spill] sm:$0xff] %v9996_v56  ;;  %v10003_v17 = vld [vmem:[%s12169_s6 + $0x3a0] sm:$0xff]  ;;  %v10008_v10 = vld [vmem:[%s12169_s6 + $0x3b0] sm:$0xff] }
 0x5b3   :  { %3231 = vmatprep.subr.mxu0 %v9991_v51  ;;  %3302 = vmatprep.subr.mxu1 %v9996_v56  ;;  %13217 = vst [vmem:[#allocation69_spill] sm:$0xff] %v10003_v17  ;;  %13218 = vst [vmem:[#allocation70_spill] sm:$0xff] %v10008_v10  ;;  %v10015_v51 = vld [vmem:[%s12169_s6 + $0x388] sm:$0xff]  ;;  %v10020_v56 = vld [vmem:[%s12169_s6 + $0x398] sm:$0xff] }
 0x5b4   :  { %3232 = vmatpush2.msra.mxu0 %v10003_v17  ;;  %3303 = vmatpush2.msra.mxu1 %v10008_v10  ;;  %13219 = vst [vmem:[#allocation71_spill] sm:$0xff] %v10015_v51  ;;  %13220 = vst [vmem:[#allocation72_spill] sm:$0xff] %v10020_v56  ;;  %v10027_v17 = vld [vmem:[%s12169_s6 + $0x380] sm:$0xff]  ;;  %v10032_v10 = vld [vmem:[%s12169_s6 + $0x390] sm:$0xff] }
 0x5b5   :  { %3233 = vmatprep.subr.mxu0 %v10015_v51  ;;  %3304 = vmatprep.subr.mxu1 %v10020_v56  ;;  %13221 = vst [vmem:[#allocation73_spill] sm:$0xff] %v10027_v17  ;;  %13222 = vst [vmem:[#allocation74_spill] sm:$0xff] %v10032_v10  ;;  %v10039_v51 = vld [vmem:[%s12169_s6 + $0x368] sm:$0xff]  ;;  %v10044_v56 = vld [vmem:[%s12169_s6 + $0x378] sm:$0xff] }
 0x5b6   :  { %3234 = vmatpush2.msra.mxu0 %v10027_v17  ;;  %3305 = vmatpush2.msra.mxu1 %v10032_v10  ;;  %13223 = vst [vmem:[#allocation75_spill] sm:$0xff] %v10039_v51  ;;  %13224 = vst [vmem:[#allocation76_spill] sm:$0xff] %v10044_v56  ;;  %v10051_v17 = vld [vmem:[%s12169_s6 + $0x360] sm:$0xff]  ;;  %v10056_v10 = vld [vmem:[%s12169_s6 + $0x370] sm:$0xff] }
 0x5b7   :  { %3235 = vmatprep.subr.mxu0 %v10039_v51  ;;  %3306 = vmatprep.subr.mxu1 %v10044_v56  ;;  %13225 = vst [vmem:[#allocation77_spill] sm:$0xff] %v10051_v17  ;;  %13226 = vst [vmem:[#allocation78_spill] sm:$0xff] %v10056_v10  ;;  %v10063_v51 = vld [vmem:[%s12169_s6 + $0x348] sm:$0xff]  ;;  %v10068_v56 = vld [vmem:[%s12169_s6 + $0x358] sm:$0xff] }
 0x5b8   :  { %3236 = vmatpush2.msra.mxu0 %v10051_v17  ;;  %3307 = vmatpush2.msra.mxu1 %v10056_v10  ;;  %13227 = vst [vmem:[#allocation79_spill] sm:$0xff] %v10063_v51  ;;  %13228 = vst [vmem:[#allocation80_spill] sm:$0xff] %v10068_v56  ;;  %v10075_v17 = vld [vmem:[%s12169_s6 + $0x340] sm:$0xff]  ;;  %v10080_v10 = vld [vmem:[%s12169_s6 + $0x350] sm:$0xff] }
 0x5b9   :  { %3237 = vmatprep.subr.mxu0 %v10063_v51  ;;  %3308 = vmatprep.subr.mxu1 %v10068_v56  ;;  %13229 = vst [vmem:[#allocation81_spill] sm:$0xff] %v10075_v17  ;;  %13230 = vst [vmem:[#allocation82_spill] sm:$0xff] %v10080_v10  ;;  %v10087_v51 = vld [vmem:[%s12169_s6 + $0x328] sm:$0xff]  ;;  %v10092_v56 = vld [vmem:[%s12169_s6 + $0x338] sm:$0xff] }
 0x5ba   :  { %3238 = vmatpush2.msra.mxu0 %v10075_v17  ;;  %3309 = vmatpush2.msra.mxu1 %v10080_v10  ;;  %13231 = vst [vmem:[#allocation83_spill] sm:$0xff] %v10087_v51  ;;  %13232 = vst [vmem:[#allocation84_spill] sm:$0xff] %v10092_v56  ;;  %v10099_v17 = vld [vmem:[%s12169_s6 + $0x320] sm:$0xff]  ;;  %v10104_v10 = vld [vmem:[%s12169_s6 + $0x330] sm:$0xff] }
 0x5bb   :  { %3239 = vmatprep.subr.mxu0 %v10087_v51  ;;  %3310 = vmatprep.subr.mxu1 %v10092_v56  ;;  %13233 = vst [vmem:[#allocation85_spill] sm:$0xff] %v10099_v17  ;;  %13234 = vst [vmem:[#allocation86_spill] sm:$0xff] %v10104_v10  ;;  %v10111_v51 = vld [vmem:[%s12169_s6 + $0x308] sm:$0xff]  ;;  %v10116_v56 = vld [vmem:[%s12169_s6 + $0x318] sm:$0xff] }
 0x5bc   :  { %3240 = vmatpush2.msra.mxu0 %v10099_v17  ;;  %3311 = vmatpush2.msra.mxu1 %v10104_v10  ;;  %13235 = vst [vmem:[#allocation87_spill] sm:$0xff] %v10111_v51  ;;  %13236 = vst [vmem:[#allocation88_spill] sm:$0xff] %v10116_v56  ;;  %v10123_v17 = vld [vmem:[%s12169_s6 + $0x300] sm:$0xff]  ;;  %v10128_v10 = vld [vmem:[%s12169_s6 + $0x310] sm:$0xff] }
 0x5bd   :  { %3241 = vmatprep.subr.mxu0 %v10111_v51  ;;  %3312 = vmatprep.subr.mxu1 %v10116_v56  ;;  %13237 = vst [vmem:[#allocation89_spill] sm:$0xff] %v10123_v17  ;;  %13238 = vst [vmem:[#allocation90_spill] sm:$0xff] %v10128_v10  ;;  %v10140_v56 = vld [vmem:[%s12169_s6 + $0x2f8] sm:$0xff]  ;;  %v10145_v51 = vld [vmem:[%s12169_s6 + $0x2e0] sm:$0xff] }
 0x5be   :  { %3242 = vmatpush2.msra.mxu0 %v10123_v17  ;;  %3313 = vmatpush2.msra.mxu1 %v10128_v10  ;;  %13240 = vst [vmem:[#allocation92_spill] sm:$0xff] %v10140_v56  ;;  %13241 = vst [vmem:[#allocation93_spill] sm:$0xff] %v10145_v51  ;;  %v10157_v10 = vld [vmem:[%s12169_s6 + $0x2c8] sm:$0xff]  ;;  %v10162_v17 = vld [vmem:[%s12169_s6 + $0x2d8] sm:$0xff] }
 0x5bf   :  { %3243 = vmatprep.subr.mxu0 %v10133_v11  ;;  %3314 = vmatprep.subr.mxu1 %v10140_v56  ;;  %13243 = vst [vmem:[#allocation95_spill] sm:$0xff] %v10157_v10  ;;  %13244 = vst [vmem:[#allocation96_spill] sm:$0xff] %v10162_v17  ;;  %v10174_v56 = vld [vmem:[%s12169_s6 + $0x2d0] sm:$0xff]  ;;  %v10179_v11 = vld [vmem:[%s12169_s6 + $0x2a8] sm:$0xff] }
 0x5c0   :  { %3244 = vmatpush2.msra.mxu0 %v10145_v51  ;;  %3315 = vmatpush2.msra.mxu1 %v10150_v28  ;;  %13246 = vst [vmem:[#allocation98_spill] sm:$0xff] %v10174_v56  ;;  %13247 = vst [vmem:[#allocation99_spill] sm:$0xff] %v10179_v11  ;;  %v10191_v28 = vld [vmem:[%s12169_s6 + $0x2a0] sm:$0xff]  ;;  %v10196_v51 = vld [vmem:[%s12169_s6 + $0x2b0] sm:$0xff] }
 0x5c1   :  { %3245 = vmatprep.subr.mxu0 %v10157_v10  ;;  %3316 = vmatprep.subr.mxu1 %v10162_v17  ;;  %13249 = vst [vmem:[#allocation101_spill] sm:$0xff] %v10191_v28  ;;  %13250 = vst [vmem:[#allocation102_spill] sm:$0xff] %v10196_v51  ;;  %v10203_v10 = vld [vmem:[%s12169_s6 + $0x288] sm:$0xff]  ;;  %v10208_v17 = vld [vmem:[%s12169_s6 + $0x298] sm:$0xff] }
 0x5c2   :  { %3246 = vmatpush2.msra.mxu0 %v10167_v23  ;;  %3317 = vmatpush2.msra.mxu1 %v10174_v56  ;;  %13251 = vst [vmem:[#allocation103_spill] sm:$0xff] %v10203_v10  ;;  %13252 = vst [vmem:[#allocation104_spill] sm:$0xff] %v10208_v17  ;;  %v10215_v23 = vld [vmem:[%s12169_s6 + $0x280] sm:$0xff]  ;;  %v10220_v56 = vld [vmem:[%s12169_s6 + $0x290] sm:$0xff] }
 0x5c3   :  { %3247 = vmatprep.subr.mxu0 %v10179_v11  ;;  %3318 = vmatprep.subr.mxu1 %v10184_v58  ;;  %13253 = vst [vmem:[#allocation105_spill] sm:$0xff] %v10215_v23  ;;  %13254 = vst [vmem:[#allocation106_spill] sm:$0xff] %v10220_v56  ;;  %v10227_v11 = vld [vmem:[%s12169_s6 + $0x268] sm:$0xff]  ;;  %v10232_v58 = vld [vmem:[%s12169_s6 + $0x278] sm:$0xff] }
 0x5c4   :  { %3248 = vmatpush2.msra.mxu0 %v10191_v28  ;;  %3319 = vmatpush2.msra.mxu1 %v10196_v51  ;;  %13255 = vst [vmem:[#allocation107_spill] sm:$0xff] %v10227_v11  ;;  %13256 = vst [vmem:[#allocation108_spill] sm:$0xff] %v10232_v58  ;;  %v10239_v28 = vld [vmem:[%s12169_s6 + $0x260] sm:$0xff]  ;;  %v10244_v51 = vld [vmem:[%s12169_s6 + $0x270] sm:$0xff] }
 0x5c5   :  { %3249 = vmatprep.subr.mxu0 %v10203_v10  ;;  %3320 = vmatprep.subr.mxu1 %v10208_v17  ;;  %13257 = vst [vmem:[#allocation109_spill] sm:$0xff] %v10239_v28  ;;  %13258 = vst [vmem:[#allocation110_spill] sm:$0xff] %v10244_v51  ;;  %v10251_v10 = vld [vmem:[%s12169_s6 + $0x248] sm:$0xff]  ;;  %v10256_v17 = vld [vmem:[%s12169_s6 + $0x258] sm:$0xff] }
 0x5c6   :  { %3250 = vmatpush2.msra.mxu0 %v10215_v23  ;;  %3321 = vmatpush2.msra.mxu1 %v10220_v56  ;;  %13259 = vst [vmem:[#allocation111_spill] sm:$0xff] %v10251_v10  ;;  %13260 = vst [vmem:[#allocation112_spill] sm:$0xff] %v10256_v17  ;;  %v10263_v23 = vld [vmem:[%s12169_s6 + $0x240] sm:$0xff]  ;;  %v10268_v56 = vld [vmem:[%s12169_s6 + $0x250] sm:$0xff] }
 0x5c7   :  { %3251 = vmatprep.subr.mxu0 %v10227_v11  ;;  %3322 = vmatprep.subr.mxu1 %v10232_v58  ;;  %13261 = vst [vmem:[#allocation113_spill] sm:$0xff] %v10263_v23  ;;  %13262 = vst [vmem:[#allocation114_spill] sm:$0xff] %v10268_v56  ;;  %v10275_v11 = vld [vmem:[%s12169_s6 + $0x228] sm:$0xff]  ;;  %v10280_v58 = vld [vmem:[%s12169_s6 + $0x238] sm:$0xff] }
 0x5c8   :  { %3252 = vmatpush2.msra.mxu0 %v10239_v28  ;;  %3323 = vmatpush2.msra.mxu1 %v10244_v51  ;;  %13263 = vst [vmem:[#allocation115_spill] sm:$0xff] %v10275_v11  ;;  %13264 = vst [vmem:[#allocation116_spill] sm:$0xff] %v10280_v58  ;;  %v10287_v28 = vld [vmem:[%s12169_s6 + $0x220] sm:$0xff]  ;;  %v10292_v51 = vld [vmem:[%s12169_s6 + $0x230] sm:$0xff] }
 0x5c9   :  { %3253 = vmatprep.subr.mxu0 %v10251_v10  ;;  %3324 = vmatprep.subr.mxu1 %v10256_v17  ;;  %13265 = vst [vmem:[#allocation117_spill] sm:$0xff] %v10287_v28  ;;  %13266 = vst [vmem:[#allocation118_spill] sm:$0xff] %v10292_v51  ;;  %v10299_v10 = vld [vmem:[%s12169_s6 + $0x208] sm:$0xff]  ;;  %v10304_v17 = vld [vmem:[%s12169_s6 + $0x218] sm:$0xff] }
 0x5ca   :  { %3254 = vmatpush2.msra.mxu0 %v10263_v23  ;;  %3325 = vmatpush2.msra.mxu1 %v10268_v56  ;;  %13267 = vst [vmem:[#allocation119_spill] sm:$0xff] %v10299_v10  ;;  %13268 = vst [vmem:[#allocation120_spill] sm:$0xff] %v10304_v17  ;;  %v10311_v23 = vld [vmem:[%s12169_s6 + $0x200] sm:$0xff]  ;;  %v10316_v56 = vld [vmem:[%s12169_s6 + $0x210] sm:$0xff] }
 0x5cb   :  { %3255 = vmatprep.subr.mxu0 %v10275_v11  ;;  %3326 = vmatprep.subr.mxu1 %v10280_v58  ;;  %13269 = vst [vmem:[#allocation121_spill] sm:$0xff] %v10311_v23  ;;  %13270 = vst [vmem:[#allocation122_spill] sm:$0xff] %v10316_v56  ;;  %v10323_v11 = vld [vmem:[%s12168_s5 + $0x1e8] sm:$0xff] }
 0x5cc   :  { %3256 = vmatpush2.msra.mxu0 %v10287_v28  ;;  %3327 = vmatpush2.msra.mxu1 %v10292_v51  ;;  %13271 = vst [vmem:[#allocation123_spill] sm:$0xff] %v10323_v11 }
 0x5cd   :  { %3257 = vmatprep.subr.mxu0 %v10299_v10  ;;  %3328 = vmatprep.subr.mxu1 %v10304_v17 }
 0x5ce   :  { %3258 = vmatpush2.msra.mxu0 %v10311_v23  ;;  %3329 = vmatpush2.msra.mxu1 %v10316_v56 }
 0x5cf   :  { %3430 = vmatprep.subr.mxu0 %v10323_v11  ;;  %3501 = vmatprep.subr.mxu1 %v9343_v52 }
 0x62d   :  { %v2728_v28 = vpop.f32.mrf.mxu0  ;;  %v2799_v26 = vpop.f32.mrf.mxu1 }
 0x62e   :  { %v2729_v51 = vadd.f32 %v2728_v28, %v13151_v54  ;;  %v2800_v11 = vadd.f32 %v2799_v26, %v13273_v50 }
 0x62f   :  { %v2730_v58 = vpop.f32.mrf.mxu0  ;;  %v2801_v17 = vpop.f32.mrf.mxu1 }
 0x630   :  { %v5295_v20 = vmul.f32 -1.442695, %v2729_v51  ;;  %v2731_v59 = vadd.f32 %v2730_v58, %v13152_v57  ;;  %v2802_v23 = vadd.f32 %v2801_v17, %v13272_v2  ;;  %v13274_v57 = vld [vmem:[#allocation134_spill] sm:$0xff] }
 0x632   :  { %5713 = vpow2.f32 %v5295_v20  ;;  %v5296_v10 = vmul.f32 -1.442695, %v2731_v59  ;;  %v5297_v0 = vmul.f32 -1.442695, %v2802_v23  ;;  %v13275_v23 = vld [vmem:[#allocation133_spill] sm:$0xff] }
 0x634   :  { %5715 = vpow2.f32 %v5296_v10 }
 0x635   :  { %5717 = vpow2.f32 %v5297_v0 }
 0x63f   :  { %v5714_v56 = vpop.eup %5713 }
 0x640   :  { %v2810_v18 = vadd.f32 1.0, %v5714_v56 }
 0x641   :  { %v5716_v52 = vpop.eup %5715 }
 0x642   :  { %5719 = vrcp.f32 %v2810_v18  ;;  %v2811_v28 = vadd.f32 1.0, %v5716_v52  ;;  %v5718_v51 = vpop.eup %5717 }
 0x643   :  { %5721 = vtanh.f32 %v2800_v11  ;;  %v2820_v26 = vadd.f32 1.0, %v5718_v51 }
 0x644   :  { %5723 = vrcp.f32 %v2811_v28 }
 0x64e   :  { %v2963_v58 = vpop.f32.mrf.mxu0  ;;  %v3034_v18 = vpop.f32.mrf.mxu1 }
 0x64f   :  { %v5720_v20 = vpop.eup %5719  ;;  %v3039_v59 = vadd.f32 %v2963_v58, %v13274_v57  ;;  %v13276_v57 = vld [vmem:[#allocation149_spill] sm:$0xff]  ;;  %v13277_v58 = vld [vmem:[#allocation135_spill] sm:$0xff] }
 0x650   :  { %v5722_v10 = vpop.eup %5721  ;;  %v2965_v54 = vpop.f32.mrf.mxu0 }
 0x651   :  { %v5724_v13 = vpop.eup %5723  ;;  %v5298_v17 = vmul.f32 -1.442695, %v3039_v59  ;;  %v3040_v2 = vadd.f32 %v2965_v54, %v13275_v23  ;;  %v2824_v12 = vmul.f32 %v5722_v10, %v5720_v20  ;;  %v3036_v52 = vpop.f32.mrf.mxu1  ;;  %v3041_v59 = vadd.f32 %v3034_v18, %v13277_v58  ;;  %v10356_v58 = vld [vmem:[%s12168_s5 + $0x1e0] sm:$0xff] }
 0x652   :  { %v2823_v56 = vmul.f32 %v5724_v13, %v9353_v3  ;;  %v3042_v28 = vadd.f32 %v3036_v52, %v13276_v57 }
 0x653   :  { %5725 = vpow2.f32 %v5298_v17  ;;  %v5299_v0 = vmul.f32 -1.442695, %v3040_v2 }
 0x654   :  { %v10338_v11 = vadd.f32 %v2824_v12, %v2823_v56  ;;  %v5300_v50 = vmul.f32 -1.442695, %v3042_v28 }
 0x655   :  { %5727 = vpow2.f32 %v5299_v0 }
 0x656   :  { %5729 = vrcp.f32 %v2820_v26 }
 0x657   :  { %5731 = vtanh.f32 %v10338_v11 }
 0x658   :  { %5733 = vtanh.f32 %v3041_v59  ;;  %v10361_v59 = vld [vmem:[%s12168_s5 + $0x1c8] sm:$0xff] }
 0x659   :  { %5735 = vpow2.f32 %v5300_v50 }
 0x660   :  { %v5726_v54 = vpop.eup %5725 }
 0x661   :  { %v3049_v20 = vadd.f32 1.0, %v5726_v54  ;;  %v10375_v54 = vld [vmem:[%s12168_s5 + $0x1a8] sm:$0xff] }
 0x662   :  { %v5728_v3 = vpop.eup %5727 }
 0x663   :  { %v5730_v13 = vpop.eup %5729  ;;  %5737 = vrcp.f32 %v3049_v20  ;;  %v3050_v2 = vadd.f32 1.0, %v5728_v3  ;;  %v10382_v20 = vld [vmem:[%s12168_s5 + $0x1a0] sm:$0xff]  ;;  %v10527_v3 = vld [vmem:[%s12168_s5 + $0x70] sm:$0xff] }
 0x664   :  { %v5732_v12 = vpop.eup %5731 }
 0x665   :  { %5739 = vrcp.f32 %v3050_v2  ;;  %v10343_v51 = vmul.f32 %v5732_v12, %v5730_v13  ;;  %v5734_v10 = vpop.eup %5733  ;;  %v10546_v13 = vld [vmem:[%s12168_s5 + $0x40] sm:$0xff]  ;;  %v10558_v2 = vld [vmem:[%s12168_s5 + $0x28] sm:$0xff] }
 0x666   :  { %v5736_v17 = vpop.eup %5735  ;;  %v10570_v12 = vld [vmem:[%s12168_s5 + $0x20] sm:$0xff] }
 0x667   :  { %13278 = vst [vmem:[#allocation125_spill] sm:$0xff] %v10343_v51  ;;  %3259 = vmatprep.mubr.f32.mxu0 %v10343_v51  ;;  %3330 = vmatprep.mubr.f32.mxu1 %v10343_v51  ;;  %v3059_v18 = vadd.f32 1.0, %v5736_v17  ;;  %v10582_v17 = vld [vmem:[%s12168_s5 + $0x8] sm:$0xff] }
 0x669   :  { %5741 = vrcp.f32 %v3059_v18  ;;  %v13296_v18 = vld [vmem:[#allocation29_spill] sm:$0xff] }
 0x670   :  { %v5738_v23 = vpop.eup %5737 }
 0x671   :  { %v3063_v56 = vmul.f32 %v5738_v23, %v5734_v10  ;;  %v10575_v10 = vld [vmem:[%s12168_s5 + $0x30] sm:$0xff]  ;;  %v10587_v23 = vld [vmem:[%s12168_s5 + $0x18] sm:$0xff] }
 0x672   :  { %v5740_v26 = vpop.eup %5739 }
 0x673   :  { %v3062_v0 = vmul.f32 %v5740_v26, %v9363_v25  ;;  %v10368_v25 = vld [vmem:[%s12168_s5 + $0x1c0] sm:$0xff]  ;;  %v10601_v26 = vld [vmem:[%s12168_s5 + $0x10] sm:$0xff] }
 0x675   :  { %v10348_v50 = vadd.f32 %v3063_v56, %v3062_v0  ;;  %v10594_v56 = vld [vmem:[%s12168_s5] sm:$0xff]  ;;  %v13297_v0 = vld [vmem:[#allocation30_spill] sm:$0xff] }
 0x676   :  { %v5742_v52 = vpop.eup %5741 }
 0x677   :  { %5743 = vtanh.f32 %v10348_v50 }
 0x684   :  { %v5744_v57 = vpop.eup %5743 }
 0x685   :  { %v10351_v28 = vmul.f32 %v5744_v57, %v5742_v52  ;;  %v13298_v52 = vld [vmem:[#allocation31_spill] sm:$0xff]  ;;  %v13299_v57 = vld [vmem:[#allocation32_spill] sm:$0xff] }
 0x687   :  { %3260 = vmatmul.mubr.f32.vlgmr.msra.gmra.mxu0 %v10351_v28  ;;  %3331 = vmatmul.mubr.f32.vlgmr.msra.gmra.mxu1 %v10351_v28 }
 0x688   :  { %3431 = vmatpush1.msra.mxu0 %v10356_v58  ;;  %3502 = vmatpush1.msra.mxu1 %v9371_v55  ;;  %v10389_v55 = vld [vmem:[%s12168_s5 + $0x188] sm:$0xff] }
 0x689   :  { %3432 = vmatprep.subr.mxu0 %v10361_v59  ;;  %3503 = vmatprep.subr.mxu1 %v9376_v33  ;;  %v10396_v33 = vld [vmem:[%s12168_s5 + $0x180] sm:$0xff] }
 0x68a   :  { %3433 = vmatpush1.msra.mxu0 %v10368_v25  ;;  %3504 = vmatpush1.msra.mxu1 %v9383_v19  ;;  %v10403_v19 = vld [vmem:[%s12168_s5 + $0x168] sm:$0xff] }
 0x68b   :  { %3434 = vmatprep.subr.mxu0 %v10375_v54  ;;  %3505 = vmatprep.subr.mxu1 %v9390_v36  ;;  %v10410_v36 = vld [vmem:[%s12168_s5 + $0x160] sm:$0xff] }
 0x68c   :  { %3435 = vmatpush1.msra.mxu0 %v10382_v20  ;;  %3506 = vmatpush1.msra.mxu1 %v9397_v53  ;;  %v10417_v53 = vld [vmem:[%s12168_s5 + $0x148] sm:$0xff] }
 0x68d   :  { %3436 = vmatprep.subr.mxu0 %v10389_v55  ;;  %3507 = vmatprep.subr.mxu1 %v9404_v29  ;;  %v10424_v29 = vld [vmem:[%s12168_s5 + $0x140] sm:$0xff] }
 0x68e   :  { %3437 = vmatpush1.msra.mxu0 %v10396_v33  ;;  %3508 = vmatpush1.msra.mxu1 %v9411_v8  ;;  %v10431_v8 = vld [vmem:[%s12168_s5 + $0x128] sm:$0xff] }
 0x68f   :  { %3438 = vmatprep.subr.mxu0 %v10403_v19  ;;  %3509 = vmatprep.subr.mxu1 %v9418_v16  ;;  %v10438_v16 = vld [vmem:[%s12168_s5 + $0x120] sm:$0xff] }
 0x690   :  { %3439 = vmatpush1.msra.mxu0 %v10410_v36  ;;  %3510 = vmatpush1.msra.mxu1 %v9425_v15  ;;  %v10445_v15 = vld [vmem:[%s12168_s5 + $0x108] sm:$0xff] }
 0x691   :  { %3440 = vmatprep.subr.mxu0 %v10417_v53  ;;  %3511 = vmatprep.subr.mxu1 %v9432_v7  ;;  %v10452_v7 = vld [vmem:[%s12168_s5 + $0x100] sm:$0xff] }
 0x692   :  { %3441 = vmatpush1.msra.mxu0 %v10424_v29  ;;  %3512 = vmatpush1.msra.mxu1 %v9439_v35  ;;  %v10459_v35 = vld [vmem:[%s12168_s5 + $0xe8] sm:$0xff] }
 0x693   :  { %3442 = vmatprep.subr.mxu0 %v10431_v8  ;;  %3513 = vmatprep.subr.mxu1 %v9446_v34  ;;  %v10466_v34 = vld [vmem:[%s12168_s5 + $0xe0] sm:$0xff] }
 0x694   :  { %3443 = vmatpush1.msra.mxu0 %v10438_v16  ;;  %3514 = vmatpush1.msra.mxu1 %v9453_v24  ;;  %v10473_v24 = vld [vmem:[%s12168_s5 + $0xc8] sm:$0xff] }
 0x695   :  { %3444 = vmatprep.subr.mxu0 %v10445_v15  ;;  %3515 = vmatprep.subr.mxu1 %v9460_v4  ;;  %v10480_v4 = vld [vmem:[%s12168_s5 + $0xc0] sm:$0xff] }
 0x696   :  { %3445 = vmatpush1.msra.mxu0 %v10452_v7  ;;  %3516 = vmatpush1.msra.mxu1 %v9467_v6  ;;  %v10487_v6 = vld [vmem:[%s12168_s5 + $0xa8] sm:$0xff] }
 0x697   :  { %3446 = vmatprep.subr.mxu0 %v10459_v35  ;;  %3517 = vmatprep.subr.mxu1 %v9474_v27  ;;  %v10494_v27 = vld [vmem:[%s12168_s5 + $0xa0] sm:$0xff] }
 0x698   :  { %3447 = vmatpush1.msra.mxu0 %v10466_v34  ;;  %3518 = vmatpush1.msra.mxu1 %v9481_v62  ;;  %v10501_v62 = vld [vmem:[%s12168_s5 + $0x88] sm:$0xff] }
 0x699   :  { %3448 = vmatprep.subr.mxu0 %v10473_v24  ;;  %3519 = vmatprep.subr.mxu1 %v9488_v22  ;;  %v10508_v22 = vld [vmem:[%s12168_s5 + $0x80] sm:$0xff] }
 0x69a   :  { %3449 = vmatpush1.msra.mxu0 %v10480_v4  ;;  %3520 = vmatpush1.msra.mxu1 %v9495_v1  ;;  %v10515_v1 = vld [vmem:[%s12168_s5 + $0x68] sm:$0xff] }
 0x69b   :  { %3450 = vmatprep.subr.mxu0 %v10487_v6  ;;  %3521 = vmatprep.subr.mxu1 %v9502_v63  ;;  %v10522_v63 = vld [vmem:[%s12168_s5 + $0x60] sm:$0xff] }
 0x69c   :  { %3451 = vmatpush1.msra.mxu0 %v10494_v27  ;;  %3522 = vmatpush1.msra.mxu1 %v9509_v37  ;;  %v10534_v37 = vld [vmem:[%s12168_s5 + $0x48] sm:$0xff] }
 0x69d   :  { %3452 = vmatprep.subr.mxu0 %v10501_v62  ;;  %3523 = vmatprep.subr.mxu1 %v9516_v31  ;;  %v10539_v31 = vld [vmem:[%s12168_s5 + $0x58] sm:$0xff] }
 0x69e   :  { %3453 = vmatpush1.msra.mxu0 %v10508_v22  ;;  %3524 = vmatpush1.msra.mxu1 %v9523_v38  ;;  %v10551_v38 = vld [vmem:[%s12168_s5 + $0x50] sm:$0xff] }
 0x69f   :  { %3454 = vmatprep.subr.mxu0 %v10515_v1  ;;  %3525 = vmatprep.subr.mxu1 %v9530_v39  ;;  %v10563_v39 = vld [vmem:[%s12168_s5 + $0x38] sm:$0xff] }
 0x6a0   :  { %3455 = vmatpush1.msra.mxu0 %v10522_v63  ;;  %3526 = vmatpush1.msra.mxu1 %v10527_v3 }
 0x6a1   :  { %3456 = vmatprep.subr.mxu0 %v10534_v37  ;;  %3527 = vmatprep.subr.mxu1 %v10539_v31 }
 0x6a2   :  { %3457 = vmatpush1.msra.mxu0 %v10546_v13  ;;  %3528 = vmatpush1.msra.mxu1 %v10551_v38 }
 0x6a3   :  { %3458 = vmatprep.subr.mxu0 %v10558_v2  ;;  %3529 = vmatprep.subr.mxu1 %v10563_v39 }
 0x6a4   :  { %3459 = vmatpush1.msra.mxu0 %v10570_v12  ;;  %3530 = vmatpush1.msra.mxu1 %v10575_v10 }
 0x6a5   :  { %3460 = vmatprep.subr.mxu0 %v10582_v17  ;;  %3531 = vmatprep.subr.mxu1 %v10587_v23 }
 0x6a6   :  { %3461 = vmatpush1.msra.mxu0 %v10594_v56  ;;  %3494 = vmatprep.mubr.f32.mxu0 %v12792_v60 }
 0x6a7   :  { %3532 = vmatpush1.msra.mxu1 %v10601_v26  ;;  %3565 = vmatprep.mubr.f32.mxu1 %v12792_v60 }
 0x6a8   :  { %3495 = vmatmul.mubr.f32.vlgmr.msra.gmra.mxu0 %v10351_v28  ;;  %3566 = vmatmul.mubr.f32.vlgmr.msra.gmra.mxu1 %v10351_v28  ;;  %v13300_v28 = vld [vmem:[#allocation33_spill] sm:$0xff] }
 0x6a9   :  { %3728 = vmatprep.subr.mxu0 %v9559_v40  ;;  %3799 = vmatprep.subr.mxu1 %v9564_v41  ;;  %v13279_v40 = vld [vmem:[#allocation127_spill] sm:$0xff] }
 0x6aa   :  { %3729 = vmatpush1.msra.mxu0 %v9571_v42  ;;  %3800 = vmatpush1.msra.mxu1 %v9576_v43  ;;  %v13280_v41 = vld [vmem:[#allocation147_spill] sm:$0xff]  ;;  %v13281_v42 = vld [vmem:[#allocation129_spill] sm:$0xff] }
 0x6ab   :  { %3730 = vmatprep.subr.mxu0 %v9583_v44  ;;  %3801 = vmatprep.subr.mxu1 %v9588_v45  ;;  %v13282_v43 = vld [vmem:[#allocation15_spill] sm:$0xff]  ;;  %v13283_v44 = vld [vmem:[#allocation16_spill] sm:$0xff]  ;;  %v13284_v45 = vld [vmem:[#allocation17_spill] sm:$0xff] }
 0x6ac   :  { %3731 = vmatpush1.msra.mxu0 %v9595_v61  ;;  %3802 = vmatpush1.msra.mxu1 %v9600_v46  ;;  %v13285_v61 = vld [vmem:[#allocation18_spill] sm:$0xff]  ;;  %v13286_v46 = vld [vmem:[#allocation19_spill] sm:$0xff] }
 0x6ad   :  { %3732 = vmatprep.subr.mxu0 %v9607_v47  ;;  %3803 = vmatprep.subr.mxu1 %v9612_v32  ;;  %v13287_v47 = vld [vmem:[#allocation20_spill] sm:$0xff]  ;;  %v13288_v32 = vld [vmem:[#allocation21_spill] sm:$0xff] }
 0x6ae   :  { %3733 = vmatpush1.msra.mxu0 %v9619_v48  ;;  %3804 = vmatpush1.msra.mxu1 %v9624_v30  ;;  %v13289_v48 = vld [vmem:[#allocation22_spill] sm:$0xff]  ;;  %v13290_v30 = vld [vmem:[#allocation23_spill] sm:$0xff] }
 0x6af   :  { %3734 = vmatprep.subr.mxu0 %v9631_v49  ;;  %3805 = vmatprep.subr.mxu1 %v9636_v21  ;;  %v13291_v49 = vld [vmem:[#allocation24_spill] sm:$0xff]  ;;  %v13292_v21 = vld [vmem:[#allocation25_spill] sm:$0xff] }
 0x6b0   :  { %3735 = vmatpush1.msra.mxu0 %v9643_v9  ;;  %3806 = vmatpush1.msra.mxu1 %v9648_v5  ;;  %v13293_v9 = vld [vmem:[#allocation26_spill] sm:$0xff]  ;;  %v13294_v5 = vld [vmem:[#allocation27_spill] sm:$0xff] }
 0x6b1   :  { %3736 = vmatprep.subr.mxu0 %v9655_v14  ;;  %3807 = vmatprep.subr.mxu1 %v13279_v40  ;;  %v13295_v14 = vld [vmem:[#allocation28_spill] sm:$0xff]  ;;  %v13301_v40 = vld [vmem:[#allocation34_spill] sm:$0xff] }
 0x6b2   :  { %3737 = vmatpush1.msra.mxu0 %v13280_v41  ;;  %3808 = vmatpush1.msra.mxu1 %v13281_v42  ;;  %v13302_v41 = vld [vmem:[#allocation35_spill] sm:$0xff]  ;;  %v13303_v42 = vld [vmem:[#allocation36_spill] sm:$0xff] }
 0x6b3   :  { %3738 = vmatprep.subr.mxu0 %v13282_v43  ;;  %3809 = vmatprep.subr.mxu1 %v13283_v44  ;;  %v13304_v43 = vld [vmem:[#allocation37_spill] sm:$0xff]  ;;  %v13305_v44 = vld [vmem:[#allocation38_spill] sm:$0xff] }
 0x6b4   :  { %3739 = vmatpush1.msra.mxu0 %v13284_v45  ;;  %3810 = vmatpush1.msra.mxu1 %v13285_v61  ;;  %v13306_v45 = vld [vmem:[#allocation39_spill] sm:$0xff]  ;;  %v13307_v61 = vld [vmem:[#allocation40_spill] sm:$0xff] }
 0x6b5   :  { %3740 = vmatprep.subr.mxu0 %v13286_v46  ;;  %3811 = vmatprep.subr.mxu1 %v13287_v47  ;;  %v13308_v46 = vld [vmem:[#allocation41_spill] sm:$0xff]  ;;  %v13309_v47 = vld [vmem:[#allocation42_spill] sm:$0xff] }
 0x6b6   :  { %3741 = vmatpush1.msra.mxu0 %v13288_v32  ;;  %3812 = vmatpush1.msra.mxu1 %v13289_v48  ;;  %v13310_v32 = vld [vmem:[#allocation43_spill] sm:$0xff]  ;;  %v13311_v48 = vld [vmem:[#allocation44_spill] sm:$0xff] }
 0x6b7   :  { %3742 = vmatprep.subr.mxu0 %v13290_v30  ;;  %3813 = vmatprep.subr.mxu1 %v13291_v49  ;;  %v13312_v30 = vld [vmem:[#allocation45_spill] sm:$0xff]  ;;  %v13313_v49 = vld [vmem:[#allocation46_spill] sm:$0xff] }
 0x6b8   :  { %3743 = vmatpush1.msra.mxu0 %v13292_v21  ;;  %3814 = vmatpush1.msra.mxu1 %v13293_v9  ;;  %v13314_v21 = vld [vmem:[#allocation47_spill] sm:$0xff]  ;;  %v13315_v9 = vld [vmem:[#allocation48_spill] sm:$0xff] }
 0x6b9   :  { %3744 = vmatprep.subr.mxu0 %v13294_v5  ;;  %3815 = vmatprep.subr.mxu1 %v13295_v14  ;;  %v13316_v5 = vld [vmem:[#allocation49_spill] sm:$0xff]  ;;  %v13317_v14 = vld [vmem:[#allocation50_spill] sm:$0xff] }
 0x6ba   :  { %3745 = vmatpush1.msra.mxu0 %v13296_v18  ;;  %3816 = vmatpush1.msra.mxu1 %v13297_v0  ;;  %v13318_v18 = vld [vmem:[#allocation51_spill] sm:$0xff]  ;;  %v13319_v0 = vld [vmem:[#allocation52_spill] sm:$0xff] }
 0x6bb   :  { %3746 = vmatprep.subr.mxu0 %v13298_v52  ;;  %3817 = vmatprep.subr.mxu1 %v13299_v57  ;;  %v13320_v52 = vld [vmem:[#allocation53_spill] sm:$0xff]  ;;  %v13321_v57 = vld [vmem:[#allocation54_spill] sm:$0xff] }
 0x6bc   :  { %3747 = vmatpush1.msra.mxu0 %v13300_v28  ;;  %3818 = vmatpush1.msra.mxu1 %v13301_v40  ;;  %v13322_v28 = vld [vmem:[#allocation55_spill] sm:$0xff]  ;;  %v13323_v40 = vld [vmem:[#allocation56_spill] sm:$0xff] }
 0x6bd   :  { %3748 = vmatprep.subr.mxu0 %v13302_v41  ;;  %3819 = vmatprep.subr.mxu1 %v13303_v42  ;;  %v13324_v41 = vld [vmem:[#allocation57_spill] sm:$0xff]  ;;  %v13325_v42 = vld [vmem:[#allocation58_spill] sm:$0xff] }
 0x6be   :  { %3749 = vmatpush1.msra.mxu0 %v13304_v43  ;;  %3820 = vmatpush1.msra.mxu1 %v13305_v44  ;;  %v13326_v43 = vld [vmem:[#allocation59_spill] sm:$0xff]  ;;  %v13327_v44 = vld [vmem:[#allocation60_spill] sm:$0xff] }
 0x6bf   :  { %3750 = vmatprep.subr.mxu0 %v13306_v45  ;;  %3821 = vmatprep.subr.mxu1 %v13307_v61  ;;  %v13328_v45 = vld [vmem:[#allocation61_spill] sm:$0xff]  ;;  %v13329_v61 = vld [vmem:[#allocation62_spill] sm:$0xff] }
 0x6c0   :  { %3751 = vmatpush1.msra.mxu0 %v13308_v46  ;;  %3822 = vmatpush1.msra.mxu1 %v13309_v47  ;;  %v13330_v46 = vld [vmem:[#allocation63_spill] sm:$0xff]  ;;  %v13331_v47 = vld [vmem:[#allocation64_spill] sm:$0xff] }
 0x6c1   :  { %3752 = vmatprep.subr.mxu0 %v13310_v32  ;;  %3823 = vmatprep.subr.mxu1 %v13311_v48  ;;  %v13332_v32 = vld [vmem:[#allocation65_spill] sm:$0xff]  ;;  %v13333_v48 = vld [vmem:[#allocation66_spill] sm:$0xff] }
 0x6c2   :  { %3753 = vmatpush1.msra.mxu0 %v13312_v30  ;;  %3824 = vmatpush1.msra.mxu1 %v13313_v49  ;;  %v13334_v30 = vld [vmem:[#allocation67_spill] sm:$0xff]  ;;  %v13335_v49 = vld [vmem:[#allocation68_spill] sm:$0xff] }
 0x6c3   :  { %3754 = vmatprep.subr.mxu0 %v13314_v21  ;;  %3825 = vmatprep.subr.mxu1 %v13315_v9  ;;  %v13336_v21 = vld [vmem:[#allocation69_spill] sm:$0xff]  ;;  %v13337_v9 = vld [vmem:[#allocation70_spill] sm:$0xff] }
 0x6c4   :  { %3755 = vmatpush1.msra.mxu0 %v13316_v5  ;;  %3826 = vmatpush1.msra.mxu1 %v13317_v14  ;;  %v13338_v5 = vld [vmem:[#allocation71_spill] sm:$0xff]  ;;  %v13339_v14 = vld [vmem:[#allocation72_spill] sm:$0xff] }
 0x6c5   :  { %3756 = vmatprep.subr.mxu0 %v13318_v18  ;;  %3827 = vmatprep.subr.mxu1 %v13319_v0  ;;  %v13340_v18 = vld [vmem:[#allocation73_spill] sm:$0xff]  ;;  %v13341_v0 = vld [vmem:[#allocation74_spill] sm:$0xff] }
 0x6c6   :  { %3757 = vmatpush1.msra.mxu0 %v13320_v52  ;;  %3828 = vmatpush1.msra.mxu1 %v13321_v57  ;;  %v13342_v52 = vld [vmem:[#allocation75_spill] sm:$0xff]  ;;  %v13343_v57 = vld [vmem:[#allocation76_spill] sm:$0xff] }
 0x6c7   :  { %3758 = vmatprep.subr.mxu0 %v13322_v28  ;;  %3829 = vmatprep.subr.mxu1 %v13323_v40  ;;  %v13344_v28 = vld [vmem:[#allocation77_spill] sm:$0xff]  ;;  %v13345_v40 = vld [vmem:[#allocation78_spill] sm:$0xff] }
 0x6c8   :  { %3759 = vmatpush1.msra.mxu0 %v13324_v41  ;;  %3830 = vmatpush1.msra.mxu1 %v13325_v42  ;;  %v13346_v41 = vld [vmem:[#allocation79_spill] sm:$0xff]  ;;  %v13347_v42 = vld [vmem:[#allocation80_spill] sm:$0xff] }
 0x6c9   :  { %3760 = vmatprep.subr.mxu0 %v13326_v43  ;;  %3831 = vmatprep.subr.mxu1 %v13327_v44  ;;  %v13348_v43 = vld [vmem:[#allocation81_spill] sm:$0xff]  ;;  %v13349_v44 = vld [vmem:[#allocation82_spill] sm:$0xff] }
 0x6ca   :  { %3761 = vmatpush2.msra.mxu0 %v13328_v45  ;;  %3832 = vmatpush2.msra.mxu1 %v13329_v61  ;;  %v13350_v45 = vld [vmem:[#allocation83_spill] sm:$0xff]  ;;  %v13351_v61 = vld [vmem:[#allocation84_spill] sm:$0xff] }
 0x6cb   :  { %3762 = vmatprep.subr.mxu0 %v13330_v46  ;;  %3833 = vmatprep.subr.mxu1 %v13331_v47  ;;  %v13352_v46 = vld [vmem:[#allocation85_spill] sm:$0xff]  ;;  %v13353_v47 = vld [vmem:[#allocation86_spill] sm:$0xff] }
 0x6cc   :  { %3763 = vmatpush2.msra.mxu0 %v13332_v32  ;;  %3834 = vmatpush2.msra.mxu1 %v13333_v48  ;;  %v13354_v32 = vld [vmem:[#allocation87_spill] sm:$0xff]  ;;  %v13355_v48 = vld [vmem:[#allocation88_spill] sm:$0xff] }
 0x6cd   :  { %3764 = vmatprep.subr.mxu0 %v13334_v30  ;;  %3835 = vmatprep.subr.mxu1 %v13335_v49  ;;  %v13356_v30 = vld [vmem:[#allocation89_spill] sm:$0xff]  ;;  %v13357_v49 = vld [vmem:[#allocation90_spill] sm:$0xff] }
 0x6ce   :  { %3765 = vmatpush2.msra.mxu0 %v13336_v21  ;;  %3836 = vmatpush2.msra.mxu1 %v13337_v9  ;;  %v13358_v21 = vld [vmem:[#allocation91_spill] sm:$0xff]  ;;  %v13359_v9 = vld [vmem:[#allocation92_spill] sm:$0xff] }
 0x6cf   :  { %3766 = vmatprep.subr.mxu0 %v13338_v5  ;;  %3837 = vmatprep.subr.mxu1 %v13339_v14  ;;  %v13360_v5 = vld [vmem:[#allocation93_spill] sm:$0xff]  ;;  %v13361_v14 = vld [vmem:[#allocation94_spill] sm:$0xff] }
 0x6d0   :  { %3767 = vmatpush2.msra.mxu0 %v13340_v18  ;;  %3838 = vmatpush2.msra.mxu1 %v13341_v0  ;;  %v13362_v18 = vld [vmem:[#allocation95_spill] sm:$0xff]  ;;  %v13363_v0 = vld [vmem:[#allocation96_spill] sm:$0xff] }
 0x6d1   :  { %3768 = vmatprep.subr.mxu0 %v13342_v52  ;;  %3839 = vmatprep.subr.mxu1 %v13343_v57  ;;  %v13364_v52 = vld [vmem:[#allocation97_spill] sm:$0xff]  ;;  %v13365_v57 = vld [vmem:[#allocation98_spill] sm:$0xff] }
 0x6d2   :  { %3769 = vmatpush2.msra.mxu0 %v13344_v28  ;;  %3840 = vmatpush2.msra.mxu1 %v13345_v40  ;;  %v13366_v28 = vld [vmem:[#allocation99_spill] sm:$0xff]  ;;  %v13367_v40 = vld [vmem:[#allocation100_spill] sm:$0xff] }
 0x6d3   :  { %3770 = vmatprep.subr.mxu0 %v13346_v41  ;;  %3841 = vmatprep.subr.mxu1 %v13347_v42  ;;  %v13368_v41 = vld [vmem:[#allocation101_spill] sm:$0xff]  ;;  %v13369_v42 = vld [vmem:[#allocation102_spill] sm:$0xff] }
 0x6d4   :  { %3771 = vmatpush2.msra.mxu0 %v13348_v43  ;;  %3842 = vmatpush2.msra.mxu1 %v13349_v44  ;;  %v13370_v43 = vld [vmem:[#allocation103_spill] sm:$0xff]  ;;  %v13371_v44 = vld [vmem:[#allocation104_spill] sm:$0xff] }
 0x6d5   :  { %3772 = vmatprep.subr.mxu0 %v13350_v45  ;;  %3843 = vmatprep.subr.mxu1 %v13351_v61  ;;  %v13372_v45 = vld [vmem:[#allocation105_spill] sm:$0xff]  ;;  %v13373_v61 = vld [vmem:[#allocation106_spill] sm:$0xff] }
 0x6d6   :  { %3773 = vmatpush2.msra.mxu0 %v13352_v46  ;;  %3844 = vmatpush2.msra.mxu1 %v13353_v47  ;;  %v13374_v46 = vld [vmem:[#allocation107_spill] sm:$0xff]  ;;  %v13375_v47 = vld [vmem:[#allocation108_spill] sm:$0xff] }
 0x6d7   :  { %3774 = vmatprep.subr.mxu0 %v13354_v32  ;;  %3845 = vmatprep.subr.mxu1 %v13355_v48  ;;  %v13376_v32 = vld [vmem:[#allocation109_spill] sm:$0xff]  ;;  %v13377_v48 = vld [vmem:[#allocation110_spill] sm:$0xff] }
 0x6d8   :  { %3775 = vmatpush2.msra.mxu0 %v13356_v30  ;;  %3846 = vmatpush2.msra.mxu1 %v13357_v49  ;;  %v13378_v30 = vld [vmem:[#allocation111_spill] sm:$0xff]  ;;  %v13379_v49 = vld [vmem:[#allocation112_spill] sm:$0xff] }
 0x6d9   :  { %3776 = vmatprep.subr.mxu0 %v13358_v21  ;;  %3847 = vmatprep.subr.mxu1 %v13359_v9  ;;  %v13380_v21 = vld [vmem:[#allocation113_spill] sm:$0xff]  ;;  %v13381_v9 = vld [vmem:[#allocation114_spill] sm:$0xff] }
 0x6da   :  { %3777 = vmatpush2.msra.mxu0 %v13360_v5  ;;  %3848 = vmatpush2.msra.mxu1 %v13361_v14  ;;  %v13382_v5 = vld [vmem:[#allocation115_spill] sm:$0xff]  ;;  %v13383_v14 = vld [vmem:[#allocation116_spill] sm:$0xff] }
 0x6db   :  { %3778 = vmatprep.subr.mxu0 %v13362_v18  ;;  %3849 = vmatprep.subr.mxu1 %v13363_v0  ;;  %v13384_v18 = vld [vmem:[#allocation117_spill] sm:$0xff]  ;;  %v13385_v0 = vld [vmem:[#allocation118_spill] sm:$0xff] }
 0x6dc   :  { %3779 = vmatpush2.msra.mxu0 %v13364_v52  ;;  %3850 = vmatpush2.msra.mxu1 %v13365_v57  ;;  %v13386_v52 = vld [vmem:[#allocation119_spill] sm:$0xff]  ;;  %v13387_v57 = vld [vmem:[#allocation120_spill] sm:$0xff] }
 0x6dd   :  { %3780 = vmatprep.subr.mxu0 %v13366_v28  ;;  %3851 = vmatprep.subr.mxu1 %v13367_v40  ;;  %v13388_v28 = vld [vmem:[#allocation121_spill] sm:$0xff]  ;;  %v13389_v40 = vld [vmem:[#allocation122_spill] sm:$0xff] }
 0x6de   :  { %3781 = vmatpush2.msra.mxu0 %v13368_v41  ;;  %3852 = vmatpush2.msra.mxu1 %v13369_v42  ;;  %v13390_v41 = vld [vmem:[#allocation123_spill] sm:$0xff]  ;;  %v10743_v42 = vld [vmem:[%s12168_s5 + $0x1f8] sm:$0xff] }
 0x6df   :  { %3782 = vmatprep.subr.mxu0 %v13370_v43  ;;  %3853 = vmatprep.subr.mxu1 %v13371_v44  ;;  %v13391_v44 = vld [vmem:[#allocation10_spill] sm:$0xff] }
 0x6e0   :  { %3783 = vmatpush2.msra.mxu0 %v13372_v45  ;;  %3854 = vmatpush2.msra.mxu1 %v13373_v61 }
 0x6e1   :  { %3784 = vmatprep.subr.mxu0 %v13374_v46  ;;  %3855 = vmatprep.subr.mxu1 %v13375_v47  ;;  %v13392_v47 = vld [vmem:[#allocation11_spill] sm:$0xff] }
 0x6e2   :  { %3785 = vmatpush2.msra.mxu0 %v13376_v32  ;;  %3856 = vmatpush2.msra.mxu1 %v13377_v48 }
 0x6e3   :  { %3786 = vmatprep.subr.mxu0 %v13378_v30  ;;  %3857 = vmatprep.subr.mxu1 %v13379_v49 }
 0x6e4   :  { %3787 = vmatpush2.msra.mxu0 %v13380_v21  ;;  %3858 = vmatpush2.msra.mxu1 %v13381_v9  ;;  %v13393_v21 = vld [vmem:[#allocation12_spill] sm:$0xff] }
 0x6e5   :  { %3788 = vmatprep.subr.mxu0 %v13382_v5  ;;  %3859 = vmatprep.subr.mxu1 %v13383_v14 }
 0x6e6   :  { %3789 = vmatpush2.msra.mxu0 %v13384_v18  ;;  %3860 = vmatpush2.msra.mxu1 %v13385_v0  ;;  %v13394_v18 = vld [vmem:[#allocation13_spill] sm:$0xff] }
 0x6e7   :  { %3790 = vmatprep.subr.mxu0 %v13386_v52  ;;  %3861 = vmatprep.subr.mxu1 %v13387_v57 }
 0x6e8   :  { %3791 = vmatpush2.msra.mxu0 %v13388_v28  ;;  %3862 = vmatpush2.msra.mxu1 %v13389_v40 }
 0x6e9   :  { %3963 = vmatprep.subr.mxu0 %v13390_v41  ;;  %4034 = vmatprep.subr.mxu1 %v10743_v42 }
 0x747   :  { %v3261_v43 = vpop.f32.mrf.mxu0  ;;  %v3332_v48 = vpop.f32.mrf.mxu1 }
 0x748   :  { %v3262_v45 = vadd.f32 %v3261_v43, %v13391_v44  ;;  %v3333_v0 = vadd.f32 %v3332_v48, %v13394_v18 }
 0x749   :  { %v3263_v61 = vpop.f32.mrf.mxu0  ;;  %v3334_v49 = vpop.f32.mrf.mxu1 }
 0x74a   :  { %v5301_v46 = vmul.f32 -1.442695, %v3262_v45  ;;  %v3264_v32 = vadd.f32 %v3263_v61, %v13392_v47  ;;  %v3335_v9 = vadd.f32 %v3334_v49, %v13393_v21  ;;  %v13395_v45 = vld [vmem:[#allocation137_spill] sm:$0xff] }
 0x74c   :  { %5745 = vpow2.f32 %v5301_v46  ;;  %v5302_v30 = vmul.f32 -1.442695, %v3264_v32  ;;  %v5303_v5 = vmul.f32 -1.442695, %v3335_v9  ;;  %v13396_v9 = vld [vmem:[#allocation136_spill] sm:$0xff] }
 0x74e   :  { %5747 = vpow2.f32 %v5302_v30 }
 0x74f   :  { %5749 = vpow2.f32 %v5303_v5 }
 0x759   :  { %v5746_v14 = vpop.eup %5745 }
 0x75a   :  { %v3343_v52 = vadd.f32 1.0, %v5746_v14 }
 0x75b   :  { %v5748_v57 = vpop.eup %5747 }
 0x75c   :  { %5751 = vrcp.f32 %v3343_v52  ;;  %v3344_v28 = vadd.f32 1.0, %v5748_v57  ;;  %v5750_v40 = vpop.eup %5749 }
 0x75d   :  { %5753 = vtanh.f32 %v3333_v0  ;;  %v3353_v14 = vadd.f32 1.0, %v5750_v40 }
 0x75e   :  { %5755 = vrcp.f32 %v3344_v28  ;;  %v13397_v28 = vld [vmem:[#allocation148_spill] sm:$0xff] }
 0x768   :  { %v3496_v41 = vpop.f32.mrf.mxu0  ;;  %v3567_v5 = vpop.f32.mrf.mxu1 }
 0x769   :  { %v5752_v43 = vpop.eup %5751  ;;  %v3572_v61 = vadd.f32 %v3496_v41, %v13395_v45  ;;  %v13398_v45 = vld [vmem:[#allocation138_spill] sm:$0xff] }
 0x76a   :  { %v5754_v46 = vpop.eup %5753  ;;  %v3498_v32 = vpop.f32.mrf.mxu0 }
 0x76b   :  { %v5756_v30 = vpop.eup %5755  ;;  %v5304_v49 = vmul.f32 -1.442695, %v3572_v61  ;;  %v3573_v51 = vadd.f32 %v3498_v32, %v13396_v9  ;;  %v3357_v21 = vmul.f32 %v5754_v46, %v5752_v43  ;;  %v3569_v57 = vpop.f32.mrf.mxu1  ;;  %v3574_v61 = vadd.f32 %v3567_v5, %v13398_v45  ;;  %v10771_v45 = vld [vmem:[%s12168_s5 + $0x1f0] sm:$0xff] }
 0x76c   :  { %v3356_v48 = vmul.f32 %v5756_v30, %v10338_v11  ;;  %v3575_v41 = vadd.f32 %v3569_v57, %v13397_v28 }
 0x76d   :  { %5757 = vpow2.f32 %v5304_v49  ;;  %v5305_v52 = vmul.f32 -1.442695, %v3573_v51 }
 0x76e   :  { %v10753_v0 = vadd.f32 %v3357_v21, %v3356_v48  ;;  %v5306_v18 = vmul.f32 -1.442695, %v3575_v41 }
 0x76f   :  { %5759 = vpow2.f32 %v5305_v52 }
 0x770   :  { %5761 = vrcp.f32 %v3353_v14 }
 0x771   :  { %5763 = vtanh.f32 %v10753_v0 }
 0x772   :  { %5765 = vtanh.f32 %v3574_v61  ;;  %v10776_v61 = vld [vmem:[%s12168_s5 + $0x1d8] sm:$0xff] }
 0x773   :  { %5767 = vpow2.f32 %v5306_v18 }
 0x77a   :  { %v5758_v32 = vpop.eup %5757 }
 0x77b   :  { %v3582_v43 = vadd.f32 1.0, %v5758_v32  ;;  %v10790_v32 = vld [vmem:[%s12168_s5 + $0x1b8] sm:$0xff] }
 0x77c   :  { %v5760_v11 = vpop.eup %5759 }
 0x77d   :  { %v5762_v40 = vpop.eup %5761  ;;  %5769 = vrcp.f32 %v3582_v43  ;;  %v3583_v51 = vadd.f32 1.0, %v5760_v11  ;;  %v10797_v43 = vld [vmem:[%s12168_s5 + $0x1b0] sm:$0xff] }
 0x77e   :  { %v5764_v21 = vpop.eup %5763  ;;  %v11072_v11 = vld [vmem:[%s12169_s6 + $0x170] sm:$0xff] }
 0x77f   :  { %5771 = vrcp.f32 %v3583_v51  ;;  %v10758_v46 = vmul.f32 %v5764_v21, %v5762_v40  ;;  %v5766_v30 = vpop.eup %5765  ;;  %13402 = vst [vmem:[#allocation130_spill] sm:$0xff] %v11072_v11  ;;  %v11079_v40 = vld [vmem:[%s12169_s6 + $0x148] sm:$0xff]  ;;  %v11084_v51 = vld [vmem:[%s12169_s6 + $0x158] sm:$0xff]  ;;  %v11091_v21 = vld [vmem:[%s12169_s6 + $0x140] sm:$0xff] }
 0x780   :  { %v5768_v49 = vpop.eup %5767  ;;  %13403 = vst [vmem:[#allocation146_spill] sm:$0xff] %v11079_v40  ;;  %13404 = vst [vmem:[#allocation132_spill] sm:$0xff] %v11084_v51 }
 0x781   :  { %13399 = vst [vmem:[#allocation124_spill] sm:$0xff] %v10758_v46  ;;  %3792 = vmatprep.mubr.f32.mxu0 %v10758_v46  ;;  %3863 = vmatprep.mubr.f32.mxu1 %v10758_v46  ;;  %v3592_v5 = vadd.f32 1.0, %v5768_v49  ;;  %13405 = vst [vmem:[#allocation134_spill] sm:$0xff] %v11091_v21  ;;  %v11103_v49 = vld [vmem:[%s12169_s6 + $0x128] sm:$0xff]  ;;  %v11156_v46 = vld [vmem:[%s12169_s6 + $0xf8] sm:$0xff] }
 0x782   :  { %13407 = vst [vmem:[#allocation149_spill] sm:$0xff] %v11103_v49  ;;  %13416 = vst [vmem:[#allocation19_spill] sm:$0xff] %v11156_v46 }
 0x783   :  { %5773 = vrcp.f32 %v3592_v5  ;;  %v11127_v5 = vld [vmem:[%s12169_s6 + $0x108] sm:$0xff] }
 0x784   :  { %13411 = vst [vmem:[#allocation129_spill] sm:$0xff] %v11127_v5 }
 0x78a   :  { %v5770_v9 = vpop.eup %5769 }
 0x78b   :  { %v3596_v48 = vmul.f32 %v5770_v9, %v5766_v30  ;;  %v11096_v30 = vld [vmem:[%s12169_s6 + $0x150] sm:$0xff]  ;;  %v11108_v9 = vld [vmem:[%s12169_s6 + $0x138] sm:$0xff] }
 0x78c   :  { %v5772_v14 = vpop.eup %5771  ;;  %13406 = vst [vmem:[#allocation133_spill] sm:$0xff] %v11096_v30  ;;  %13408 = vst [vmem:[#allocation135_spill] sm:$0xff] %v11108_v9 }
 0x78d   :  { %v3595_v52 = vmul.f32 %v5772_v14, %v10348_v50  ;;  %v10783_v50 = vld [vmem:[%s12168_s5 + $0x1d0] sm:$0xff] }
 0x78e   :  { %v11120_v14 = vld [vmem:[%s12169_s6 + $0x130] sm:$0xff] }
 0x78f   :  { %v10763_v18 = vadd.f32 %v3596_v48, %v3595_v52  ;;  %v11115_v48 = vld [vmem:[%s12169_s6 + $0x120] sm:$0xff]  ;;  %13410 = vst [vmem:[#allocation147_spill] sm:$0xff] %v11120_v14  ;;  %v11132_v52 = vld [vmem:[%s12169_s6 + $0x118] sm:$0xff] }
 0x790   :  { %v5774_v57 = vpop.eup %5773  ;;  %13409 = vst [vmem:[#allocation127_spill] sm:$0xff] %v11115_v48  ;;  %13412 = vst [vmem:[#allocation15_spill] sm:$0xff] %v11132_v52 }
 0x791   :  { %5775 = vtanh.f32 %v10763_v18 }
 0x79e   :  { %v5776_v28 = vpop.eup %5775 }
 0x79f   :  { %v10766_v41 = vmul.f32 %v5776_v28, %v5774_v57  ;;  %v11139_v57 = vld [vmem:[%s12169_s6 + $0x100] sm:$0xff]  ;;  %v11144_v28 = vld [vmem:[%s12169_s6 + $0x110] sm:$0xff] }
 0x7a0   :  { %13413 = vst [vmem:[#allocation16_spill] sm:$0xff] %v11139_v57  ;;  %13414 = vst [vmem:[#allocation17_spill] sm:$0xff] %v11144_v28 }
 0x7a1   :  { %3793 = vmatmul.mubr.f32.vlgmr.msra.gmra.mxu0 %v10766_v41  ;;  %3864 = vmatmul.mubr.f32.vlgmr.msra.gmra.mxu1 %v10766_v41 }
 0x7a2   :  { %3964 = vmatpush1.msra.mxu0 %v10356_v58  ;;  %4035 = vmatpush1.msra.mxu1 %v10771_v45  ;;  %v10804_v58 = vld [vmem:[%s12168_s5 + $0x198] sm:$0xff] }
 0x7a3   :  { %3965 = vmatprep.subr.mxu0 %v10361_v59  ;;  %4036 = vmatprep.subr.mxu1 %v10776_v61  ;;  %v10811_v59 = vld [vmem:[%s12168_s5 + $0x190] sm:$0xff] }
 0x7a4   :  { %3966 = vmatpush1.msra.mxu0 %v10368_v25  ;;  %4037 = vmatpush1.msra.mxu1 %v10783_v50  ;;  %v10818_v25 = vld [vmem:[%s12168_s5 + $0x178] sm:$0xff] }
 0x7a5   :  { %3967 = vmatprep.subr.mxu0 %v10375_v54  ;;  %4038 = vmatprep.subr.mxu1 %v10790_v32  ;;  %v10825_v54 = vld [vmem:[%s12168_s5 + $0x170] sm:$0xff] }
 0x7a6   :  { %3968 = vmatpush1.msra.mxu0 %v10382_v20  ;;  %4039 = vmatpush1.msra.mxu1 %v10797_v43  ;;  %v10832_v20 = vld [vmem:[%s12168_s5 + $0x158] sm:$0xff] }
 0x7a7   :  { %3969 = vmatprep.subr.mxu0 %v10389_v55  ;;  %4040 = vmatprep.subr.mxu1 %v10804_v58  ;;  %v10839_v55 = vld [vmem:[%s12168_s5 + $0x150] sm:$0xff] }
 0x7a8   :  { %3970 = vmatpush1.msra.mxu0 %v10396_v33  ;;  %4041 = vmatpush1.msra.mxu1 %v10811_v59  ;;  %v10846_v33 = vld [vmem:[%s12168_s5 + $0x138] sm:$0xff] }
 0x7a9   :  { %3971 = vmatprep.subr.mxu0 %v10403_v19  ;;  %4042 = vmatprep.subr.mxu1 %v10818_v25  ;;  %v10853_v19 = vld [vmem:[%s12168_s5 + $0x130] sm:$0xff] }
 0x7aa   :  { %3972 = vmatpush1.msra.mxu0 %v10410_v36  ;;  %4043 = vmatpush1.msra.mxu1 %v10825_v54  ;;  %v10860_v36 = vld [vmem:[%s12168_s5 + $0x118] sm:$0xff] }
 0x7ab   :  { %3973 = vmatprep.subr.mxu0 %v10417_v53  ;;  %4044 = vmatprep.subr.mxu1 %v10832_v20  ;;  %v10867_v53 = vld [vmem:[%s12168_s5 + $0x110] sm:$0xff] }
 0x7ac   :  { %3974 = vmatpush1.msra.mxu0 %v10424_v29  ;;  %4045 = vmatpush1.msra.mxu1 %v10839_v55  ;;  %v10874_v29 = vld [vmem:[%s12168_s5 + $0xf8] sm:$0xff] }
 0x7ad   :  { %3975 = vmatprep.subr.mxu0 %v10431_v8  ;;  %4046 = vmatprep.subr.mxu1 %v10846_v33  ;;  %v10881_v8 = vld [vmem:[%s12168_s5 + $0xf0] sm:$0xff] }
 0x7ae   :  { %3976 = vmatpush1.msra.mxu0 %v10438_v16  ;;  %4047 = vmatpush1.msra.mxu1 %v10853_v19  ;;  %v10888_v16 = vld [vmem:[%s12168_s5 + $0xd8] sm:$0xff] }
 0x7af   :  { %3977 = vmatprep.subr.mxu0 %v10445_v15  ;;  %4048 = vmatprep.subr.mxu1 %v10860_v36  ;;  %v10895_v15 = vld [vmem:[%s12168_s5 + $0xd0] sm:$0xff] }
 0x7b0   :  { %3978 = vmatpush1.msra.mxu0 %v10452_v7  ;;  %4049 = vmatpush1.msra.mxu1 %v10867_v53  ;;  %v10902_v7 = vld [vmem:[%s12168_s5 + $0xb8] sm:$0xff] }
 0x7b1   :  { %3979 = vmatprep.subr.mxu0 %v10459_v35  ;;  %4050 = vmatprep.subr.mxu1 %v10874_v29  ;;  %v10909_v35 = vld [vmem:[%s12168_s5 + $0xb0] sm:$0xff] }
 0x7b2   :  { %3980 = vmatpush1.msra.mxu0 %v10466_v34  ;;  %4051 = vmatpush1.msra.mxu1 %v10881_v8  ;;  %v10916_v34 = vld [vmem:[%s12168_s5 + $0x98] sm:$0xff] }
 0x7b3   :  { %3981 = vmatprep.subr.mxu0 %v10473_v24  ;;  %4052 = vmatprep.subr.mxu1 %v10888_v16  ;;  %v10923_v24 = vld [vmem:[%s12168_s5 + $0x90] sm:$0xff] }
 0x7b4   :  { %3982 = vmatpush1.msra.mxu0 %v10480_v4  ;;  %4053 = vmatpush1.msra.mxu1 %v10895_v15  ;;  %v10930_v4 = vld [vmem:[%s12168_s5 + $0x78] sm:$0xff] }
 0x7b5   :  { %3983 = vmatprep.subr.mxu0 %v10487_v6  ;;  %4054 = vmatprep.subr.mxu1 %v10902_v7  ;;  %v10959_v6 = vld [vmem:[%s12169_s6 + $0x1e8] sm:$0xff] }
 0x7b6   :  { %3984 = vmatpush1.msra.mxu0 %v10494_v27  ;;  %4055 = vmatpush1.msra.mxu1 %v10909_v35  ;;  %v10964_v27 = vld [vmem:[%s12169_s6 + $0x1f8] sm:$0xff] }
 0x7b7   :  { %3985 = vmatprep.subr.mxu0 %v10501_v62  ;;  %4056 = vmatprep.subr.mxu1 %v10916_v34  ;;  %v10971_v62 = vld [vmem:[%s12169_s6 + $0x1e0] sm:$0xff] }
 0x7b8   :  { %3986 = vmatpush1.msra.mxu0 %v10508_v22  ;;  %4057 = vmatpush1.msra.mxu1 %v10923_v24  ;;  %v10976_v22 = vld [vmem:[%s12169_s6 + $0x1f0] sm:$0xff] }
 0x7b9   :  { %3987 = vmatprep.subr.mxu0 %v10515_v1  ;;  %4058 = vmatprep.subr.mxu1 %v10930_v4  ;;  %v10983_v1 = vld [vmem:[%s12169_s6 + $0x1c8] sm:$0xff] }
 0x7ba   :  { %3988 = vmatpush1.msra.mxu0 %v10522_v63  ;;  %4059 = vmatpush1.msra.mxu1 %v10527_v3  ;;  %v10988_v63 = vld [vmem:[%s12169_s6 + $0x1d8] sm:$0xff]  ;;  %v10995_v3 = vld [vmem:[%s12169_s6 + $0x1c0] sm:$0xff] }
 0x7bb   :  { %3989 = vmatprep.subr.mxu0 %v10534_v37  ;;  %4060 = vmatprep.subr.mxu1 %v10539_v31  ;;  %v11000_v37 = vld [vmem:[%s12169_s6 + $0x1d0] sm:$0xff]  ;;  %v11007_v31 = vld [vmem:[%s12169_s6 + $0x1a8] sm:$0xff] }
 0x7bc   :  { %3990 = vmatpush1.msra.mxu0 %v10546_v13  ;;  %4061 = vmatpush1.msra.mxu1 %v10551_v38  ;;  %v11012_v13 = vld [vmem:[%s12169_s6 + $0x1b8] sm:$0xff]  ;;  %v11019_v38 = vld [vmem:[%s12169_s6 + $0x1a0] sm:$0xff] }
 0x7bd   :  { %3991 = vmatprep.subr.mxu0 %v10558_v2  ;;  %4062 = vmatprep.subr.mxu1 %v10563_v39  ;;  %v11024_v2 = vld [vmem:[%s12169_s6 + $0x1b0] sm:$0xff]  ;;  %v11031_v39 = vld [vmem:[%s12169_s6 + $0x188] sm:$0xff] }
 0x7be   :  { %3992 = vmatpush1.msra.mxu0 %v10570_v12  ;;  %4063 = vmatpush1.msra.mxu1 %v10575_v10  ;;  %v11036_v12 = vld [vmem:[%s12169_s6 + $0x198] sm:$0xff]  ;;  %v11043_v10 = vld [vmem:[%s12169_s6 + $0x180] sm:$0xff] }
 0x7bf   :  { %3993 = vmatprep.subr.mxu0 %v10582_v17  ;;  %4064 = vmatprep.subr.mxu1 %v10587_v23  ;;  %v11048_v17 = vld [vmem:[%s12169_s6 + $0x190] sm:$0xff]  ;;  %v11055_v23 = vld [vmem:[%s12169_s6 + $0x168] sm:$0xff] }
 0x7c0   :  { %3994 = vmatpush1.msra.mxu0 %v10594_v56  ;;  %4027 = vmatprep.mubr.f32.mxu0 %v12792_v60  ;;  %v11060_v56 = vld [vmem:[%s12169_s6 + $0x178] sm:$0xff] }
 0x7c1   :  { %4065 = vmatpush1.msra.mxu1 %v10601_v26  ;;  %4098 = vmatprep.mubr.f32.mxu1 %v12792_v60  ;;  %13400 = vst [vmem:[#allocation145_spill] sm:$0xff] %v11060_v56  ;;  %v11067_v26 = vld [vmem:[%s12169_s6 + $0x160] sm:$0xff] }
 0x7c2   :  { %4028 = vmatmul.mubr.f32.vlgmr.msra.gmra.mxu0 %v10766_v41  ;;  %4099 = vmatmul.mubr.f32.vlgmr.msra.gmra.mxu1 %v10766_v41  ;;  %13401 = vst [vmem:[#allocation131_spill] sm:$0xff] %v11067_v26  ;;  %v11151_v41 = vld [vmem:[%s12169_s6 + $0xe8] sm:$0xff] }
 0x7c3   :  { %4261 = vmatprep.subr.mxu0 %v10959_v6  ;;  %4332 = vmatprep.subr.mxu1 %v10964_v27  ;;  %13415 = vst [vmem:[#allocation18_spill] sm:$0xff] %v11151_v41 }
 0x7c4   :  { %4262 = vmatpush1.msra.mxu0 %v10971_v62  ;;  %4333 = vmatpush1.msra.mxu1 %v10976_v22 }
 0x7c5   :  { %4263 = vmatprep.subr.mxu0 %v10983_v1  ;;  %4334 = vmatprep.subr.mxu1 %v10988_v63 }
 0x7c6   :  { %4264 = vmatpush1.msra.mxu0 %v10995_v3  ;;  %4335 = vmatpush1.msra.mxu1 %v11000_v37 }
 0x7c7   :  { %4265 = vmatprep.subr.mxu0 %v11007_v31  ;;  %4336 = vmatprep.subr.mxu1 %v11012_v13 }
 0x7c8   :  { %4266 = vmatpush1.msra.mxu0 %v11019_v38  ;;  %4337 = vmatpush1.msra.mxu1 %v11024_v2 }
 0x7c9   :  { %4267 = vmatprep.subr.mxu0 %v11031_v39  ;;  %4338 = vmatprep.subr.mxu1 %v11036_v12 }
 0x7ca   :  { %4268 = vmatpush1.msra.mxu0 %v11043_v10  ;;  %4339 = vmatpush1.msra.mxu1 %v11048_v17 }
 0x7cb   :  { %4269 = vmatprep.subr.mxu0 %v11055_v23  ;;  %4340 = vmatprep.subr.mxu1 %v11060_v56 }
 0x7cc   :  { %4270 = vmatpush1.msra.mxu0 %v11067_v26  ;;  %4341 = vmatpush1.msra.mxu1 %v11072_v11 }
 0x7cd   :  { %4271 = vmatprep.subr.mxu0 %v11079_v40  ;;  %4342 = vmatprep.subr.mxu1 %v11084_v51 }
 0x7ce   :  { %4272 = vmatpush1.msra.mxu0 %v11091_v21  ;;  %4343 = vmatpush1.msra.mxu1 %v11096_v30 }
 0x7cf   :  { %4273 = vmatprep.subr.mxu0 %v11103_v49  ;;  %4344 = vmatprep.subr.mxu1 %v11108_v9 }
 0x7d0   :  { %4274 = vmatpush1.msra.mxu0 %v11115_v48  ;;  %4345 = vmatpush1.msra.mxu1 %v11120_v14  ;;  %v11567_v14 = vld [vmem:[%s12169_s6 + $0x2c0] sm:$0xff]  ;;  %v11584_v48 = vld [vmem:[%s12169_s6 + $0x2b8] sm:$0xff] }
 0x7d1   :  { %4275 = vmatprep.subr.mxu0 %v11127_v5  ;;  %4346 = vmatprep.subr.mxu1 %v11132_v52  ;;  %v11533_v52 = vld [vmem:[%s12169_s6 + $0x2e8] sm:$0xff]  ;;  %v11550_v5 = vld [vmem:[%s12169_s6 + $0x2f0] sm:$0xff]  ;;  %13485 = vst [vmem:[#allocation88_spill] sm:$0xff] %v11567_v14  ;;  %13488 = vst [vmem:[#allocation91_spill] sm:$0xff] %v11584_v48 }
 0x7d2   :  { %4276 = vmatpush1.msra.mxu0 %v11139_v57  ;;  %4347 = vmatpush1.msra.mxu1 %v11144_v28  ;;  %v11163_v57 = vld [vmem:[%s12169_s6 + $0xe0] sm:$0xff]  ;;  %v11168_v28 = vld [vmem:[%s12169_s6 + $0xf0] sm:$0xff]  ;;  %13479 = vst [vmem:[#allocation82_spill] sm:$0xff] %v11533_v52  ;;  %13482 = vst [vmem:[#allocation85_spill] sm:$0xff] %v11550_v5 }
 0x7d3   :  { %4277 = vmatprep.subr.mxu0 %v11151_v41  ;;  %4348 = vmatprep.subr.mxu1 %v11156_v46  ;;  %13417 = vst [vmem:[#allocation20_spill] sm:$0xff] %v11163_v57  ;;  %13418 = vst [vmem:[#allocation21_spill] sm:$0xff] %v11168_v28  ;;  %v11175_v41 = vld [vmem:[%s12169_s6 + $0xc8] sm:$0xff]  ;;  %v11180_v46 = vld [vmem:[%s12169_s6 + $0xd8] sm:$0xff] }
 0x7d4   :  { %4278 = vmatpush1.msra.mxu0 %v11163_v57  ;;  %4349 = vmatpush1.msra.mxu1 %v11168_v28  ;;  %13419 = vst [vmem:[#allocation22_spill] sm:$0xff] %v11175_v41  ;;  %13420 = vst [vmem:[#allocation23_spill] sm:$0xff] %v11180_v46  ;;  %v11187_v57 = vld [vmem:[%s12169_s6 + $0xc0] sm:$0xff]  ;;  %v11192_v28 = vld [vmem:[%s12169_s6 + $0xd0] sm:$0xff] }
 0x7d5   :  { %4279 = vmatprep.subr.mxu0 %v11175_v41  ;;  %4350 = vmatprep.subr.mxu1 %v11180_v46  ;;  %13421 = vst [vmem:[#allocation24_spill] sm:$0xff] %v11187_v57  ;;  %13422 = vst [vmem:[#allocation25_spill] sm:$0xff] %v11192_v28  ;;  %v11199_v41 = vld [vmem:[%s12169_s6 + $0xa8] sm:$0xff]  ;;  %v11204_v46 = vld [vmem:[%s12169_s6 + $0xb8] sm:$0xff] }
 0x7d6   :  { %4280 = vmatpush1.msra.mxu0 %v11187_v57  ;;  %4351 = vmatpush1.msra.mxu1 %v11192_v28  ;;  %13423 = vst [vmem:[#allocation26_spill] sm:$0xff] %v11199_v41  ;;  %13424 = vst [vmem:[#allocation27_spill] sm:$0xff] %v11204_v46  ;;  %v11211_v57 = vld [vmem:[%s12169_s6 + $0xa0] sm:$0xff]  ;;  %v11216_v28 = vld [vmem:[%s12169_s6 + $0xb0] sm:$0xff] }
 0x7d7   :  { %4281 = vmatprep.subr.mxu0 %v11199_v41  ;;  %4352 = vmatprep.subr.mxu1 %v11204_v46  ;;  %13425 = vst [vmem:[#allocation28_spill] sm:$0xff] %v11211_v57  ;;  %13426 = vst [vmem:[#allocation29_spill] sm:$0xff] %v11216_v28  ;;  %v11223_v41 = vld [vmem:[%s12169_s6 + $0x88] sm:$0xff]  ;;  %v11228_v46 = vld [vmem:[%s12169_s6 + $0x98] sm:$0xff] }
 0x7d8   :  { %4282 = vmatpush1.msra.mxu0 %v11211_v57  ;;  %4353 = vmatpush1.msra.mxu1 %v11216_v28  ;;  %13427 = vst [vmem:[#allocation30_spill] sm:$0xff] %v11223_v41  ;;  %13428 = vst [vmem:[#allocation31_spill] sm:$0xff] %v11228_v46  ;;  %v11235_v57 = vld [vmem:[%s12169_s6 + $0x80] sm:$0xff]  ;;  %v11240_v28 = vld [vmem:[%s12169_s6 + $0x90] sm:$0xff] }
 0x7d9   :  { %4283 = vmatprep.subr.mxu0 %v11223_v41  ;;  %4354 = vmatprep.subr.mxu1 %v11228_v46  ;;  %13429 = vst [vmem:[#allocation32_spill] sm:$0xff] %v11235_v57  ;;  %13430 = vst [vmem:[#allocation33_spill] sm:$0xff] %v11240_v28  ;;  %v11247_v41 = vld [vmem:[%s12169_s6 + $0x68] sm:$0xff]  ;;  %v11252_v46 = vld [vmem:[%s12169_s6 + $0x78] sm:$0xff] }
 0x7da   :  { %4284 = vmatpush1.msra.mxu0 %v11235_v57  ;;  %4355 = vmatpush1.msra.mxu1 %v11240_v28  ;;  %13431 = vst [vmem:[#allocation34_spill] sm:$0xff] %v11247_v41  ;;  %13432 = vst [vmem:[#allocation35_spill] sm:$0xff] %v11252_v46  ;;  %v11259_v57 = vld [vmem:[%s12169_s6 + $0x60] sm:$0xff]  ;;  %v11264_v28 = vld [vmem:[%s12169_s6 + $0x70] sm:$0xff] }
 0x7db   :  { %4285 = vmatprep.subr.mxu0 %v11247_v41  ;;  %4356 = vmatprep.subr.mxu1 %v11252_v46  ;;  %13433 = vst [vmem:[#allocation36_spill] sm:$0xff] %v11259_v57  ;;  %13434 = vst [vmem:[#allocation37_spill] sm:$0xff] %v11264_v28  ;;  %v11271_v41 = vld [vmem:[%s12169_s6 + $0x48] sm:$0xff]  ;;  %v11276_v46 = vld [vmem:[%s12169_s6 + $0x58] sm:$0xff] }
 0x7dc   :  { %4286 = vmatpush1.msra.mxu0 %v11259_v57  ;;  %4357 = vmatpush1.msra.mxu1 %v11264_v28  ;;  %13435 = vst [vmem:[#allocation38_spill] sm:$0xff] %v11271_v41  ;;  %13436 = vst [vmem:[#allocation39_spill] sm:$0xff] %v11276_v46  ;;  %v11283_v57 = vld [vmem:[%s12169_s6 + $0x40] sm:$0xff]  ;;  %v11288_v28 = vld [vmem:[%s12169_s6 + $0x50] sm:$0xff] }
 0x7dd   :  { %4287 = vmatprep.subr.mxu0 %v11271_v41  ;;  %4358 = vmatprep.subr.mxu1 %v11276_v46  ;;  %13437 = vst [vmem:[#allocation40_spill] sm:$0xff] %v11283_v57  ;;  %13438 = vst [vmem:[#allocation41_spill] sm:$0xff] %v11288_v28  ;;  %v11295_v41 = vld [vmem:[%s12169_s6 + $0x28] sm:$0xff]  ;;  %v11300_v46 = vld [vmem:[%s12169_s6 + $0x38] sm:$0xff] }
 0x7de   :  { %4288 = vmatpush1.msra.mxu0 %v11283_v57  ;;  %4359 = vmatpush1.msra.mxu1 %v11288_v28  ;;  %13439 = vst [vmem:[#allocation42_spill] sm:$0xff] %v11295_v41  ;;  %13440 = vst [vmem:[#allocation43_spill] sm:$0xff] %v11300_v46  ;;  %v11307_v57 = vld [vmem:[%s12169_s6 + $0x20] sm:$0xff]  ;;  %v11312_v28 = vld [vmem:[%s12169_s6 + $0x30] sm:$0xff] }
 0x7df   :  { %4289 = vmatprep.subr.mxu0 %v11295_v41  ;;  %4360 = vmatprep.subr.mxu1 %v11300_v46  ;;  %13441 = vst [vmem:[#allocation44_spill] sm:$0xff] %v11307_v57  ;;  %13442 = vst [vmem:[#allocation45_spill] sm:$0xff] %v11312_v28  ;;  %v11319_v41 = vld [vmem:[%s12169_s6 + $0x8] sm:$0xff]  ;;  %v11324_v46 = vld [vmem:[%s12169_s6 + $0x18] sm:$0xff] }
 0x7e0   :  { %4290 = vmatpush1.msra.mxu0 %v11307_v57  ;;  %4361 = vmatpush1.msra.mxu1 %v11312_v28  ;;  %13443 = vst [vmem:[#allocation46_spill] sm:$0xff] %v11319_v41  ;;  %13444 = vst [vmem:[#allocation47_spill] sm:$0xff] %v11324_v46  ;;  %v11331_v57 = vld [vmem:[%s12169_s6] sm:$0xff]  ;;  %v11336_v28 = vld [vmem:[%s12169_s6 + $0x10] sm:$0xff] }
 0x7e1   :  { %4291 = vmatprep.subr.mxu0 %v11319_v41  ;;  %4362 = vmatprep.subr.mxu1 %v11324_v46  ;;  %13445 = vst [vmem:[#allocation48_spill] sm:$0xff] %v11331_v57  ;;  %13446 = vst [vmem:[#allocation49_spill] sm:$0xff] %v11336_v28  ;;  %v11343_v41 = vld [vmem:[%s12169_s6 + $0x3e8] sm:$0xff]  ;;  %v11348_v46 = vld [vmem:[%s12169_s6 + $0x3f8] sm:$0xff] }
 0x7e2   :  { %4292 = vmatpush1.msra.mxu0 %v11331_v57  ;;  %4363 = vmatpush1.msra.mxu1 %v11336_v28  ;;  %13447 = vst [vmem:[#allocation50_spill] sm:$0xff] %v11343_v41  ;;  %13448 = vst [vmem:[#allocation51_spill] sm:$0xff] %v11348_v46  ;;  %v11355_v57 = vld [vmem:[%s12169_s6 + $0x3e0] sm:$0xff]  ;;  %v11360_v28 = vld [vmem:[%s12169_s6 + $0x3f0] sm:$0xff] }
 0x7e3   :  { %4293 = vmatprep.subr.mxu0 %v11343_v41  ;;  %4364 = vmatprep.subr.mxu1 %v11348_v46  ;;  %13449 = vst [vmem:[#allocation52_spill] sm:$0xff] %v11355_v57  ;;  %13450 = vst [vmem:[#allocation53_spill] sm:$0xff] %v11360_v28  ;;  %v11367_v41 = vld [vmem:[%s12169_s6 + $0x3c8] sm:$0xff]  ;;  %v11372_v46 = vld [vmem:[%s12169_s6 + $0x3d8] sm:$0xff] }
 0x7e4   :  { %4294 = vmatpush2.msra.mxu0 %v11355_v57  ;;  %4365 = vmatpush2.msra.mxu1 %v11360_v28  ;;  %13451 = vst [vmem:[#allocation54_spill] sm:$0xff] %v11367_v41  ;;  %13452 = vst [vmem:[#allocation55_spill] sm:$0xff] %v11372_v46  ;;  %v11379_v57 = vld [vmem:[%s12169_s6 + $0x3c0] sm:$0xff]  ;;  %v11384_v28 = vld [vmem:[%s12169_s6 + $0x3d0] sm:$0xff] }
 0x7e5   :  { %4295 = vmatprep.subr.mxu0 %v11367_v41  ;;  %4366 = vmatprep.subr.mxu1 %v11372_v46  ;;  %13453 = vst [vmem:[#allocation56_spill] sm:$0xff] %v11379_v57  ;;  %13454 = vst [vmem:[#allocation57_spill] sm:$0xff] %v11384_v28  ;;  %v11391_v41 = vld [vmem:[%s12169_s6 + $0x3a8] sm:$0xff]  ;;  %v11396_v46 = vld [vmem:[%s12169_s6 + $0x3b8] sm:$0xff] }
 0x7e6   :  { %4296 = vmatpush2.msra.mxu0 %v11379_v57  ;;  %4367 = vmatpush2.msra.mxu1 %v11384_v28  ;;  %13455 = vst [vmem:[#allocation58_spill] sm:$0xff] %v11391_v41  ;;  %13456 = vst [vmem:[#allocation59_spill] sm:$0xff] %v11396_v46  ;;  %v11403_v57 = vld [vmem:[%s12169_s6 + $0x3a0] sm:$0xff]  ;;  %v11408_v28 = vld [vmem:[%s12169_s6 + $0x3b0] sm:$0xff] }
 0x7e7   :  { %4297 = vmatprep.subr.mxu0 %v11391_v41  ;;  %4368 = vmatprep.subr.mxu1 %v11396_v46  ;;  %13457 = vst [vmem:[#allocation60_spill] sm:$0xff] %v11403_v57  ;;  %13458 = vst [vmem:[#allocation61_spill] sm:$0xff] %v11408_v28  ;;  %v11415_v41 = vld [vmem:[%s12169_s6 + $0x388] sm:$0xff]  ;;  %v11420_v46 = vld [vmem:[%s12169_s6 + $0x398] sm:$0xff] }
 0x7e8   :  { %4298 = vmatpush2.msra.mxu0 %v11403_v57  ;;  %4369 = vmatpush2.msra.mxu1 %v11408_v28  ;;  %13459 = vst [vmem:[#allocation62_spill] sm:$0xff] %v11415_v41  ;;  %13460 = vst [vmem:[#allocation63_spill] sm:$0xff] %v11420_v46  ;;  %v11427_v57 = vld [vmem:[%s12169_s6 + $0x380] sm:$0xff]  ;;  %v11432_v28 = vld [vmem:[%s12169_s6 + $0x390] sm:$0xff] }
 0x7e9   :  { %4299 = vmatprep.subr.mxu0 %v11415_v41  ;;  %4370 = vmatprep.subr.mxu1 %v11420_v46  ;;  %13461 = vst [vmem:[#allocation64_spill] sm:$0xff] %v11427_v57  ;;  %13462 = vst [vmem:[#allocation65_spill] sm:$0xff] %v11432_v28  ;;  %v11439_v41 = vld [vmem:[%s12169_s6 + $0x368] sm:$0xff]  ;;  %v11444_v46 = vld [vmem:[%s12169_s6 + $0x378] sm:$0xff] }
 0x7ea   :  { %4300 = vmatpush2.msra.mxu0 %v11427_v57  ;;  %4371 = vmatpush2.msra.mxu1 %v11432_v28  ;;  %13463 = vst [vmem:[#allocation66_spill] sm:$0xff] %v11439_v41  ;;  %13464 = vst [vmem:[#allocation67_spill] sm:$0xff] %v11444_v46  ;;  %v11451_v57 = vld [vmem:[%s12169_s6 + $0x360] sm:$0xff]  ;;  %v11456_v28 = vld [vmem:[%s12169_s6 + $0x370] sm:$0xff] }
 0x7eb   :  { %4301 = vmatprep.subr.mxu0 %v11439_v41  ;;  %4372 = vmatprep.subr.mxu1 %v11444_v46  ;;  %13465 = vst [vmem:[#allocation68_spill] sm:$0xff] %v11451_v57  ;;  %13466 = vst [vmem:[#allocation69_spill] sm:$0xff] %v11456_v28  ;;  %v11463_v41 = vld [vmem:[%s12169_s6 + $0x348] sm:$0xff]  ;;  %v11468_v46 = vld [vmem:[%s12169_s6 + $0x358] sm:$0xff] }
 0x7ec   :  { %4302 = vmatpush2.msra.mxu0 %v11451_v57  ;;  %4373 = vmatpush2.msra.mxu1 %v11456_v28  ;;  %13467 = vst [vmem:[#allocation70_spill] sm:$0xff] %v11463_v41  ;;  %13468 = vst [vmem:[#allocation71_spill] sm:$0xff] %v11468_v46  ;;  %v11475_v57 = vld [vmem:[%s12169_s6 + $0x340] sm:$0xff]  ;;  %v11480_v28 = vld [vmem:[%s12169_s6 + $0x350] sm:$0xff] }
 0x7ed   :  { %4303 = vmatprep.subr.mxu0 %v11463_v41  ;;  %4374 = vmatprep.subr.mxu1 %v11468_v46  ;;  %13469 = vst [vmem:[#allocation72_spill] sm:$0xff] %v11475_v57  ;;  %13470 = vst [vmem:[#allocation73_spill] sm:$0xff] %v11480_v28  ;;  %v11487_v41 = vld [vmem:[%s12169_s6 + $0x328] sm:$0xff]  ;;  %v11492_v46 = vld [vmem:[%s12169_s6 + $0x338] sm:$0xff] }
 0x7ee   :  { %4304 = vmatpush2.msra.mxu0 %v11475_v57  ;;  %4375 = vmatpush2.msra.mxu1 %v11480_v28  ;;  %13471 = vst [vmem:[#allocation74_spill] sm:$0xff] %v11487_v41  ;;  %13472 = vst [vmem:[#allocation75_spill] sm:$0xff] %v11492_v46  ;;  %v11499_v57 = vld [vmem:[%s12169_s6 + $0x320] sm:$0xff]  ;;  %v11504_v28 = vld [vmem:[%s12169_s6 + $0x330] sm:$0xff] }
 0x7ef   :  { %4305 = vmatprep.subr.mxu0 %v11487_v41  ;;  %4376 = vmatprep.subr.mxu1 %v11492_v46  ;;  %13473 = vst [vmem:[#allocation76_spill] sm:$0xff] %v11499_v57  ;;  %13474 = vst [vmem:[#allocation77_spill] sm:$0xff] %v11504_v28  ;;  %v11511_v41 = vld [vmem:[%s12169_s6 + $0x308] sm:$0xff]  ;;  %v11516_v46 = vld [vmem:[%s12169_s6 + $0x318] sm:$0xff] }
 0x7f0   :  { %4306 = vmatpush2.msra.mxu0 %v11499_v57  ;;  %4377 = vmatpush2.msra.mxu1 %v11504_v28  ;;  %13475 = vst [vmem:[#allocation78_spill] sm:$0xff] %v11511_v41  ;;  %13476 = vst [vmem:[#allocation79_spill] sm:$0xff] %v11516_v46  ;;  %v11523_v57 = vld [vmem:[%s12169_s6 + $0x300] sm:$0xff]  ;;  %v11528_v28 = vld [vmem:[%s12169_s6 + $0x310] sm:$0xff] }
 0x7f1   :  { %4307 = vmatprep.subr.mxu0 %v11511_v41  ;;  %4378 = vmatprep.subr.mxu1 %v11516_v46  ;;  %13477 = vst [vmem:[#allocation80_spill] sm:$0xff] %v11523_v57  ;;  %13478 = vst [vmem:[#allocation81_spill] sm:$0xff] %v11528_v28  ;;  %v11540_v46 = vld [vmem:[%s12169_s6 + $0x2f8] sm:$0xff]  ;;  %v11545_v41 = vld [vmem:[%s12169_s6 + $0x2e0] sm:$0xff] }
 0x7f2   :  { %4308 = vmatpush2.msra.mxu0 %v11523_v57  ;;  %4379 = vmatpush2.msra.mxu1 %v11528_v28  ;;  %13480 = vst [vmem:[#allocation83_spill] sm:$0xff] %v11540_v46  ;;  %13481 = vst [vmem:[#allocation84_spill] sm:$0xff] %v11545_v41  ;;  %v11557_v28 = vld [vmem:[%s12169_s6 + $0x2c8] sm:$0xff]  ;;  %v11562_v57 = vld [vmem:[%s12169_s6 + $0x2d8] sm:$0xff] }
 0x7f3   :  { %4309 = vmatprep.subr.mxu0 %v11533_v52  ;;  %4380 = vmatprep.subr.mxu1 %v11540_v46  ;;  %13483 = vst [vmem:[#allocation86_spill] sm:$0xff] %v11557_v28  ;;  %13484 = vst [vmem:[#allocation87_spill] sm:$0xff] %v11562_v57  ;;  %v11574_v46 = vld [vmem:[%s12169_s6 + $0x2d0] sm:$0xff]  ;;  %v11579_v52 = vld [vmem:[%s12169_s6 + $0x2a8] sm:$0xff] }
 0x7f4   :  { %4310 = vmatpush2.msra.mxu0 %v11545_v41  ;;  %4381 = vmatpush2.msra.mxu1 %v11550_v5  ;;  %13486 = vst [vmem:[#allocation89_spill] sm:$0xff] %v11574_v46  ;;  %13487 = vst [vmem:[#allocation90_spill] sm:$0xff] %v11579_v52  ;;  %v11591_v5 = vld [vmem:[%s12169_s6 + $0x2a0] sm:$0xff]  ;;  %v11596_v41 = vld [vmem:[%s12169_s6 + $0x2b0] sm:$0xff] }
 0x7f5   :  { %4311 = vmatprep.subr.mxu0 %v11557_v28  ;;  %4382 = vmatprep.subr.mxu1 %v11562_v57  ;;  %13489 = vst [vmem:[#allocation92_spill] sm:$0xff] %v11591_v5  ;;  %13490 = vst [vmem:[#allocation93_spill] sm:$0xff] %v11596_v41  ;;  %v11603_v28 = vld [vmem:[%s12169_s6 + $0x288] sm:$0xff]  ;;  %v11608_v57 = vld [vmem:[%s12169_s6 + $0x298] sm:$0xff] }
 0x7f6   :  { %4312 = vmatpush2.msra.mxu0 %v11567_v14  ;;  %4383 = vmatpush2.msra.mxu1 %v11574_v46  ;;  %13491 = vst [vmem:[#allocation94_spill] sm:$0xff] %v11603_v28  ;;  %13492 = vst [vmem:[#allocation95_spill] sm:$0xff] %v11608_v57  ;;  %v11615_v14 = vld [vmem:[%s12169_s6 + $0x280] sm:$0xff]  ;;  %v11620_v46 = vld [vmem:[%s12169_s6 + $0x290] sm:$0xff] }
 0x7f7   :  { %4313 = vmatprep.subr.mxu0 %v11579_v52  ;;  %4384 = vmatprep.subr.mxu1 %v11584_v48  ;;  %13493 = vst [vmem:[#allocation96_spill] sm:$0xff] %v11615_v14  ;;  %13494 = vst [vmem:[#allocation97_spill] sm:$0xff] %v11620_v46  ;;  %v11627_v52 = vld [vmem:[%s12169_s6 + $0x268] sm:$0xff]  ;;  %v11632_v48 = vld [vmem:[%s12169_s6 + $0x278] sm:$0xff] }
 0x7f8   :  { %4314 = vmatpush2.msra.mxu0 %v11591_v5  ;;  %4385 = vmatpush2.msra.mxu1 %v11596_v41  ;;  %13495 = vst [vmem:[#allocation98_spill] sm:$0xff] %v11627_v52  ;;  %13496 = vst [vmem:[#allocation99_spill] sm:$0xff] %v11632_v48  ;;  %v11639_v5 = vld [vmem:[%s12169_s6 + $0x260] sm:$0xff]  ;;  %v11644_v41 = vld [vmem:[%s12169_s6 + $0x270] sm:$0xff] }
 0x7f9   :  { %4315 = vmatprep.subr.mxu0 %v11603_v28  ;;  %4386 = vmatprep.subr.mxu1 %v11608_v57  ;;  %13497 = vst [vmem:[#allocation100_spill] sm:$0xff] %v11639_v5  ;;  %13498 = vst [vmem:[#allocation101_spill] sm:$0xff] %v11644_v41  ;;  %v11651_v28 = vld [vmem:[%s12169_s6 + $0x248] sm:$0xff]  ;;  %v11656_v57 = vld [vmem:[%s12169_s6 + $0x258] sm:$0xff] }
 0x7fa   :  { %4316 = vmatpush2.msra.mxu0 %v11615_v14  ;;  %4387 = vmatpush2.msra.mxu1 %v11620_v46  ;;  %13499 = vst [vmem:[#allocation102_spill] sm:$0xff] %v11651_v28  ;;  %13500 = vst [vmem:[#allocation103_spill] sm:$0xff] %v11656_v57  ;;  %v11663_v14 = vld [vmem:[%s12169_s6 + $0x240] sm:$0xff]  ;;  %v11668_v46 = vld [vmem:[%s12169_s6 + $0x250] sm:$0xff] }
 0x7fb   :  { %4317 = vmatprep.subr.mxu0 %v11627_v52  ;;  %4388 = vmatprep.subr.mxu1 %v11632_v48  ;;  %13501 = vst [vmem:[#allocation104_spill] sm:$0xff] %v11663_v14  ;;  %13502 = vst [vmem:[#allocation105_spill] sm:$0xff] %v11668_v46  ;;  %v11675_v52 = vld [vmem:[%s12169_s6 + $0x228] sm:$0xff]  ;;  %v11680_v48 = vld [vmem:[%s12169_s6 + $0x238] sm:$0xff] }
 0x7fc   :  { %4318 = vmatpush2.msra.mxu0 %v11639_v5  ;;  %4389 = vmatpush2.msra.mxu1 %v11644_v41  ;;  %13503 = vst [vmem:[#allocation106_spill] sm:$0xff] %v11675_v52  ;;  %13504 = vst [vmem:[#allocation107_spill] sm:$0xff] %v11680_v48  ;;  %v11687_v5 = vld [vmem:[%s12169_s6 + $0x220] sm:$0xff]  ;;  %v11692_v41 = vld [vmem:[%s12169_s6 + $0x230] sm:$0xff] }
 0x7fd   :  { %4319 = vmatprep.subr.mxu0 %v11651_v28  ;;  %4390 = vmatprep.subr.mxu1 %v11656_v57  ;;  %13505 = vst [vmem:[#allocation108_spill] sm:$0xff] %v11687_v5  ;;  %13506 = vst [vmem:[#allocation109_spill] sm:$0xff] %v11692_v41  ;;  %v11699_v28 = vld [vmem:[%s12169_s6 + $0x208] sm:$0xff]  ;;  %v11704_v57 = vld [vmem:[%s12169_s6 + $0x218] sm:$0xff] }
 0x7fe   :  { %4320 = vmatpush2.msra.mxu0 %v11663_v14  ;;  %4391 = vmatpush2.msra.mxu1 %v11668_v46  ;;  %13507 = vst [vmem:[#allocation110_spill] sm:$0xff] %v11699_v28  ;;  %13508 = vst [vmem:[#allocation111_spill] sm:$0xff] %v11704_v57  ;;  %v11711_v14 = vld [vmem:[%s12169_s6 + $0x200] sm:$0xff]  ;;  %v11716_v46 = vld [vmem:[%s12169_s6 + $0x210] sm:$0xff] }
 0x7ff   :  { %4321 = vmatprep.subr.mxu0 %v11675_v52  ;;  %4392 = vmatprep.subr.mxu1 %v11680_v48  ;;  %13509 = vst [vmem:[#allocation112_spill] sm:$0xff] %v11711_v14  ;;  %13510 = vst [vmem:[#allocation113_spill] sm:$0xff] %v11716_v46  ;;  %v4493_v52 = vld [vmem:[%s12168_s5 + $0x1e8] sm:$0xff] }
 0x800   :  { %4322 = vmatpush2.msra.mxu0 %v11687_v5  ;;  %4393 = vmatpush2.msra.mxu1 %v11692_v41 }
 0x801   :  { %4323 = vmatprep.subr.mxu0 %v11699_v28  ;;  %4394 = vmatprep.subr.mxu1 %v11704_v57  ;;  %v13511_v57 = vld [vmem:[#allocation12_spill] sm:$0xff] }
 0x802   :  { %4324 = vmatpush2.msra.mxu0 %v11711_v14  ;;  %4395 = vmatpush2.msra.mxu1 %v11716_v46  ;;  %v13512_v46 = vld [vmem:[#allocation13_spill] sm:$0xff] }
 0x803   :  { %4496 = vmatprep.subr.mxu0 %v4493_v52  ;;  %4567 = vmatprep.subr.mxu1 %v10743_v42 }
 0x861   :  { %v3794_v48 = vpop.f32.mrf.mxu0  ;;  %v3865_v30 = vpop.f32.mrf.mxu1 }
 0x862   :  { %v3795_v5 = vadd.f32 %v3794_v48, %v13391_v44  ;;  %v3866_v52 = vadd.f32 %v3865_v30, %v13512_v46 }
 0x863   :  { %v3796_v9 = vpop.f32.mrf.mxu0  ;;  %v3867_v28 = vpop.f32.mrf.mxu1 }
 0x864   :  { %v5307_v41 = vmul.f32 -1.442695, %v3795_v5  ;;  %v3797_v49 = vadd.f32 %v3796_v9, %v13392_v47  ;;  %v3868_v51 = vadd.f32 %v3867_v28, %v13511_v57  ;;  %v13513_v47 = vld [vmem:[#allocation140_spill] sm:$0xff] }
 0x866   :  { %5777 = vpow2.f32 %v5307_v41  ;;  %v5308_v21 = vmul.f32 -1.442695, %v3797_v49  ;;  %v5309_v14 = vmul.f32 -1.442695, %v3868_v51  ;;  %v13514_v51 = vld [vmem:[#allocation139_spill] sm:$0xff] }
 0x868   :  { %5779 = vpow2.f32 %v5308_v21 }
 0x869   :  { %5781 = vpow2.f32 %v5309_v14 }
 0x873   :  { %v5778_v40 = vpop.eup %5777 }
 0x874   :  { %v3876_v11 = vadd.f32 1.0, %v5778_v40 }
 0x875   :  { %v5780_v42 = vpop.eup %5779 }
 0x876   :  { %5783 = vrcp.f32 %v3876_v11  ;;  %v3877_v48 = vadd.f32 1.0, %v5780_v42  ;;  %v5782_v5 = vpop.eup %5781 }
 0x877   :  { %5785 = vtanh.f32 %v3866_v52  ;;  %v3886_v30 = vadd.f32 1.0, %v5782_v5 }
 0x878   :  { %5787 = vrcp.f32 %v3877_v48 }
 0x882   :  { %v4029_v9 = vpop.f32.mrf.mxu0  ;;  %v4100_v11 = vpop.f32.mrf.mxu1 }
 0x883   :  { %v5784_v41 = vpop.eup %5783  ;;  %v4105_v49 = vadd.f32 %v4029_v9, %v13513_v47  ;;  %v13515_v47 = vld [vmem:[#allocation151_spill] sm:$0xff]  ;;  %v13516_v9 = vld [vmem:[#allocation141_spill] sm:$0xff] }
 0x884   :  { %v5786_v21 = vpop.eup %5785  ;;  %v4031_v44 = vpop.f32.mrf.mxu0 }
 0x885   :  { %v5788_v26 = vpop.eup %5787  ;;  %v5310_v28 = vmul.f32 -1.442695, %v4105_v49  ;;  %v4106_v57 = vadd.f32 %v4031_v44, %v13514_v51  ;;  %v3890_v56 = vmul.f32 %v5786_v21, %v5784_v41  ;;  %v4102_v42 = vpop.f32.mrf.mxu1  ;;  %v4107_v49 = vadd.f32 %v4100_v11, %v13516_v9  ;;  %v4492_v9 = vld [vmem:[%s12168_s5 + $0x1e0] sm:$0xff] }
 0x886   :  { %v3889_v40 = vmul.f32 %v5788_v26, %v10753_v0  ;;  %v4108_v48 = vadd.f32 %v4102_v42, %v13515_v47 }
 0x887   :  { %5789 = vpow2.f32 %v5310_v28  ;;  %v5311_v14 = vmul.f32 -1.442695, %v4106_v57 }
 0x888   :  { %v11735_v52 = vadd.f32 %v3890_v56, %v3889_v40  ;;  %v5312_v46 = vmul.f32 -1.442695, %v4108_v48 }
 0x889   :  { %5791 = vpow2.f32 %v5311_v14 }
 0x88a   :  { %5793 = vrcp.f32 %v3886_v30 }
 0x88b   :  { %5795 = vtanh.f32 %v11735_v52 }
 0x88c   :  { %5797 = vtanh.f32 %v4107_v49  ;;  %v4489_v49 = vld [vmem:[%s12168_s5 + $0x1c8] sm:$0xff] }
 0x88d   :  { %5799 = vpow2.f32 %v5312_v46 }
 0x894   :  { %v5790_v44 = vpop.eup %5789 }
 0x895   :  { %v4115_v41 = vadd.f32 1.0, %v5790_v44  ;;  %v4485_v44 = vld [vmem:[%s12168_s5 + $0x1a8] sm:$0xff] }
 0x896   :  { %v5792_v0 = vpop.eup %5791 }
 0x897   :  { %v5794_v26 = vpop.eup %5793  ;;  %5801 = vrcp.f32 %v4115_v41  ;;  %v4116_v57 = vadd.f32 1.0, %v5792_v0  ;;  %v4484_v41 = vld [vmem:[%s12168_s5 + $0x1a0] sm:$0xff]  ;;  %v4481_v0 = vld [vmem:[%s12168_s5 + $0x188] sm:$0xff] }
 0x898   :  { %v5796_v56 = vpop.eup %5795 }
 0x899   :  { %5803 = vrcp.f32 %v4116_v57  ;;  %v11740_v5 = vmul.f32 %v5796_v56, %v5794_v26  ;;  %v5798_v21 = vpop.eup %5797  ;;  %v4443_v26 = vld [vmem:[%s12168_s5 + $0x58] sm:$0xff]  ;;  %v4442_v57 = vld [vmem:[%s12168_s5 + $0x50] sm:$0xff] }
 0x89a   :  { %v5800_v28 = vpop.eup %5799  ;;  %v4439_v56 = vld [vmem:[%s12168_s5 + $0x38] sm:$0xff] }
 0x89b   :  { %4325 = vmatprep.mubr.f32.mxu0 %v11740_v5  ;;  %4396 = vmatprep.mubr.f32.mxu1 %v11740_v5  ;;  %v4125_v11 = vadd.f32 1.0, %v5800_v28  ;;  %v4433_v28 = vld [vmem:[%s12168_s5 + $0x8] sm:$0xff] }
 0x89d   :  { %5805 = vrcp.f32 %v4125_v11  ;;  %v13535_v11 = vld [vmem:[#allocation21_spill] sm:$0xff] }
 0x8a4   :  { %v5802_v51 = vpop.eup %5801 }
 0x8a5   :  { %v4129_v40 = vmul.f32 %v5802_v51, %v5798_v21  ;;  %v4438_v21 = vld [vmem:[%s12168_s5 + $0x30] sm:$0xff]  ;;  %v4435_v51 = vld [vmem:[%s12168_s5 + $0x18] sm:$0xff] }
 0x8a6   :  { %v5804_v30 = vpop.eup %5803 }
 0x8a7   :  { %v4128_v14 = vmul.f32 %v5804_v30, %v10763_v18  ;;  %v4488_v18 = vld [vmem:[%s12168_s5 + $0x1c0] sm:$0xff]  ;;  %v4434_v30 = vld [vmem:[%s12168_s5 + $0x10] sm:$0xff] }
 0x8a9   :  { %v11745_v46 = vadd.f32 %v4129_v40, %v4128_v14  ;;  %v4432_v40 = vld [vmem:[%s12168_s5] sm:$0xff]  ;;  %v13536_v14 = vld [vmem:[#allocation22_spill] sm:$0xff] }
 0x8aa   :  { %v5806_v42 = vpop.eup %5805 }
 0x8ab   :  { %5807 = vtanh.f32 %v11745_v46 }
 0x8b8   :  { %v5808_v47 = vpop.eup %5807 }
 0x8b9   :  { %v11748_v48 = vmul.f32 %v5808_v47, %v5806_v42  ;;  %v13537_v42 = vld [vmem:[#allocation23_spill] sm:$0xff]  ;;  %v13538_v47 = vld [vmem:[#allocation24_spill] sm:$0xff] }
 0x8bb   :  { %4326 = vmatmul.mubr.f32.vlgmr.msra.gmra.mxu0 %v11748_v48  ;;  %4397 = vmatmul.mubr.f32.vlgmr.msra.gmra.mxu1 %v11748_v48 }
 0x8bc   :  { %4497 = vmatpush1.msra.mxu0 %v4492_v9  ;;  %4568 = vmatpush1.msra.mxu1 %v10771_v45  ;;  %v4480_v45 = vld [vmem:[%s12168_s5 + $0x180] sm:$0xff]  ;;  %v13540_v9 = vld [vmem:[#allocation26_spill] sm:$0xff] }
 0x8bd   :  { %4498 = vmatprep.subr.mxu0 %v4489_v49  ;;  %4569 = vmatprep.subr.mxu1 %v10776_v61  ;;  %v4477_v61 = vld [vmem:[%s12168_s5 + $0x168] sm:$0xff]  ;;  %v13541_v49 = vld [vmem:[#allocation27_spill] sm:$0xff] }
 0x8be   :  { %4499 = vmatpush1.msra.mxu0 %v4488_v18  ;;  %4570 = vmatpush1.msra.mxu1 %v10783_v50  ;;  %v4476_v50 = vld [vmem:[%s12168_s5 + $0x160] sm:$0xff]  ;;  %v13542_v18 = vld [vmem:[#allocation28_spill] sm:$0xff] }
 0x8bf   :  { %4500 = vmatprep.subr.mxu0 %v4485_v44  ;;  %4571 = vmatprep.subr.mxu1 %v10790_v32  ;;  %v4473_v32 = vld [vmem:[%s12168_s5 + $0x148] sm:$0xff]  ;;  %v13543_v44 = vld [vmem:[#allocation29_spill] sm:$0xff] }
 0x8c0   :  { %4501 = vmatpush1.msra.mxu0 %v4484_v41  ;;  %4572 = vmatpush1.msra.mxu1 %v10797_v43  ;;  %v4472_v43 = vld [vmem:[%s12168_s5 + $0x140] sm:$0xff]  ;;  %v13544_v41 = vld [vmem:[#allocation30_spill] sm:$0xff] }
 0x8c1   :  { %4502 = vmatprep.subr.mxu0 %v4481_v0  ;;  %4573 = vmatprep.subr.mxu1 %v10804_v58  ;;  %v4469_v58 = vld [vmem:[%s12168_s5 + $0x128] sm:$0xff]  ;;  %v13545_v0 = vld [vmem:[#allocation31_spill] sm:$0xff] }
 0x8c2   :  { %4503 = vmatpush1.msra.mxu0 %v4480_v45  ;;  %4574 = vmatpush1.msra.mxu1 %v10811_v59  ;;  %v4468_v59 = vld [vmem:[%s12168_s5 + $0x120] sm:$0xff]  ;;  %v13546_v45 = vld [vmem:[#allocation32_spill] sm:$0xff] }
 0x8c3   :  { %4504 = vmatprep.subr.mxu0 %v4477_v61  ;;  %4575 = vmatprep.subr.mxu1 %v10818_v25  ;;  %v4465_v25 = vld [vmem:[%s12168_s5 + $0x108] sm:$0xff]  ;;  %v13547_v61 = vld [vmem:[#allocation33_spill] sm:$0xff] }
 0x8c4   :  { %4505 = vmatpush1.msra.mxu0 %v4476_v50  ;;  %4576 = vmatpush1.msra.mxu1 %v10825_v54  ;;  %v4464_v54 = vld [vmem:[%s12168_s5 + $0x100] sm:$0xff]  ;;  %v13548_v50 = vld [vmem:[#allocation34_spill] sm:$0xff] }
 0x8c5   :  { %4506 = vmatprep.subr.mxu0 %v4473_v32  ;;  %4577 = vmatprep.subr.mxu1 %v10832_v20  ;;  %v4461_v20 = vld [vmem:[%s12168_s5 + $0xe8] sm:$0xff]  ;;  %v13549_v32 = vld [vmem:[#allocation35_spill] sm:$0xff] }
 0x8c6   :  { %4507 = vmatpush1.msra.mxu0 %v4472_v43  ;;  %4578 = vmatpush1.msra.mxu1 %v10839_v55  ;;  %v4460_v55 = vld [vmem:[%s12168_s5 + $0xe0] sm:$0xff]  ;;  %v13550_v43 = vld [vmem:[#allocation36_spill] sm:$0xff] }
 0x8c7   :  { %4508 = vmatprep.subr.mxu0 %v4469_v58  ;;  %4579 = vmatprep.subr.mxu1 %v10846_v33  ;;  %v4457_v33 = vld [vmem:[%s12168_s5 + $0xc8] sm:$0xff]  ;;  %v13551_v58 = vld [vmem:[#allocation37_spill] sm:$0xff] }
 0x8c8   :  { %4509 = vmatpush1.msra.mxu0 %v4468_v59  ;;  %4580 = vmatpush1.msra.mxu1 %v10853_v19  ;;  %v4456_v19 = vld [vmem:[%s12168_s5 + $0xc0] sm:$0xff]  ;;  %v13552_v59 = vld [vmem:[#allocation38_spill] sm:$0xff] }
 0x8c9   :  { %4510 = vmatprep.subr.mxu0 %v4465_v25  ;;  %4581 = vmatprep.subr.mxu1 %v10860_v36  ;;  %v4453_v36 = vld [vmem:[%s12168_s5 + $0xa8] sm:$0xff]  ;;  %v13553_v25 = vld [vmem:[#allocation39_spill] sm:$0xff] }
 0x8ca   :  { %4511 = vmatpush1.msra.mxu0 %v4464_v54  ;;  %4582 = vmatpush1.msra.mxu1 %v10867_v53  ;;  %v4452_v53 = vld [vmem:[%s12168_s5 + $0xa0] sm:$0xff]  ;;  %v13554_v54 = vld [vmem:[#allocation40_spill] sm:$0xff] }
 0x8cb   :  { %4512 = vmatprep.subr.mxu0 %v4461_v20  ;;  %4583 = vmatprep.subr.mxu1 %v10874_v29  ;;  %v4449_v29 = vld [vmem:[%s12168_s5 + $0x88] sm:$0xff]  ;;  %v13555_v20 = vld [vmem:[#allocation41_spill] sm:$0xff] }
 0x8cc   :  { %4513 = vmatpush1.msra.mxu0 %v4460_v55  ;;  %4584 = vmatpush1.msra.mxu1 %v10881_v8  ;;  %v4448_v8 = vld [vmem:[%s12168_s5 + $0x80] sm:$0xff]  ;;  %v13556_v55 = vld [vmem:[#allocation42_spill] sm:$0xff] }
 0x8cd   :  { %4514 = vmatprep.subr.mxu0 %v4457_v33  ;;  %4585 = vmatprep.subr.mxu1 %v10888_v16  ;;  %v4445_v16 = vld [vmem:[%s12168_s5 + $0x68] sm:$0xff]  ;;  %v13557_v33 = vld [vmem:[#allocation43_spill] sm:$0xff] }
 0x8ce   :  { %4515 = vmatpush1.msra.mxu0 %v4456_v19  ;;  %4586 = vmatpush1.msra.mxu1 %v10895_v15  ;;  %v4444_v15 = vld [vmem:[%s12168_s5 + $0x60] sm:$0xff]  ;;  %v13558_v19 = vld [vmem:[#allocation44_spill] sm:$0xff] }
 0x8cf   :  { %4516 = vmatprep.subr.mxu0 %v4453_v36  ;;  %4587 = vmatprep.subr.mxu1 %v10902_v7  ;;  %v4446_v7 = vld [vmem:[%s12168_s5 + $0x70] sm:$0xff]  ;;  %v13559_v36 = vld [vmem:[#allocation45_spill] sm:$0xff] }
 0x8d0   :  { %4517 = vmatpush1.msra.mxu0 %v4452_v53  ;;  %4588 = vmatpush1.msra.mxu1 %v10909_v35  ;;  %v4441_v35 = vld [vmem:[%s12168_s5 + $0x48] sm:$0xff] }
 0x8d1   :  { %4518 = vmatprep.subr.mxu0 %v4449_v29  ;;  %4589 = vmatprep.subr.mxu1 %v10916_v34  ;;  %v4440_v34 = vld [vmem:[%s12168_s5 + $0x40] sm:$0xff]  ;;  %v13560_v53 = vld [vmem:[#allocation46_spill] sm:$0xff]  ;;  %v13561_v29 = vld [vmem:[#allocation47_spill] sm:$0xff] }
 0x8d2   :  { %4519 = vmatpush1.msra.mxu0 %v4448_v8  ;;  %4590 = vmatpush1.msra.mxu1 %v10923_v24  ;;  %v4437_v24 = vld [vmem:[%s12168_s5 + $0x28] sm:$0xff]  ;;  %v13562_v8 = vld [vmem:[#allocation48_spill] sm:$0xff] }
 0x8d3   :  { %4520 = vmatprep.subr.mxu0 %v4445_v16  ;;  %4591 = vmatprep.subr.mxu1 %v10930_v4  ;;  %v4436_v4 = vld [vmem:[%s12168_s5 + $0x20] sm:$0xff] }
 0x8d4   :  { %4521 = vmatpush1.msra.mxu0 %v4444_v15  ;;  %4592 = vmatpush1.msra.mxu1 %v4446_v7  ;;  %v13563_v16 = vld [vmem:[#allocation49_spill] sm:$0xff]  ;;  %v13564_v15 = vld [vmem:[#allocation50_spill] sm:$0xff]  ;;  %v13565_v7 = vld [vmem:[#allocation51_spill] sm:$0xff] }
 0x8d5   :  { %4522 = vmatprep.subr.mxu0 %v4441_v35  ;;  %4593 = vmatprep.subr.mxu1 %v4443_v26  ;;  %v13566_v35 = vld [vmem:[#allocation52_spill] sm:$0xff]  ;;  %v13567_v26 = vld [vmem:[#allocation53_spill] sm:$0xff] }
 0x8d6   :  { %4523 = vmatpush1.msra.mxu0 %v4440_v34  ;;  %4594 = vmatpush1.msra.mxu1 %v4442_v57  ;;  %v13568_v34 = vld [vmem:[#allocation54_spill] sm:$0xff]  ;;  %v13569_v57 = vld [vmem:[#allocation55_spill] sm:$0xff] }
 0x8d7   :  { %4524 = vmatprep.subr.mxu0 %v4437_v24  ;;  %4595 = vmatprep.subr.mxu1 %v4439_v56  ;;  %v13570_v24 = vld [vmem:[#allocation56_spill] sm:$0xff]  ;;  %v13571_v56 = vld [vmem:[#allocation57_spill] sm:$0xff] }
 0x8d8   :  { %4525 = vmatpush1.msra.mxu0 %v4436_v4  ;;  %4596 = vmatpush1.msra.mxu1 %v4438_v21  ;;  %v13572_v4 = vld [vmem:[#allocation58_spill] sm:$0xff]  ;;  %v13573_v21 = vld [vmem:[#allocation59_spill] sm:$0xff] }
 0x8d9   :  { %4526 = vmatprep.subr.mxu0 %v4433_v28  ;;  %4597 = vmatprep.subr.mxu1 %v4435_v51  ;;  %v13574_v28 = vld [vmem:[#allocation60_spill] sm:$0xff]  ;;  %v13575_v51 = vld [vmem:[#allocation61_spill] sm:$0xff] }
 0x8da   :  { %4527 = vmatpush1.msra.mxu0 %v4432_v40  ;;  %4560 = vmatprep.mubr.f32.mxu0 %v12792_v60  ;;  %v13576_v40 = vld [vmem:[#allocation62_spill] sm:$0xff] }
 0x8db   :  { %4598 = vmatpush1.msra.mxu1 %v4434_v30  ;;  %4631 = vmatprep.mubr.f32.mxu1 %v12792_v60  ;;  %v13517_v60 = vld [vmem:[#allocation145_spill] sm:$0xff]  ;;  %v13577_v30 = vld [vmem:[#allocation63_spill] sm:$0xff] }
 0x8dc   :  { %4561 = vmatmul.mubr.f32.vlgmr.msra.gmra.mxu0 %v11748_v48  ;;  %4632 = vmatmul.mubr.f32.vlgmr.msra.gmra.mxu1 %v11748_v48  ;;  %v13539_v48 = vld [vmem:[#allocation25_spill] sm:$0xff] }
 0x8dd   :  { %4794 = vmatprep.subr.mxu0 %v10959_v6  ;;  %4865 = vmatprep.subr.mxu1 %v10964_v27  ;;  %v13518_v6 = vld [vmem:[#allocation131_spill] sm:$0xff]  ;;  %v13519_v27 = vld [vmem:[#allocation130_spill] sm:$0xff] }
 0x8de   :  { %4795 = vmatpush1.msra.mxu0 %v10971_v62  ;;  %4866 = vmatpush1.msra.mxu1 %v10976_v22  ;;  %v13520_v62 = vld [vmem:[#allocation146_spill] sm:$0xff]  ;;  %v13521_v22 = vld [vmem:[#allocation132_spill] sm:$0xff] }
 0x8df   :  { %4796 = vmatprep.subr.mxu0 %v10983_v1  ;;  %4867 = vmatprep.subr.mxu1 %v10988_v63  ;;  %v13522_v1 = vld [vmem:[#allocation134_spill] sm:$0xff]  ;;  %v13523_v63 = vld [vmem:[#allocation133_spill] sm:$0xff] }
 0x8e0   :  { %4797 = vmatpush1.msra.mxu0 %v10995_v3  ;;  %4868 = vmatpush1.msra.mxu1 %v11000_v37  ;;  %v13524_v3 = vld [vmem:[#allocation149_spill] sm:$0xff]  ;;  %v13525_v37 = vld [vmem:[#allocation135_spill] sm:$0xff] }
 0x8e1   :  { %4798 = vmatprep.subr.mxu0 %v11007_v31  ;;  %4869 = vmatprep.subr.mxu1 %v11012_v13  ;;  %v13526_v31 = vld [vmem:[#allocation127_spill] sm:$0xff] }
 0x8e2   :  { %4799 = vmatpush1.msra.mxu0 %v11019_v38  ;;  %4870 = vmatpush1.msra.mxu1 %v11024_v2  ;;  %v13527_v13 = vld [vmem:[#allocation147_spill] sm:$0xff]  ;;  %v13528_v38 = vld [vmem:[#allocation129_spill] sm:$0xff] }
 0x8e3   :  { %4800 = vmatprep.subr.mxu0 %v11031_v39  ;;  %4871 = vmatprep.subr.mxu1 %v11036_v12  ;;  %v13529_v2 = vld [vmem:[#allocation15_spill] sm:$0xff]  ;;  %v13530_v39 = vld [vmem:[#allocation16_spill] sm:$0xff]  ;;  %v13531_v12 = vld [vmem:[#allocation17_spill] sm:$0xff] }
 0x8e4   :  { %4801 = vmatpush1.msra.mxu0 %v11043_v10  ;;  %4872 = vmatpush1.msra.mxu1 %v11048_v17  ;;  %v13532_v10 = vld [vmem:[#allocation18_spill] sm:$0xff]  ;;  %v13533_v17 = vld [vmem:[#allocation19_spill] sm:$0xff] }
 0x8e5   :  { %4802 = vmatprep.subr.mxu0 %v11055_v23  ;;  %4873 = vmatprep.subr.mxu1 %v13517_v60  ;;  %v13534_v23 = vld [vmem:[#allocation20_spill] sm:$0xff] }
 0x8e6   :  { %4803 = vmatpush1.msra.mxu0 %v13518_v6  ;;  %4874 = vmatpush1.msra.mxu1 %v13519_v27  ;;  %v13578_v60 = vld [vmem:[#allocation64_spill] sm:$0xff]  ;;  %v13579_v6 = vld [vmem:[#allocation65_spill] sm:$0xff]  ;;  %v13580_v27 = vld [vmem:[#allocation66_spill] sm:$0xff] }
 0x8e7   :  { %4804 = vmatprep.subr.mxu0 %v13520_v62  ;;  %4875 = vmatprep.subr.mxu1 %v13521_v22  ;;  %v13581_v62 = vld [vmem:[#allocation67_spill] sm:$0xff]  ;;  %v13582_v22 = vld [vmem:[#allocation68_spill] sm:$0xff] }
 0x8e8   :  { %4805 = vmatpush1.msra.mxu0 %v13522_v1  ;;  %4876 = vmatpush1.msra.mxu1 %v13523_v63  ;;  %v13583_v1 = vld [vmem:[#allocation69_spill] sm:$0xff]  ;;  %v13584_v63 = vld [vmem:[#allocation70_spill] sm:$0xff] }
 0x8e9   :  { %4806 = vmatprep.subr.mxu0 %v13524_v3  ;;  %4877 = vmatprep.subr.mxu1 %v13525_v37  ;;  %v13585_v3 = vld [vmem:[#allocation71_spill] sm:$0xff]  ;;  %v13586_v37 = vld [vmem:[#allocation72_spill] sm:$0xff] }
 0x8ea   :  { %4807 = vmatpush1.msra.mxu0 %v13526_v31  ;;  %4878 = vmatpush1.msra.mxu1 %v13527_v13  ;;  %v13587_v31 = vld [vmem:[#allocation73_spill] sm:$0xff]  ;;  %v13588_v13 = vld [vmem:[#allocation74_spill] sm:$0xff] }
 0x8eb   :  { %4808 = vmatprep.subr.mxu0 %v13528_v38  ;;  %4879 = vmatprep.subr.mxu1 %v13529_v2  ;;  %v13589_v38 = vld [vmem:[#allocation75_spill] sm:$0xff]  ;;  %v13590_v2 = vld [vmem:[#allocation76_spill] sm:$0xff] }
 0x8ec   :  { %4809 = vmatpush1.msra.mxu0 %v13530_v39  ;;  %4880 = vmatpush1.msra.mxu1 %v13531_v12  ;;  %v13591_v39 = vld [vmem:[#allocation77_spill] sm:$0xff]  ;;  %v13592_v12 = vld [vmem:[#allocation78_spill] sm:$0xff] }
 0x8ed   :  { %4810 = vmatprep.subr.mxu0 %v13532_v10  ;;  %4881 = vmatprep.subr.mxu1 %v13533_v17  ;;  %v13593_v10 = vld [vmem:[#allocation79_spill] sm:$0xff]  ;;  %v13594_v17 = vld [vmem:[#allocation80_spill] sm:$0xff] }
 0x8ee   :  { %4811 = vmatpush1.msra.mxu0 %v13534_v23  ;;  %4882 = vmatpush1.msra.mxu1 %v13535_v11  ;;  %v13595_v23 = vld [vmem:[#allocation81_spill] sm:$0xff]  ;;  %v13596_v11 = vld [vmem:[#allocation82_spill] sm:$0xff] }
 0x8ef   :  { %4812 = vmatprep.subr.mxu0 %v13536_v14  ;;  %4883 = vmatprep.subr.mxu1 %v13537_v42  ;;  %v13597_v14 = vld [vmem:[#allocation83_spill] sm:$0xff]  ;;  %v13598_v42 = vld [vmem:[#allocation84_spill] sm:$0xff] }
 0x8f0   :  { %4813 = vmatpush1.msra.mxu0 %v13538_v47  ;;  %4884 = vmatpush1.msra.mxu1 %v13539_v48  ;;  %v13599_v47 = vld [vmem:[#allocation85_spill] sm:$0xff]  ;;  %v13600_v48 = vld [vmem:[#allocation86_spill] sm:$0xff] }
 0x8f1   :  { %4814 = vmatprep.subr.mxu0 %v13540_v9  ;;  %4885 = vmatprep.subr.mxu1 %v13541_v49  ;;  %v13601_v9 = vld [vmem:[#allocation87_spill] sm:$0xff]  ;;  %v13602_v49 = vld [vmem:[#allocation88_spill] sm:$0xff] }
 0x8f2   :  { %4815 = vmatpush1.msra.mxu0 %v13542_v18  ;;  %4886 = vmatpush1.msra.mxu1 %v13543_v44  ;;  %v13603_v18 = vld [vmem:[#allocation89_spill] sm:$0xff]  ;;  %v13604_v44 = vld [vmem:[#allocation90_spill] sm:$0xff] }
 0x8f3   :  { %4816 = vmatprep.subr.mxu0 %v13544_v41  ;;  %4887 = vmatprep.subr.mxu1 %v13545_v0  ;;  %v13605_v41 = vld [vmem:[#allocation91_spill] sm:$0xff]  ;;  %v13606_v0 = vld [vmem:[#allocation92_spill] sm:$0xff] }
 0x8f4   :  { %4817 = vmatpush1.msra.mxu0 %v13546_v45  ;;  %4888 = vmatpush1.msra.mxu1 %v13547_v61  ;;  %v13607_v45 = vld [vmem:[#allocation93_spill] sm:$0xff]  ;;  %v13608_v61 = vld [vmem:[#allocation94_spill] sm:$0xff] }
 0x8f5   :  { %4818 = vmatprep.subr.mxu0 %v13548_v50  ;;  %4889 = vmatprep.subr.mxu1 %v13549_v32  ;;  %v13609_v50 = vld [vmem:[#allocation95_spill] sm:$0xff]  ;;  %v13610_v32 = vld [vmem:[#allocation96_spill] sm:$0xff] }
 0x8f6   :  { %4819 = vmatpush1.msra.mxu0 %v13550_v43  ;;  %4890 = vmatpush1.msra.mxu1 %v13551_v58  ;;  %v13611_v43 = vld [vmem:[#allocation97_spill] sm:$0xff]  ;;  %v13612_v58 = vld [vmem:[#allocation98_spill] sm:$0xff] }
 0x8f7   :  { %4820 = vmatprep.subr.mxu0 %v13552_v59  ;;  %4891 = vmatprep.subr.mxu1 %v13553_v25  ;;  %v13613_v59 = vld [vmem:[#allocation99_spill] sm:$0xff]  ;;  %v13614_v25 = vld [vmem:[#allocation100_spill] sm:$0xff] }
 0x8f8   :  { %4821 = vmatpush1.msra.mxu0 %v13554_v54  ;;  %4892 = vmatpush1.msra.mxu1 %v13555_v20  ;;  %v13615_v54 = vld [vmem:[#allocation101_spill] sm:$0xff]  ;;  %v13616_v20 = vld [vmem:[#allocation102_spill] sm:$0xff] }
 0x8f9   :  { %4822 = vmatprep.subr.mxu0 %v13556_v55  ;;  %4893 = vmatprep.subr.mxu1 %v13557_v33  ;;  %v13617_v55 = vld [vmem:[#allocation103_spill] sm:$0xff]  ;;  %v13618_v33 = vld [vmem:[#allocation104_spill] sm:$0xff] }
 0x8fa   :  { %4823 = vmatpush1.msra.mxu0 %v13558_v19  ;;  %4894 = vmatpush1.msra.mxu1 %v13559_v36  ;;  %v13619_v19 = vld [vmem:[#allocation105_spill] sm:$0xff]  ;;  %v13620_v36 = vld [vmem:[#allocation106_spill] sm:$0xff] }
 0x8fb   :  { %4824 = vmatprep.subr.mxu0 %v13560_v53  ;;  %4895 = vmatprep.subr.mxu1 %v13561_v29  ;;  %v13621_v53 = vld [vmem:[#allocation107_spill] sm:$0xff]  ;;  %v13622_v29 = vld [vmem:[#allocation108_spill] sm:$0xff] }
 0x8fc   :  { %4825 = vmatpush1.msra.mxu0 %v13562_v8  ;;  %4896 = vmatpush1.msra.mxu1 %v13563_v16  ;;  %v13623_v8 = vld [vmem:[#allocation109_spill] sm:$0xff]  ;;  %v13624_v16 = vld [vmem:[#allocation110_spill] sm:$0xff] }
 0x8fd   :  { %4826 = vmatprep.subr.mxu0 %v13564_v15  ;;  %4897 = vmatprep.subr.mxu1 %v13565_v7  ;;  %v13625_v15 = vld [vmem:[#allocation111_spill] sm:$0xff]  ;;  %v13626_v7 = vld [vmem:[#allocation112_spill] sm:$0xff] }
 0x8fe   :  { %4827 = vmatpush2.msra.mxu0 %v13566_v35  ;;  %4898 = vmatpush2.msra.mxu1 %v13567_v26  ;;  %v13627_v35 = vld [vmem:[#allocation113_spill] sm:$0xff]  ;;  %v12025_v26 = vld [vmem:[%s12171_s8 + $0x78] sm:$0xff] }
 0x8ff   :  { %4828 = vmatprep.subr.mxu0 %v13568_v34  ;;  %4899 = vmatprep.subr.mxu1 %v13569_v57  ;;  %v13628_v57 = vld [vmem:[#allocation10_spill] sm:$0xff] }
 0x900   :  { %4829 = vmatpush2.msra.mxu0 %v13570_v24  ;;  %4900 = vmatpush2.msra.mxu1 %v13571_v56 }
 0x901   :  { %4830 = vmatprep.subr.mxu0 %v13572_v4  ;;  %4901 = vmatprep.subr.mxu1 %v13573_v21  ;;  %v13629_v21 = vld [vmem:[#allocation11_spill] sm:$0xff] }
 0x902   :  { %4831 = vmatpush2.msra.mxu0 %v13574_v28  ;;  %4902 = vmatpush2.msra.mxu1 %v13575_v51 }
 0x903   :  { %4832 = vmatprep.subr.mxu0 %v13576_v40  ;;  %4903 = vmatprep.subr.mxu1 %v13577_v30 }
 0x904   :  { %4833 = vmatpush2.msra.mxu0 %v13578_v60  ;;  %4904 = vmatpush2.msra.mxu1 %v13579_v6  ;;  %v13630_v60 = vld [vmem:[#allocation12_spill] sm:$0xff] }
 0x905   :  { %4834 = vmatprep.subr.mxu0 %v13580_v27  ;;  %4905 = vmatprep.subr.mxu1 %v13581_v62 }
 0x906   :  { %4835 = vmatpush2.msra.mxu0 %v13582_v22  ;;  %4906 = vmatpush2.msra.mxu1 %v13583_v1  ;;  %v13631_v22 = vld [vmem:[#allocation13_spill] sm:$0xff] }
 0x907   :  { %4836 = vmatprep.subr.mxu0 %v13584_v63  ;;  %4907 = vmatprep.subr.mxu1 %v13585_v3 }
 0x908   :  { %4837 = vmatpush2.msra.mxu0 %v13586_v37  ;;  %4908 = vmatpush2.msra.mxu1 %v13587_v31 }
 0x909   :  { %4838 = vmatprep.subr.mxu0 %v13588_v13  ;;  %4909 = vmatprep.subr.mxu1 %v13589_v38 }
 0x90a   :  { %4839 = vmatpush2.msra.mxu0 %v13590_v2  ;;  %4910 = vmatpush2.msra.mxu1 %v13591_v39  ;;  %v13632_v2 = vld [vmem:[#allocation143_spill] sm:$0xff] }
 0x90b   :  { %4840 = vmatprep.subr.mxu0 %v13592_v12  ;;  %4911 = vmatprep.subr.mxu1 %v13593_v10 }
 0x90c   :  { %4841 = vmatpush2.msra.mxu0 %v13594_v17  ;;  %4912 = vmatpush2.msra.mxu1 %v13595_v23 }
 0x90d   :  { %4842 = vmatprep.subr.mxu0 %v13596_v11  ;;  %4913 = vmatprep.subr.mxu1 %v13597_v14  ;;  %v13633_v11 = vld [vmem:[#allocation142_spill] sm:$0xff] }
 0x90e   :  { %4843 = vmatpush2.msra.mxu0 %v13598_v42  ;;  %4914 = vmatpush2.msra.mxu1 %v13599_v47 }
 0x90f   :  { %4844 = vmatprep.subr.mxu0 %v13600_v48  ;;  %4915 = vmatprep.subr.mxu1 %v13601_v9 }
 0x910   :  { %4845 = vmatpush2.msra.mxu0 %v13602_v49  ;;  %4916 = vmatpush2.msra.mxu1 %v13603_v18 }
 0x911   :  { %4846 = vmatprep.subr.mxu0 %v13604_v44  ;;  %4917 = vmatprep.subr.mxu1 %v13605_v41  ;;  %v13634_v41 = vld [vmem:[#allocation150_spill] sm:$0xff] }
 0x912   :  { %4847 = vmatpush2.msra.mxu0 %v13606_v0  ;;  %4918 = vmatpush2.msra.mxu1 %v13607_v45  ;;  %v13635_v45 = vld [vmem:[#allocation144_spill] sm:$0xff] }
 0x913   :  { %4848 = vmatprep.subr.mxu0 %v13608_v61  ;;  %4919 = vmatprep.subr.mxu1 %v13609_v50 }
 0x914   :  { %4849 = vmatpush2.msra.mxu0 %v13610_v32  ;;  %4920 = vmatpush2.msra.mxu1 %v13611_v43 }
 0x915   :  { %4850 = vmatprep.subr.mxu0 %v13612_v58  ;;  %4921 = vmatprep.subr.mxu1 %v13613_v59 }
 0x916   :  { %4851 = vmatpush2.msra.mxu0 %v13614_v25  ;;  %4922 = vmatpush2.msra.mxu1 %v13615_v54 }
 0x917   :  { %4852 = vmatprep.subr.mxu0 %v13616_v20  ;;  %4923 = vmatprep.subr.mxu1 %v13617_v55 }
 0x918   :  { %4853 = vmatpush2.msra.mxu0 %v13618_v33  ;;  %4924 = vmatpush2.msra.mxu1 %v13619_v19 }
 0x919   :  { %4854 = vmatprep.subr.mxu0 %v13620_v36  ;;  %4925 = vmatprep.subr.mxu1 %v13621_v53 }
 0x91a   :  { %4855 = vmatpush2.msra.mxu0 %v13622_v29  ;;  %4926 = vmatpush2.msra.mxu1 %v13623_v8 }
 0x91b   :  { %4856 = vmatprep.subr.mxu0 %v13624_v16  ;;  %4927 = vmatprep.subr.mxu1 %v13625_v15 }
 0x91c   :  { %4857 = vmatpush2.msra.mxu0 %v13626_v7  ;;  %4928 = vmatpush2.msra.mxu1 %v13627_v35  ;;  %v4983_v35 = vld [vmem:[%s12171_s8 + $0x70] sm:$0xff] }
 0x91d   :  { %5508 = vmatprep.subr.mxu0 %v12025_v26 }
 0x97b   :  { %v4327_v34 = vpop.f32.mrf.mxu0  ;;  %v4398_v51 = vpop.f32.mrf.mxu1 }
 0x97c   :  { %v4328_v24 = vadd.f32 %v4327_v34, %v13628_v57  ;;  %v4399_v1 = vadd.f32 %v4398_v51, %v13631_v22  ;;  %v13636_v34 = vld [vmem:[#allocation14_spill] sm:$0xff]  ;;  %v4976_v51 = vld [vmem:[%s12171_s8 + $0x38] sm:$0xff] }
 0x97d   :  { %v4329_v56 = vpop.f32.mrf.mxu0  ;;  %v4400_v30 = vpop.f32.mrf.mxu1 }
 0x97e   :  { %v5313_v4 = vmul.f32 -1.442695, %v4328_v24  ;;  %v4330_v28 = vadd.f32 %v4329_v56, %v13629_v21  ;;  %v4401_v6 = vadd.f32 %v4400_v30, %v13630_v60  ;;  %v4981_v24 = vld [vmem:[%s12171_s8 + $0x60] sm:$0xff]  ;;  %v4980_v56 = vld [vmem:[%s12171_s8 + $0x58] sm:$0xff]  ;;  %v4974_v30 = vld [vmem:[%s12171_s8 + $0x28] sm:$0xff] }
 0x980   :  { %5809 = vpow2.f32 %v5313_v4  ;;  %v5314_v40 = vmul.f32 -1.442695, %v4330_v28  ;;  %v5315_v27 = vmul.f32 -1.442695, %v4401_v6  ;;  %v4978_v4 = vld [vmem:[%s12171_s8 + $0x48] sm:$0xff]  ;;  %v4977_v28 = vld [vmem:[%s12171_s8 + $0x40] sm:$0xff] }
 0x981   :  { %v4973_v6 = vld [vmem:[%s12171_s8 + $0x20] sm:$0xff] }
 0x982   :  { %5811 = vpow2.f32 %v5314_v40  ;;  %v4975_v40 = vld [vmem:[%s12171_s8 + $0x30] sm:$0xff] }
 0x983   :  { %5813 = vpow2.f32 %v5315_v27  ;;  %v4972_v27 = vld [vmem:[%s12171_s8 + $0x18] sm:$0xff] }
 0x98d   :  { %v5810_v62 = vpop.eup %5809 }
 0x98e   :  { %v4409_v63 = vadd.f32 1.0, %v5810_v62  ;;  %v4971_v62 = vld [vmem:[%s12171_s8 + $0x10] sm:$0xff] }
 0x98f   :  { %v5812_v3 = vpop.eup %5811 }
 0x990   :  { %5815 = vrcp.f32 %v4409_v63  ;;  %v4410_v37 = vadd.f32 1.0, %v5812_v3  ;;  %v5814_v31 = vpop.eup %5813  ;;  %v4969_v63 = vld [vmem:[%s12171_s8] sm:$0xff]  ;;  %v13637_v3 = vld [vmem:[#allocation126_spill] sm:$0xff] }
 0x991   :  { %5817 = vtanh.f32 %v4399_v1  ;;  %v4419_v48 = vadd.f32 1.0, %v5814_v31  ;;  %v4970_v1 = vld [vmem:[%s12171_s8 + $0x8] sm:$0xff]  ;;  %v13639_v31 = vld [vmem:[#allocation125_spill] sm:$0xff] }
 0x992   :  { %5819 = vrcp.f32 %v4410_v37  ;;  %v13638_v37 = vld [vmem:[#allocation128_spill] sm:$0xff] }
 0x99c   :  { %v4562_v13 = vpop.f32.mrf.mxu0  ;;  %v4633_v9 = vpop.f32.mrf.mxu1 }
 0x99d   :  { %v5816_v38 = vpop.eup %5815  ;;  %v4638_v39 = vadd.f32 %v4562_v13, %v13632_v2  ;;  %v4640_v61 = vadd.f32 %v4633_v9, %v13635_v45  ;;  %v13640_v13 = vld [vmem:[#allocation124_spill] sm:$0xff]  ;;  %v5119_v2 = vld [vmem:[%s12173_s10 + $0x70] sm:$0xff] }
 0x99e   :  { %v5818_v12 = vpop.eup %5817  ;;  %v4564_v10 = vpop.f32.mrf.mxu0  ;;  %v5107_v9 = vld [vmem:[%s12173_s10 + $0x10] sm:$0xff] }
 0x99f   :  { %v5820_v17 = vpop.eup %5819  ;;  %v5316_v23 = vmul.f32 -1.442695, %v4638_v39  ;;  %v4639_v14 = vadd.f32 %v4564_v10, %v13633_v11  ;;  %v4423_v42 = vmul.f32 %v5818_v12, %v5816_v38  ;;  %v4635_v44 = vpop.f32.mrf.mxu1  ;;  %v5120_v38 = vld [vmem:[%s12173_s10 + $0x78] sm:$0xff]  ;;  %v5118_v39 = vld [vmem:[%s12173_s10 + $0x68] sm:$0xff]  ;;  %v5115_v10 = vld [vmem:[%s12173_s10 + $0x50] sm:$0xff] }
 0x9a0   :  { %v4422_v47 = vmul.f32 %v5820_v17, %v11735_v52  ;;  %v4641_v0 = vadd.f32 %v4635_v44, %v13634_v41  ;;  %5552 = vmatprep.subr.mxu1 %v5120_v38  ;;  %v5116_v12 = vld [vmem:[%s12173_s10 + $0x58] sm:$0xff]  ;;  %v5114_v17 = vld [vmem:[%s12173_s10 + $0x48] sm:$0xff]  ;;  %v5105_v44 = vld [vmem:[%s12173_s10] sm:$0xff] }
 0x9a1   :  { %5821 = vpow2.f32 %v5316_v23  ;;  %v5317_v49 = vmul.f32 -1.442695, %v4639_v14  ;;  %v5113_v23 = vld [vmem:[%s12173_s10 + $0x40] sm:$0xff]  ;;  %v5112_v11 = vld [vmem:[%s12173_s10 + $0x38] sm:$0xff]  ;;  %v5111_v14 = vld [vmem:[%s12173_s10 + $0x30] sm:$0xff] }
 0x9a2   :  { %v12035_v18 = vadd.f32 %v4423_v42, %v4422_v47  ;;  %v5318_v50 = vmul.f32 -1.442695, %v4641_v0  ;;  %v5110_v42 = vld [vmem:[%s12173_s10 + $0x28] sm:$0xff]  ;;  %v5109_v47 = vld [vmem:[%s12173_s10 + $0x20] sm:$0xff] }
 0x9a3   :  { %5823 = vpow2.f32 %v5317_v49  ;;  %v5106_v49 = vld [vmem:[%s12173_s10 + $0x8] sm:$0xff] }
 0x9a4   :  { %5825 = vrcp.f32 %v4419_v48  ;;  %v5108_v48 = vld [vmem:[%s12173_s10 + $0x18] sm:$0xff] }
 0x9a5   :  { %5827 = vtanh.f32 %v12035_v18 }
 0x9a6   :  { %5829 = vtanh.f32 %v4640_v61 }
 0x9a7   :  { %5831 = vpow2.f32 %v5318_v50 }
 0x9ae   :  { %v5822_v32 = vpop.eup %5821 }
 0x9af   :  { %v4648_v43 = vadd.f32 1.0, %v5822_v32 }
 0x9b0   :  { %v5824_v52 = vpop.eup %5823 }
 0x9b1   :  { %v5826_v58 = vpop.eup %5825  ;;  %5833 = vrcp.f32 %v4648_v43  ;;  %v4649_v59 = vadd.f32 1.0, %v5824_v52 }
 0x9b2   :  { %v5828_v25 = vpop.eup %5827 }
 0x9b3   :  { %5835 = vrcp.f32 %v4649_v59  ;;  %v12040_v54 = vmul.f32 %v5828_v25, %v5826_v58  ;;  %v5830_v20 = vpop.eup %5829 }
 0x9b4   :  { %v5832_v55 = vpop.eup %5831 }
 0x9b5   :  { %4858 = vmatprep.mubr.f32.mxu0 %v12040_v54  ;;  %4929 = vmatprep.mubr.f32.mxu1 %v12040_v54  ;;  %v4658_v53 = vadd.f32 1.0, %v5832_v55 }
 0x9b7   :  { %5837 = vrcp.f32 %v4658_v53 }
 0x9be   :  { %v5834_v33 = vpop.eup %5833 }
 0x9bf   :  { %v4662_v19 = vmul.f32 %v5834_v33, %v5830_v20 }
 0x9c0   :  { %v5836_v36 = vpop.eup %5835 }
 0x9c1   :  { %v4661_v29 = vmul.f32 %v5836_v36, %v11745_v46  ;;  %v4982_v46 = vld [vmem:[%s12171_s8 + $0x68] sm:$0xff] }
 0x9c3   :  { %v4663_v8 = vadd.f32 %v4662_v19, %v4661_v29 }
 0x9c4   :  { %v5838_v16 = vpop.eup %5837 }
 0x9c5   :  { %5839 = vtanh.f32 %v4663_v8 }
 0x9d2   :  { %v5840_v15 = vpop.eup %5839 }
 0x9d3   :  { %v4665_v7 = vmul.f32 %v5840_v15, %v5838_v16 }
 0x9d5   :  { %4859 = vmatmul.mubr.f32.vlgmr.msra.gmra.mxu0 %v4665_v7  ;;  %4930 = vmatmul.mubr.f32.vlgmr.msra.gmra.mxu1 %v4665_v7 }
 0x9d6   :  { %5509 = vmatpush3.msra.mxu0 %v12025_v26  ;;  %5540 = vmatprep.mubr.f32.mxu0 %v13636_v34  ;;  %v4979_v26 = vld [vmem:[%s12171_s8 + $0x50] sm:$0xff] }
 0x9d7   :  { %5510 = vmatprep.subr.mxu0 %v4983_v35  ;;  %5553 = vmatpush3.msra.mxu1 %v5120_v38 }
 0x9d8   :  { %5511 = vmatpush3.msra.mxu0 %v4983_v35  ;;  %5554 = vmatprep.subr.mxu1 %v5119_v2 }
 0x9d9   :  { %5512 = vmatprep.subr.mxu0 %v4982_v46  ;;  %5555 = vmatpush3.msra.mxu1 %v5119_v2 }
 0x9da   :  { %5513 = vmatpush3.msra.mxu0 %v4982_v46  ;;  %5556 = vmatprep.subr.mxu1 %v5118_v39 }
 0x9db   :  { %5514 = vmatprep.subr.mxu0 %v4981_v24  ;;  %5557 = vmatpush3.msra.mxu1 %v5118_v39 }
 0x9dc   :  { %5515 = vmatpush3.msra.mxu0 %v4981_v24 }
 0x9dd   :  { %5516 = vmatprep.subr.mxu0 %v4980_v56 }
 0x9de   :  { %5517 = vmatpush3.msra.mxu0 %v4980_v56 }
 0x9df   :  { %5518 = vmatprep.subr.mxu0 %v4979_v26 }
 0x9e0   :  { %5519 = vmatpush3.msra.mxu0 %v4979_v26 }
 0x9e1   :  { %5520 = vmatprep.subr.mxu0 %v4978_v4 }
 0x9e2   :  { %5521 = vmatpush3.msra.mxu0 %v4978_v4 }
 0x9e3   :  { %5522 = vmatprep.subr.mxu0 %v4977_v28 }
 0x9e4   :  { %5523 = vmatpush3.msra.mxu0 %v4977_v28 }
 0x9e5   :  { %5524 = vmatprep.subr.mxu0 %v4976_v51 }
 0x9e6   :  { %5525 = vmatpush3.msra.mxu0 %v4976_v51 }
 0x9e7   :  { %5526 = vmatprep.subr.mxu0 %v4975_v40 }
 0x9e8   :  { %5527 = vmatpush3.msra.mxu0 %v4975_v40 }
 0x9e9   :  { %5528 = vmatprep.subr.mxu0 %v4974_v30 }
 0x9ea   :  { %5529 = vmatpush3.msra.mxu0 %v4974_v30 }
 0x9eb   :  { %5530 = vmatprep.subr.mxu0 %v4973_v6 }
 0x9ec   :  { %5531 = vmatpush3.msra.mxu0 %v4973_v6 }
 0x9ed   :  { %5532 = vmatprep.subr.mxu0 %v4972_v27 }
 0x9ee   :  { %5533 = vmatpush3.msra.mxu0 %v4972_v27 }
 0x9ef   :  { %5534 = vmatprep.subr.mxu0 %v4971_v62 }
 0x9f0   :  { %5535 = vmatpush3.msra.mxu0 %v4971_v62 }
 0x9f1   :  { %5536 = vmatprep.subr.mxu0 %v4970_v1 }
 0x9f2   :  { %5537 = vmatpush3.msra.mxu0 %v4970_v1 }
 0x9f3   :  { %5538 = vmatprep.subr.mxu0 %v4969_v63 }
 0x9f4   :  { %5539 = vmatpush3.msra.mxu0 %v4969_v63 }
 0x9f5   :  { %5541 = vmatmul.mubr.f32.vlgmr.msra.gmra.mxu0 %v13637_v3 }
 0x9f6   :  { %5543 = vmatprep.mubr.f32.mxu0 %v13638_v37 }
 0x9f9   :  { %5544 = vmatmul.mubr.f32.gmra.mxu0 %v13639_v31 }
 0x9fa   :  { %5546 = vmatprep.mubr.f32.mxu0 %v13640_v13 }
 0x9fd   :  { %5547 = vmatmul.mubr.f32.gmra.mxu0 %v11740_v5  ;;  %v5117_v5 = vld [vmem:[%s12173_s10 + $0x60] sm:$0xff] }
 0x9fe   :  { %5549 = vmatprep.mubr.f32.mxu0 %v12040_v54  ;;  %5558 = vmatprep.subr.mxu1 %v5117_v5 }
 0x9ff   :  { %5559 = vmatpush3.msra.mxu1 %v5117_v5 }
 0xa00   :  { %5560 = vmatprep.subr.mxu1 %v5116_v12 }
 0xa01   :  { %5561 = vmatpush3.msra.mxu1 %v5116_v12 }
 0xa02   :  { %5562 = vmatprep.subr.mxu1 %v5115_v10 }
 0xa03   :  { %5563 = vmatpush3.msra.mxu1 %v5115_v10 }
 0xa04   :  { %5564 = vmatprep.subr.mxu1 %v5114_v17 }
 0xa05   :  { %5565 = vmatpush3.msra.mxu1 %v5114_v17 }
 0xa06   :  { %5566 = vmatprep.subr.mxu1 %v5113_v23 }
 0xa07   :  { %5567 = vmatpush3.msra.mxu1 %v5113_v23 }
 0xa08   :  { %5568 = vmatprep.subr.mxu1 %v5112_v11 }
 0xa09   :  { %5569 = vmatpush3.msra.mxu1 %v5112_v11 }
 0xa0a   :  { %5570 = vmatprep.subr.mxu1 %v5111_v14 }
 0xa0b   :  { %5571 = vmatpush3.msra.mxu1 %v5111_v14 }
 0xa0c   :  { %5572 = vmatprep.subr.mxu1 %v5110_v42 }
 0xa0d   :  { %5573 = vmatpush3.msra.mxu1 %v5110_v42 }
 0xa0e   :  { %5574 = vmatprep.subr.mxu1 %v5109_v47 }
 0xa0f   :  { %5575 = vmatpush3.msra.mxu1 %v5109_v47 }
 0xa10   :  { %5576 = vmatprep.subr.mxu1 %v5108_v48 }
 0xa11   :  { %5577 = vmatpush3.msra.mxu1 %v5108_v48 }
 0xa12   :  { %5578 = vmatprep.subr.mxu1 %v5107_v9 }
 0xa13   :  { %5579 = vmatpush3.msra.mxu1 %v5107_v9 }
 0xa14   :  { %5580 = vmatprep.subr.mxu1 %v5106_v49 }
 0xa15   :  { %5581 = vmatpush3.msra.mxu1 %v5106_v49 }
 0xa16   :  { %5582 = vmatprep.subr.mxu1 %v5105_v44 }
 0xa17   :  { %5583 = vmatpush3.msra.mxu1 %v5105_v44 }
 0xa95   :  { %v4860_v41 = vpop.f32.mrf.mxu0  ;;  %v4931_v32 = vpop.f32.mrf.mxu1 }
 0xa96   :  { %v4861_v0 = vadd.f32 %v4860_v41, %v13628_v57  ;;  %v4932_v54 = vadd.f32 %v4931_v32, %v13631_v22 }
 0xa97   :  { %v4862_v45 = vpop.f32.mrf.mxu0  ;;  %v4933_v52 = vpop.f32.mrf.mxu1 }
 0xa98   :  { %v5319_v61 = vmul.f32 -1.442695, %v4861_v0  ;;  %v4863_v50 = vadd.f32 %v4862_v45, %v13629_v21  ;;  %v4934_v58 = vadd.f32 %v4933_v52, %v13630_v60  ;;  %v5322_v21 = vld [vmem:[%s12172_s9] ss:$0 sm:$0xff]  ;;  %s5902_s9 = smov [#allocation6]  }
 0xa99   :  { %s5258_s27 = sshll.u32 %s5902_s9, 4  ;;  %s5259_s27 = int_to_ptr.vmem [resolvable:$true] %s5258_s27 }
 0xa9a   :  { %5841 = vpow2.f32 %v5319_v61  ;;  %v5320_v43 = vmul.f32 -1.442695, %v4863_v50  ;;  %v5321_v59 = vmul.f32 -1.442695, %v4934_v58  ;;  %s5857_s4 = scalar_lea.vmem %s5259_s27, 1024  ;;  %p5862_p1 = scmp.lt.s32.totalorder %s5259_s27, %s5259_s27 }
 0xa9b   :  { %p5858_p0 = scmp.ne.s32.totalorder %s5259_s27, %s5857_s4  ;;  %p5863_p2 = scmp.lt.s32.totalorder %s5857_s4, %s5857_s4 }
 0xa9c   :  { %5843 = vpow2.f32 %v5320_v43 }
 0xa9d   :  { %5845 = vpow2.f32 %v5321_v59  ;;  %p5864_p3 = por %p5863_p2, %p5862_p1 }
 0xa9f   :  { %p5865_p4 = pnand %p5864_p3, %p5858_p0 }
 0xaa7   :  { %v5842_v25 = vpop.eup %5841 }
 0xaa8   :  { %v4942_v20 = vadd.f32 1.0, %v5842_v25 }
 0xaa9   :  { %v5844_v55 = vpop.eup %5843 }
 0xaaa   :  { %5847 = vrcp.f32 %v4942_v20  ;;  %v4943_v57 = vadd.f32 1.0, %v5844_v55  ;;  %v5846_v19 = vpop.eup %5845 }
 0xaab   :  { %5849 = vtanh.f32 %v4932_v54  ;;  %v4952_v22 = vadd.f32 1.0, %v5846_v19 }
 0xaac   :  { %5851 = vrcp.f32 %v4943_v57 }
 0xaad   :  { %5853 = vrcp.f32 %v4952_v22 }
 0xab5   :  { %v5542_v33 = vpop.f32.mrf.mxu0 }
 0xab6   :  { %v5064_v53 = vadd.f32 %v5542_v33, %v5322_v21 }
 0xab7   :  { %v5848_v36 = vpop.eup %5847  ;;  %v5058_v60 = vpop.f32.mrf.mxu0 }
 0xab8   :  { %v5850_v29 = vpop.eup %5849  ;;  %v5059_v8 = vadd.f32 %v5322_v21, %v5058_v60  ;;  %v5098_v46 = vmax.f32 %v5064_v53, 0.0 }
 0xab9   :  { %v5852_v16 = vpop.eup %5851  ;;  %v5545_v15 = vpop.f32.mrf.mxu0  ;;  %v4956_v7 = vmul.f32 %v5850_v29, %v5848_v36 }
 0xaba   :  { %v4955_v35 = vmul.f32 %v5852_v16, %v12035_v18  ;;  %v5097_v34 = vmax.f32 %v5059_v8, 0.0  ;;  %v5074_v24 = vadd.f32 %v5545_v15, %v5322_v21  ;;  %v5854_v1 = vpop.eup %5853 }
 0xabb   :  { %v5068_v56 = vpop.f32.mrf.mxu0 }
 0xabc   :  { %v5069_v26 = vadd.f32 %v5322_v21, %v5068_v56  ;;  %5584 = vmatprep.mubr.f32.mxu1 %v5097_v34  ;;  %v4957_v4 = vadd.f32 %v4956_v7, %v4955_v35  ;;  %v5100_v40 = vmax.f32 %v5074_v24, 0.0 }
 0xabd   :  { %v5548_v28 = vpop.f32.mrf.mxu0  ;;  %5585 = vmatmul.mubr.f32.vlgmr.msra.gmra.mxu1 %v5098_v46 }
 0xabe   :  { %v5099_v51 = vmax.f32 %v5069_v26, 0.0  ;;  %5855 = vtanh.f32 %v4957_v4  ;;  %v5084_v30 = vadd.f32 %v5548_v28, %v5322_v21 }
 0xabf   :  { %v5078_v6 = vpop.f32.mrf.mxu0 }
 0xac0   :  { %v5079_v27 = vadd.f32 %v5322_v21, %v5078_v6  ;;  %5587 = vmatprep.mubr.f32.mxu1 %v5099_v51  ;;  %v5102_v18 = vmax.f32 %v5084_v30, 0.0 }
 0xac1   :  { %5588 = vmatmul.mubr.f32.gmra.mxu1 %v5100_v40 }
 0xac2   :  { %v5101_v62 = vmax.f32 %v5079_v27, 0.0 }
 0xac4   :  { %5590 = vmatprep.mubr.f32.mxu1 %v5101_v62 }
 0xac5   :  { %5591 = vmatmul.mubr.f32.gmra.mxu1 %v5102_v18 }
 0xacb   :  { %v5856_v63 = vpop.eup %5855 }
 0xacc   :  { %v4959_v3 = vmul.f32 %v5856_v63, %v5854_v1 }
 0xace   :  { %5550 = vmatmul.mubr.f32.gmra.mxu0 %v4959_v3 }
 0xb8e   :  { %v5551_v37 = vpop.f32.mrf.mxu0 }
 0xb8f   :  { %v5094_v31 = vadd.f32 %v5551_v37, %v5322_v21 }
 0xb90   :  { %v5088_v13 = vpop.f32.mrf.mxu0 }
 0xb91   :  { %v5089_v38 = vadd.f32 %v5322_v21, %v5088_v13  ;;  %v5104_v39 = vmax.f32 %v5094_v31, 0.0 }
 0xb93   :  { %v5103_v2 = vmax.f32 %v5089_v38, 0.0 }
 0xb95   :  { %5593 = vmatprep.mubr.f32.mxu1 %v5103_v2 }
 0xb96   :  { %5594 = vmatmul.mubr.f32.gmra.mxu1 %v5104_v39 }
 0xb97   :  { %5868 = shalt.err (!%p5865_p4)
}
 0xb98   :  { %s5903_s28 = smov 128   ;;  %s5904_s29 = smov 8   ;;  %v5586_v5 = vpop.f32.mrf.mxu1  ;;  %v5323_v45 = vld [vmem:[%s12174_s11] ss:$0 sm:$0xff] }
 0xb99   :  { %5264 = dma.vmem_to_hbm [thread:$0]  %s5259_s27, 1024, %s12176_s13, [#allocation7], %s5903_s28, %s5903_s28, %s5904_s29  }
 0xb9a   :  { %v5187_v12 = vpop.f32.mrf.mxu1  ;;  %s5905_s13 = smov [#allocation4]  }
 0xb9b   :  { %v5226_v23 = vadd.f32 %v5586_v5, %v5187_v12  ;;  %s5249_s6 = sshll.u32 %s5905_s13, 4  ;;  %s5250_s6 = int_to_ptr.vmem [resolvable:$true] %s5249_s6 }
 0xb9c   :  { %v5589_v10 = vpop.f32.mrf.mxu1  ;;  %s5877_s2 = scalar_lea.vmem %s5250_s6, 128  ;;  %p5882_p6 = scmp.lt.s32.totalorder %s5250_s6, %s5250_s6 }
 0xb9d   :  { %p5878_p5 = scmp.ne.s32.totalorder %s5250_s6, %s5877_s2  ;;  %p5883_p7 = scmp.lt.s32.totalorder %s5877_s2, %s5877_s2 }
 0xb9e   :  { %v5197_v17 = vpop.f32.mrf.mxu1 }
 0xb9f   :  { %v5227_v11 = vadd.f32 %v5226_v23, %v5197_v17  ;;  %p5884_p8 = por %p5883_p7, %p5882_p6 }
 0xba0   :  { %v5592_v14 = vpop.f32.mrf.mxu1 }
 0xba1   :  { %v5228_v42 = vadd.f32 %v5589_v10, %v5227_v11  ;;  %p5885_p9 = pnand %p5884_p8, %p5878_p5 }
 0xba2   :  { %v5207_v47 = vpop.f32.mrf.mxu1 }
 0xba3   :  { %v5229_v48 = vadd.f32 %v5228_v42, %v5207_v47 }
 0xba5   :  { %v5230_v49 = vadd.f32 %v5592_v14, %v5229_v48 }
 0xc56   :  { %v5595_v9 = vpop.f32.mrf.mxu1 }
 0xc58   :  { %v5217_v44 = vpop.f32.mrf.mxu1 }
 0xc59   :  { %v5231_v41 = vadd.f32 %v5230_v49, %v5217_v44 }
 0xc5b   :  { %v5232_v0 = vadd.f32 %v5595_v9, %v5231_v41 }
 0xc5d   :  { %v5233_v61 = vmul.f32 0.125, %v5232_v0 }
 0xc5f   :  { %v5241_v50 = vadd.f32 %v5323_v45, %v5233_v61 }
 0xc61   :  { %5242 = vst [vmem:[#allocation4] sm:$0xff] %v5241_v50 }
 0xc62   :  { %5888 = shalt.err (!%p5885_p9)
}
 0xc63   :  { %5252 = dma.vmem_to_hbm [thread:$0]  %s5250_s6, 128, %s12175_s12, [#allocation5]  }
 0xc64   :  { %5897 = dma.done.wait [#allocation5], 128  }
 0xc65   :  { %5898 = vsyncadd [#allocation5], 4294967168 }
 0xc66   :  { %5899 = dma.done.wait [#allocation7], 1024  }
 0xc67   :  { %5900 = vsyncadd [#allocation7], 4294966272 }
 0xc68   :  { %5271 = vsyncpa [#allocation5], 1 }
 0xc69   :  { %5272 = vsyncpa [#allocation7], 1 }

</bundles_post_ra>
